<compile_context>
chip_gen: v6e
topology: v6e:2x2x1
jax: 0.10.0
libtpu: 0.0.40
codegen_flags: <defaults>
</compile_context>

<pallas_src>
import numpy as np
import jax
import jax.numpy as jnp
from jax.experimental import pallas as pl
from jax.experimental.pallas import tpu as pltpu

_EPS = 1e-5
_LANE = 128                       # output channels padded to lane width (dense vst)
_TILE_M = 1024                    # rows per grid step (review: step overhead dominated at 256)
_VMEM_LIMIT = 32 * 1024 * 1024    # safe on v5e/v6e/v7x; raises v5e's 16 MiB default


def _gelu(x):
    # TODO(synk): PyTorch nn.GELU() defaults to the exact erf formulation; the
    # tanh approximation is used here for guaranteed Mosaic lowering (~1e-3).
    c = 0.7978845608028654  # sqrt(2/pi)
    return 0.5 * x * (1.0 + jnp.tanh(c * (x + 0.044715 * x * x * x)))


def _round_up(v, m):
    return (v + m - 1) // m * m


# ----------------------------- Pallas kernels ----------------------------- #

def _mm_shift_gelu_kernel(x_ref, w_ref, shift_ref, o_ref):
    # Full contraction (taps folded into K, BN scale folded into w) in one
    # bf16 MXU dot, f32 epilogue: gelu(acc + shift).
    acc = jnp.dot(x_ref[...], w_ref[...], preferred_element_type=jnp.float32)
    o_ref[...] = _gelu(acc + shift_ref[...]).astype(o_ref.dtype)


def _mm_shift_gelu_res_relu_kernel(x_ref, w_ref, shift_ref, res_ref, o_ref):
    acc = jnp.dot(x_ref[...], w_ref[...], preferred_element_type=jnp.float32)
    y = _gelu(acc + shift_ref[...])
    o_ref[...] = jnp.maximum(y + res_ref[...].astype(jnp.float32), 0.0
                             ).astype(o_ref.dtype)


# ------------------------- shared matmul dispatcher ------------------------ #

def _matmul_bn_gelu(xcol, wt, shift, *, residual_col=None,
                    out_dtype=jnp.bfloat16, tile_m=_TILE_M):
    """gelu(xcol @ wt + shift)  [optionally relu(... + residual_col)].

    xcol : (M, K) activations (cast to bf16), K = ntaps*Cin folded.
    wt   : (K, N) f32 weights with BN scale already folded in.
    shift: (N,)   f32 BN shift.
    """
    xcol = xcol.astype(jnp.bfloat16)
    M, K = xcol.shape
    N = wt.shape[1]
    Np = _round_up(N, _LANE)                     # lane-dense output channels

    tm = min(tile_m, _round_up(M, 16))           # M tile (multiple of 16, bf16)
    # Keep >=2 M tiles when possible so the 'parallel' grid axis can split
    # across the two TensorCores on v7x.
    half = _round_up(max(M // 2, 1), 16)
    if 16 <= half < tm:
        tm = half
    Mp = _round_up(M, tm)

    if Mp != M:
        xcol = jnp.pad(xcol, ((0, Mp - M), (0, 0)))
    wt_p = jnp.pad(wt, ((0, 0), (0, Np - N))).astype(jnp.bfloat16)
    shift_p = jnp.pad(shift.astype(jnp.float32), (0, Np - N)).reshape(1, Np)

    in_specs = [
        pl.BlockSpec((tm, K), lambda m: (m, 0)),     # activations (bf16)
        pl.BlockSpec((K, Np), lambda m: (0, 0)),     # weights: one DMA, reused
        pl.BlockSpec((1, Np), lambda m: (0, 0)),     # folded BN shift
    ]
    args = [xcol, wt_p, shift_p]
    if residual_col is None:
        kernel = _mm_shift_gelu_kernel
    else:
        kernel = _mm_shift_gelu_res_relu_kernel
        res = residual_col.astype(jnp.bfloat16)      # bf16 residual: half the read
        res = jnp.pad(res, ((0, Mp - res.shape[0]), (0, Np - res.shape[1])))
        in_specs.append(pl.BlockSpec((tm, Np), lambda m: (m, 0)))
        args.append(res)

    out = pl.pallas_call(
        kernel,
        out_shape=jax.ShapeDtypeStruct((Mp, Np), out_dtype),
        grid_spec=pltpu.PrefetchScalarGridSpec(
            num_scalar_prefetch=0,
            grid=(Mp // tm,),                        # parallel M-tile axis
            in_specs=in_specs,
            out_specs=pl.BlockSpec((tm, Np), lambda m: (m, 0)),
        ),
        compiler_params=pltpu.CompilerParams(
            dimension_semantics=("parallel",),
            vmem_limit_bytes=_VMEM_LIMIT),
    )(*args)
    return out[:M, :N]


# ------------------------------- glue (JAX) ------------------------------- #

def _im2col_folded(x, ksize, padding, dilation):
    """x: (B, T, H, W, C) -> (M, ntaps*C) bf16, stride-1 conv taps, tap-major.

    TODO(synk): this still materializes the im2col in HBM (bf16 to halve the
    bytes); an in-kernel halo gather (pl.ANY + make_async_copy) would remove
    this traffic entirely for the large-tap dilated convs.
    """
    x = x.astype(jnp.bfloat16)
    B, T, H, W, C = x.shape
    kt, kh, kw = ksize
    pt, ph, pw = padding
    dt, dh, dw = dilation
    if (kt, kh, kw) == (1, 1, 1) and (pt, ph, pw) == (0, 0, 0):
        return x.reshape(B * T * H * W, C), (B, T, H, W)
    xp = jnp.pad(x, ((0, 0), (pt, pt), (ph, ph), (pw, pw), (0, 0)))
    To = T + 2 * pt - dt * (kt - 1)
    Ho = H + 2 * ph - dh * (kh - 1)
    Wo = W + 2 * pw - dw * (kw - 1)
    cols = []
    for it in range(kt):
        for ih in range(kh):
            for iw in range(kw):
                sl = xp[:, it * dt:it * dt + To,
                        ih * dh:ih * dh + Ho,
                        iw * dw:iw * dw + Wo, :]
                cols.append(sl.reshape(B * To * Ho * Wo, C))
    xcol = jnp.concatenate(cols, axis=-1)  # (M, ntaps*C), tap-major / C-minor
    return xcol, (B, To, Ho, Wo)


def _fold_weight(w, scale):
    """(Cout,Cin,kt,kh,kw) + BN scale(Cout) -> (ntaps*Cin, Cout) f32, scale folded."""
    Cout = w.shape[0]
    K = w.shape[1] * w.shape[2] * w.shape[3] * w.shape[4]
    wt = jnp.transpose(w, (2, 3, 4, 1, 0)).reshape(K, Cout)
    return wt * scale.reshape(1, Cout)


def conv3d_bn_gelu(x, p, *, residual=None, out_dtype=jnp.bfloat16,
                   tile_m=_TILE_M):
    """BasicConv3d: conv3d(no bias) + folded BN + GELU in one pallas_call.

    x: (B,T,H,W,Cin) channels-last.  If `residual` is given, also computes
    relu(gelu(bn(conv)) + residual) in the same epilogue.
    """
    w = p["w"]
    Cout, Cin, kt, kh, kw = w.shape
    xcol, (B, To, Ho, Wo) = _im2col_folded(x, (kt, kh, kw), p["pad"], p["dil"])
    wt = _fold_weight(w, p["scale"])
    res_col = None
    if residual is not None:
        res_col = residual.reshape(-1, residual.shape[-1])
    out = _matmul_bn_gelu(xcol, wt, p["shift"], residual_col=res_col,
                          out_dtype=out_dtype, tile_m=tile_m)
    return out.reshape(B, To, Ho, Wo, Cout)


def fused_pointwise_convs(x, plist, *, tile_m=_TILE_M):
    """N shared-input 1x1x1 BasicConv3d layers in ONE pallas_call.

    Weights are stacked along the lane (output-channel) axis so the raw
    activation is read once instead of len(plist) times; returns one bf16
    (B,T,H,W,Cout_i) output per param dict.
    """
    B, T, H, W, Cin = x.shape
    M = B * T * H * W
    xcol = x.reshape(M, Cin)
    wts = [_fold_weight(p["w"], p["scale"]) for p in plist]      # (Cin, Cout_i)
    couts = [wt.shape[1] for wt in wts]
    wt = jnp.concatenate(wts, axis=1)                            # (Cin, sum Cout)
    shift = jnp.concatenate([p["shift"] for p in plist])
    out = _matmul_bn_gelu(xcol, wt, shift, tile_m=tile_m)        # (M, sum Cout)
    outs, off = [], 0
    for c in couts:
        outs.append(out[:, off:off + c].reshape(B, T, H, W, c))
        off += c
    return outs


# ----------------------------- parameter setup ---------------------------- #

def _to3(v):
    return (v, v, v) if isinstance(v, int) else tuple(v)


def make_basicconv_params(key, cin, cout, ksize, pad=0, dil=1):
    ksize, pad, dil = _to3(ksize), _to3(pad), _to3(dil)
    kt, kh, kw = ksize
    k_w, k_g, k_b = jax.random.split(key, 3)
    fan_in = cin * kt * kh * kw
    w = jax.random.normal(k_w, (cout, cin, kt, kh, kw), jnp.float32)
    w = w * (2.0 / fan_in) ** 0.5
    gamma = 1.0 + 0.1 * jax.random.normal(k_g, (cout,), jnp.float32)
    beta = 0.1 * jax.random.normal(k_b, (cout,), jnp.float32)
    # TODO(synk): BatchNorm3d is implemented in inference mode (running stats
    # folded into an affine scale/shift); training-mode batch stats not computed.
    run_mean = jnp.zeros((cout,), jnp.float32)
    run_var = jnp.ones((cout,), jnp.float32)
    scale = gamma / jnp.sqrt(run_var + _EPS)
    shift = beta - run_mean * scale
    return dict(w=w, scale=scale, shift=shift, pad=pad, dil=dil)


def make_rfb3d_params(key, in_ch, out_ch):
    cfgs = {
        "branch0": [(in_ch, out_ch, 1, 0, 1)],
        "branch1": [(in_ch, out_ch, 1, 0, 1),
                    (out_ch, out_ch, (1, 1, 3), (0, 0, 1), 1),
                    (out_ch, out_ch, (1, 3, 1), (0, 1, 0), 1),
                    (out_ch, out_ch, 3, (1, 3, 3), (1, 3, 3))],
        "branch2": [(in_ch, out_ch, 1, 0, 1),
                    (out_ch, out_ch, (3, 3, 5), (1, 1, 2), 1),
                    (out_ch, out_ch, (3, 5, 3), (1, 2, 1), 1),
                    (out_ch, out_ch, 3, (1, 5, 5), (1, 5, 5))],
        "branch3": [(in_ch, out_ch, 1, 0, 1),
                    (out_ch, out_ch, (5, 5, 7), (2, 2, 3), 1),
                    (out_ch, out_ch, (5, 7, 5), (2, 3, 2), 1),
                    (out_ch, out_ch, 3, (1, 7, 7), (1, 7, 7))],
        "conv_cat": [(4 * out_ch, out_ch, 3, 1, 1)],
        "conv_res": [(in_ch, out_ch, 1, 0, 1)],
    }
    params = {}
    idx = 0  # deterministic (no hash()) key folding
    for name, layers in cfgs.items():
        plist = []
        for cfg in layers:
            plist.append(make_basicconv_params(jax.random.fold_in(key, idx), *cfg))
            idx += 1
        params[name] = plist
    return params


# --------------------------------- forward -------------------------------- #

def rfb3d_forward(x_ncthw, params, *, tile_m=_TILE_M):
    x = jnp.transpose(x_ncthw, (0, 2, 3, 4, 1))  # -> (B, T, H, W, C)

    # The five 1x1x1 convs sharing the raw input (four branch heads + conv_res)
    # run as one fused pallas_call (weights stacked along the lane axis).
    heads = [params["branch0"][0], params["branch1"][0], params["branch2"][0],
             params["branch3"][0], params["conv_res"][0]]
    x0, h1, h2, h3, x_res = fused_pointwise_convs(x, heads, tile_m=tile_m)

    def run_tail(h, plist):
        for p in plist[1:]:
            h = conv3d_bn_gelu(h, p, tile_m=tile_m)
        return h

    x1 = run_tail(h1, params["branch1"])
    x2 = run_tail(h2, params["branch2"])
    x3 = run_tail(h3, params["branch3"])

    # TODO(synk): the channel concat could be fused into conv_cat as 4 K-partial
    # matmuls to skip this (small) HBM round-trip; left as a bf16 concat.
    xcat_in = jnp.concatenate([x0, x1, x2, x3], axis=-1)
    pc = params["conv_cat"][0]
    # Final epilogue fuses the whole tail: relu(gelu(bn(conv_cat(cat))) + conv_res(x)).
    out = conv3d_bn_gelu(xcat_in, pc, residual=x_res,
                         out_dtype=jnp.float32, tile_m=tile_m)
    return jnp.transpose(out, (0, 4, 1, 2, 3))  # back to NCTHW


# ---------------------------- pure-JAX reference --------------------------- #

def _ref_conv(x, w, scale, shift, pad, dil):
    wd = jnp.transpose(w, (2, 3, 4, 1, 0))  # DHWIO
    y = jax.lax.conv_general_dilated(
        x, wd, window_strides=(1, 1, 1),
        padding=[(p, p) for p in pad], rhs_dilation=dil,
        dimension_numbers=("NDHWC", "DHWIO", "NDHWC"),
        precision=jax.lax.Precision.HIGHEST)
    y = y * scale.reshape(1, 1, 1, 1, -1) + shift.reshape(1, 1, 1, 1, -1)
    return _gelu(y)


def rfb3d_reference(x_ncthw, params):
    x = jnp.transpose(x_ncthw, (0, 2, 3, 4, 1))

    def run_seq(h, plist):
        for p in plist:
            h = _ref_conv(h, p["w"], p["scale"], p["shift"], p["pad"], p["dil"])
        return h

    x0 = run_seq(x, params["branch0"])
    x1 = run_seq(x, params["branch1"])
    x2 = run_seq(x, params["branch2"])
    x3 = run_seq(x, params["branch3"])
    xcat_in = jnp.concatenate([x0, x1, x2, x3], axis=-1)
    pc = params["conv_cat"][0]
    x_cat = _ref_conv(xcat_in, pc["w"], pc["scale"], pc["shift"],
                      pc["pad"], pc["dil"])
    pr = params["conv_res"][0]
    res = _ref_conv(x, pr["w"], pr["scale"], pr["shift"], pr["pad"], pr["dil"])
    out = jnp.maximum(x_cat + res, 0.0)
    return jnp.transpose(out, (0, 4, 1, 2, 3))


# ----------------------------------- main ---------------------------------- #

if __name__ == "__main__":
    key = jax.random.PRNGKey(0)
    k_x, k_p = jax.random.split(key)

    B, Cin, T, H, W = 2, 4, 4, 8, 8
    Cout = 8
    x = jax.random.normal(k_x, (B, Cin, T, H, W), jnp.float32)
    params = make_rfb3d_params(k_p, Cin, Cout)

    fwd = jax.jit(lambda inp: rfb3d_forward(inp, params))
    out = jax.block_until_ready(fwd(x))

    assert out.shape == (B, Cout, T, H, W), out.shape

    ref = jax.block_until_ready(rfb3d_reference(x, params))
    out_np, ref_np = np.asarray(out), np.asarray(ref)
    assert np.all(np.isfinite(out_np))
    # Tolerance accounts for bf16 MXU inputs / bf16 intermediates vs the f32 reference.
    assert np.allclose(out_np, ref_np, rtol=5e-2, atol=8e-2), (
        "max abs diff = %g" % float(np.max(np.abs(out_np - ref_np))))

    print("KERNEL_OK")
</pallas_src>

<mosaic_0001>
module attributes {stable_mosaic.version = 11 : i64} {
  func.func @_mm_shift_gelu_kernel(%arg0: i32, %arg1: memref<256x4xbf16, #tpu.memory_space<vmem>>, %arg2: memref<4x128xbf16, #tpu.memory_space<vmem>>, %arg3: memref<1x128xf32, #tpu.memory_space<vmem>>, %arg4: memref<256x128xbf16, #tpu.memory_space<vmem>>) attributes {dimension_semantics = [#tpu.dimension_semantics<parallel>], iteration_bounds = array<i64: 2>, scalar_prefetch = 0 : i64, scratch_operands = 0 : i64, tpu.core_type = #tpu.core_type<tc>, window_params = [{transform_indices = @transform_0, window_bounds = array<i64: 256, 4>}, {pipeline_mode = #tpu.pipeline_mode<synchronous>, transform_indices = @transform_1, window_bounds = array<i64: 4, 128>}, {pipeline_mode = #tpu.pipeline_mode<synchronous>, transform_indices = @transform_2, window_bounds = array<i64: 1, 128>}, {transform_indices = @transform_3, window_bounds = array<i64: 256, 128>}]} {
    %c0 = arith.constant 0 : index
    %c0_0 = arith.constant 0 : index
    %0 = vector.load %arg1[%c0, %c0_0] : memref<256x4xbf16, #tpu.memory_space<vmem>>, vector<256x4xbf16>
    %c0_1 = arith.constant 0 : index
    %c0_2 = arith.constant 0 : index
    %1 = vector.load %arg2[%c0_1, %c0_2] : memref<4x128xbf16, #tpu.memory_space<vmem>>, vector<4x128xbf16>
    %cst = arith.constant dense<0.000000e+00> : vector<256x128xf32>
    %2 = tpu.matmul %0, %1, %cst {dimension_numbers = #tpu.dot_dimension_numbers<[1], [0], [0], [1], [0, 0, 1, 1], [], []>} : vector<256x4xbf16>, vector<4x128xbf16>, vector<256x128xf32> -> vector<256x128xf32>
    %c0_3 = arith.constant 0 : index
    %c0_4 = arith.constant 0 : index
    %3 = vector.load %arg3[%c0_3, %c0_4] : memref<1x128xf32, #tpu.memory_space<vmem>>, vector<1x128xf32>
    %4 = vector.broadcast %3 : vector<1x128xf32> to vector<256x128xf32>
    %5 = arith.addf %2, %4 : vector<256x128xf32>
    %cst_5 = arith.constant 5.000000e-01 : f32
    %6 = vector.broadcast %cst_5 : f32 to vector<256x128xf32>
    %7 = arith.mulf %6, %5 : vector<256x128xf32>
    %cst_6 = arith.constant 4.471500e-02 : f32
    %8 = vector.broadcast %cst_6 : f32 to vector<256x128xf32>
    %9 = arith.mulf %8, %5 : vector<256x128xf32>
    %10 = arith.mulf %9, %5 : vector<256x128xf32>
    %11 = arith.mulf %10, %5 : vector<256x128xf32>
    %12 = arith.addf %5, %11 : vector<256x128xf32>
    %cst_7 = arith.constant 0.797884583 : f32
    %13 = vector.broadcast %cst_7 : f32 to vector<256x128xf32>
    %14 = arith.mulf %13, %12 : vector<256x128xf32>
    %15 = math.tanh %14 : vector<256x128xf32>
    %cst_8 = arith.constant 1.000000e+00 : f32
    %16 = vector.broadcast %cst_8 : f32 to vector<256x128xf32>
    %17 = arith.addf %16, %15 : vector<256x128xf32>
    %18 = arith.mulf %7, %17 : vector<256x128xf32>
    %19 = arith.truncf %18 : vector<256x128xf32> to vector<256x128xbf16>
    %c0_9 = arith.constant 0 : index
    %c0_10 = arith.constant 0 : index
    %20 = vector.load %arg4[%c0_9, %c0_10] : memref<256x128xbf16, #tpu.memory_space<vmem>>, vector<256x128xbf16>
    tpu.vector_store %arg4[%c0_9, %c0_10], %19 {strides = array<i32>} : memref<256x128xbf16, #tpu.memory_space<vmem>>, vector<256x128xbf16>,
    return
  }
  func.func @transform_0(%arg0: i32) -> (i32, i32) {
    %c0_i32 = arith.constant 0 : i32
    %c0_i32_0 = arith.constant 0 : i32
    return %arg0, %c0_i32 : i32, i32
  }
  func.func @transform_1(%arg0: i32) -> (i32, i32) {
    %c0_i32 = arith.constant 0 : i32
    %c0_i32_0 = arith.constant 0 : i32
    %c0_i32_1 = arith.constant 0 : i32
    return %c0_i32, %c0_i32_0 : i32, i32
  }
  func.func @transform_2(%arg0: i32) -> (i32, i32) {
    %c0_i32 = arith.constant 0 : i32
    %c0_i32_0 = arith.constant 0 : i32
    %c0_i32_1 = arith.constant 0 : i32
    return %c0_i32, %c0_i32_0 : i32, i32
  }
  func.func @transform_3(%arg0: i32) -> (i32, i32) {
    %c0_i32 = arith.constant 0 : i32
    %c0_i32_0 = arith.constant 0 : i32
    return %arg0, %c0_i32 : i32, i32
  }
}

module attributes {stable_mosaic.version = 11 : i64} {
  func.func @_mm_shift_gelu_kernel(%arg0: i32, %arg1: memref<256x24xbf16, #tpu.memory_space<vmem>>, %arg2: memref<24x128xbf16, #tpu.memory_space<vmem>>, %arg3: memref<1x128xf32, #tpu.memory_space<vmem>>, %arg4: memref<256x128xbf16, #tpu.memory_space<vmem>>) attributes {dimension_semantics = [#tpu.dimension_semantics<parallel>], iteration_bounds = array<i64: 2>, scalar_prefetch = 0 : i64, scratch_operands = 0 : i64, tpu.core_type = #tpu.core_type<tc>, window_params = [{transform_indices = @transform_0, window_bounds = array<i64: 256, 24>}, {pipeline_mode = #tpu.pipeline_mode<synchronous>, transform_indices = @transform_1, window_bounds = array<i64: 24, 128>}, {pipeline_mode = #tpu.pipeline_mode<synchronous>, transform_indices = @transform_2, window_bounds = array<i64: 1, 128>}, {transform_indices = @transform_3, window_bounds = array<i64: 256, 128>}]} {
    %c0 = arith.constant 0 : index
    %c0_0 = arith.constant 0 : index
    %0 = vector.load %arg1[%c0, %c0_0] : memref<256x24xbf16, #tpu.memory_space<vmem>>, vector<256x24xbf16>
    %c0_1 = arith.constant 0 : index
    %c0_2 = arith.constant 0 : index
    %1 = vector.load %arg2[%c0_1, %c0_2] : memref<24x128xbf16, #tpu.memory_space<vmem>>, vector<24x128xbf16>
    %cst = arith.constant dense<0.000000e+00> : vector<256x128xf32>
    %2 = tpu.matmul %0, %1, %cst {dimension_numbers = #tpu.dot_dimension_numbers<[1], [0], [0], [1], [0, 0, 1, 1], [], []>} : vector<256x24xbf16>, vector<24x128xbf16>, vector<256x128xf32> -> vector<256x128xf32>
    %c0_3 = arith.constant 0 : index
    %c0_4 = arith.constant 0 : index
    %3 = vector.load %arg3[%c0_3, %c0_4] : memref<1x128xf32, #tpu.memory_space<vmem>>, vector<1x128xf32>
    %4 = vector.broadcast %3 : vector<1x128xf32> to vector<256x128xf32>
    %5 = arith.addf %2, %4 : vector<256x128xf32>
    %cst_5 = arith.constant 5.000000e-01 : f32
    %6 = vector.broadcast %cst_5 : f32 to vector<256x128xf32>
    %7 = arith.mulf %6, %5 : vector<256x128xf32>
    %cst_6 = arith.constant 4.471500e-02 : f32
    %8 = vector.broadcast %cst_6 : f32 to vector<256x128xf32>
    %9 = arith.mulf %8, %5 : vector<256x128xf32>
    %10 = arith.mulf %9, %5 : vector<256x128xf32>
    %11 = arith.mulf %10, %5 : vector<256x128xf32>
    %12 = arith.addf %5, %11 : vector<256x128xf32>
    %cst_7 = arith.constant 0.797884583 : f32
    %13 = vector.broadcast %cst_7 : f32 to vector<256x128xf32>
    %14 = arith.mulf %13, %12 : vector<256x128xf32>
    %15 = math.tanh %14 : vector<256x128xf32>
    %cst_8 = arith.constant 1.000000e+00 : f32
    %16 = vector.broadcast %cst_8 : f32 to vector<256x128xf32>
    %17 = arith.addf %16, %15 : vector<256x128xf32>
    %18 = arith.mulf %7, %17 : vector<256x128xf32>
    %19 = arith.truncf %18 : vector<256x128xf32> to vector<256x128xbf16>
    %c0_9 = arith.constant 0 : index
    %c0_10 = arith.constant 0 : index
    %20 = vector.load %arg4[%c0_9, %c0_10] : memref<256x128xbf16, #tpu.memory_space<vmem>>, vector<256x128xbf16>
    tpu.vector_store %arg4[%c0_9, %c0_10], %19 {strides = array<i32>} : memref<256x128xbf16, #tpu.memory_space<vmem>>, vector<256x128xbf16>,
    return
  }
  func.func @transform_0(%arg0: i32) -> (i32, i32) {
    %c0_i32 = arith.constant 0 : i32
    %c0_i32_0 = arith.constant 0 : i32
    return %arg0, %c0_i32 : i32, i32
  }
  func.func @transform_1(%arg0: i32) -> (i32, i32) {
    %c0_i32 = arith.constant 0 : i32
    %c0_i32_0 = arith.constant 0 : i32
    %c0_i32_1 = arith.constant 0 : i32
    return %c0_i32, %c0_i32_0 : i32, i32
  }
  func.func @transform_2(%arg0: i32) -> (i32, i32) {
    %c0_i32 = arith.constant 0 : i32
    %c0_i32_0 = arith.constant 0 : i32
    %c0_i32_1 = arith.constant 0 : i32
    return %c0_i32, %c0_i32_0 : i32, i32
  }
  func.func @transform_3(%arg0: i32) -> (i32, i32) {
    %c0_i32 = arith.constant 0 : i32
    %c0_i32_0 = arith.constant 0 : i32
    return %arg0, %c0_i32 : i32, i32
  }
}

module attributes {stable_mosaic.version = 11 : i64} {
  func.func @_mm_shift_gelu_kernel(%arg0: i32, %arg1: memref<256x216xbf16, #tpu.memory_space<vmem>>, %arg2: memref<216x128xbf16, #tpu.memory_space<vmem>>, %arg3: memref<1x128xf32, #tpu.memory_space<vmem>>, %arg4: memref<256x128xbf16, #tpu.memory_space<vmem>>) attributes {dimension_semantics = [#tpu.dimension_semantics<parallel>], iteration_bounds = array<i64: 2>, scalar_prefetch = 0 : i64, scratch_operands = 0 : i64, tpu.core_type = #tpu.core_type<tc>, window_params = [{transform_indices = @transform_0, window_bounds = array<i64: 256, 216>}, {pipeline_mode = #tpu.pipeline_mode<synchronous>, transform_indices = @transform_1, window_bounds = array<i64: 216, 128>}, {pipeline_mode = #tpu.pipeline_mode<synchronous>, transform_indices = @transform_2, window_bounds = array<i64: 1, 128>}, {transform_indices = @transform_3, window_bounds = array<i64: 256, 128>}]} {
    %c0 = arith.constant 0 : index
    %c0_0 = arith.constant 0 : index
    %0 = vector.load %arg1[%c0, %c0_0] : memref<256x216xbf16, #tpu.memory_space<vmem>>, vector<256x216xbf16>
    %c0_1 = arith.constant 0 : index
    %c0_2 = arith.constant 0 : index
    %1 = vector.load %arg2[%c0_1, %c0_2] : memref<216x128xbf16, #tpu.memory_space<vmem>>, vector<216x128xbf16>
    %cst = arith.constant dense<0.000000e+00> : vector<256x128xf32>
    %2 = tpu.matmul %0, %1, %cst {dimension_numbers = #tpu.dot_dimension_numbers<[1], [0], [0], [1], [0, 0, 1, 1], [], []>} : vector<256x216xbf16>, vector<216x128xbf16>, vector<256x128xf32> -> vector<256x128xf32>
    %c0_3 = arith.constant 0 : index
    %c0_4 = arith.constant 0 : index
    %3 = vector.load %arg3[%c0_3, %c0_4] : memref<1x128xf32, #tpu.memory_space<vmem>>, vector<1x128xf32>
    %4 = vector.broadcast %3 : vector<1x128xf32> to vector<256x128xf32>
    %5 = arith.addf %2, %4 : vector<256x128xf32>
    %cst_5 = arith.constant 5.000000e-01 : f32
    %6 = vector.broadcast %cst_5 : f32 to vector<256x128xf32>
    %7 = arith.mulf %6, %5 : vector<256x128xf32>
    %cst_6 = arith.constant 4.471500e-02 : f32
    %8 = vector.broadcast %cst_6 : f32 to vector<256x128xf32>
    %9 = arith.mulf %8, %5 : vector<256x128xf32>
    %10 = arith.mulf %9, %5 : vector<256x128xf32>
    %11 = arith.mulf %10, %5 : vector<256x128xf32>
    %12 = arith.addf %5, %11 : vector<256x128xf32>
    %cst_7 = arith.constant 0.797884583 : f32
    %13 = vector.broadcast %cst_7 : f32 to vector<256x128xf32>
    %14 = arith.mulf %13, %12 : vector<256x128xf32>
    %15 = math.tanh %14 : vector<256x128xf32>
    %cst_8 = arith.constant 1.000000e+00 : f32
    %16 = vector.broadcast %cst_8 : f32 to vector<256x128xf32>
    %17 = arith.addf %16, %15 : vector<256x128xf32>
    %18 = arith.mulf %7, %17 : vector<256x128xf32>
    %19 = arith.truncf %18 : vector<256x128xf32> to vector<256x128xbf16>
    %c0_9 = arith.constant 0 : index
    %c0_10 = arith.constant 0 : index
    %20 = vector.load %arg4[%c0_9, %c0_10] : memref<256x128xbf16, #tpu.memory_space<vmem>>, vector<256x128xbf16>
    tpu.vector_store %arg4[%c0_9, %c0_10], %19 {strides = array<i32>} : memref<256x128xbf16, #tpu.memory_space<vmem>>, vector<256x128xbf16>,
    return
  }
  func.func @transform_0(%arg0: i32) -> (i32, i32) {
    %c0_i32 = arith.constant 0 : i32
    %c0_i32_0 = arith.constant 0 : i32
    return %arg0, %c0_i32 : i32, i32
  }
  func.func @transform_1(%arg0: i32) -> (i32, i32) {
    %c0_i32 = arith.constant 0 : i32
    %c0_i32_0 = arith.constant 0 : i32
    %c0_i32_1 = arith.constant 0 : i32
    return %c0_i32, %c0_i32_0 : i32, i32
  }
  func.func @transform_2(%arg0: i32) -> (i32, i32) {
    %c0_i32 = arith.constant 0 : i32
    %c0_i32_0 = arith.constant 0 : i32
    %c0_i32_1 = arith.constant 0 : i32
    return %c0_i32, %c0_i32_0 : i32, i32
  }
  func.func @transform_3(%arg0: i32) -> (i32, i32) {
    %c0_i32 = arith.constant 0 : i32
    %c0_i32_0 = arith.constant 0 : i32
    return %arg0, %c0_i32 : i32, i32
  }
}

module attributes {stable_mosaic.version = 11 : i64} {
  func.func @_mm_shift_gelu_kernel(%arg0: i32, %arg1: memref<256x360xbf16, #tpu.memory_space<vmem>>, %arg2: memref<360x128xbf16, #tpu.memory_space<vmem>>, %arg3: memref<1x128xf32, #tpu.memory_space<vmem>>, %arg4: memref<256x128xbf16, #tpu.memory_space<vmem>>) attributes {dimension_semantics = [#tpu.dimension_semantics<parallel>], iteration_bounds = array<i64: 2>, scalar_prefetch = 0 : i64, scratch_operands = 0 : i64, tpu.core_type = #tpu.core_type<tc>, window_params = [{transform_indices = @transform_0, window_bounds = array<i64: 256, 360>}, {pipeline_mode = #tpu.pipeline_mode<synchronous>, transform_indices = @transform_1, window_bounds = array<i64: 360, 128>}, {pipeline_mode = #tpu.pipeline_mode<synchronous>, transform_indices = @transform_2, window_bounds = array<i64: 1, 128>}, {transform_indices = @transform_3, window_bounds = array<i64: 256, 128>}]} {
    %c0 = arith.constant 0 : index
    %c0_0 = arith.constant 0 : index
    %0 = vector.load %arg1[%c0, %c0_0] : memref<256x360xbf16, #tpu.memory_space<vmem>>, vector<256x360xbf16>
    %c0_1 = arith.constant 0 : index
    %c0_2 = arith.constant 0 : index
    %1 = vector.load %arg2[%c0_1, %c0_2] : memref<360x128xbf16, #tpu.memory_space<vmem>>, vector<360x128xbf16>
    %cst = arith.constant dense<0.000000e+00> : vector<256x128xf32>
    %2 = tpu.matmul %0, %1, %cst {dimension_numbers = #tpu.dot_dimension_numbers<[1], [0], [0], [1], [0, 0, 1, 1], [], []>} : vector<256x360xbf16>, vector<360x128xbf16>, vector<256x128xf32> -> vector<256x128xf32>
    %c0_3 = arith.constant 0 : index
    %c0_4 = arith.constant 0 : index
    %3 = vector.load %arg3[%c0_3, %c0_4] : memref<1x128xf32, #tpu.memory_space<vmem>>, vector<1x128xf32>
    %4 = vector.broadcast %3 : vector<1x128xf32> to vector<256x128xf32>
    %5 = arith.addf %2, %4 : vector<256x128xf32>
    %cst_5 = arith.constant 5.000000e-01 : f32
    %6 = vector.broadcast %cst_5 : f32 to vector<256x128xf32>
    %7 = arith.mulf %6, %5 : vector<256x128xf32>
    %cst_6 = arith.constant 4.471500e-02 : f32
    %8 = vector.broadcast %cst_6 : f32 to vector<256x128xf32>
    %9 = arith.mulf %8, %5 : vector<256x128xf32>
    %10 = arith.mulf %9, %5 : vector<256x128xf32>
    %11 = arith.mulf %10, %5 : vector<256x128xf32>
    %12 = arith.addf %5, %11 : vector<256x128xf32>
    %cst_7 = arith.constant 0.797884583 : f32
    %13 = vector.broadcast %cst_7 : f32 to vector<256x128xf32>
    %14 = arith.mulf %13, %12 : vector<256x128xf32>
    %15 = math.tanh %14 : vector<256x128xf32>
    %cst_8 = arith.constant 1.000000e+00 : f32
    %16 = vector.broadcast %cst_8 : f32 to vector<256x128xf32>
    %17 = arith.addf %16, %15 : vector<256x128xf32>
    %18 = arith.mulf %7, %17 : vector<256x128xf32>
    %19 = arith.truncf %18 : vector<256x128xf32> to vector<256x128xbf16>
    %c0_9 = arith.constant 0 : index
    %c0_10 = arith.constant 0 : index
    %20 = vector.load %arg4[%c0_9, %c0_10] : memref<256x128xbf16, #tpu.memory_space<vmem>>, vector<256x128xbf16>
    tpu.vector_store %arg4[%c0_9, %c0_10], %19 {strides = array<i32>} : memref<256x128xbf16, #tpu.memory_space<vmem>>, vector<256x128xbf16>,
    return
  }
  func.func @transform_0(%arg0: i32) -> (i32, i32) {
    %c0_i32 = arith.constant 0 : i32
    %c0_i32_0 = arith.constant 0 : i32
    return %arg0, %c0_i32 : i32, i32
  }
  func.func @transform_1(%arg0: i32) -> (i32, i32) {
    %c0_i32 = arith.constant 0 : i32
    %c0_i32_0 = arith.constant 0 : i32
    %c0_i32_1 = arith.constant 0 : i32
    return %c0_i32, %c0_i32_0 : i32, i32
  }
  func.func @transform_2(%arg0: i32) -> (i32, i32) {
    %c0_i32 = arith.constant 0 : i32
    %c0_i32_0 = arith.constant 0 : i32
    %c0_i32_1 = arith.constant 0 : i32
    return %c0_i32, %c0_i32_0 : i32, i32
  }
  func.func @transform_3(%arg0: i32) -> (i32, i32) {
    %c0_i32 = arith.constant 0 : i32
    %c0_i32_0 = arith.constant 0 : i32
    return %arg0, %c0_i32 : i32, i32
  }
}

module attributes {stable_mosaic.version = 11 : i64} {
  func.func @_mm_shift_gelu_kernel(%arg0: i32, %arg1: memref<256x1400xbf16, #tpu.memory_space<vmem>>, %arg2: memref<1400x128xbf16, #tpu.memory_space<vmem>>, %arg3: memref<1x128xf32, #tpu.memory_space<vmem>>, %arg4: memref<256x128xbf16, #tpu.memory_space<vmem>>) attributes {dimension_semantics = [#tpu.dimension_semantics<parallel>], iteration_bounds = array<i64: 2>, scalar_prefetch = 0 : i64, scratch_operands = 0 : i64, tpu.core_type = #tpu.core_type<tc>, window_params = [{transform_indices = @transform_0, window_bounds = array<i64: 256, 1400>}, {pipeline_mode = #tpu.pipeline_mode<synchronous>, transform_indices = @transform_1, window_bounds = array<i64: 1400, 128>}, {pipeline_mode = #tpu.pipeline_mode<synchronous>, transform_indices = @transform_2, window_bounds = array<i64: 1, 128>}, {transform_indices = @transform_3, window_bounds = array<i64: 256, 128>}]} {
    %c0 = arith.constant 0 : index
    %c0_0 = arith.constant 0 : index
    %0 = vector.load %arg1[%c0, %c0_0] : memref<256x1400xbf16, #tpu.memory_space<vmem>>, vector<256x1400xbf16>
    %c0_1 = arith.constant 0 : index
    %c0_2 = arith.constant 0 : index
    %1 = vector.load %arg2[%c0_1, %c0_2] : memref<1400x128xbf16, #tpu.memory_space<vmem>>, vector<1400x128xbf16>
    %cst = arith.constant dense<0.000000e+00> : vector<256x128xf32>
    %2 = tpu.matmul %0, %1, %cst {dimension_numbers = #tpu.dot_dimension_numbers<[1], [0], [0], [1], [0, 0, 1, 1], [], []>} : vector<256x1400xbf16>, vector<1400x128xbf16>, vector<256x128xf32> -> vector<256x128xf32>
    %c0_3 = arith.constant 0 : index
    %c0_4 = arith.constant 0 : index
    %3 = vector.load %arg3[%c0_3, %c0_4] : memref<1x128xf32, #tpu.memory_space<vmem>>, vector<1x128xf32>
    %4 = vector.broadcast %3 : vector<1x128xf32> to vector<256x128xf32>
    %5 = arith.addf %2, %4 : vector<256x128xf32>
    %cst_5 = arith.constant 5.000000e-01 : f32
    %6 = vector.broadcast %cst_5 : f32 to vector<256x128xf32>
    %7 = arith.mulf %6, %5 : vector<256x128xf32>
    %cst_6 = arith.constant 4.471500e-02 : f32
    %8 = vector.broadcast %cst_6 : f32 to vector<256x128xf32>
    %9 = arith.mulf %8, %5 : vector<256x128xf32>
    %10 = arith.mulf %9, %5 : vector<256x128xf32>
    %11 = arith.mulf %10, %5 : vector<256x128xf32>
    %12 = arith.addf %5, %11 : vector<256x128xf32>
    %cst_7 = arith.constant 0.797884583 : f32
    %13 = vector.broadcast %cst_7 : f32 to vector<256x128xf32>
    %14 = arith.mulf %13, %12 : vector<256x128xf32>
    %15 = math.tanh %14 : vector<256x128xf32>
    %cst_8 = arith.constant 1.000000e+00 : f32
    %16 = vector.broadcast %cst_8 : f32 to vector<256x128xf32>
    %17 = arith.addf %16, %15 : vector<256x128xf32>
    %18 = arith.mulf %7, %17 : vector<256x128xf32>
    %19 = arith.truncf %18 : vector<256x128xf32> to vector<256x128xbf16>
    %c0_9 = arith.constant 0 : index
    %c0_10 = arith.constant 0 : index
    %20 = vector.load %arg4[%c0_9, %c0_10] : memref<256x128xbf16, #tpu.memory_space<vmem>>, vector<256x128xbf16>
    tpu.vector_store %arg4[%c0_9, %c0_10], %19 {strides = array<i32>} : memref<256x128xbf16, #tpu.memory_space<vmem>>, vector<256x128xbf16>,
    return
  }
  func.func @transform_0(%arg0: i32) -> (i32, i32) {
    %c0_i32 = arith.constant 0 : i32
    %c0_i32_0 = arith.constant 0 : i32
    return %arg0, %c0_i32 : i32, i32
  }
  func.func @transform_1(%arg0: i32) -> (i32, i32) {
    %c0_i32 = arith.constant 0 : i32
    %c0_i32_0 = arith.constant 0 : i32
    %c0_i32_1 = arith.constant 0 : i32
    return %c0_i32, %c0_i32_0 : i32, i32
  }
  func.func @transform_2(%arg0: i32) -> (i32, i32) {
    %c0_i32 = arith.constant 0 : i32
    %c0_i32_0 = arith.constant 0 : i32
    %c0_i32_1 = arith.constant 0 : i32
    return %c0_i32, %c0_i32_0 : i32, i32
  }
  func.func @transform_3(%arg0: i32) -> (i32, i32) {
    %c0_i32 = arith.constant 0 : i32
    %c0_i32_0 = arith.constant 0 : i32
    return %arg0, %c0_i32 : i32, i32
  }
}

module attributes {stable_mosaic.version = 11 : i64} {
  func.func @_mm_shift_gelu_res_relu_kernel(%arg0: i32, %arg1: memref<256x864xbf16, #tpu.memory_space<vmem>>, %arg2: memref<864x128xbf16, #tpu.memory_space<vmem>>, %arg3: memref<1x128xf32, #tpu.memory_space<vmem>>, %arg4: memref<256x128xbf16, #tpu.memory_space<vmem>>, %arg5: memref<256x128xf32, #tpu.memory_space<vmem>>) attributes {dimension_semantics = [#tpu.dimension_semantics<parallel>], iteration_bounds = array<i64: 2>, scalar_prefetch = 0 : i64, scratch_operands = 0 : i64, tpu.core_type = #tpu.core_type<tc>, window_params = [{transform_indices = @transform_0, window_bounds = array<i64: 256, 864>}, {pipeline_mode = #tpu.pipeline_mode<synchronous>, transform_indices = @transform_1, window_bounds = array<i64: 864, 128>}, {pipeline_mode = #tpu.pipeline_mode<synchronous>, transform_indices = @transform_2, window_bounds = array<i64: 1, 128>}, {transform_indices = @transform_3, window_bounds = array<i64: 256, 128>}, {transform_indices = @transform_4, window_bounds = array<i64: 256, 128>}]} {
    %c0 = arith.constant 0 : index
    %c0_0 = arith.constant 0 : index
    %0 = vector.load %arg1[%c0, %c0_0] : memref<256x864xbf16, #tpu.memory_space<vmem>>, vector<256x864xbf16>
    %c0_1 = arith.constant 0 : index
    %c0_2 = arith.constant 0 : index
    %1 = vector.load %arg2[%c0_1, %c0_2] : memref<864x128xbf16, #tpu.memory_space<vmem>>, vector<864x128xbf16>
    %cst = arith.constant dense<0.000000e+00> : vector<256x128xf32>
    %2 = tpu.matmul %0, %1, %cst {dimension_numbers = #tpu.dot_dimension_numbers<[1], [0], [0], [1], [0, 0, 1, 1], [], []>} : vector<256x864xbf16>, vector<864x128xbf16>, vector<256x128xf32> -> vector<256x128xf32>
    %c0_3 = arith.constant 0 : index
    %c0_4 = arith.constant 0 : index
    %3 = vector.load %arg3[%c0_3, %c0_4] : memref<1x128xf32, #tpu.memory_space<vmem>>, vector<1x128xf32>
    %4 = vector.broadcast %3 : vector<1x128xf32> to vector<256x128xf32>
    %5 = arith.addf %2, %4 : vector<256x128xf32>
    %cst_5 = arith.constant 5.000000e-01 : f32
    %6 = vector.broadcast %cst_5 : f32 to vector<256x128xf32>
    %7 = arith.mulf %6, %5 : vector<256x128xf32>
    %cst_6 = arith.constant 4.471500e-02 : f32
    %8 = vector.broadcast %cst_6 : f32 to vector<256x128xf32>
    %9 = arith.mulf %8, %5 : vector<256x128xf32>
    %10 = arith.mulf %9, %5 : vector<256x128xf32>
    %11 = arith.mulf %10, %5 : vector<256x128xf32>
    %12 = arith.addf %5, %11 : vector<256x128xf32>
    %cst_7 = arith.constant 0.797884583 : f32
    %13 = vector.broadcast %cst_7 : f32 to vector<256x128xf32>
    %14 = arith.mulf %13, %12 : vector<256x128xf32>
    %15 = math.tanh %14 : vector<256x128xf32>
    %cst_8 = arith.constant 1.000000e+00 : f32
    %16 = vector.broadcast %cst_8 : f32 to vector<256x128xf32>
    %17 = arith.addf %16, %15 : vector<256x128xf32>
    %18 = arith.mulf %7, %17 : vector<256x128xf32>
    %c0_9 = arith.constant 0 : index
    %c0_10 = arith.constant 0 : index
    %19 = vector.load %arg4[%c0_9, %c0_10] : memref<256x128xbf16, #tpu.memory_space<vmem>>, vector<256x128xbf16>
    %20 = arith.extf %19 : vector<256x128xbf16> to vector<256x128xf32>
    %21 = arith.addf %18, %20 : vector<256x128xf32>
    %cst_11 = arith.constant 0.000000e+00 : f32
    %22 = vector.broadcast %cst_11 : f32 to vector<256x128xf32>
    %23 = arith.maximumf %21, %22 : vector<256x128xf32>
    %c0_12 = arith.constant 0 : index
    %c0_13 = arith.constant 0 : index
    %24 = vector.load %arg5[%c0_12, %c0_13] : memref<256x128xf32, #tpu.memory_space<vmem>>, vector<256x128xf32>
    tpu.vector_store %arg5[%c0_12, %c0_13], %23 {strides = array<i32>} : memref<256x128xf32, #tpu.memory_space<vmem>>, vector<256x128xf32>,
    return
  }
  func.func @transform_0(%arg0: i32) -> (i32, i32) {
    %c0_i32 = arith.constant 0 : i32
    %c0_i32_0 = arith.constant 0 : i32
    return %arg0, %c0_i32 : i32, i32
  }
  func.func @transform_1(%arg0: i32) -> (i32, i32) {
    %c0_i32 = arith.constant 0 : i32
    %c0_i32_0 = arith.constant 0 : i32
    %c0_i32_1 = arith.constant 0 : i32
    return %c0_i32, %c0_i32_0 : i32, i32
  }
  func.func @transform_2(%arg0: i32) -> (i32, i32) {
    %c0_i32 = arith.constant 0 : i32
    %c0_i32_0 = arith.constant 0 : i32
    %c0_i32_1 = arith.constant 0 : i32
    return %c0_i32, %c0_i32_0 : i32, i32
  }
  func.func @transform_3(%arg0: i32) -> (i32, i32) {
    %c0_i32 = arith.constant 0 : i32
    %c0_i32_0 = arith.constant 0 : i32
    return %arg0, %c0_i32 : i32, i32
  }
  func.func @transform_4(%arg0: i32) -> (i32, i32) {
    %c0_i32 = arith.constant 0 : i32
    %c0_i32_0 = arith.constant 0 : i32
    return %arg0, %c0_i32 : i32, i32
  }
}

</mosaic_0001>

<bundles_post_ra>
// kernel: _lambda_.11
= control target key start
LH: loop header
LB: loop body
LE: loop exit
PB: predicated region body
PF: predicated region fallthrough
CT: control target
= control target key end

     0   :  { %8 = vsyncpa [#allocation3], 0  ;;  %s1910_s0 = inlined_call_operand.vmem [shape: bf16[512,4], index: 0, kind: input, shape index: {}]   ;;  %s1911_s1 = inlined_call_operand.hbm [shape: bf16[4,128], index: 1, kind: input, shape index: {}]   ;;  %s1912_s2 = inlined_call_operand.hbm [shape: f32[1,128], index: 2, kind: input, shape index: {}]   ;;  %s1913_s3 = inlined_call_operand.vmem [shape: bf16[512,128], index: 3, kind: output, shape index: {}]  }
   0x1   :  { %9 = vsyncpa [#allocation5], 0  ;;  %s1522_s12 = smov 0  }
   0x2 LB: > { %s1061_s13 = sadd.s32 4294967295, %s1498_s12   ;;  %p1063_p0 = scmp.ge.s32.totalorder %s1498_s12, 1  ;;  %s1498_s12 = sphi %s1522_s12, %s15_s12  }
   0x3   : > { %p114_p1 = scmp.lt.s32.totalorder %s1498_s12, 3  ;;  %p1532_p2 = scmp.eq.s32.totalorder %s1061_s13, 0 }
   0x4   : > { %s1500_s16 = smov [#allocation2]   ;;  %s1501_s18 = smov [#allocation4]  }
   0x5   : > { %s1916_s14 = scalar_select %p1532_p2, 1, 0 }
   0x6   : > { %p1536_p3 = pnand %p1063_p0, %p114_p1  ;;  %s127_s17 = sshll.u32 %s1500_s16, 4  ;;  %s128_s17 = int_to_ptr.vmem [resolvable:$true] %s127_s17 }
   0x7   : > { %s138_s19 = sshll.u32 %s1501_s18, 4  ;;  %s1443_s21 = scalar_lea.vmem %s128_s17, 32  ;;  %s139_s19 = int_to_ptr.vmem [resolvable:$true] %s138_s19 }
   0x8   : > { %p1331_p4 = pneg %p1536_p3  ;;  %p1444_p7 = scmp.ne.s32.totalorder %s128_s17, %s1443_s21 }
   0x9   : > { %p1451_p10 = scmp.lt.s32.totalorder %s128_s17, %s128_s17  ;;  %p1452_p11 = scmp.lt.s32.totalorder %s1443_s21, %s1443_s21 }
   0xa   : > { %p1544_p5 = pnand %p1532_p2, %p1331_p4 }
   0xb   : > { %p1453_p12 = por %p1452_p11, %p1451_p10 }
   0xc   : > { %p1434_p6 = pneg %p1544_p5 }
   0xe   : > { %p1446_p8 = pnand %p1444_p7, %p1434_p6 }
  0x10   : > { %p1447_p9 = pneg %p1446_p8 }
  0x12   : > { %p1454_p13 = pnand %p1453_p12, %p1447_p9 }
  0x14   : > { %1457 = shalt.err (!%p1454_p13)
}
  0x15   : > { %1334 = dma.hbm_to_vmem [thread:$0]  (!%p1544_p5), %s1911_s1, 32, %s128_s17, [#allocation3]  }
  0x16   : > { %s1469_s24 = scalar_lea.vmem %s139_s19, 16  ;;  %s1476_s25 = scalar_lea.vmem %s139_s19, 32 }
  0x17   : > { %p1470_p0 = scmp.ne.s32.totalorder %s139_s19, %s1469_s24  ;;  %p1477_p7 = scmp.lt.s32.totalorder %s139_s19, %s139_s19 }
  0x18   : > { %p1478_p8 = scmp.lt.s32.totalorder %s1476_s25, %s1469_s24 }
  0x19   : > { %p1472_p1 = pnand %p1470_p0, %p1434_p6 }
  0x1a   : > { %p1479_p2 = por %p1478_p8, %p1477_p7 }
  0x1b   : > { %p1473_p4 = pneg %p1472_p1 }
  0x1d   : > { %p1480_p10 = pnand %p1479_p2, %p1473_p4 }
  0x1f   : > { %1483 = shalt.err (!%p1480_p10)
}
  0x20   : > { %1337 = dma.hbm_to_vmem [thread:$0]  (!%p1544_p5), %s1912_s2, 16, %s139_s19, [#allocation5]  }
  0x21   : > { %160 = sbr.rel (%p1536_p3) target bundleno = 345 (0x159), region = 32  ;;  %p1919_p9 = scmp.ne.s32.totalorder (!%p1536_p3), %s1916_s14, 0 }
  0x26   : > { %1489 = dma.done.wait (%p1919_p9), [#allocation3], 32  }
  0x27   : > { %1491 = vsyncadd (%p1919_p9), [#allocation3], 4294967264 }
  0x28   : > { %1493 = dma.done.wait (%p1919_p9), [#allocation5], 16  }
  0x29   : > { %1495 = vsyncadd (%p1919_p9), [#allocation5], 4294967280  ;;  %s1070_s28 = sshll.u32 %s1061_s13, 5  ;;  %vm370_vm0 = vcmask 1041408   ;;  %vm321_vm1 = vcmask 31744  }
  0x2a   : > { %p189_p2 = scmp.lt.s32.totalorder %s1070_s28, 63  ;;  %v233_v0 = vld [vmem:[#allocation2] sm:$0x3]  ;;  %v1620_v18 = vld [vmem:[#allocation4] ss:$0 sm:$0xff] }
  0x2b   : > { %1321 = vmatprep.subr.msk.bf16.mxu0 %vm370_vm0, %v233_v0  ;;  %1322 = vmatprep.subr.msk.bf16.mxu1 %vm370_vm0, %v233_v0  ;;  %v372_v1 = vsel %vm370_vm0, %v233_v0, 0 }
  0x2c   : > { %s1921_s28 = smov (!%p189_p2, %s1070_s28), 63  ;;  %1286 = vmatpush3.bf16.msra.mxu0 %v372_v1  ;;  %1320 = vmatpush3.bf16.msra.mxu1 %v372_v1 }
  0x2d   : > { %s1071_s29 = sshll.u32 %s1921_s28, 2 }
  0x2e   : > { %s1586_s5 = scalar_lea.vmem %s1910_s0, %s1071_s29  ;;  %s1737_s8 = scalar_lea.vmem %s1913_s3, %s1071_s29 }
  0x2f   : > { %v1352_v2 = vld [vmem:[%s1586_s5] sm:$0xff]   ;;  %v1354_v4 = vld [vmem:[%s1586_s5 + $0x8] sm:$0xff]   ;;  %v1356_v6 = vld [vmem:[%s1586_s5 + $0x10] sm:$0xff]  }
  0x30   : > { %v1353_v3 = vld [vmem:[%s1586_s5 + $0x40] sm:$0xff]   ;;  %1287 = vmatprep.mubr.msk.bf16.mxu0 %vm321_vm1, %v1352_v2  ;;  %v1355_v5 = vld [vmem:[%s1586_s5 + $0x48] sm:$0xff]   ;;  %v1357_v7 = vld [vmem:[%s1586_s5 + $0x50] sm:$0xff]  }
  0x31   : > { %1303 = vmatprep.mubr.msk.bf16.mxu1 %vm321_vm1, %v1353_v3  ;;  %1288 = vmatmul.mubr.msk.bf16.vlgmr.msra.gmra.mxu0 %vm321_vm1, %v1354_v4  ;;  %v1358_v8 = vld [vmem:[%s1586_s5 + $0x18] sm:$0xff]   ;;  %v1360_v10 = vld [vmem:[%s1586_s5 + $0x20] sm:$0xff]   ;;  %v1362_v12 = vld [vmem:[%s1586_s5 + $0x28] sm:$0xff]  }
  0x32   : > { %1304 = vmatmul.mubr.msk.bf16.vlgmr.msra.gmra.mxu1 %vm321_vm1, %v1355_v5  ;;  %1291 = vmatprep.mubr.msk.bf16.mxu0 %vm321_vm1, %v1356_v6  ;;  %v1359_v9 = vld [vmem:[%s1586_s5 + $0x58] sm:$0xff]   ;;  %v1361_v11 = vld [vmem:[%s1586_s5 + $0x60] sm:$0xff]   ;;  %v1363_v13 = vld [vmem:[%s1586_s5 + $0x68] sm:$0xff]  }
  0x33   : > { %1307 = vmatprep.mubr.msk.bf16.mxu1 %vm321_vm1, %v1357_v7  ;;  %v1364_v14 = vld [vmem:[%s1586_s5 + $0x30] sm:$0xff]   ;;  %v1366_v16 = vld [vmem:[%s1586_s5 + $0x38] sm:$0xff]  }
  0x34   : > { %v1365_v15 = vld [vmem:[%s1586_s5 + $0x70] sm:$0xff]   ;;  %v1367_v17 = vld [vmem:[%s1586_s5 + $0x78] sm:$0xff]  }
  0x39   : > { %1292 = vmatmul.mubr.msk.bf16.gmra.mxu0 %vm321_vm1, %v1358_v8 }
  0x3a   : > { %1308 = vmatmul.mubr.msk.bf16.gmra.mxu1 %vm321_vm1, %v1359_v9  ;;  %1295 = vmatprep.mubr.msk.bf16.mxu0 %vm321_vm1, %v1360_v10 }
  0x3b   : > { %1311 = vmatprep.mubr.msk.bf16.mxu1 %vm321_vm1, %v1361_v11 }
  0x41   : > { %1296 = vmatmul.mubr.msk.bf16.gmra.mxu0 %vm321_vm1, %v1362_v12 }
  0x42   : > { %1312 = vmatmul.mubr.msk.bf16.gmra.mxu1 %vm321_vm1, %v1363_v13  ;;  %1299 = vmatprep.mubr.msk.bf16.mxu0 %vm321_vm1, %v1364_v14 }
  0x43   : > { %1315 = vmatprep.mubr.msk.bf16.mxu1 %vm321_vm1, %v1365_v15 }
  0x49   : > { %1300 = vmatmul.mubr.msk.bf16.gmra.mxu0 %vm321_vm1, %v1366_v16 }
  0x4a   : > { %1316 = vmatmul.mubr.msk.bf16.gmra.mxu1 %vm321_vm1, %v1367_v17 }
  0xf1   : > { %v1289_v19 = vpop.f32.mrf.mxu0 }
  0xf2   : > { %v1623_v20 = vadd.f32 %v1289_v19, %v1620_v18  ;;  %v1305_v21 = vpop.f32.mrf.mxu1 }
  0xf3   : > { %v1626_v22 = vadd.f32 %v1305_v21, %v1620_v18  ;;  %v408_v23 = vpop.f32.mrf.mxu0 }
  0xf4   : > { %v569_v24 = vmul.f32 0.044715, %v1623_v20  ;;  %v1630_v25 = vadd.f32 %v1620_v18, %v408_v23  ;;  %v472_v26 = vpop.f32.mrf.mxu1 }
  0xf5   : > { %v585_v27 = vmul.f32 0.044715, %v1626_v22  ;;  %v1634_v28 = vadd.f32 %v1620_v18, %v472_v26  ;;  %v1290_v29 = vpop.f32.mrf.mxu0 }
  0xf6   : > { %v601_v30 = vmul.f32 %v569_v24, %v1623_v20  ;;  %v567_v31 = vmul.f32 0.044715, %v1630_v25  ;;  %v1639_v32 = vadd.f32 %v1290_v29, %v1620_v18  ;;  %v1306_v33 = vpop.f32.mrf.mxu1 }
  0xf7   : > { %v617_v34 = vmul.f32 %v585_v27, %v1626_v22  ;;  %v583_v35 = vmul.f32 0.044715, %v1634_v28  ;;  %v1644_v36 = vadd.f32 %v1306_v33, %v1620_v18  ;;  %v411_v37 = vpop.f32.mrf.mxu0 }
  0xf8   : > { %v633_v38 = vmul.f32 %v601_v30, %v1623_v20  ;;  %v599_v39 = vmul.f32 %v567_v31, %v1630_v25  ;;  %v570_v40 = vmul.f32 0.044715, %v1639_v32  ;;  %v475_v41 = vpop.f32.mrf.mxu1  ;;  %v1656_v48 = vadd.f32 %v1620_v18, %v411_v37 }
  0xf9   : > { %v649_v42 = vmul.f32 %v617_v34, %v1626_v22  ;;  %v615_v43 = vmul.f32 %v583_v35, %v1634_v28  ;;  %v586_v44 = vmul.f32 0.044715, %v1644_v36  ;;  %v1293_v49 = vpop.f32.mrf.mxu0  ;;  %v1664_v57 = vadd.f32 %v1620_v18, %v475_v41 }
  0xfa   : > { %v665_v45 = vadd.f32 %v633_v38, %v1623_v20  ;;  %v631_v46 = vmul.f32 %v599_v39, %v1630_v25  ;;  %v602_v47 = vmul.f32 %v570_v40, %v1639_v32  ;;  %v1309_v53 = vpop.f32.mrf.mxu1  ;;  %v568_v61 = vmul.f32 0.044715, %v1656_v48 }
  0xfb   : > { %v681_v50 = vadd.f32 %v649_v42, %v1626_v22  ;;  %v647_v51 = vmul.f32 %v615_v43, %v1634_v28  ;;  %v618_v52 = vmul.f32 %v586_v44, %v1644_v36  ;;  %v424_v0 = vpop.f32.mrf.mxu0  ;;  %v584_v6 = vmul.f32 0.044715, %v1664_v57 }
  0xfc   : > { %v697_v54 = vmul.f32 0.7978846, %v665_v45  ;;  %v663_v55 = vadd.f32 %v631_v46, %v1630_v25  ;;  %v634_v56 = vmul.f32 %v602_v47, %v1639_v32  ;;  %v600_v3 = vmul.f32 %v568_v61, %v1656_v48  ;;  %v488_v4 = vpop.f32.mrf.mxu1 }
  0xfd   : > { %v713_v58 = vmul.f32 0.7978846, %v681_v50  ;;  %v679_v59 = vadd.f32 %v647_v51, %v1634_v28  ;;  %v650_v60 = vmul.f32 %v618_v52, %v1644_v36  ;;  %v1674_v7 = vadd.f32 %v1293_v49, %v1620_v18  ;;  %v1294_v13 = vpop.f32.mrf.mxu0 }
  0xfe   : > { %1368 = vtanh.f32 %v697_v54  ;;  %v695_v62 = vmul.f32 0.7978846, %v663_v55  ;;  %v666_v63 = vadd.f32 %v634_v56, %v1639_v32  ;;  %v632_v9 = vmul.f32 %v600_v3, %v1656_v48  ;;  %v1310_v16 = vpop.f32.mrf.mxu1 }
  0xff   : > { %1370 = vtanh.f32 %v713_v58  ;;  %v711_v1 = vmul.f32 0.7978846, %v679_v59  ;;  %v682_v2 = vadd.f32 %v650_v60, %v1644_v36  ;;  %v1678_v10 = vadd.f32 %v1309_v53, %v1620_v18  ;;  %v427_v52 = vpop.f32.mrf.mxu0 }
 0x100   : > { %1372 = vtanh.f32 %v695_v62  ;;  %v698_v5 = vmul.f32 0.7978846, %v666_v63  ;;  %v616_v11 = vmul.f32 %v584_v6, %v1664_v57  ;;  %v573_v12 = vmul.f32 0.044715, %v1674_v7  ;;  %v491_v61 = vpop.f32.mrf.mxu1 }
 0x101   : > { %1374 = vtanh.f32 %v711_v1  ;;  %v714_v8 = vmul.f32 0.7978846, %v682_v2  ;;  %v664_v14 = vadd.f32 %v632_v9, %v1656_v48  ;;  %v589_v15 = vmul.f32 0.044715, %v1678_v10 }
 0x102   : > { %1376 = vtanh.f32 %v698_v5  ;;  %v648_v17 = vmul.f32 %v616_v11, %v1664_v57  ;;  %v605_v19 = vmul.f32 %v573_v12, %v1674_v7  ;;  %v1687_v21 = vadd.f32 %v1620_v18, %v424_v0  ;;  %v1297_v12 = vpop.f32.mrf.mxu0 }
 0x103   : > { %1378 = vtanh.f32 %v714_v8  ;;  %v1690_v23 = vadd.f32 %v1620_v18, %v488_v4  ;;  %v696_v24 = vmul.f32 0.7978846, %v664_v14  ;;  %v621_v26 = vmul.f32 %v589_v15, %v1678_v10 }
 0x104   : > { %v1694_v27 = vadd.f32 %v1294_v13, %v1620_v18  ;;  %v680_v29 = vadd.f32 %v648_v17, %v1664_v57  ;;  %v637_v30 = vmul.f32 %v605_v19, %v1674_v7  ;;  %v571_v31 = vmul.f32 0.044715, %v1687_v21  ;;  %v1313_v17 = vpop.f32.mrf.mxu1 }
 0x105   : > { %v1700_v33 = vadd.f32 %v1310_v16, %v1620_v18  ;;  %1380 = vtanh.f32 %v696_v24  ;;  %v653_v34 = vmul.f32 %v621_v26, %v1678_v10  ;;  %v587_v35 = vmul.f32 0.044715, %v1690_v23 }
 0x106   : > { %v537_v37 = vmul.f32 0.5, %v1623_v20  ;;  %v712_v38 = vmul.f32 0.7978846, %v680_v29  ;;  %v669_v39 = vadd.f32 %v637_v30, %v1674_v7  ;;  %v603_v40 = vmul.f32 %v571_v31, %v1687_v21 }
 0x107   : > { %v553_v41 = vmul.f32 0.5, %v1626_v22  ;;  %v685_v42 = vadd.f32 %v653_v34, %v1678_v10  ;;  %v619_v43 = vmul.f32 %v587_v35, %v1690_v23  ;;  %v574_v44 = vmul.f32 0.044715, %v1694_v27 }
 0x108   : > { %1382 = vtanh.f32 %v712_v38  ;;  %v701_v45 = vmul.f32 0.7978846, %v669_v39  ;;  %v635_v46 = vmul.f32 %v603_v40, %v1687_v21  ;;  %v590_v47 = vmul.f32 0.044715, %v1700_v33  ;;  %v440_v38 = vpop.f32.mrf.mxu0 }
 0x109   : > { %v535_v49 = vmul.f32 0.5, %v1630_v25  ;;  %v717_v50 = vmul.f32 0.7978846, %v685_v42  ;;  %v651_v51 = vmul.f32 %v619_v43, %v1690_v23  ;;  %v606_v22 = vmul.f32 %v574_v44, %v1694_v27 }
 0x10a   : > { %v551_v55 = vmul.f32 0.5, %v1634_v28  ;;  %1384 = vtanh.f32 %v701_v45  ;;  %v622_v56 = vmul.f32 %v590_v47, %v1700_v33  ;;  %v667_v60 = vadd.f32 %v635_v46, %v1687_v21 }
 0x10b   : > { %v1369_v20 = vpop.eup %1368  ;;  %1386 = vtanh.f32 %v717_v50  ;;  %v638_v25 = vmul.f32 %v606_v22, %v1694_v27  ;;  %v538_v63 = vmul.f32 0.5, %v1639_v32  ;;  %v554_v0 = vmul.f32 0.5, %v1644_v36  ;;  %v504_v22 = vpop.f32.mrf.mxu1 }
 0x10c   : > { %v1371_v53 = vpop.eup %1370  ;;  %v761_v54 = vadd.f32 1.0, %v1369_v20  ;;  %v654_v1 = vmul.f32 %v622_v56, %v1700_v33  ;;  %v1724_v28 = vadd.f32 %v1620_v18, %v427_v52  ;;  %v536_v3 = vmul.f32 0.5, %v1656_v48 }
 0x10d   : > { %v1373_v58 = vpop.eup %1372  ;;  %v777_v59 = vadd.f32 1.0, %v1371_v53  ;;  %v552_v4 = vmul.f32 0.5, %v1664_v57  ;;  %v683_v5 = vadd.f32 %v651_v51, %v1690_v23  ;;  %v670_v6 = vadd.f32 %v638_v25, %v1694_v27 }
 0x10e   : > { %v1375_v62 = vpop.eup %1374  ;;  %v793_v9 = vmul.f32 %v761_v54, %v537_v37  ;;  %v759_v32 = vadd.f32 1.0, %v1373_v58  ;;  %v686_v36 = vadd.f32 %v654_v1, %v1700_v33  ;;  %v699_v15 = vmul.f32 0.7978846, %v667_v60 }
 0x10f   : > { %v1377_v2 = vpop.eup %1376  ;;  %v809_v13 = vmul.f32 %v777_v59, %v553_v41  ;;  %v702_v16 = vmul.f32 0.7978846, %v670_v6  ;;  %v775_v48 = vadd.f32 1.0, %v1375_v62  ;;  %v572_v24 = vmul.f32 0.044715, %v1724_v28 }
 0x110   : > { %v1379_v8 = vpop.eup %1378  ;;  %v762_v11 = vadd.f32 1.0, %v1377_v2  ;;  %v718_v57 = vmul.f32 0.7978846, %v686_v36  ;;  %v1740_v29 = vadd.f32 %v1620_v18, %v491_v61  ;;  %v1743_v30 = vadd.f32 %v1297_v12, %v1620_v18  ;;  %v1314_v12 = vpop.f32.mrf.mxu1 }
 0x111   : > { %v778_v14 = vadd.f32 1.0, %v1379_v8  ;;  %1388 = vtanh.f32 %v702_v16  ;;  %v604_v35 = vmul.f32 %v572_v24, %v1724_v28  ;;  %v1747_v37 = vadd.f32 %v1313_v17, %v1620_v18  ;;  %v1298_v8 = vpop.f32.mrf.mxu0 }
 0x112   : > { %v794_v19 = vmul.f32 %v762_v11, %v538_v63  ;;  %v1381_v31 = vpop.eup %1380  ;;  %1390 = vtanh.f32 %v718_v57  ;;  %v715_v41 = vmul.f32 0.7978846, %v683_v5  ;;  %v588_v42 = vmul.f32 0.044715, %v1740_v29 }
 0x113   : > { %v810_v26 = vmul.f32 %v778_v14, %v554_v0  ;;  %v760_v40 = vadd.f32 1.0, %v1381_v31  ;;  %v791_v43 = vmul.f32 %v759_v32, %v535_v49  ;;  %1392 = vtanh.f32 %v699_v15 }
 0x114   : > { %v1181_v34 = vpack.c.bf16 %v794_v19, %v793_v9  ;;  %v636_v44 = vmul.f32 %v604_v35, %v1724_v28  ;;  %v577_v45 = vmul.f32 0.044715, %v1743_v30  ;;  %v620_v20 = vmul.f32 %v588_v42, %v1740_v29 }
 0x115   : > { %v1221_v39 = vpack.c.bf16 %v810_v26, %v809_v13  ;;  %v1383_v46 = vpop.eup %1382  ;;  %v792_v47 = vmul.f32 %v760_v40, %v536_v3  ;;  %v593_v50 = vmul.f32 0.044715, %v1747_v37  ;;  %v1757_v51 = vadd.f32 %v1620_v18, %v440_v38  ;;  %v507_v38 = vpop.f32.mrf.mxu1 }
 0x116   : > { %1253 = vst [vmem:[%s1737_s8 + $0x8] sm:$0xff] %v1181_v34   ;;  %v807_v52 = vmul.f32 %v775_v48, %v551_v55  ;;  %v776_v49 = vadd.f32 1.0, %v1383_v46  ;;  %v668_v53 = vadd.f32 %v636_v44, %v1724_v28  ;;  %v609_v54 = vmul.f32 %v577_v45, %v1743_v30 }
 0x117   : > { %1261 = vst [vmem:[%s1737_s8 + $0x48] sm:$0xff] %v1221_v39   ;;  %v1385_v56 = vpop.eup %1384  ;;  %v1176_v58 = vpack.c.bf16 %v792_v47, %v791_v43  ;;  %1394 = vtanh.f32 %v715_v41  ;;  %v652_v59 = vmul.f32 %v620_v20, %v1740_v29  ;;  %v625_v60 = vmul.f32 %v593_v50, %v1747_v37 }
 0x118   : > { %v1387_v25 = vpop.eup %1386  ;;  %v808_v61 = vmul.f32 %v776_v49, %v552_v4  ;;  %v700_v62 = vmul.f32 0.7978846, %v668_v53  ;;  %v641_v63 = vmul.f32 %v609_v54, %v1743_v30  ;;  %v1765_v0 = vadd.f32 %v1620_v18, %v504_v22 }
 0x119   : > { %1177 = vst [vmem:[%s1737_s8] sm:$0xff] %v1176_v58   ;;  %v541_v55 = vmul.f32 0.5, %v1674_v7  ;;  %v684_v1 = vadd.f32 %v652_v59, %v1740_v29  ;;  %v657_v2 = vmul.f32 %v625_v60, %v1747_v37  ;;  %v575_v3 = vmul.f32 0.044715, %v1757_v51 }
 0x11a   : > { %v1216_v5 = vpack.c.bf16 %v808_v61, %v807_v52  ;;  %v765_v6 = vadd.f32 1.0, %v1385_v56  ;;  %1396 = vtanh.f32 %v700_v62  ;;  %v673_v4 = vadd.f32 %v641_v63, %v1743_v30  ;;  %v1317_v56 = vpop.f32.mrf.mxu1 }
 0x11b   : > { %v781_v9 = vadd.f32 1.0, %v1387_v25  ;;  %v716_v32 = vmul.f32 0.7978846, %v684_v1  ;;  %v689_v11 = vadd.f32 %v657_v2, %v1747_v37  ;;  %v607_v36 = vmul.f32 %v575_v3, %v1757_v51 }
 0x11c   : > { %1260 = vst [vmem:[%s1737_s8 + $0x40] sm:$0xff] %v1216_v5   ;;  %v557_v7 = vmul.f32 0.5, %v1678_v10  ;;  %v539_v13 = vmul.f32 0.5, %v1687_v21  ;;  %v705_v14 = vmul.f32 0.7978846, %v673_v4  ;;  %v542_v16 = vmul.f32 0.5, %v1694_v27  ;;  %v443_v10 = vpop.f32.mrf.mxu0 }
 0x11d   : > { %v591_v15 = vmul.f32 0.044715, %v1765_v0  ;;  %1398 = vtanh.f32 %v716_v32  ;;  %v721_v17 = vmul.f32 0.7978846, %v689_v11  ;;  %v639_v48 = vmul.f32 %v607_v36, %v1757_v51 }
 0x11e   : > { %v1389_v19 = vpop.eup %1388  ;;  %v797_v57 = vmul.f32 %v765_v6, %v541_v55  ;;  %v558_v24 = vmul.f32 0.5, %v1700_v33  ;;  %v1784_v31 = vadd.f32 %v1298_v8, %v1620_v18  ;;  %v813_v34 = vmul.f32 %v781_v9, %v557_v7  ;;  %v1301_v54 = vpop.f32.mrf.mxu0 }
 0x11f   : > { %v623_v26 = vmul.f32 %v591_v15, %v1765_v0  ;;  %v1391_v21 = vpop.eup %1390  ;;  %v766_v35 = vadd.f32 1.0, %v1389_v19  ;;  %1400 = vtanh.f32 %v705_v14  ;;  %v671_v27 = vadd.f32 %v639_v48, %v1757_v51  ;;  %v520_v19 = vpop.f32.mrf.mxu1 }
 0x120   : > { %v782_v39 = vadd.f32 1.0, %v1391_v21  ;;  %1402 = vtanh.f32 %v721_v17  ;;  %v578_v41 = vmul.f32 0.044715, %v1784_v31  ;;  %v1393_v33 = vpop.eup %1392  ;;  %v1790_v44 = vadd.f32 %v1314_v12, %v1620_v18  ;;  %v456_v9 = vpop.f32.mrf.mxu0 }
 0x121   : > { %v655_v40 = vmul.f32 %v623_v26, %v1765_v0  ;;  %v798_v42 = vmul.f32 %v766_v35, %v542_v16  ;;  %v703_v43 = vmul.f32 0.7978846, %v671_v27  ;;  %v1793_v45 = vadd.f32 %v1620_v18, %v443_v10 }
 0x122   : > { %v814_v46 = vmul.f32 %v782_v39, %v558_v24  ;;  %v610_v20 = vmul.f32 %v578_v41, %v1784_v31  ;;  %v1798_v50 = vadd.f32 %v1620_v18, %v507_v38  ;;  %v555_v22 = vmul.f32 0.5, %v1690_v23  ;;  %v1302_v10 = vpop.f32.mrf.mxu0 }
 0x123   : > { %v687_v47 = vadd.f32 %v655_v40, %v1765_v0  ;;  %v1191_v52 = vpack.c.bf16 %v798_v42, %v797_v57  ;;  %v540_v49 = vmul.f32 0.5, %v1724_v28  ;;  %v594_v53 = vmul.f32 0.044715, %v1790_v44 }
 0x124   : > { %v1395_v58 = vpop.eup %1394  ;;  %v763_v59 = vadd.f32 1.0, %v1393_v33  ;;  %v1231_v60 = vpack.c.bf16 %v814_v46, %v813_v34  ;;  %1404 = vtanh.f32 %v703_v43  ;;  %v642_v25 = vmul.f32 %v610_v20, %v1784_v31  ;;  %v1318_v20 = vpop.f32.mrf.mxu1 }
 0x125   : > { %1255 = vst [vmem:[%s1737_s8 + $0x18] sm:$0xff] %v1191_v52   ;;  %v719_v61 = vmul.f32 0.7978846, %v687_v47  ;;  %v626_v62 = vmul.f32 %v594_v53, %v1790_v44  ;;  %v576_v23 = vmul.f32 0.044715, %v1793_v45  ;;  %v556_v28 = vmul.f32 0.5, %v1740_v29  ;;  %v459_v53 = vpop.f32.mrf.mxu0 }
 0x126   : > { %v592_v63 = vmul.f32 0.044715, %v1798_v50  ;;  %1263 = vst [vmem:[%s1737_s8 + $0x58] sm:$0xff] %v1231_v60   ;;  %v674_v55 = vadd.f32 %v642_v25, %v1784_v31  ;;  %v1812_v1 = vadd.f32 %v1301_v54, %v1620_v18  ;;  %v1815_v2 = vadd.f32 %v1317_v56, %v1620_v18 }
 0x127   : > { %v1397_v3 = vpop.eup %1396  ;;  %v779_v5 = vadd.f32 1.0, %v1395_v58  ;;  %v658_v6 = vmul.f32 %v626_v62, %v1790_v44  ;;  %v608_v4 = vmul.f32 %v576_v23, %v1793_v45  ;;  %v795_v32 = vmul.f32 %v763_v59, %v539_v13 }
 0x128   : > { %v624_v8 = vmul.f32 %v592_v63, %v1798_v50  ;;  %v764_v11 = vadd.f32 1.0, %v1397_v3  ;;  %v706_v29 = vmul.f32 0.7978846, %v674_v55  ;;  %v581_v36 = vmul.f32 0.044715, %v1812_v1 }
 0x129   : > { %1406 = vtanh.f32 %v719_v61  ;;  %v690_v12 = vadd.f32 %v658_v6, %v1790_v44  ;;  %v640_v7 = vmul.f32 %v608_v4, %v1793_v45  ;;  %v597_v48 = vmul.f32 0.044715, %v1815_v2  ;;  %v523_v4 = vpop.f32.mrf.mxu1 }
 0x12a   : > { %v656_v14 = vmul.f32 %v624_v8, %v1798_v50  ;;  %v1399_v15 = vpop.eup %1398  ;;  %v796_v16 = vmul.f32 %v764_v11, %v540_v49  ;;  %1408 = vtanh.f32 %v706_v29  ;;  %v613_v17 = vmul.f32 %v581_v36, %v1812_v1 }
 0x12b   : > { %v780_v13 = vadd.f32 1.0, %v1399_v15  ;;  %v722_v57 = vmul.f32 0.7978846, %v690_v12  ;;  %v672_v24 = vadd.f32 %v640_v7, %v1793_v45  ;;  %v629_v27 = vmul.f32 %v597_v48, %v1815_v2 }
 0x12c   : > { %v688_v26 = vadd.f32 %v656_v14, %v1798_v50  ;;  %v1401_v21 = vpop.eup %1400  ;;  %v1186_v34 = vpack.c.bf16 %v796_v16, %v795_v32  ;;  %v645_v35 = vmul.f32 %v613_v17, %v1812_v1  ;;  %v1831_v38 = vadd.f32 %v1620_v18, %v456_v9 }
 0x12d   : > { %v1403_v39 = vpop.eup %1402  ;;  %v811_v40 = vmul.f32 %v779_v5, %v555_v22  ;;  %v812_v41 = vmul.f32 %v780_v13, %v556_v28  ;;  %1410 = vtanh.f32 %v722_v57  ;;  %v704_v33 = vmul.f32 0.7978846, %v672_v24 }
 0x12e   : > { %1254 = vst [vmem:[%s1737_s8 + $0x10] sm:$0xff] %v1186_v34   ;;  %v545_v42 = vmul.f32 0.5, %v1743_v30  ;;  %v561_v43 = vmul.f32 0.5, %v1747_v37  ;;  %v720_v46 = vmul.f32 0.7978846, %v688_v26  ;;  %v661_v47 = vmul.f32 %v629_v27, %v1815_v2 }
 0x12f   : > { %v1226_v52 = vpack.c.bf16 %v812_v41, %v811_v40  ;;  %v1838_v49 = vmul.f32 0.5, %v1757_v51  ;;  %1412 = vtanh.f32 %v704_v33  ;;  %v677_v22 = vadd.f32 %v645_v35, %v1812_v1 }
 0x130   : > { %v769_v54 = vadd.f32 1.0, %v1401_v21  ;;  %v1842_v56 = vmul.f32 0.5, %v1765_v0  ;;  %1414 = vtanh.f32 %v720_v46  ;;  %v579_v30 = vmul.f32 0.044715, %v1831_v38 }
 0x131   : > { %v1405_v37 = vpop.eup %1404  ;;  %1262 = vst [vmem:[%s1737_s8 + $0x50] sm:$0xff] %v1226_v52   ;;  %v785_v58 = vadd.f32 1.0, %v1403_v39  ;;  %v1847_v59 = vadd.f32 %v1620_v18, %v520_v19  ;;  %v1850_v51 = vadd.f32 %v1302_v10, %v1620_v18  ;;  %v1853_v60 = vadd.f32 %v1318_v20, %v1620_v18 }
 0x132   : > { %v546_v25 = vmul.f32 0.5, %v1784_v31  ;;  %v693_v0 = vadd.f32 %v661_v47, %v1815_v2  ;;  %v611_v61 = vmul.f32 %v579_v30, %v1831_v38  ;;  %v1859_v62 = vadd.f32 %v1620_v18, %v459_v53 }
 0x133   : > { %v562_v23 = vmul.f32 0.5, %v1790_v44  ;;  %v544_v63 = vmul.f32 0.5, %v1793_v45  ;;  %v709_v28 = vmul.f32 0.7978846, %v677_v22  ;;  %v595_v55 = vmul.f32 0.044715, %v1847_v59 }
 0x134   : > { %v801_v3 = vmul.f32 %v769_v54, %v545_v42  ;;  %v560_v5 = vmul.f32 0.5, %v1798_v50  ;;  %v643_v6 = vmul.f32 %v611_v61, %v1831_v38  ;;  %v582_v31 = vmul.f32 0.044715, %v1850_v51 }
 0x135   : > { %v817_v8 = vmul.f32 %v785_v58, %v561_v43  ;;  %v767_v9 = vadd.f32 1.0, %v1405_v37  ;;  %v627_v32 = vmul.f32 %v595_v55, %v1847_v59  ;;  %v598_v11 = vmul.f32 0.044715, %v1853_v60 }
 0x136   : > { %v1407_v44 = vpop.eup %1406  ;;  %v725_v29 = vmul.f32 0.7978846, %v693_v0  ;;  %v675_v45 = vadd.f32 %v643_v6, %v1831_v38  ;;  %v614_v36 = vmul.f32 %v582_v31, %v1850_v51  ;;  %v580_v12 = vmul.f32 0.044715, %v1859_v62 }
 0x137   : > { %v1409_v50 = vpop.eup %1408  ;;  %1416 = vtanh.f32 %v709_v28  ;;  %v659_v7 = vmul.f32 %v627_v32, %v1847_v59  ;;  %v630_v14 = vmul.f32 %v598_v11, %v1853_v60  ;;  %v1875_v15 = vadd.f32 %v1620_v18, %v523_v4 }
 0x138   : > { %v770_v16 = vadd.f32 1.0, %v1409_v50  ;;  %v707_v17 = vmul.f32 0.7978846, %v675_v45  ;;  %v646_v48 = vmul.f32 %v614_v36, %v1850_v51  ;;  %v612_v19 = vmul.f32 %v580_v12, %v1859_v62 }
 0x139   : > { %v783_v13 = vadd.f32 1.0, %v1407_v44  ;;  %v691_v57 = vadd.f32 %v659_v7, %v1847_v59  ;;  %v662_v24 = vmul.f32 %v630_v14, %v1853_v60  ;;  %v596_v26 = vmul.f32 0.044715, %v1875_v15 }
 0x13a   : > { %v1411_v10 = vpop.eup %1410  ;;  %v802_v21 = vmul.f32 %v770_v16, %v546_v25  ;;  %1418 = vtanh.f32 %v725_v29  ;;  %v678_v34 = vadd.f32 %v646_v48, %v1850_v51  ;;  %v644_v18 = vmul.f32 %v612_v19, %v1859_v62 }
 0x13b   : > { %v786_v35 = vadd.f32 1.0, %v1411_v10  ;;  %v723_v27 = vmul.f32 0.7978846, %v691_v57  ;;  %v694_v39 = vadd.f32 %v662_v24, %v1853_v60  ;;  %v628_v40 = vmul.f32 %v596_v26, %v1875_v15 }
 0x13c   : > { %v1413_v41 = vpop.eup %1412  ;;  %v1201_v33 = vpack.c.bf16 %v802_v21, %v801_v3  ;;  %1420 = vtanh.f32 %v707_v17  ;;  %v710_v42 = vmul.f32 0.7978846, %v678_v34  ;;  %v676_v43 = vadd.f32 %v644_v18, %v1859_v62 }
 0x13d   : > { %v1415_v46 = vpop.eup %1414  ;;  %v818_v47 = vmul.f32 %v786_v35, %v562_v23  ;;  %v768_v20 = vadd.f32 1.0, %v1413_v41  ;;  %1422 = vtanh.f32 %v723_v27  ;;  %v726_v52 = vmul.f32 0.7978846, %v694_v39 }
 0x13e   : > { %1257 = vst [vmem:[%s1737_s8 + $0x28] sm:$0xff] %v1201_v33   ;;  %v784_v22 = vadd.f32 1.0, %v1415_v46  ;;  %1424 = vtanh.f32 %v710_v42  ;;  %v708_v53 = vmul.f32 0.7978846, %v676_v43  ;;  %v660_v54 = vmul.f32 %v628_v40, %v1875_v15 }
 0x13f   : > { %v799_v30 = vmul.f32 %v767_v9, %v1838_v49  ;;  %v1241_v37 = vpack.c.bf16 %v818_v47, %v817_v8  ;;  %v800_v58 = vmul.f32 %v768_v20, %v544_v63  ;;  %1426 = vtanh.f32 %v726_v52 }
 0x140   : > { %v815_v25 = vmul.f32 %v783_v13, %v1842_v56  ;;  %v816_v0 = vmul.f32 %v784_v22, %v560_v5  ;;  %1428 = vtanh.f32 %v708_v53  ;;  %v692_v61 = vadd.f32 %v660_v54, %v1875_v15 }
 0x141   : > { %1265 = vst [vmem:[%s1737_s8 + $0x68] sm:$0xff] %v1241_v37   ;;  %v1196_v23 = vpack.c.bf16 %v800_v58, %v799_v30  ;;  %v549_v56 = vmul.f32 0.5, %v1812_v1  ;;  %v550_v32 = vmul.f32 0.5, %v1850_v51  ;;  %v565_v29 = vmul.f32 0.5, %v1815_v2 }
 0x142   : > { %v1236_v28 = vpack.c.bf16 %v816_v0, %v815_v25  ;;  %v724_v55 = vmul.f32 0.7978846, %v692_v61  ;;  %v547_v45 = vmul.f32 0.5, %v1831_v38  ;;  %v566_v36 = vmul.f32 0.5, %v1853_v60 }
 0x143   : > { %1256 = vst [vmem:[%s1737_s8 + $0x20] sm:$0xff] %v1196_v23   ;;  %v548_v14 = vmul.f32 0.5, %v1859_v62  ;;  %v563_v57 = vmul.f32 0.5, %v1847_v59  ;;  %v564_v24 = vmul.f32 0.5, %v1875_v15 }
 0x144   : > { %v1417_v3 = vpop.eup %1416  ;;  %1264 = vst [vmem:[%s1737_s8 + $0x60] sm:$0xff] %v1236_v28   ;;  %1430 = vtanh.f32 %v724_v55 }
 0x145   : > { %v773_v4 = vadd.f32 1.0, %v1417_v3 }
 0x147   : > { %v1419_v6 = vpop.eup %1418  ;;  %v805_v50 = vmul.f32 %v773_v4, %v549_v56 }
 0x148   : > { %v789_v8 = vadd.f32 1.0, %v1419_v6 }
 0x149   : > { %v1421_v31 = vpop.eup %1420 }
 0x14a   : > { %v1423_v49 = vpop.eup %1422  ;;  %v771_v5 = vadd.f32 1.0, %v1421_v31  ;;  %v821_v1 = vmul.f32 %v789_v8, %v565_v29 }
 0x14b   : > { %v1425_v63 = vpop.eup %1424  ;;  %v787_v48 = vadd.f32 1.0, %v1423_v49 }
 0x14c   : > { %v1427_v9 = vpop.eup %1426  ;;  %v774_v11 = vadd.f32 1.0, %v1425_v63  ;;  %v803_v51 = vmul.f32 %v771_v5, %v547_v45 }
 0x14d   : > { %v1429_v44 = vpop.eup %1428  ;;  %v790_v12 = vadd.f32 1.0, %v1427_v9  ;;  %v819_v62 = vmul.f32 %v787_v48, %v563_v57 }
 0x14e   : > { %v806_v7 = vmul.f32 %v774_v11, %v550_v32  ;;  %v772_v16 = vadd.f32 1.0, %v1429_v44 }
 0x14f   : > { %v822_v17 = vmul.f32 %v790_v12, %v566_v36 }
 0x150   : > { %v1211_v19 = vpack.c.bf16 %v806_v7, %v805_v50  ;;  %v804_v2 = vmul.f32 %v772_v16, %v548_v14 }
 0x151   : > { %v1431_v13 = vpop.eup %1430  ;;  %v1251_v38 = vpack.c.bf16 %v822_v17, %v821_v1 }
 0x152   : > { %1259 = vst [vmem:[%s1737_s8 + $0x38] sm:$0xff] %v1211_v19   ;;  %v1206_v60 = vpack.c.bf16 %v804_v2, %v803_v51  ;;  %v788_v26 = vadd.f32 1.0, %v1431_v13 }
 0x153   : > { %1267 = vst [vmem:[%s1737_s8 + $0x78] sm:$0xff] %v1251_v38  }
 0x154   : > { %1258 = vst [vmem:[%s1737_s8 + $0x30] sm:$0xff] %v1206_v60   ;;  %v820_v10 = vmul.f32 %v788_v26, %v564_v24 }
 0x156   : > { %v1246_v21 = vpack.c.bf16 %v820_v10, %v819_v62 }
 0x158   : > { %1266 = vst [vmem:[%s1737_s8 + $0x70] sm:$0xff] %v1246_v21  }
 0x159 PF: > { %s15_s12 = sadd.s32 1, %s1498_s12  }
 0x15a   : > { %p12_p3 = scmp.ge.s32.totalorder %s15_s12, 4  }
 0x15c   :  { %14 = sbr.rel (!%p12_p3) target bundleno = 2 (0x2), region = 71 }
 0x161   :  { %1005 = vsyncpa [#allocation3], 1 }
 0x162   :  { %1007 = vsyncpa [#allocation3 + $0x1], 1 }
 0x163   :  { %1008 = vsyncpa [#allocation5], 1 }

// kernel: _lambda_.12
= control target key start
LH: loop header
LB: loop body
LE: loop exit
PB: predicated region body
PF: predicated region fallthrough
CT: control target
= control target key end

     0   :  { %s1407_s12 = smov 0   ;;  %s1756_s0 = inlined_call_operand.vmem [shape: bf16[512,24], index: 0, kind: input, shape index: {}]   ;;  %s1757_s1 = inlined_call_operand.vmem [shape: bf16[24,128], index: 1, kind: input, shape index: {}]   ;;  %s1758_s2 = inlined_call_operand.vmem [shape: f32[1,128], index: 2, kind: input, shape index: {}]   ;;  %s1759_s3 = inlined_call_operand.vmem [shape: bf16[512,128], index: 3, kind: output, shape index: {}]  }
   0x1 LB: > { %s1024_s13 = sadd.s32 4294967295, %s1385_s12   ;;  %p1028_p0 = scmp.ge.s32.totalorder %s1385_s12, 1  ;;  %s1385_s12 = sphi %s1407_s12, %s13_s12  }
   0x2   : > { %p138_p1 = scmp.lt.s32.totalorder %s1385_s12, 3 }
   0x4   : > { %p139_p2 = pnand %p1028_p0, %p138_p1 }
   0x5   : > { %s1029_s18 = sshll.u32 (!%p139_p2), %s1024_s13, 5 }
   0x6   : > { %142 = sbr.rel (%p139_p2) target bundleno = 316 (0x13c), region = 32  ;;  %p163_p3 = scmp.lt.s32.totalorder (!%p139_p2), %s1029_s18, 63 }
   0xb   : > { %v1297_v0 = vld [vmem:[%s1757_s1 + $0x8] ss:$0 sps:$4 sm:$0xff]   ;;  %vm355_vm0 = vcmask 1043456   ;;  %v1298_v1 = vld [vmem:[%s1757_s1] sm:$0xff]   ;;  %s1761_s18 = smov (!%p163_p3, %s1029_s18), 63  ;;  %vm306_vm1 = vcmask 195584  }
   0xc   : > { %1287 = vmatprep.subr.msk.bf16.mxu0 %vm355_vm0, %v1297_v0  ;;  %1288 = vmatprep.subr.msk.bf16.mxu1 %vm355_vm0, %v1297_v0  ;;  %v357_v2 = vsel %vm355_vm0, %v1297_v0, 0  ;;  %s1030_s19 = sshll.u32 %s1761_s18, 2  ;;  %v1466_v19 = vld [vmem:[%s1758_s2] ss:$0 sm:$0xff] }
   0xd   : > { %1248 = vmatpush3.bf16.msra.mxu0 %v357_v2  ;;  %1285 = vmatpush3.bf16.msra.mxu1 %v357_v2  ;;  %s1429_s22 = scalar_lea.vmem %s1756_s0, %s1030_s19  ;;  %s1583_s27 = scalar_lea.vmem %s1759_s3, %s1030_s19 }
   0xe   : > { %1249 = vmatprep.subr.bf16.mxu0 %v1298_v1  ;;  %1284 = vmatprep.subr.bf16.mxu1 %v1298_v1  ;;  %v1299_v3 = vld [vmem:[%s1429_s22] sm:$0xff]   ;;  %v1301_v5 = vld [vmem:[%s1429_s22 + $0x8] sm:$0xff]   ;;  %v1303_v7 = vld [vmem:[%s1429_s22 + $0x10] sm:$0xff]  }
   0xf   : > { %v1300_v4 = vld [vmem:[%s1429_s22 + $0x40] sm:$0xff]   ;;  %1251 = vmatprep.mubr.msk.bf16.mxu0 %vm306_vm1, %v1299_v3  ;;  %v1302_v6 = vld [vmem:[%s1429_s22 + $0x48] sm:$0xff]   ;;  %v1304_v8 = vld [vmem:[%s1429_s22 + $0x50] sm:$0xff]  }
  0x10   : > { %1267 = vmatprep.mubr.msk.bf16.mxu1 %vm306_vm1, %v1300_v4  ;;  %v1305_v9 = vld [vmem:[%s1429_s22 + $0x18] sm:$0xff]   ;;  %v1307_v11 = vld [vmem:[%s1429_s22 + $0x20] sm:$0xff]   ;;  %v1309_v13 = vld [vmem:[%s1429_s22 + $0x28] sm:$0xff]  }
  0x11   : > { %1250 = vmatpush3.bf16.msra.mxu0 %v1298_v1  ;;  %1286 = vmatpush3.bf16.msra.mxu1 %v1298_v1  ;;  %v1306_v10 = vld [vmem:[%s1429_s22 + $0x58] sm:$0xff]   ;;  %v1308_v12 = vld [vmem:[%s1429_s22 + $0x60] sm:$0xff]   ;;  %v1310_v14 = vld [vmem:[%s1429_s22 + $0x68] sm:$0xff]  }
  0x12   : > { %v1311_v15 = vld [vmem:[%s1429_s22 + $0x30] sm:$0xff]   ;;  %v1313_v17 = vld [vmem:[%s1429_s22 + $0x38] sm:$0xff]  }
  0x13   : > { %v1312_v16 = vld [vmem:[%s1429_s22 + $0x70] sm:$0xff]   ;;  %v1314_v18 = vld [vmem:[%s1429_s22 + $0x78] sm:$0xff]  }
  0x14   : > { %1252 = vmatmul.mubr.msk.bf16.vlgmr.msra.gmra.mxu0 %vm306_vm1, %v1301_v5  ;;  %1268 = vmatmul.mubr.msk.bf16.vlgmr.msra.gmra.mxu1 %vm306_vm1, %v1302_v6 }
  0x15   : > { %1255 = vmatprep.mubr.msk.bf16.mxu0 %vm306_vm1, %v1303_v7  ;;  %1271 = vmatprep.mubr.msk.bf16.mxu1 %vm306_vm1, %v1304_v8 }
  0x1c   : > { %1256 = vmatmul.mubr.msk.bf16.gmra.mxu0 %vm306_vm1, %v1305_v9  ;;  %1272 = vmatmul.mubr.msk.bf16.gmra.mxu1 %vm306_vm1, %v1306_v10 }
  0x1d   : > { %1259 = vmatprep.mubr.msk.bf16.mxu0 %vm306_vm1, %v1307_v11  ;;  %1275 = vmatprep.mubr.msk.bf16.mxu1 %vm306_vm1, %v1308_v12 }
  0x24   : > { %1260 = vmatmul.mubr.msk.bf16.gmra.mxu0 %vm306_vm1, %v1309_v13  ;;  %1276 = vmatmul.mubr.msk.bf16.gmra.mxu1 %vm306_vm1, %v1310_v14 }
  0x25   : > { %1263 = vmatprep.mubr.msk.bf16.mxu0 %vm306_vm1, %v1311_v15  ;;  %1279 = vmatprep.mubr.msk.bf16.mxu1 %vm306_vm1, %v1312_v16 }
  0x2c   : > { %1264 = vmatmul.mubr.msk.bf16.gmra.mxu0 %vm306_vm1, %v1313_v17  ;;  %1280 = vmatmul.mubr.msk.bf16.gmra.mxu1 %vm306_vm1, %v1314_v18 }
  0xd4   : > { %v1253_v20 = vpop.f32.mrf.mxu0  ;;  %v1269_v22 = vpop.f32.mrf.mxu1 }
  0xd5   : > { %v1469_v21 = vadd.f32 %v1253_v20, %v1466_v19  ;;  %v1472_v23 = vadd.f32 %v1269_v22, %v1466_v19 }
  0xd6   : > { %v393_v24 = vpop.f32.mrf.mxu0  ;;  %v457_v27 = vpop.f32.mrf.mxu1 }
  0xd7   : > { %v554_v25 = vmul.f32 0.044715, %v1469_v21  ;;  %v1476_v26 = vadd.f32 %v1466_v19, %v393_v24  ;;  %v570_v28 = vmul.f32 0.044715, %v1472_v23  ;;  %v1480_v29 = vadd.f32 %v1466_v19, %v457_v27 }
  0xd8   : > { %v1254_v30 = vpop.f32.mrf.mxu0  ;;  %v1270_v34 = vpop.f32.mrf.mxu1 }
  0xd9   : > { %v586_v31 = vmul.f32 %v554_v25, %v1469_v21  ;;  %v552_v32 = vmul.f32 0.044715, %v1476_v26  ;;  %v1485_v33 = vadd.f32 %v1254_v30, %v1466_v19  ;;  %v602_v35 = vmul.f32 %v570_v28, %v1472_v23 }
  0xda   : > { %v568_v36 = vmul.f32 0.044715, %v1480_v29  ;;  %v1490_v37 = vadd.f32 %v1270_v34, %v1466_v19  ;;  %v396_v38 = vpop.f32.mrf.mxu0  ;;  %v460_v42 = vpop.f32.mrf.mxu1 }
  0xdb   : > { %v618_v39 = vmul.f32 %v586_v31, %v1469_v21  ;;  %v584_v40 = vmul.f32 %v552_v32, %v1476_v26  ;;  %v555_v41 = vmul.f32 0.044715, %v1485_v33  ;;  %v634_v43 = vmul.f32 %v602_v35, %v1472_v23 }
  0xdc   : > { %v600_v44 = vmul.f32 %v568_v36, %v1480_v29  ;;  %v571_v45 = vmul.f32 0.044715, %v1490_v37  ;;  %v1502_v49 = vadd.f32 %v1466_v19, %v396_v38  ;;  %v1257_v50 = vpop.f32.mrf.mxu0  ;;  %v1273_v54 = vpop.f32.mrf.mxu1  ;;  %v1510_v58 = vadd.f32 %v1466_v19, %v460_v42 }
  0xdd   : > { %v650_v46 = vadd.f32 %v618_v39, %v1469_v21  ;;  %v616_v47 = vmul.f32 %v584_v40, %v1476_v26  ;;  %v587_v48 = vmul.f32 %v555_v41, %v1485_v33  ;;  %v666_v51 = vadd.f32 %v634_v43, %v1472_v23 }
  0xde   : > { %v632_v52 = vmul.f32 %v600_v44, %v1480_v29  ;;  %v603_v53 = vmul.f32 %v571_v45, %v1490_v37  ;;  %v553_v62 = vmul.f32 0.044715, %v1502_v49  ;;  %v409_v1 = vpop.f32.mrf.mxu0  ;;  %v473_v5 = vpop.f32.mrf.mxu1  ;;  %v569_v7 = vmul.f32 0.044715, %v1510_v58 }
  0xdf   : > { %v682_v55 = vmul.f32 0.7978846, %v650_v46  ;;  %v648_v56 = vadd.f32 %v616_v47, %v1476_v26  ;;  %v619_v57 = vmul.f32 %v587_v48, %v1485_v33  ;;  %v698_v59 = vmul.f32 0.7978846, %v666_v51 }
  0xe0   : > { %v664_v60 = vadd.f32 %v632_v52, %v1480_v29  ;;  %v635_v61 = vmul.f32 %v603_v53, %v1490_v37  ;;  %v585_v4 = vmul.f32 %v553_v62, %v1502_v49  ;;  %v1520_v8 = vadd.f32 %v1257_v50, %v1466_v19  ;;  %v1258_v14 = vpop.f32.mrf.mxu0  ;;  %v1274_v17 = vpop.f32.mrf.mxu1 }
  0xe1   : > { %1315 = vtanh.f32 %v682_v55  ;;  %v680_v63 = vmul.f32 0.7978846, %v648_v56  ;;  %v651_v0 = vadd.f32 %v619_v57, %v1485_v33  ;;  %v1524_v11 = vadd.f32 %v1273_v54, %v1466_v19 }
  0xe2   : > { %1317 = vtanh.f32 %v698_v59  ;;  %v696_v2 = vmul.f32 0.7978846, %v664_v60  ;;  %v667_v3 = vadd.f32 %v635_v61, %v1490_v37  ;;  %v617_v10 = vmul.f32 %v585_v4, %v1502_v49  ;;  %v412_v53 = vpop.f32.mrf.mxu0  ;;  %v476_v62 = vpop.f32.mrf.mxu1 }
  0xe3   : > { %1319 = vtanh.f32 %v680_v63  ;;  %v683_v6 = vmul.f32 0.7978846, %v651_v0  ;;  %v601_v12 = vmul.f32 %v569_v7, %v1510_v58  ;;  %v558_v13 = vmul.f32 0.044715, %v1520_v8 }
  0xe4   : > { %1321 = vtanh.f32 %v696_v2  ;;  %v699_v9 = vmul.f32 0.7978846, %v667_v3  ;;  %v649_v15 = vadd.f32 %v617_v10, %v1502_v49  ;;  %v574_v16 = vmul.f32 0.044715, %v1524_v11 }
  0xe5   : > { %1323 = vtanh.f32 %v683_v6  ;;  %v633_v18 = vmul.f32 %v601_v12, %v1510_v58  ;;  %v590_v20 = vmul.f32 %v558_v13, %v1520_v8  ;;  %v1533_v22 = vadd.f32 %v1466_v19, %v409_v1  ;;  %v1261_v13 = vpop.f32.mrf.mxu0 }
  0xe6   : > { %1325 = vtanh.f32 %v699_v9  ;;  %v1536_v24 = vadd.f32 %v1466_v19, %v473_v5  ;;  %v681_v25 = vmul.f32 0.7978846, %v649_v15  ;;  %v606_v27 = vmul.f32 %v574_v16, %v1524_v11 }
  0xe7   : > { %v1540_v28 = vadd.f32 %v1258_v14, %v1466_v19  ;;  %v665_v30 = vadd.f32 %v633_v18, %v1510_v58  ;;  %v622_v31 = vmul.f32 %v590_v20, %v1520_v8  ;;  %v556_v32 = vmul.f32 0.044715, %v1533_v22  ;;  %v1277_v18 = vpop.f32.mrf.mxu1 }
  0xe8   : > { %v1546_v34 = vadd.f32 %v1274_v17, %v1466_v19  ;;  %1327 = vtanh.f32 %v681_v25  ;;  %v638_v35 = vmul.f32 %v606_v27, %v1524_v11  ;;  %v572_v36 = vmul.f32 0.044715, %v1536_v24 }
  0xe9   : > { %v522_v38 = vmul.f32 0.5, %v1469_v21  ;;  %v697_v39 = vmul.f32 0.7978846, %v665_v30  ;;  %v654_v40 = vadd.f32 %v622_v31, %v1520_v8  ;;  %v588_v41 = vmul.f32 %v556_v32, %v1533_v22 }
  0xea   : > { %v538_v42 = vmul.f32 0.5, %v1472_v23  ;;  %v670_v43 = vadd.f32 %v638_v35, %v1524_v11  ;;  %v604_v44 = vmul.f32 %v572_v36, %v1536_v24  ;;  %v559_v45 = vmul.f32 0.044715, %v1540_v28 }
  0xeb   : > { %1329 = vtanh.f32 %v697_v39  ;;  %v686_v46 = vmul.f32 0.7978846, %v654_v40  ;;  %v620_v47 = vmul.f32 %v588_v41, %v1533_v22  ;;  %v575_v48 = vmul.f32 0.044715, %v1546_v34  ;;  %v425_v39 = vpop.f32.mrf.mxu0 }
  0xec   : > { %v520_v50 = vmul.f32 0.5, %v1476_v26  ;;  %v702_v51 = vmul.f32 0.7978846, %v670_v43  ;;  %v636_v52 = vmul.f32 %v604_v44, %v1536_v24  ;;  %v591_v23 = vmul.f32 %v559_v45, %v1540_v28 }
  0xed   : > { %v536_v56 = vmul.f32 0.5, %v1480_v29  ;;  %1331 = vtanh.f32 %v686_v46  ;;  %v607_v57 = vmul.f32 %v575_v48, %v1546_v34  ;;  %v652_v61 = vadd.f32 %v620_v47, %v1533_v22 }
  0xee   : > { %v1316_v21 = vpop.eup %1315  ;;  %1333 = vtanh.f32 %v702_v51  ;;  %v623_v26 = vmul.f32 %v591_v23, %v1540_v28  ;;  %v523_v0 = vmul.f32 0.5, %v1485_v33  ;;  %v539_v1 = vmul.f32 0.5, %v1490_v37  ;;  %v489_v23 = vpop.f32.mrf.mxu1 }
  0xef   : > { %v1318_v54 = vpop.eup %1317  ;;  %v746_v55 = vadd.f32 1.0, %v1316_v21  ;;  %v639_v2 = vmul.f32 %v607_v57, %v1546_v34  ;;  %v1570_v29 = vadd.f32 %v1466_v19, %v412_v53  ;;  %v521_v4 = vmul.f32 0.5, %v1502_v49 }
  0xf0   : > { %v1320_v59 = vpop.eup %1319  ;;  %v762_v60 = vadd.f32 1.0, %v1318_v54  ;;  %v537_v5 = vmul.f32 0.5, %v1510_v58  ;;  %v668_v6 = vadd.f32 %v636_v52, %v1536_v24  ;;  %v655_v7 = vadd.f32 %v623_v26, %v1540_v28 }
  0xf1   : > { %v1322_v63 = vpop.eup %1321  ;;  %v778_v10 = vmul.f32 %v746_v55, %v522_v38  ;;  %v744_v33 = vadd.f32 1.0, %v1320_v59  ;;  %v671_v37 = vadd.f32 %v639_v2, %v1546_v34  ;;  %v684_v16 = vmul.f32 0.7978846, %v652_v61 }
  0xf2   : > { %v1324_v3 = vpop.eup %1323  ;;  %v794_v14 = vmul.f32 %v762_v60, %v538_v42  ;;  %v687_v17 = vmul.f32 0.7978846, %v655_v7  ;;  %v760_v49 = vadd.f32 1.0, %v1322_v63  ;;  %v557_v25 = vmul.f32 0.044715, %v1570_v29 }
  0xf3   : > { %v1326_v9 = vpop.eup %1325  ;;  %v747_v12 = vadd.f32 1.0, %v1324_v3  ;;  %v703_v58 = vmul.f32 0.7978846, %v671_v37  ;;  %v1586_v30 = vadd.f32 %v1466_v19, %v476_v62  ;;  %v1589_v31 = vadd.f32 %v1261_v13, %v1466_v19  ;;  %v1278_v13 = vpop.f32.mrf.mxu1 }
  0xf4   : > { %v763_v15 = vadd.f32 1.0, %v1326_v9  ;;  %1335 = vtanh.f32 %v687_v17  ;;  %v589_v36 = vmul.f32 %v557_v25, %v1570_v29  ;;  %v1593_v38 = vadd.f32 %v1277_v18, %v1466_v19  ;;  %v1262_v9 = vpop.f32.mrf.mxu0 }
  0xf5   : > { %v779_v20 = vmul.f32 %v747_v12, %v523_v0  ;;  %v1328_v32 = vpop.eup %1327  ;;  %1337 = vtanh.f32 %v703_v58  ;;  %v700_v42 = vmul.f32 0.7978846, %v668_v6  ;;  %v573_v43 = vmul.f32 0.044715, %v1586_v30 }
  0xf6   : > { %v795_v27 = vmul.f32 %v763_v15, %v539_v1  ;;  %v745_v41 = vadd.f32 1.0, %v1328_v32  ;;  %v776_v44 = vmul.f32 %v744_v33, %v520_v50  ;;  %1339 = vtanh.f32 %v684_v16 }
  0xf7   : > { %v1142_v35 = vpack.c.bf16 %v779_v20, %v778_v10  ;;  %v621_v45 = vmul.f32 %v589_v36, %v1570_v29  ;;  %v562_v46 = vmul.f32 0.044715, %v1589_v31  ;;  %v605_v21 = vmul.f32 %v573_v43, %v1586_v30 }
  0xf8   : > { %v1182_v40 = vpack.c.bf16 %v795_v27, %v794_v14  ;;  %v1330_v47 = vpop.eup %1329  ;;  %v777_v48 = vmul.f32 %v745_v41, %v521_v4  ;;  %v578_v51 = vmul.f32 0.044715, %v1593_v38  ;;  %v1603_v52 = vadd.f32 %v1466_v19, %v425_v39  ;;  %v492_v39 = vpop.f32.mrf.mxu1 }
  0xf9   : > { %1214 = vst [vmem:[%s1583_s27 + $0x8] sm:$0xff] %v1142_v35   ;;  %v792_v53 = vmul.f32 %v760_v49, %v536_v56  ;;  %v761_v50 = vadd.f32 1.0, %v1330_v47  ;;  %v653_v54 = vadd.f32 %v621_v45, %v1570_v29  ;;  %v594_v55 = vmul.f32 %v562_v46, %v1589_v31 }
  0xfa   : > { %1222 = vst [vmem:[%s1583_s27 + $0x48] sm:$0xff] %v1182_v40   ;;  %v1332_v57 = vpop.eup %1331  ;;  %v1137_v59 = vpack.c.bf16 %v777_v48, %v776_v44  ;;  %1341 = vtanh.f32 %v700_v42  ;;  %v637_v60 = vmul.f32 %v605_v21, %v1586_v30  ;;  %v610_v61 = vmul.f32 %v578_v51, %v1593_v38 }
  0xfb   : > { %v1334_v26 = vpop.eup %1333  ;;  %v793_v62 = vmul.f32 %v761_v50, %v537_v5  ;;  %v685_v63 = vmul.f32 0.7978846, %v653_v54  ;;  %v626_v0 = vmul.f32 %v594_v55, %v1589_v31  ;;  %v1611_v1 = vadd.f32 %v1466_v19, %v489_v23 }
  0xfc   : > { %1138 = vst [vmem:[%s1583_s27] sm:$0xff] %v1137_v59   ;;  %v526_v56 = vmul.f32 0.5, %v1520_v8  ;;  %v669_v2 = vadd.f32 %v637_v60, %v1586_v30  ;;  %v642_v3 = vmul.f32 %v610_v61, %v1593_v38  ;;  %v560_v4 = vmul.f32 0.044715, %v1603_v52 }
  0xfd   : > { %v1177_v6 = vpack.c.bf16 %v793_v62, %v792_v53  ;;  %v750_v7 = vadd.f32 1.0, %v1332_v57  ;;  %1343 = vtanh.f32 %v685_v63  ;;  %v658_v5 = vadd.f32 %v626_v0, %v1589_v31  ;;  %v1281_v57 = vpop.f32.mrf.mxu1 }
  0xfe   : > { %v766_v10 = vadd.f32 1.0, %v1334_v26  ;;  %v701_v33 = vmul.f32 0.7978846, %v669_v2  ;;  %v674_v12 = vadd.f32 %v642_v3, %v1593_v38  ;;  %v592_v37 = vmul.f32 %v560_v4, %v1603_v52 }
  0xff   : > { %1221 = vst [vmem:[%s1583_s27 + $0x40] sm:$0xff] %v1177_v6   ;;  %v542_v8 = vmul.f32 0.5, %v1524_v11  ;;  %v524_v14 = vmul.f32 0.5, %v1533_v22  ;;  %v690_v15 = vmul.f32 0.7978846, %v658_v5  ;;  %v527_v17 = vmul.f32 0.5, %v1540_v28  ;;  %v428_v11 = vpop.f32.mrf.mxu0 }
 0x100   : > { %v576_v16 = vmul.f32 0.044715, %v1611_v1  ;;  %1345 = vtanh.f32 %v701_v33  ;;  %v706_v18 = vmul.f32 0.7978846, %v674_v12  ;;  %v624_v49 = vmul.f32 %v592_v37, %v1603_v52 }
 0x101   : > { %v1336_v20 = vpop.eup %1335  ;;  %v782_v58 = vmul.f32 %v750_v7, %v526_v56  ;;  %v543_v25 = vmul.f32 0.5, %v1546_v34  ;;  %v1630_v32 = vadd.f32 %v1262_v9, %v1466_v19  ;;  %v798_v35 = vmul.f32 %v766_v10, %v542_v8  ;;  %v1265_v55 = vpop.f32.mrf.mxu0 }
 0x102   : > { %v608_v27 = vmul.f32 %v576_v16, %v1611_v1  ;;  %v1338_v22 = vpop.eup %1337  ;;  %v751_v36 = vadd.f32 1.0, %v1336_v20  ;;  %1347 = vtanh.f32 %v690_v15  ;;  %v656_v28 = vadd.f32 %v624_v49, %v1603_v52  ;;  %v505_v20 = vpop.f32.mrf.mxu1 }
 0x103   : > { %v767_v40 = vadd.f32 1.0, %v1338_v22  ;;  %1349 = vtanh.f32 %v706_v18  ;;  %v563_v42 = vmul.f32 0.044715, %v1630_v32  ;;  %v1340_v34 = vpop.eup %1339  ;;  %v1636_v45 = vadd.f32 %v1278_v13, %v1466_v19  ;;  %v441_v10 = vpop.f32.mrf.mxu0 }
 0x104   : > { %v640_v41 = vmul.f32 %v608_v27, %v1611_v1  ;;  %v783_v43 = vmul.f32 %v751_v36, %v527_v17  ;;  %v688_v44 = vmul.f32 0.7978846, %v656_v28  ;;  %v1639_v46 = vadd.f32 %v1466_v19, %v428_v11 }
 0x105   : > { %v799_v47 = vmul.f32 %v767_v40, %v543_v25  ;;  %v595_v21 = vmul.f32 %v563_v42, %v1630_v32  ;;  %v1644_v51 = vadd.f32 %v1466_v19, %v492_v39  ;;  %v540_v23 = vmul.f32 0.5, %v1536_v24  ;;  %v1266_v11 = vpop.f32.mrf.mxu0 }
 0x106   : > { %v672_v48 = vadd.f32 %v640_v41, %v1611_v1  ;;  %v1152_v53 = vpack.c.bf16 %v783_v43, %v782_v58  ;;  %v525_v50 = vmul.f32 0.5, %v1570_v29  ;;  %v579_v54 = vmul.f32 0.044715, %v1636_v45 }
 0x107   : > { %v1342_v59 = vpop.eup %1341  ;;  %v748_v60 = vadd.f32 1.0, %v1340_v34  ;;  %v1192_v61 = vpack.c.bf16 %v799_v47, %v798_v35  ;;  %1351 = vtanh.f32 %v688_v44  ;;  %v627_v26 = vmul.f32 %v595_v21, %v1630_v32  ;;  %v1282_v21 = vpop.f32.mrf.mxu1 }
 0x108   : > { %1216 = vst [vmem:[%s1583_s27 + $0x18] sm:$0xff] %v1152_v53   ;;  %v704_v62 = vmul.f32 0.7978846, %v672_v48  ;;  %v611_v63 = vmul.f32 %v579_v54, %v1636_v45  ;;  %v561_v24 = vmul.f32 0.044715, %v1639_v46  ;;  %v541_v29 = vmul.f32 0.5, %v1586_v30  ;;  %v444_v54 = vpop.f32.mrf.mxu0 }
 0x109   : > { %v577_v0 = vmul.f32 0.044715, %v1644_v51  ;;  %1224 = vst [vmem:[%s1583_s27 + $0x58] sm:$0xff] %v1192_v61   ;;  %v659_v56 = vadd.f32 %v627_v26, %v1630_v32  ;;  %v1658_v2 = vadd.f32 %v1265_v55, %v1466_v19  ;;  %v1661_v3 = vadd.f32 %v1281_v57, %v1466_v19 }
 0x10a   : > { %v1344_v4 = vpop.eup %1343  ;;  %v764_v6 = vadd.f32 1.0, %v1342_v59  ;;  %v643_v7 = vmul.f32 %v611_v63, %v1636_v45  ;;  %v593_v5 = vmul.f32 %v561_v24, %v1639_v46  ;;  %v780_v33 = vmul.f32 %v748_v60, %v524_v14 }
 0x10b   : > { %v609_v9 = vmul.f32 %v577_v0, %v1644_v51  ;;  %v749_v12 = vadd.f32 1.0, %v1344_v4  ;;  %v691_v30 = vmul.f32 0.7978846, %v659_v56  ;;  %v566_v37 = vmul.f32 0.044715, %v1658_v2 }
 0x10c   : > { %1353 = vtanh.f32 %v704_v62  ;;  %v675_v13 = vadd.f32 %v643_v7, %v1636_v45  ;;  %v625_v8 = vmul.f32 %v593_v5, %v1639_v46  ;;  %v582_v49 = vmul.f32 0.044715, %v1661_v3  ;;  %v508_v5 = vpop.f32.mrf.mxu1 }
 0x10d   : > { %v641_v15 = vmul.f32 %v609_v9, %v1644_v51  ;;  %v1346_v16 = vpop.eup %1345  ;;  %v781_v17 = vmul.f32 %v749_v12, %v525_v50  ;;  %1355 = vtanh.f32 %v691_v30  ;;  %v598_v18 = vmul.f32 %v566_v37, %v1658_v2 }
 0x10e   : > { %v765_v14 = vadd.f32 1.0, %v1346_v16  ;;  %v707_v58 = vmul.f32 0.7978846, %v675_v13  ;;  %v657_v25 = vadd.f32 %v625_v8, %v1639_v46  ;;  %v614_v28 = vmul.f32 %v582_v49, %v1661_v3 }
 0x10f   : > { %v673_v27 = vadd.f32 %v641_v15, %v1644_v51  ;;  %v1348_v22 = vpop.eup %1347  ;;  %v1147_v35 = vpack.c.bf16 %v781_v17, %v780_v33  ;;  %v630_v36 = vmul.f32 %v598_v18, %v1658_v2  ;;  %v1677_v39 = vadd.f32 %v1466_v19, %v441_v10 }
 0x110   : > { %v1350_v40 = vpop.eup %1349  ;;  %v796_v41 = vmul.f32 %v764_v6, %v540_v23  ;;  %v797_v42 = vmul.f32 %v765_v14, %v541_v29  ;;  %1357 = vtanh.f32 %v707_v58  ;;  %v689_v34 = vmul.f32 0.7978846, %v657_v25 }
 0x111   : > { %1215 = vst [vmem:[%s1583_s27 + $0x10] sm:$0xff] %v1147_v35   ;;  %v530_v43 = vmul.f32 0.5, %v1589_v31  ;;  %v546_v44 = vmul.f32 0.5, %v1593_v38  ;;  %v705_v47 = vmul.f32 0.7978846, %v673_v27  ;;  %v646_v48 = vmul.f32 %v614_v28, %v1661_v3 }
 0x112   : > { %v1187_v53 = vpack.c.bf16 %v797_v42, %v796_v41  ;;  %v1684_v50 = vmul.f32 0.5, %v1603_v52  ;;  %1359 = vtanh.f32 %v689_v34  ;;  %v662_v23 = vadd.f32 %v630_v36, %v1658_v2 }
 0x113   : > { %v754_v55 = vadd.f32 1.0, %v1348_v22  ;;  %v1688_v57 = vmul.f32 0.5, %v1611_v1  ;;  %1361 = vtanh.f32 %v705_v47  ;;  %v564_v31 = vmul.f32 0.044715, %v1677_v39 }
 0x114   : > { %v1352_v38 = vpop.eup %1351  ;;  %1223 = vst [vmem:[%s1583_s27 + $0x50] sm:$0xff] %v1187_v53   ;;  %v770_v59 = vadd.f32 1.0, %v1350_v40  ;;  %v1693_v60 = vadd.f32 %v1466_v19, %v505_v20  ;;  %v1696_v52 = vadd.f32 %v1266_v11, %v1466_v19  ;;  %v1699_v61 = vadd.f32 %v1282_v21, %v1466_v19 }
 0x115   : > { %v531_v26 = vmul.f32 0.5, %v1630_v32  ;;  %v678_v1 = vadd.f32 %v646_v48, %v1661_v3  ;;  %v596_v62 = vmul.f32 %v564_v31, %v1677_v39  ;;  %v1705_v63 = vadd.f32 %v1466_v19, %v444_v54 }
 0x116   : > { %v547_v24 = vmul.f32 0.5, %v1636_v45  ;;  %v529_v0 = vmul.f32 0.5, %v1639_v46  ;;  %v694_v29 = vmul.f32 0.7978846, %v662_v23  ;;  %v580_v56 = vmul.f32 0.044715, %v1693_v60 }
 0x117   : > { %v786_v4 = vmul.f32 %v754_v55, %v530_v43  ;;  %v545_v6 = vmul.f32 0.5, %v1644_v51  ;;  %v628_v7 = vmul.f32 %v596_v62, %v1677_v39  ;;  %v567_v32 = vmul.f32 0.044715, %v1696_v52 }
 0x118   : > { %v802_v9 = vmul.f32 %v770_v59, %v546_v44  ;;  %v752_v10 = vadd.f32 1.0, %v1352_v38  ;;  %v612_v33 = vmul.f32 %v580_v56, %v1693_v60  ;;  %v583_v12 = vmul.f32 0.044715, %v1699_v61 }
 0x119   : > { %v1354_v45 = vpop.eup %1353  ;;  %v710_v30 = vmul.f32 0.7978846, %v678_v1  ;;  %v660_v46 = vadd.f32 %v628_v7, %v1677_v39  ;;  %v599_v37 = vmul.f32 %v567_v32, %v1696_v52  ;;  %v565_v13 = vmul.f32 0.044715, %v1705_v63 }
 0x11a   : > { %v1356_v51 = vpop.eup %1355  ;;  %1363 = vtanh.f32 %v694_v29  ;;  %v644_v8 = vmul.f32 %v612_v33, %v1693_v60  ;;  %v615_v15 = vmul.f32 %v583_v12, %v1699_v61  ;;  %v1721_v16 = vadd.f32 %v1466_v19, %v508_v5 }
 0x11b   : > { %v755_v17 = vadd.f32 1.0, %v1356_v51  ;;  %v692_v18 = vmul.f32 0.7978846, %v660_v46  ;;  %v631_v49 = vmul.f32 %v599_v37, %v1696_v52  ;;  %v597_v20 = vmul.f32 %v565_v13, %v1705_v63 }
 0x11c   : > { %v768_v14 = vadd.f32 1.0, %v1354_v45  ;;  %v676_v58 = vadd.f32 %v644_v8, %v1693_v60  ;;  %v647_v25 = vmul.f32 %v615_v15, %v1699_v61  ;;  %v581_v27 = vmul.f32 0.044715, %v1721_v16 }
 0x11d   : > { %v1358_v11 = vpop.eup %1357  ;;  %v787_v22 = vmul.f32 %v755_v17, %v531_v26  ;;  %1365 = vtanh.f32 %v710_v30  ;;  %v663_v35 = vadd.f32 %v631_v49, %v1696_v52  ;;  %v629_v19 = vmul.f32 %v597_v20, %v1705_v63 }
 0x11e   : > { %v771_v36 = vadd.f32 1.0, %v1358_v11  ;;  %v708_v28 = vmul.f32 0.7978846, %v676_v58  ;;  %v679_v40 = vadd.f32 %v647_v25, %v1699_v61  ;;  %v613_v41 = vmul.f32 %v581_v27, %v1721_v16 }
 0x11f   : > { %v1360_v42 = vpop.eup %1359  ;;  %v1162_v34 = vpack.c.bf16 %v787_v22, %v786_v4  ;;  %1367 = vtanh.f32 %v692_v18  ;;  %v695_v43 = vmul.f32 0.7978846, %v663_v35  ;;  %v661_v44 = vadd.f32 %v629_v19, %v1705_v63 }
 0x120   : > { %v1362_v47 = vpop.eup %1361  ;;  %v803_v48 = vmul.f32 %v771_v36, %v547_v24  ;;  %v753_v21 = vadd.f32 1.0, %v1360_v42  ;;  %1369 = vtanh.f32 %v708_v28  ;;  %v711_v53 = vmul.f32 0.7978846, %v679_v40 }
 0x121   : > { %1218 = vst [vmem:[%s1583_s27 + $0x28] sm:$0xff] %v1162_v34   ;;  %v769_v23 = vadd.f32 1.0, %v1362_v47  ;;  %1371 = vtanh.f32 %v695_v43  ;;  %v693_v54 = vmul.f32 0.7978846, %v661_v44  ;;  %v645_v55 = vmul.f32 %v613_v41, %v1721_v16 }
 0x122   : > { %v784_v31 = vmul.f32 %v752_v10, %v1684_v50  ;;  %v1202_v38 = vpack.c.bf16 %v803_v48, %v802_v9  ;;  %v785_v59 = vmul.f32 %v753_v21, %v529_v0  ;;  %1373 = vtanh.f32 %v711_v53 }
 0x123   : > { %v800_v26 = vmul.f32 %v768_v14, %v1688_v57  ;;  %v801_v1 = vmul.f32 %v769_v23, %v545_v6  ;;  %1375 = vtanh.f32 %v693_v54  ;;  %v677_v62 = vadd.f32 %v645_v55, %v1721_v16 }
 0x124   : > { %1226 = vst [vmem:[%s1583_s27 + $0x68] sm:$0xff] %v1202_v38   ;;  %v1157_v24 = vpack.c.bf16 %v785_v59, %v784_v31  ;;  %v534_v57 = vmul.f32 0.5, %v1658_v2  ;;  %v535_v33 = vmul.f32 0.5, %v1696_v52  ;;  %v550_v30 = vmul.f32 0.5, %v1661_v3 }
 0x125   : > { %v1197_v29 = vpack.c.bf16 %v801_v1, %v800_v26  ;;  %v709_v56 = vmul.f32 0.7978846, %v677_v62  ;;  %v532_v46 = vmul.f32 0.5, %v1677_v39  ;;  %v551_v37 = vmul.f32 0.5, %v1699_v61 }
 0x126   : > { %1217 = vst [vmem:[%s1583_s27 + $0x20] sm:$0xff] %v1157_v24   ;;  %v533_v15 = vmul.f32 0.5, %v1705_v63  ;;  %v548_v58 = vmul.f32 0.5, %v1693_v60  ;;  %v549_v25 = vmul.f32 0.5, %v1721_v16 }
 0x127   : > { %v1364_v4 = vpop.eup %1363  ;;  %1225 = vst [vmem:[%s1583_s27 + $0x60] sm:$0xff] %v1197_v29   ;;  %1377 = vtanh.f32 %v709_v56 }
 0x128   : > { %v758_v5 = vadd.f32 1.0, %v1364_v4 }
 0x12a   : > { %v1366_v7 = vpop.eup %1365  ;;  %v790_v51 = vmul.f32 %v758_v5, %v534_v57 }
 0x12b   : > { %v774_v9 = vadd.f32 1.0, %v1366_v7 }
 0x12c   : > { %v1368_v32 = vpop.eup %1367 }
 0x12d   : > { %v1370_v50 = vpop.eup %1369  ;;  %v756_v6 = vadd.f32 1.0, %v1368_v32  ;;  %v806_v2 = vmul.f32 %v774_v9, %v550_v30 }
 0x12e   : > { %v1372_v0 = vpop.eup %1371  ;;  %v772_v49 = vadd.f32 1.0, %v1370_v50 }
 0x12f   : > { %v1374_v10 = vpop.eup %1373  ;;  %v759_v12 = vadd.f32 1.0, %v1372_v0  ;;  %v788_v52 = vmul.f32 %v756_v6, %v532_v46 }
 0x130   : > { %v1376_v45 = vpop.eup %1375  ;;  %v775_v13 = vadd.f32 1.0, %v1374_v10  ;;  %v804_v63 = vmul.f32 %v772_v49, %v548_v58 }
 0x131   : > { %v791_v8 = vmul.f32 %v759_v12, %v535_v33  ;;  %v757_v17 = vadd.f32 1.0, %v1376_v45 }
 0x132   : > { %v807_v18 = vmul.f32 %v775_v13, %v551_v37 }
 0x133   : > { %v1172_v20 = vpack.c.bf16 %v791_v8, %v790_v51  ;;  %v789_v3 = vmul.f32 %v757_v17, %v533_v15 }
 0x134   : > { %v1378_v14 = vpop.eup %1377  ;;  %v1212_v39 = vpack.c.bf16 %v807_v18, %v806_v2 }
 0x135   : > { %1220 = vst [vmem:[%s1583_s27 + $0x38] sm:$0xff] %v1172_v20   ;;  %v1167_v61 = vpack.c.bf16 %v789_v3, %v788_v52  ;;  %v773_v27 = vadd.f32 1.0, %v1378_v14 }
 0x136   : > { %1228 = vst [vmem:[%s1583_s27 + $0x78] sm:$0xff] %v1212_v39  }
 0x137   : > { %1219 = vst [vmem:[%s1583_s27 + $0x30] sm:$0xff] %v1167_v61   ;;  %v805_v11 = vmul.f32 %v773_v27, %v549_v25 }
 0x139   : > { %v1207_v22 = vpack.c.bf16 %v805_v11, %v804_v63 }
 0x13b   : > { %1227 = vst [vmem:[%s1583_s27 + $0x70] sm:$0xff] %v1207_v22  }
 0x13c PF: > { %s13_s12 = sadd.s32 1, %s1385_s12  }
 0x13d   : > { %p10_p4 = scmp.ge.s32.totalorder %s13_s12, 4  }
 0x13f   :  { %12 = sbr.rel (!%p10_p4) target bundleno = 1 (0x1), region = 62 }

// kernel: _lambda_.14
= control target key start
LH: loop header
LB: loop body
LE: loop exit
PB: predicated region body
PF: predicated region fallthrough
CT: control target
= control target key end

     0   :  { %s1614_s12 = smov 0   ;;  %s2046_s0 = inlined_call_operand.vmem [shape: bf16[512,216], index: 0, kind: input, shape index: {}]   ;;  %s2047_s1 = inlined_call_operand.vmem [shape: bf16[216,128], index: 1, kind: input, shape index: {}]   ;;  %s2048_s2 = inlined_call_operand.vmem [shape: f32[1,128], index: 2, kind: input, shape index: {}]   ;;  %s2049_s3 = inlined_call_operand.vmem [shape: bf16[512,128], index: 3, kind: output, shape index: {}]  }
   0x1 LB: > { %s1187_s13 = sadd.s32 4294967295, %s1591_s12   ;;  %p1191_p0 = scmp.ge.s32.totalorder %s1591_s12, 1  ;;  %s1591_s12 = sphi %s1614_s12, %s13_s12  }
   0x2   : > { %p139_p1 = scmp.lt.s32.totalorder %s1591_s12, 3 }
   0x4   : > { %p140_p2 = pnand %p1191_p0, %p139_p1 }
   0x5   : > { %s1192_s18 = sshll.u32 (!%p140_p2), %s1187_s13, 5 }
   0x6   : > { %143 = sbr.rel (%p140_p2) target bundleno = 370 (0x172), region = 32  ;;  %p165_p3 = scmp.lt.s32.totalorder (!%p140_p2), %s1192_s18, 63 }
   0xb   : > { %v1459_v0 = vld [vmem:[%s2047_s1 + $0x38] sm:$0xff]   ;;  %v1593_v1 = vmov 0   ;;  %v1460_v2 = vld [vmem:[%s2047_s1 + $0x30] sm:$0xff]   ;;  %s2051_s18 = smov (!%p165_p3, %s1192_s18), 63  ;;  %v1461_v3 = vld [vmem:[%s2047_s1 + $0x28] sm:$0xff]   ;;  %vm469_vm0 = vcmask 719872  }
   0xc   : > { %522 = vmatprep.subr.bf16.mxu0 %v1593_v1  ;;  %1422 = vmatprep.subr.bf16.mxu1 %v1593_v1  ;;  %s1294_s21 = sshll.u32 %s2051_s18, 3  ;;  %v1462_v4 = vld [vmem:[%s2047_s1 + $0x20] sm:$0xff]   ;;  %v1463_v5 = vld [vmem:[%s2047_s1 + $0x18] sm:$0xff]   ;;  %v1464_v8 = vld [vmem:[%s2047_s1 + $0x10] sm:$0xff]   ;;  %vm518_vm1 = vcmask 1043456   ;;  %s1196_s24 = sshll.u32 %s2051_s18, 2 }
   0xd   : > { %523 = vmatpush1.bf16.msra.mxu0 %v1459_v0  ;;  %1436 = vmatpush1.bf16.msra.mxu1 %v1459_v0  ;;  %s1648_s26 = scalar_lea.vmem %s2046_s0, %s1294_s21  ;;  %v1465_v9 = vld [vmem:[%s2047_s1 + $0x8] sm:$0xff]   ;;  %v1466_v10 = vld [vmem:[%s2047_s1] sm:$0xff]   ;;  %v1469_v14 = vld [vmem:[%s2047_s1 + $0x58] sm:$0xff]  }
   0xe   : > { %524 = vmatprep.subr.bf16.mxu0 %v1593_v1  ;;  %1423 = vmatprep.subr.bf16.mxu1 %v1593_v1  ;;  %v1475_v6 = vld [vmem:[%s1648_s26 + $0x4] ss:$8 sps:$4 sm:$0xff]   ;;  %v1467_v11 = vld [vmem:[%s2047_s1 + $0x68] ss:$0 sps:$4 sm:$0xff]   ;;  %v1470_v15 = vld [vmem:[%s2047_s1 + $0x50] sm:$0xff]  }
   0xf   : > { %1244 = vmatprep.mubr.msk.bf16.mxu0 %vm469_vm0, %v1475_v6  ;;  %v1478_v7 = vld [vmem:[%s1648_s26 + $0x84] ss:$8 sps:$4 sm:$0xff]   ;;  %v520_v12 = vsel %vm518_vm1, %v1467_v11, 0  ;;  %v1473_v18 = vld [vmem:[%s1648_s26] ss:$8 sps:$4 sm:$0xff]  }
  0x10   : > { %1252 = vmatprep.mubr.msk.bf16.mxu1 %vm469_vm0, %v1478_v7  ;;  %v1468_v13 = vld [vmem:[%s2047_s1 + $0x60] sm:$0xff]   ;;  %v1471_v16 = vld [vmem:[%s2047_s1 + $0x48] sm:$0xff]   ;;  %v1479_v20 = vld [vmem:[%s1648_s26 + $0x14] ss:$8 sps:$4 sm:$0xff]  }
  0x11   : > { %525 = vmatpush1.bf16.msra.mxu0 %v1460_v2  ;;  %1437 = vmatpush1.bf16.msra.mxu1 %v1460_v2  ;;  %v1472_v17 = vld [vmem:[%s2047_s1 + $0x40] sm:$0xff]   ;;  %v1481_v21 = vld [vmem:[%s1648_s26 + $0x94] ss:$8 sps:$4 sm:$0xff]   ;;  %v1483_v22 = vld [vmem:[%s1648_s26 + $0x10] ss:$8 sps:$4 sm:$0xff]  }
  0x12   : > { %526 = vmatprep.subr.bf16.mxu0 %v1593_v1  ;;  %1424 = vmatprep.subr.bf16.mxu1 %v1593_v1  ;;  %v1476_v19 = vld [vmem:[%s1648_s26 + $0x80] ss:$8 sps:$4 sm:$0xff]   ;;  %v1484_v23 = vld [vmem:[%s1648_s26 + $0x90] ss:$8 sps:$4 sm:$0xff]   ;;  %v1485_v24 = vld [vmem:[%s1648_s26 + $0x24] ss:$8 sps:$4 sm:$0xff]  }
  0x13   : > { %v1487_v25 = vld [vmem:[%s1648_s26 + $0xa4] ss:$8 sps:$4 sm:$0xff]   ;;  %v1489_v26 = vld [vmem:[%s1648_s26 + $0x20] ss:$8 sps:$4 sm:$0xff]   ;;  %v1491_v28 = vld [vmem:[%s1648_s26 + $0x34] ss:$8 sps:$4 sm:$0xff]  }
  0x14   : > { %v1490_v27 = vld [vmem:[%s1648_s26 + $0xa0] ss:$8 sps:$4 sm:$0xff]   ;;  %v1493_v29 = vld [vmem:[%s1648_s26 + $0xb4] ss:$8 sps:$4 sm:$0xff]   ;;  %v1495_v30 = vld [vmem:[%s1648_s26 + $0x30] ss:$8 sps:$4 sm:$0xff]  }
  0x15   : > { %527 = vmatpush1.bf16.msra.mxu0 %v1461_v3  ;;  %1438 = vmatpush1.bf16.msra.mxu1 %v1461_v3  ;;  %v1496_v31 = vld [vmem:[%s1648_s26 + $0xb0] ss:$8 sps:$4 sm:$0xff]   ;;  %v1497_v32 = vld [vmem:[%s1648_s26 + $0x44] ss:$8 sps:$4 sm:$0xff]   ;;  %v1501_v34 = vld [vmem:[%s1648_s26 + $0x40] ss:$8 sps:$4 sm:$0xff]  }
  0x16   : > { %528 = vmatprep.subr.bf16.mxu0 %v1593_v1  ;;  %1425 = vmatprep.subr.bf16.mxu1 %v1593_v1  ;;  %v1499_v33 = vld [vmem:[%s1648_s26 + $0xc4] ss:$8 sps:$4 sm:$0xff]   ;;  %v1502_v35 = vld [vmem:[%s1648_s26 + $0xc0] ss:$8 sps:$4 sm:$0xff]   ;;  %v1503_v36 = vld [vmem:[%s1648_s26 + $0x54] ss:$8 sps:$4 sm:$0xff]  }
  0x17   : > { %v1505_v37 = vld [vmem:[%s1648_s26 + $0xd4] ss:$8 sps:$4 sm:$0xff]   ;;  %v1507_v38 = vld [vmem:[%s1648_s26 + $0x50] ss:$8 sps:$4 sm:$0xff]   ;;  %v1509_v40 = vld [vmem:[%s1648_s26 + $0x64] ss:$8 sps:$4 sm:$0xff]  }
  0x18   : > { %v1508_v39 = vld [vmem:[%s1648_s26 + $0xd0] ss:$8 sps:$4 sm:$0xff]   ;;  %v1511_v41 = vld [vmem:[%s1648_s26 + $0xe4] ss:$8 sps:$4 sm:$0xff]   ;;  %v1513_v42 = vld [vmem:[%s1648_s26 + $0x60] ss:$8 sps:$4 sm:$0xff]  }
  0x19   : > { %529 = vmatpush1.bf16.msra.mxu0 %v1462_v4  ;;  %1439 = vmatpush1.bf16.msra.mxu1 %v1462_v4  ;;  %v1514_v43 = vld [vmem:[%s1648_s26 + $0xe0] ss:$8 sps:$4 sm:$0xff]   ;;  %v1515_v44 = vld [vmem:[%s1648_s26 + $0x74] ss:$8 sps:$4 sm:$0xff]   ;;  %v1519_v46 = vld [vmem:[%s1648_s26 + $0x70] ss:$8 sps:$4 sm:$0xff]  }
  0x1a   : > { %530 = vmatprep.subr.bf16.mxu0 %v1593_v1  ;;  %1426 = vmatprep.subr.bf16.mxu1 %v1593_v1  ;;  %v1517_v45 = vld [vmem:[%s1648_s26 + $0xf4] ss:$8 sps:$4 sm:$0xff]   ;;  %v1520_v47 = vld [vmem:[%s1648_s26 + $0xf0] ss:$8 sps:$4 sm:$0xff]   ;;  %v1751_v48 = vld [vmem:[%s2048_s2] ss:$0 sm:$0xff]  ;;  %s1863_s26 = scalar_lea.vmem %s2049_s3, %s1196_s24 }
  0x1d   : > { %531 = vmatpush1.bf16.msra.mxu0 %v1463_v5  ;;  %1440 = vmatpush1.bf16.msra.mxu1 %v1463_v5 }
  0x1e   : > { %532 = vmatprep.subr.bf16.mxu0 %v1593_v1  ;;  %1427 = vmatprep.subr.bf16.mxu1 %v1593_v1 }
  0x21   : > { %533 = vmatpush1.bf16.msra.mxu0 %v1464_v8  ;;  %1441 = vmatpush1.bf16.msra.mxu1 %v1464_v8 }
  0x22   : > { %534 = vmatprep.subr.bf16.mxu0 %v1593_v1  ;;  %1428 = vmatprep.subr.bf16.mxu1 %v1593_v1 }
  0x25   : > { %535 = vmatpush1.bf16.msra.mxu0 %v1465_v9  ;;  %1442 = vmatpush1.bf16.msra.mxu1 %v1465_v9 }
  0x26   : > { %536 = vmatprep.subr.bf16.mxu0 %v1593_v1  ;;  %1429 = vmatprep.subr.bf16.mxu1 %v1593_v1 }
  0x29   : > { %537 = vmatpush1.bf16.msra.mxu0 %v1466_v10  ;;  %1443 = vmatpush1.bf16.msra.mxu1 %v1466_v10 }
  0x2a   : > { %542 = vmatprep.subr.bf16.mxu0 %v1593_v1  ;;  %1430 = vmatprep.subr.bf16.mxu1 %v1593_v1 }
  0x2d   : > { %543 = vmatpush2.bf16.msra.mxu0 %v520_v12  ;;  %1444 = vmatpush2.bf16.msra.mxu1 %v520_v12 }
  0x2e   : > { %544 = vmatprep.subr.bf16.mxu0 %v1593_v1  ;;  %1431 = vmatprep.subr.bf16.mxu1 %v1593_v1 }
  0x31   : > { %545 = vmatpush2.bf16.msra.mxu0 %v1468_v13  ;;  %1445 = vmatpush2.bf16.msra.mxu1 %v1468_v13 }
  0x32   : > { %546 = vmatprep.subr.bf16.mxu0 %v1593_v1  ;;  %1432 = vmatprep.subr.bf16.mxu1 %v1593_v1 }
  0x35   : > { %547 = vmatpush2.bf16.msra.mxu0 %v1469_v14  ;;  %1446 = vmatpush2.bf16.msra.mxu1 %v1469_v14 }
  0x36   : > { %548 = vmatprep.subr.bf16.mxu0 %v1593_v1  ;;  %1433 = vmatprep.subr.bf16.mxu1 %v1593_v1 }
  0x39   : > { %549 = vmatpush2.bf16.msra.mxu0 %v1470_v15  ;;  %1447 = vmatpush2.bf16.msra.mxu1 %v1470_v15 }
  0x3a   : > { %550 = vmatprep.subr.bf16.mxu0 %v1593_v1  ;;  %1434 = vmatprep.subr.bf16.mxu1 %v1593_v1 }
  0x3d   : > { %551 = vmatpush2.bf16.msra.mxu0 %v1471_v16  ;;  %1448 = vmatpush2.bf16.msra.mxu1 %v1471_v16 }
  0x3e   : > { %552 = vmatprep.subr.bf16.mxu0 %v1593_v1  ;;  %1435 = vmatprep.subr.bf16.mxu1 %v1593_v1 }
  0x41   : > { %553 = vmatpush2.bf16.msra.mxu0 %v1472_v17  ;;  %1449 = vmatpush2.bf16.msra.mxu1 %v1472_v17 }
  0x44   : > { %555 = vmatmul.mubr.bf16.vlgmr.msra.gmra.mxu0 %v1473_v18  ;;  %619 = vmatmul.mubr.bf16.vlgmr.msra.gmra.mxu1 %v1476_v19 }
  0x45   : > { %1245 = vmatprep.mubr.msk.bf16.mxu0 %vm469_vm0, %v1479_v20  ;;  %1253 = vmatprep.mubr.msk.bf16.mxu1 %vm469_vm0, %v1481_v21 }
  0x4c   : > { %563 = vmatmul.mubr.bf16.gmra.mxu0 %v1483_v22  ;;  %627 = vmatmul.mubr.bf16.gmra.mxu1 %v1484_v23 }
  0x4d   : > { %1246 = vmatprep.mubr.msk.bf16.mxu0 %vm469_vm0, %v1485_v24  ;;  %1254 = vmatprep.mubr.msk.bf16.mxu1 %vm469_vm0, %v1487_v25 }
  0x54   : > { %571 = vmatmul.mubr.bf16.gmra.mxu0 %v1489_v26  ;;  %635 = vmatmul.mubr.bf16.gmra.mxu1 %v1490_v27 }
  0x55   : > { %1247 = vmatprep.mubr.msk.bf16.mxu0 %vm469_vm0, %v1491_v28  ;;  %1255 = vmatprep.mubr.msk.bf16.mxu1 %vm469_vm0, %v1493_v29 }
  0x5c   : > { %579 = vmatmul.mubr.bf16.gmra.mxu0 %v1495_v30  ;;  %643 = vmatmul.mubr.bf16.gmra.mxu1 %v1496_v31 }
  0x5d   : > { %1248 = vmatprep.mubr.msk.bf16.mxu0 %vm469_vm0, %v1497_v32  ;;  %1256 = vmatprep.mubr.msk.bf16.mxu1 %vm469_vm0, %v1499_v33 }
  0x64   : > { %587 = vmatmul.mubr.bf16.gmra.mxu0 %v1501_v34  ;;  %651 = vmatmul.mubr.bf16.gmra.mxu1 %v1502_v35 }
  0x65   : > { %1249 = vmatprep.mubr.msk.bf16.mxu0 %vm469_vm0, %v1503_v36  ;;  %1257 = vmatprep.mubr.msk.bf16.mxu1 %vm469_vm0, %v1505_v37 }
  0x6c   : > { %595 = vmatmul.mubr.bf16.gmra.mxu0 %v1507_v38  ;;  %659 = vmatmul.mubr.bf16.gmra.mxu1 %v1508_v39 }
  0x6d   : > { %1250 = vmatprep.mubr.msk.bf16.mxu0 %vm469_vm0, %v1509_v40  ;;  %1258 = vmatprep.mubr.msk.bf16.mxu1 %vm469_vm0, %v1511_v41 }
  0x74   : > { %603 = vmatmul.mubr.bf16.gmra.mxu0 %v1513_v42  ;;  %667 = vmatmul.mubr.bf16.gmra.mxu1 %v1514_v43 }
  0x75   : > { %1251 = vmatprep.mubr.msk.bf16.mxu0 %vm469_vm0, %v1515_v44  ;;  %1259 = vmatprep.mubr.msk.bf16.mxu1 %vm469_vm0, %v1517_v45 }
  0x7c   : > { %611 = vmatmul.mubr.bf16.gmra.mxu0 %v1519_v46  ;;  %675 = vmatmul.mubr.bf16.gmra.mxu1 %v1520_v47 }
 0x104   : > { %v556_v49 = vpop.f32.mrf.mxu0  ;;  %v620_v50 = vpop.f32.mrf.mxu1 }
 0x105   : > { %v1754_v51 = vadd.f32 %v1751_v48, %v556_v49  ;;  %v1757_v52 = vadd.f32 %v1751_v48, %v620_v50 }
 0x106   : > { %v558_v53 = vpop.f32.mrf.mxu0  ;;  %v622_v54 = vpop.f32.mrf.mxu1 }
 0x107   : > { %v715_v55 = vmul.f32 0.044715, %v1754_v51  ;;  %v731_v56 = vmul.f32 0.044715, %v1757_v52 }
 0x108   : > { %v559_v57 = vpop.f32.mrf.mxu0  ;;  %v623_v58 = vpop.f32.mrf.mxu1 }
 0x109   : > { %v747_v59 = vmul.f32 %v715_v55, %v1754_v51  ;;  %v763_v60 = vmul.f32 %v731_v56, %v1757_v52  ;;  %v1764_v61 = vadd.f32 %v1751_v48, %v559_v57  ;;  %v1767_v62 = vadd.f32 %v1751_v48, %v623_v58 }
 0x10a   : > { %v561_v63 = vpop.f32.mrf.mxu0  ;;  %v625_v0 = vpop.f32.mrf.mxu1 }
 0x10b   : > { %v779_v1 = vmul.f32 %v747_v59, %v1754_v51  ;;  %v795_v2 = vmul.f32 %v763_v60, %v1757_v52  ;;  %v716_v3 = vmul.f32 0.044715, %v1764_v61  ;;  %v732_v4 = vmul.f32 0.044715, %v1767_v62 }
 0x10c   : > { %v564_v5 = vpop.f32.mrf.mxu0  ;;  %v628_v6 = vpop.f32.mrf.mxu1 }
 0x10d   : > { %v811_v7 = vadd.f32 %v779_v1, %v1754_v51  ;;  %v827_v8 = vadd.f32 %v795_v2, %v1757_v52  ;;  %v748_v9 = vmul.f32 %v716_v3, %v1764_v61  ;;  %v1777_v10 = vadd.f32 %v1751_v48, %v564_v5 }
 0x10e   : > { %v764_v11 = vmul.f32 %v732_v4, %v1767_v62  ;;  %v1781_v12 = vadd.f32 %v1751_v48, %v628_v6  ;;  %v566_v13 = vpop.f32.mrf.mxu0  ;;  %v630_v14 = vpop.f32.mrf.mxu1  ;;  %v683_v4 = vmul.f32 0.5, %v1754_v51 }
 0x10f   : > { %v843_v15 = vmul.f32 0.7978846, %v811_v7  ;;  %v859_v16 = vmul.f32 0.7978846, %v827_v8  ;;  %v780_v17 = vmul.f32 %v748_v9, %v1764_v61  ;;  %v717_v19 = vmul.f32 0.044715, %v1777_v10 }
 0x110   : > { %v796_v18 = vmul.f32 %v764_v11, %v1767_v62  ;;  %v733_v20 = vmul.f32 0.044715, %v1781_v12  ;;  %v567_v21 = vpop.f32.mrf.mxu0  ;;  %v631_v22 = vpop.f32.mrf.mxu1  ;;  %v699_v7 = vmul.f32 0.5, %v1757_v52 }
 0x111   : > { %1521 = vtanh.f32 %v843_v15  ;;  %v812_v23 = vadd.f32 %v780_v17, %v1764_v61  ;;  %v1789_v24 = vadd.f32 %v1751_v48, %v567_v21  ;;  %v1792_v25 = vadd.f32 %v1751_v48, %v631_v22 }
 0x112   : > { %1523 = vtanh.f32 %v859_v16  ;;  %v828_v26 = vadd.f32 %v796_v18, %v1767_v62  ;;  %v749_v27 = vmul.f32 %v717_v19, %v1777_v10  ;;  %v765_v28 = vmul.f32 %v733_v20, %v1781_v12  ;;  %v569_v29 = vpop.f32.mrf.mxu0  ;;  %v633_v30 = vpop.f32.mrf.mxu1 }
 0x113   : > { %v844_v31 = vmul.f32 0.7978846, %v812_v23  ;;  %v718_v32 = vmul.f32 0.044715, %v1789_v24  ;;  %v734_v36 = vmul.f32 0.044715, %v1792_v25 }
 0x114   : > { %v860_v33 = vmul.f32 0.7978846, %v828_v26  ;;  %v781_v34 = vmul.f32 %v749_v27, %v1777_v10  ;;  %v797_v35 = vmul.f32 %v765_v28, %v1781_v12  ;;  %v572_v37 = vpop.f32.mrf.mxu0  ;;  %v636_v38 = vpop.f32.mrf.mxu1  ;;  %v684_v18 = vmul.f32 0.5, %v1764_v61 }
 0x115   : > { %1525 = vtanh.f32 %v844_v31  ;;  %v750_v39 = vmul.f32 %v718_v32, %v1789_v24  ;;  %v1803_v40 = vadd.f32 %v1751_v48, %v572_v37  ;;  %v1806_v41 = vadd.f32 %v1751_v48, %v636_v38 }
 0x116   : > { %1527 = vtanh.f32 %v860_v33  ;;  %v813_v42 = vadd.f32 %v781_v34, %v1777_v10  ;;  %v829_v43 = vadd.f32 %v797_v35, %v1781_v12  ;;  %v766_v44 = vmul.f32 %v734_v36, %v1792_v25  ;;  %v574_v45 = vpop.f32.mrf.mxu0  ;;  %v638_v46 = vpop.f32.mrf.mxu1 }
 0x117   : > { %v782_v47 = vmul.f32 %v750_v39, %v1789_v24  ;;  %v719_v49 = vmul.f32 0.044715, %v1803_v40  ;;  %v735_v55 = vmul.f32 0.044715, %v1806_v41  ;;  %v700_v34 = vmul.f32 0.5, %v1767_v62 }
 0x118   : > { %v845_v50 = vmul.f32 0.7978846, %v813_v42  ;;  %v861_v53 = vmul.f32 0.7978846, %v829_v43  ;;  %v798_v54 = vmul.f32 %v766_v44, %v1792_v25  ;;  %v575_v56 = vpop.f32.mrf.mxu0  ;;  %v639_v57 = vpop.f32.mrf.mxu1  ;;  %v685_v35 = vmul.f32 0.5, %v1777_v10 }
 0x119   : > { %v814_v58 = vadd.f32 %v782_v47, %v1789_v24  ;;  %v751_v59 = vmul.f32 %v719_v49, %v1803_v40  ;;  %v1818_v60 = vadd.f32 %v1751_v48, %v575_v56  ;;  %v1821_v63 = vadd.f32 %v1751_v48, %v639_v57 }
 0x11a   : > { %1529 = vtanh.f32 %v845_v50  ;;  %v830_v0 = vadd.f32 %v798_v54, %v1792_v25  ;;  %v767_v1 = vmul.f32 %v735_v55, %v1806_v41  ;;  %v577_v2 = vpop.f32.mrf.mxu0  ;;  %v641_v3 = vpop.f32.mrf.mxu1 }
 0x11b   : > { %1531 = vtanh.f32 %v861_v53  ;;  %v846_v5 = vmul.f32 0.7978846, %v814_v58  ;;  %v783_v6 = vmul.f32 %v751_v59, %v1803_v40  ;;  %v720_v11 = vmul.f32 0.044715, %v1818_v60 }
 0x11c   : > { %v862_v8 = vmul.f32 0.7978846, %v830_v0  ;;  %v799_v9 = vmul.f32 %v767_v1, %v1806_v41  ;;  %v580_v13 = vpop.f32.mrf.mxu0  ;;  %v644_v14 = vpop.f32.mrf.mxu1  ;;  %v736_v16 = vmul.f32 0.044715, %v1821_v63 }
 0x11d   : > { %1533 = vtanh.f32 %v846_v5  ;;  %v815_v15 = vadd.f32 %v783_v6, %v1803_v40  ;;  %v1833_v51 = vadd.f32 %v1751_v48, %v580_v13  ;;  %v752_v19 = vmul.f32 %v720_v11, %v1818_v60 }
 0x11e   : > { %v1522_v17 = vpop.eup %1521  ;;  %1535 = vtanh.f32 %v862_v8  ;;  %v831_v52 = vadd.f32 %v799_v9, %v1806_v41  ;;  %v582_v20 = vpop.f32.mrf.mxu0  ;;  %v768_v27 = vmul.f32 %v736_v16, %v1821_v63  ;;  %v1840_v28 = vadd.f32 %v1751_v48, %v644_v14 }
 0x11f   : > { %v646_v21 = vpop.f32.mrf.mxu1  ;;  %v1524_v22 = vpop.eup %1523  ;;  %v907_v23 = vadd.f32 1.0, %v1522_v17  ;;  %v847_v26 = vmul.f32 0.7978846, %v815_v15  ;;  %v784_v31 = vmul.f32 %v752_v19, %v1818_v60  ;;  %v721_v61 = vmul.f32 0.044715, %v1833_v51 }
 0x120   : > { %v923_v29 = vadd.f32 1.0, %v1524_v22  ;;  %v863_v30 = vmul.f32 0.7978846, %v831_v52  ;;  %v583_v32 = vpop.f32.mrf.mxu0  ;;  %v800_v36 = vmul.f32 %v768_v27, %v1821_v63  ;;  %v737_v62 = vmul.f32 0.044715, %v1840_v28 }
 0x121   : > { %v647_v33 = vpop.f32.mrf.mxu1  ;;  %1537 = vtanh.f32 %v847_v26  ;;  %v939_v38 = vmul.f32 %v907_v23, %v683_v4  ;;  %v816_v39 = vadd.f32 %v784_v31, %v1818_v60  ;;  %v753_v42 = vmul.f32 %v721_v61, %v1833_v51 }
 0x122   : > { %v1526_v37 = vpop.eup %1525  ;;  %1539 = vtanh.f32 %v863_v30  ;;  %v585_v43 = vpop.f32.mrf.mxu0  ;;  %v832_v47 = vadd.f32 %v800_v36, %v1821_v63  ;;  %v1853_v10 = vadd.f32 %v1751_v48, %v583_v32  ;;  %v955_v49 = vmul.f32 %v923_v29, %v699_v7 }
 0x123   : > { %v649_v44 = vpop.f32.mrf.mxu1  ;;  %v1528_v45 = vpop.eup %1527  ;;  %v908_v46 = vadd.f32 1.0, %v1526_v37  ;;  %v848_v53 = vmul.f32 0.7978846, %v816_v39  ;;  %v785_v54 = vmul.f32 %v753_v42, %v1833_v51  ;;  %v769_v59 = vmul.f32 %v737_v62, %v1840_v28 }
 0x124   : > { %v924_v50 = vadd.f32 1.0, %v1528_v45  ;;  %v588_v55 = vpop.f32.mrf.mxu0  ;;  %v864_v58 = vmul.f32 0.7978846, %v832_v47  ;;  %v1858_v0 = vadd.f32 %v1751_v48, %v647_v33  ;;  %v722_v3 = vmul.f32 0.044715, %v1853_v10 }
 0x125   : > { %v652_v56 = vpop.f32.mrf.mxu1  ;;  %v940_v57 = vmul.f32 %v908_v46, %v684_v18  ;;  %1541 = vtanh.f32 %v848_v53  ;;  %v817_v2 = vadd.f32 %v785_v54, %v1833_v51  ;;  %v701_v8 = vmul.f32 0.5, %v1781_v12 }
 0x126   : > { %v956_v1 = vmul.f32 %v924_v50, %v700_v34  ;;  %v590_v4 = vpop.f32.mrf.mxu0  ;;  %1543 = vtanh.f32 %v864_v58  ;;  %v801_v9 = vmul.f32 %v769_v59, %v1840_v28  ;;  %v754_v16 = vmul.f32 %v722_v3, %v1853_v10 }
 0x127   : > { %v654_v5 = vpop.f32.mrf.mxu1  ;;  %v1530_v6 = vpop.eup %1529  ;;  %v1330_v7 = vpack.c.bf16 %v940_v57, %v939_v38  ;;  %v849_v15 = vmul.f32 0.7978846, %v817_v2  ;;  %v738_v20 = vmul.f32 0.044715, %v1858_v0  ;;  %v1874_v12 = vadd.f32 %v1751_v48, %v588_v55 }
 0x128   : > { %v1532_v11 = vpop.eup %1531  ;;  %v1370_v13 = vpack.c.bf16 %v956_v1, %v955_v49  ;;  %v909_v14 = vadd.f32 1.0, %v1530_v6  ;;  %v591_v17 = vpop.f32.mrf.mxu0  ;;  %v833_v19 = vadd.f32 %v801_v9, %v1840_v28  ;;  %v686_v22 = vmul.f32 0.5, %v1789_v24 }
 0x129   : > { %v655_v18 = vpop.f32.mrf.mxu1  ;;  %1331 = vst [vmem:[%s1863_s26] sm:$0xff] %v1330_v7   ;;  %v925_v52 = vadd.f32 1.0, %v1532_v11  ;;  %v702_v23 = vmul.f32 0.5, %v1792_v25  ;;  %v786_v26 = vmul.f32 %v754_v16, %v1853_v10  ;;  %v1881_v27 = vadd.f32 %v1751_v48, %v652_v56 }
 0x12a   : > { %v1534_v21 = vpop.eup %1533  ;;  %1414 = vst [vmem:[%s1863_s26 + $0x40] sm:$0xff] %v1370_v13   ;;  %v593_v29 = vpop.f32.mrf.mxu0  ;;  %v941_v61 = vmul.f32 %v909_v14, %v685_v35  ;;  %v865_v33 = vmul.f32 0.7978846, %v833_v19  ;;  %v770_v34 = vmul.f32 %v738_v20, %v1858_v0  ;;  %1545 = vtanh.f32 %v849_v15 }
 0x12b   : > { %v657_v30 = vpop.f32.mrf.mxu1  ;;  %v1536_v31 = vpop.eup %1535  ;;  %v910_v32 = vadd.f32 1.0, %v1534_v21  ;;  %v818_v37 = vadd.f32 %v786_v26, %v1853_v10  ;;  %v723_v24 = vmul.f32 0.044715, %v1874_v12  ;;  %v957_v39 = vmul.f32 %v925_v52, %v701_v8 }
 0x12c   : > { %v926_v36 = vadd.f32 1.0, %v1536_v31  ;;  %v596_v25 = vpop.f32.mrf.mxu0  ;;  %1547 = vtanh.f32 %v865_v33  ;;  %v802_v43 = vmul.f32 %v770_v34, %v1858_v0  ;;  %v739_v47 = vmul.f32 0.044715, %v1881_v27 }
 0x12d   : > { %v660_v38 = vpop.f32.mrf.mxu1  ;;  %v942_v42 = vmul.f32 %v910_v32, %v686_v22  ;;  %v850_v35 = vmul.f32 0.7978846, %v818_v37  ;;  %v755_v46 = vmul.f32 %v723_v24, %v1874_v12  ;;  %v687_v54 = vmul.f32 0.5, %v1803_v40 }
 0x12e   : > { %v1538_v44 = vpop.eup %1537  ;;  %v958_v45 = vmul.f32 %v926_v36, %v702_v23  ;;  %v598_v62 = vpop.f32.mrf.mxu0  ;;  %v834_v55 = vadd.f32 %v802_v43, %v1858_v0  ;;  %v1892_v56 = vadd.f32 %v1751_v48, %v591_v17  ;;  %v703_v3 = vmul.f32 0.5, %v1806_v41 }
 0x12f   : > { %v662_v49 = vpop.f32.mrf.mxu1  ;;  %v1540_v50 = vpop.eup %1539  ;;  %v1335_v53 = vpack.c.bf16 %v942_v42, %v941_v61  ;;  %v911_v58 = vadd.f32 1.0, %v1538_v44  ;;  %1549 = vtanh.f32 %v850_v35  ;;  %v787_v59 = vmul.f32 %v755_v46, %v1874_v12 }
 0x130   : > { %v1375_v57 = vpack.c.bf16 %v958_v45, %v957_v39  ;;  %v599_v1 = vpop.f32.mrf.mxu0  ;;  %v688_v4 = vmul.f32 0.5, %v1818_v60  ;;  %v866_v5 = vmul.f32 0.7978846, %v834_v55  ;;  %v771_v40 = vmul.f32 %v739_v47, %v1881_v27 }
 0x131   : > { %v663_v2 = vpop.f32.mrf.mxu1  ;;  %1407 = vst [vmem:[%s1863_s26 + $0x8] sm:$0xff] %v1335_v53   ;;  %v704_v6 = vmul.f32 0.5, %v1821_v63  ;;  %v819_v7 = vadd.f32 %v787_v59, %v1874_v12  ;;  %v724_v8 = vmul.f32 0.044715, %v1892_v56  ;;  %v1904_v9 = vadd.f32 %v1751_v48, %v655_v18 }
 0x132   : > { %1415 = vst [vmem:[%s1863_s26 + $0x48] sm:$0xff] %v1375_v57   ;;  %v601_v11 = vpop.f32.mrf.mxu0  ;;  %v1542_v14 = vpop.eup %1541  ;;  %v927_v15 = vadd.f32 1.0, %v1540_v50  ;;  %1551 = vtanh.f32 %v866_v5  ;;  %v803_v41 = vmul.f32 %v771_v40, %v1881_v27  ;;  %v1908_v60 = vadd.f32 %v1751_v48, %v596_v25 }
 0x133   : > { %v665_v13 = vpop.f32.mrf.mxu1  ;;  %v1544_v16 = vpop.eup %1543  ;;  %v943_v17 = vmul.f32 %v911_v58, %v687_v54  ;;  %v912_v63 = vadd.f32 1.0, %v1542_v14  ;;  %v851_v52 = vmul.f32 0.7978846, %v819_v7  ;;  %v756_v19 = vmul.f32 %v724_v8, %v1892_v56 }
 0x134   : > { %v604_v20 = vpop.f32.mrf.mxu0  ;;  %v928_v18 = vadd.f32 1.0, %v1544_v16  ;;  %v835_v22 = vadd.f32 %v803_v41, %v1881_v27  ;;  %v740_v23 = vmul.f32 0.044715, %v1904_v9  ;;  %v1914_v26 = vadd.f32 %v1751_v48, %v660_v38 }
 0x135   : > { %v668_v21 = vpop.f32.mrf.mxu1  ;;  %v944_v29 = vmul.f32 %v912_v63, %v688_v4  ;;  %1553 = vtanh.f32 %v851_v52  ;;  %v788_v30 = vmul.f32 %v756_v19, %v1892_v56  ;;  %v725_v31 = vmul.f32 0.044715, %v1908_v60 }
 0x136   : > { %v606_v61 = vpop.f32.mrf.mxu0  ;;  %v959_v33 = vmul.f32 %v927_v15, %v703_v3  ;;  %v960_v34 = vmul.f32 %v928_v18, %v704_v6  ;;  %v867_v36 = vmul.f32 0.7978846, %v835_v22  ;;  %v772_v37 = vmul.f32 %v740_v23, %v1904_v9 }
 0x137   : > { %v670_v32 = vpop.f32.mrf.mxu1  ;;  %v1340_v24 = vpack.c.bf16 %v944_v29, %v943_v17  ;;  %v689_v25 = vmul.f32 0.5, %v1833_v51  ;;  %v820_v38 = vadd.f32 %v788_v30, %v1892_v56  ;;  %v757_v39 = vmul.f32 %v725_v31, %v1908_v60  ;;  %v1546_v44 = vpop.eup %1545 }
 0x138   : > { %v1922_v42 = vpop.f32.mrf.mxu0  ;;  %v1380_v45 = vpack.c.bf16 %v960_v34, %v959_v33  ;;  %v705_v35 = vmul.f32 0.5, %v1840_v28  ;;  %v804_v46 = vmul.f32 %v772_v37, %v1904_v9  ;;  %v741_v47 = vmul.f32 0.044715, %v1914_v26 }
 0x139   : > { %v1924_v43 = vpop.f32.mrf.mxu1  ;;  %v1548_v62 = vpop.eup %1547  ;;  %1408 = vst [vmem:[%s1863_s26 + $0x10] sm:$0xff] %v1340_v24   ;;  %v690_v51 = vmul.f32 0.5, %v1853_v10  ;;  %v852_v49 = vmul.f32 0.7978846, %v820_v38  ;;  %v789_v50 = vmul.f32 %v757_v39, %v1908_v60  ;;  %v1933_v53 = vadd.f32 %v1751_v48, %v599_v1 }
 0x13a   : > { %v609_v54 = vpop.f32.mrf.mxu0  ;;  %1416 = vst [vmem:[%s1863_s26 + $0x50] sm:$0xff] %v1380_v45   ;;  %1555 = vtanh.f32 %v867_v36  ;;  %v836_v28 = vadd.f32 %v804_v46, %v1904_v9  ;;  %v773_v57 = vmul.f32 %v741_v47, %v1914_v26  ;;  %v1939_v58 = vadd.f32 %v1751_v48, %v663_v2 }
 0x13b   : > { %v673_v55 = vpop.f32.mrf.mxu1  ;;  %v913_v59 = vadd.f32 1.0, %v1546_v44  ;;  %1557 = vtanh.f32 %v852_v49  ;;  %v821_v10 = vadd.f32 %v789_v50, %v1908_v60  ;;  %v726_v3 = vmul.f32 0.044715, %v1933_v53 }
 0x13c   : > { %v612_v4 = vpop.f32.mrf.mxu0  ;;  %v1550_v5 = vpop.eup %1549  ;;  %v929_v40 = vadd.f32 1.0, %v1548_v62  ;;  %v706_v6 = vmul.f32 0.5, %v1858_v0  ;;  %v868_v7 = vmul.f32 0.7978846, %v836_v28  ;;  %v805_v8 = vmul.f32 %v773_v57, %v1914_v26 }
 0x13d   : > { %v1943_v1 = vpop.f32.mrf.mxu1  ;;  %v914_v11 = vadd.f32 1.0, %v1550_v5  ;;  %v853_v13 = vmul.f32 0.7978846, %v821_v10  ;;  %v758_v2 = vmul.f32 %v726_v3, %v1933_v53  ;;  %v742_v14 = vmul.f32 0.044715, %v1939_v58 }
 0x13e   : > { %v614_v15 = vpop.f32.mrf.mxu0  ;;  %1559 = vtanh.f32 %v868_v7  ;;  %v837_v16 = vadd.f32 %v805_v8, %v1914_v26  ;;  %v1951_v17 = vadd.f32 %v1751_v48, %v604_v20  ;;  %v1954_v63 = vadd.f32 %v1751_v48, %v668_v21 }
 0x13f   : > { %v678_v41 = vpop.f32.mrf.mxu1  ;;  %v1552_v0 = vpop.eup %1551  ;;  %v945_v52 = vmul.f32 %v913_v59, %v689_v25  ;;  %v946_v19 = vmul.f32 %v914_v11, %v690_v51  ;;  %v790_v18 = vmul.f32 %v758_v2, %v1933_v53  ;;  %v774_v22 = vmul.f32 %v742_v14, %v1939_v58 }
 0x140   : > { %v615_v23 = vpop.f32.mrf.mxu0  ;;  %v930_v30 = vadd.f32 1.0, %v1552_v0  ;;  %1561 = vtanh.f32 %v853_v13  ;;  %v869_v31 = vmul.f32 0.7978846, %v837_v16  ;;  %v727_v20 = vmul.f32 0.044715, %v1951_v17 }
 0x141   : > { %v1958_v29 = vpop.f32.mrf.mxu1  ;;  %v1345_v61 = vpack.c.bf16 %v946_v19, %v945_v52  ;;  %v822_v21 = vadd.f32 %v790_v18, %v1933_v53  ;;  %v806_v32 = vmul.f32 %v774_v22, %v1939_v58  ;;  %v961_v37 = vmul.f32 %v929_v40, %v705_v35 }
 0x142   : > { %v617_v33 = vpop.f32.mrf.mxu0  ;;  %v1554_v36 = vpop.eup %1553  ;;  %v962_v24 = vmul.f32 %v930_v30, %v706_v6  ;;  %v759_v25 = vmul.f32 %v727_v20, %v1951_v17  ;;  %v743_v38 = vmul.f32 0.044715, %v1954_v63  ;;  %1563 = vtanh.f32 %v869_v31 }
 0x143   : > { %v681_v34 = vpop.f32.mrf.mxu1  ;;  %1409 = vst [vmem:[%s1863_s26 + $0x18] sm:$0xff] %v1345_v61   ;;  %v854_v39 = vmul.f32 0.7978846, %v822_v21  ;;  %v838_v44 = vadd.f32 %v806_v32, %v1939_v58  ;;  %v1969_v45 = vadd.f32 %v1751_v48, %v1922_v42  ;;  %v1975_v62 = vadd.f32 %v1751_v48, %v1924_v43 }
 0x144   : > { %v1385_v46 = vpack.c.bf16 %v962_v24, %v961_v37  ;;  %v791_v47 = vmul.f32 %v759_v25, %v1951_v17  ;;  %v775_v35 = vmul.f32 %v743_v38, %v1954_v63  ;;  %v915_v51 = vadd.f32 1.0, %v1554_v36 }
 0x145   : > { %1565 = vtanh.f32 %v854_v39  ;;  %v870_v49 = vmul.f32 0.7978846, %v838_v44  ;;  %v691_v50 = vmul.f32 0.5, %v1874_v12  ;;  %v728_v55 = vmul.f32 0.044715, %v1969_v45 }
 0x146   : > { %1417 = vst [vmem:[%s1863_s26 + $0x58] sm:$0xff] %v1385_v46   ;;  %v823_v54 = vadd.f32 %v791_v47, %v1951_v17  ;;  %v807_v42 = vmul.f32 %v775_v35, %v1954_v63  ;;  %v707_v57 = vmul.f32 0.5, %v1881_v27  ;;  %v744_v59 = vmul.f32 0.044715, %v1975_v62 }
 0x147   : > { %v1556_v28 = vpop.eup %1555  ;;  %1567 = vtanh.f32 %v870_v49  ;;  %v1985_v43 = vadd.f32 %v1751_v48, %v612_v4  ;;  %v692_v3 = vmul.f32 0.5, %v1892_v56  ;;  %v760_v40 = vmul.f32 %v728_v55, %v1969_v45 }
 0x148   : > { %v1558_v10 = vpop.eup %1557  ;;  %v855_v5 = vmul.f32 0.7978846, %v823_v54  ;;  %v839_v12 = vadd.f32 %v807_v42, %v1954_v63  ;;  %v947_v6 = vmul.f32 %v915_v51, %v691_v50  ;;  %v776_v8 = vmul.f32 %v744_v59, %v1975_v62 }
 0x149   : > { %v916_v7 = vadd.f32 1.0, %v1558_v10  ;;  %v729_v27 = vmul.f32 0.044715, %v1985_v43  ;;  %v931_v11 = vadd.f32 1.0, %v1556_v28  ;;  %v792_v2 = vmul.f32 %v760_v40, %v1969_v45 }
 0x14a   : > { %v871_v13 = vmul.f32 0.7978846, %v839_v12  ;;  %v1995_v4 = vadd.f32 %v1751_v48, %v1943_v1  ;;  %v808_v15 = vmul.f32 %v776_v8, %v1975_v62  ;;  %v2000_v16 = vadd.f32 %v1751_v48, %v615_v23 }
 0x14b   : > { %v1560_v56 = vpop.eup %1559  ;;  %v948_v14 = vmul.f32 %v916_v7, %v692_v3  ;;  %v761_v41 = vmul.f32 %v729_v27, %v1985_v43  ;;  %v708_v0 = vmul.f32 0.5, %v1904_v9  ;;  %1569 = vtanh.f32 %v855_v5 }
 0x14c   : > { %v932_v52 = vadd.f32 1.0, %v1560_v56  ;;  %v824_v19 = vadd.f32 %v792_v2, %v1969_v45  ;;  %1571 = vtanh.f32 %v871_v13  ;;  %v840_v1 = vadd.f32 %v808_v15, %v1975_v62 }
 0x14d   : > { %v1562_v18 = vpop.eup %1561  ;;  %v1350_v22 = vpack.c.bf16 %v948_v14, %v947_v6  ;;  %v793_v30 = vmul.f32 %v761_v41, %v1985_v43  ;;  %v963_v31 = vmul.f32 %v931_v11, %v707_v57  ;;  %v745_v23 = vmul.f32 0.044715, %v1995_v4 }
 0x14e   : > { %v964_v20 = vmul.f32 %v932_v52, %v708_v0  ;;  %v856_v61 = vmul.f32 0.7978846, %v824_v19  ;;  %v872_v21 = vmul.f32 0.7978846, %v840_v1  ;;  %v730_v32 = vmul.f32 0.044715, %v2000_v16 }
 0x14f   : > { %1410 = vst [vmem:[%s1863_s26 + $0x20] sm:$0xff] %v1350_v22   ;;  %v825_v9 = vadd.f32 %v793_v30, %v1985_v43  ;;  %v1564_v33 = vpop.eup %1563  ;;  %v917_v36 = vadd.f32 1.0, %v1562_v18  ;;  %v777_v37 = vmul.f32 %v745_v23, %v1995_v4  ;;  %v2014_v38 = vadd.f32 %v1751_v48, %v1958_v29 }
 0x150   : > { %v1390_v34 = vpack.c.bf16 %v964_v20, %v963_v31  ;;  %1573 = vtanh.f32 %v856_v61  ;;  %v762_v25 = vmul.f32 %v730_v32, %v2000_v16  ;;  %v693_v44 = vmul.f32 0.5, %v1908_v60 }
 0x151   : > { %1575 = vtanh.f32 %v872_v21  ;;  %v857_v24 = vmul.f32 0.7978846, %v825_v9  ;;  %v709_v46 = vmul.f32 0.5, %v1914_v26  ;;  %v809_v47 = vmul.f32 %v777_v37, %v1995_v4 }
 0x152   : > { %v1566_v39 = vpop.eup %1565  ;;  %1418 = vst [vmem:[%s1863_s26 + $0x60] sm:$0xff] %v1390_v34   ;;  %v933_v35 = vadd.f32 1.0, %v1564_v33  ;;  %v694_v51 = vmul.f32 0.5, %v1933_v53  ;;  %v794_v50 = vmul.f32 %v762_v25, %v2000_v16  ;;  %v949_v42 = vmul.f32 %v917_v36, %v693_v44 }
 0x153   : > { %v918_v49 = vadd.f32 1.0, %v1566_v39  ;;  %v710_v48 = vmul.f32 0.5, %v1939_v58  ;;  %v841_v29 = vadd.f32 %v809_v47, %v1995_v4  ;;  %v746_v55 = vmul.f32 0.044715, %v2014_v38 }
 0x154   : > { %v1568_v54 = vpop.eup %1567  ;;  %1577 = vtanh.f32 %v857_v24  ;;  %v826_v26 = vadd.f32 %v794_v50, %v2000_v16  ;;  %v965_v59 = vmul.f32 %v933_v35, %v709_v46  ;;  %v695_v56 = vmul.f32 0.5, %v1951_v17 }
 0x155   : > { %v950_v60 = vmul.f32 %v918_v49, %v694_v51  ;;  %v934_v28 = vadd.f32 1.0, %v1568_v54  ;;  %v873_v57 = vmul.f32 0.7978846, %v841_v29  ;;  %v778_v53 = vmul.f32 %v746_v55, %v2014_v38 }
 0x156   : > { %v858_v5 = vmul.f32 0.7978846, %v826_v26  ;;  %v696_v14 = vmul.f32 0.5, %v1969_v45  ;;  %v711_v41 = vmul.f32 0.5, %v1954_v63  ;;  %v712_v0 = vmul.f32 0.5, %v1975_v62 }
 0x157   : > { %v1355_v10 = vpack.c.bf16 %v950_v60, %v949_v42  ;;  %v966_v3 = vmul.f32 %v934_v28, %v710_v48  ;;  %v810_v12 = vmul.f32 %v778_v53, %v2014_v38  ;;  %v697_v23 = vmul.f32 0.5, %v1985_v43 }
 0x158   : > { %v1570_v58 = vpop.eup %1569  ;;  %1579 = vtanh.f32 %v858_v5  ;;  %v698_v63 = vmul.f32 0.5, %v2000_v16  ;;  %v713_v36 = vmul.f32 0.5, %v1995_v4  ;;  %v714_v37 = vmul.f32 0.5, %v2014_v38 }
 0x159   : > { %1411 = vst [vmem:[%s1863_s26 + $0x28] sm:$0xff] %v1355_v10   ;;  %v1395_v40 = vpack.c.bf16 %v966_v3, %v965_v59  ;;  %v1572_v6 = vpop.eup %1571  ;;  %1581 = vtanh.f32 %v873_v57  ;;  %v842_v7 = vadd.f32 %v810_v12, %v2014_v38  ;;  %v919_v8 = vadd.f32 1.0, %v1570_v58 }
 0x15a   : > { %v935_v13 = vadd.f32 1.0, %v1572_v6 }
 0x15b   : > { %1419 = vst [vmem:[%s1863_s26 + $0x68] sm:$0xff] %v1395_v40   ;;  %v874_v27 = vmul.f32 0.7978846, %v842_v7  ;;  %v951_v19 = vmul.f32 %v919_v8, %v695_v56 }
 0x15c   : > { %v967_v22 = vmul.f32 %v935_v13, %v711_v41 }
 0x15d   : > { %v1574_v11 = vpop.eup %1573  ;;  %1583 = vtanh.f32 %v874_v27 }
 0x15e   : > { %v1576_v2 = vpop.eup %1575  ;;  %v920_v15 = vadd.f32 1.0, %v1574_v11 }
 0x15f   : > { %v936_v52 = vadd.f32 1.0, %v1576_v2 }
 0x160   : > { %v952_v18 = vmul.f32 %v920_v15, %v696_v14 }
 0x161   : > { %v968_v1 = vmul.f32 %v936_v52, %v712_v0  ;;  %v1578_v30 = vpop.eup %1577 }
 0x162   : > { %v1360_v31 = vpack.c.bf16 %v952_v18, %v951_v19  ;;  %v921_v17 = vadd.f32 1.0, %v1578_v30 }
 0x163   : > { %v1400_v20 = vpack.c.bf16 %v968_v1, %v967_v22 }
 0x164   : > { %1412 = vst [vmem:[%s1863_s26 + $0x30] sm:$0xff] %v1360_v31   ;;  %v953_v21 = vmul.f32 %v921_v17, %v697_v23 }
 0x165   : > { %1420 = vst [vmem:[%s1863_s26 + $0x70] sm:$0xff] %v1400_v20   ;;  %v1580_v61 = vpop.eup %1579 }
 0x166   : > { %v1582_v45 = vpop.eup %1581  ;;  %v922_v62 = vadd.f32 1.0, %v1580_v61 }
 0x167   : > { %v937_v32 = vadd.f32 1.0, %v1582_v45 }
 0x168   : > { %v954_v9 = vmul.f32 %v922_v62, %v698_v63 }
 0x169   : > { %v969_v25 = vmul.f32 %v937_v32, %v713_v36 }
 0x16a   : > { %v1584_v33 = vpop.eup %1583  ;;  %v1365_v34 = vpack.c.bf16 %v954_v9, %v953_v21 }
 0x16b   : > { %v938_v24 = vadd.f32 1.0, %v1584_v33 }
 0x16c   : > { %1413 = vst [vmem:[%s1863_s26 + $0x38] sm:$0xff] %v1365_v34  }
 0x16d   : > { %v970_v39 = vmul.f32 %v938_v24, %v714_v37 }
 0x16f   : > { %v1405_v44 = vpack.c.bf16 %v970_v39, %v969_v25 }
 0x171   : > { %1421 = vst [vmem:[%s1863_s26 + $0x78] sm:$0xff] %v1405_v44  }
 0x172 PF: > { %s13_s12 = sadd.s32 1, %s1591_s12  }
 0x173   : > { %p10_p4 = scmp.ge.s32.totalorder %s13_s12, 4  }
 0x175   :  { %12 = sbr.rel (!%p10_p4) target bundleno = 1 (0x1), region = 62 }

// kernel: _lambda_.15
= control target key start
LH: loop header
LB: loop body
LE: loop exit
PB: predicated region body
PF: predicated region fallthrough
CT: control target
= control target key end

     0   :  { %s2192_s12 = smov 0   ;;  %s2687_s0 = inlined_call_operand.vmem [shape: bf16[512,360], index: 0, kind: input, shape index: {}]   ;;  %s2688_s1 = inlined_call_operand.vmem [shape: bf16[360,128], index: 1, kind: input, shape index: {}]   ;;  %s2689_s2 = inlined_call_operand.vmem [shape: f32[1,128], index: 2, kind: input, shape index: {}]   ;;  %s2690_s3 = inlined_call_operand.vmem [shape: bf16[512,128], index: 3, kind: output, shape index: {}]  }
   0x1 LB: > { %s1548_s13 = sadd.s32 4294967295, %s2170_s12   ;;  %p1552_p0 = scmp.ge.s32.totalorder %s2170_s12, 1  ;;  %s2170_s12 = sphi %s2192_s12, %s13_s12  }
   0x2   : > { %p139_p1 = scmp.lt.s32.totalorder %s2170_s12, 3 }
   0x4   : > { %p140_p2 = pnand %p1552_p0, %p139_p1 }
   0x5   : > { %s1553_s16 = sshll.u32 (!%p140_p2), %s1548_s13, 5 }
   0x6   : > { %143 = sbr.rel (%p140_p2) target bundleno = 384 (0x180), region = 32  ;;  %p165_p3 = scmp.lt.s32.totalorder (!%p140_p2), %s1553_s16, 63 }
   0xb   : > { %v2013_v0 = vld [vmem:[%s2688_s1 + $0x78] sm:$0xff]   ;;  %v2015_v2 = vld [vmem:[%s2688_s1 + $0x70] sm:$0xff]   ;;  %v2017_v4 = vld [vmem:[%s2688_s1 + $0x68] sm:$0xff]   ;;  %s2692_s16 = smov (!%p165_p3, %s1553_s16), 63  ;;  %vm718_vm0 = vcmask 1043456   ;;  %vm669_vm1 = vcmask 850944  }
   0xc   : > { %v2014_v1 = vld [vmem:[%s2688_s1 + $0x38] sm:$0xff]   ;;  %1806 = vmatprep.subr.bf16.mxu0 %v2013_v0  ;;  %1987 = vmatprep.subr.bf16.mxu1 %v2013_v0  ;;  %v2016_v3 = vld [vmem:[%s2688_s1 + $0x30] sm:$0xff]   ;;  %v2018_v5 = vld [vmem:[%s2688_s1 + $0x28] sm:$0xff]   ;;  %s2004_s29 = smul.u32 12, %s2692_s16  ;;  %s1556_s17 = sshll.u32 %s2692_s16, 2 }
   0xd   : > { %1807 = vmatpush3.bf16.msra.mxu0 %v2014_v1  ;;  %1995 = vmatpush3.bf16.msra.mxu1 %v2014_v1  ;;  %v2019_v6 = vld [vmem:[%s2688_s1 + $0x60] sm:$0xff]   ;;  %v2021_v8 = vld [vmem:[%s2688_s1 + $0x58] sm:$0xff]   ;;  %v2023_v10 = vld [vmem:[%s2688_s1 + $0x50] sm:$0xff]   ;;  %s2476_s19 = scalar_lea.vmem %s2690_s3, %s1556_s17 }
   0xe   : > { %1808 = vmatprep.subr.bf16.mxu0 %v2015_v2  ;;  %1988 = vmatprep.subr.bf16.mxu1 %v2015_v2  ;;  %v2020_v7 = vld [vmem:[%s2688_s1 + $0x20] sm:$0xff]   ;;  %s2233_s9 = scalar_lea.vmem %s2687_s0, %s2004_s29  ;;  %v2022_v9 = vld [vmem:[%s2688_s1 + $0x18] sm:$0xff]   ;;  %v2024_v13 = vld [vmem:[%s2688_s1 + $0x10] sm:$0xff]  }
   0xf   : > { %v2031_v11 = vld [vmem:[%s2233_s9 + $0x4] ss:$12 sps:$4 sm:$0xff]   ;;  %v2025_v14 = vld [vmem:[%s2688_s1 + $0x48] sm:$0xff]   ;;  %v2044_v28 = vld [vmem:[%s2233_s9 + $0x34] ss:$12 sps:$4 sm:$0xff]  }
  0x10   : > { %v2034_v12 = vld [vmem:[%s2233_s9 + $0x124] ss:$12 sps:$4 sm:$0xff]   ;;  %754 = vmatprep.mubr.bf16.mxu0 %v2031_v11  ;;  %v2026_v15 = vld [vmem:[%s2688_s1 + $0x8] sm:$0xff]   ;;  %v2046_v29 = vld [vmem:[%s2233_s9 + $0x154] ss:$12 sps:$4 sm:$0xff]  }
  0x11   : > { %1809 = vmatpush3.bf16.msra.mxu0 %v2016_v3  ;;  %1996 = vmatpush3.bf16.msra.mxu1 %v2016_v3  ;;  %v2027_v16 = vld [vmem:[%s2688_s1 + $0x40] sm:$0xff]   ;;  %v2035_v18 = vld [vmem:[%s2688_s1 + $0xb0] ss:$0 sps:$4 sm:$0xff]   ;;  %v2036_v21 = vld [vmem:[%s2233_s9 + $0x1c] ss:$12 sps:$4 sm:$0xff]  }
  0x12   : > { %1810 = vmatprep.subr.bf16.mxu0 %v2017_v4  ;;  %1989 = vmatprep.subr.bf16.mxu1 %v2017_v4  ;;  %v2028_v17 = vld [vmem:[%s2688_s1] sm:$0xff]   ;;  %v2038_v22 = vld [vmem:[%s2233_s9 + $0x13c] ss:$12 sps:$4 sm:$0xff]   ;;  %v720_v23 = vsel %vm718_vm0, %v2035_v18, 0  ;;  %v2051_v31 = vld [vmem:[%s2688_s1 + $0x90] sm:$0xff]  }
  0x13   : > { %850 = vmatprep.mubr.bf16.mxu1 %v2034_v12  ;;  %v2029_v19 = vld [vmem:[%s2233_s9] ss:$12 sps:$4 sm:$0xff]   ;;  %v2040_v26 = vld [vmem:[%s2233_s9 + $0x18] ss:$12 sps:$4 sm:$0xff]   ;;  %v2048_v32 = vld [vmem:[%s2233_s9 + $0x30] ss:$12 sps:$4 sm:$0xff]  }
  0x14   : > { %v2032_v20 = vld [vmem:[%s2233_s9 + $0x120] ss:$12 sps:$4 sm:$0xff]   ;;  %v2041_v27 = vld [vmem:[%s2233_s9 + $0x138] ss:$12 sps:$4 sm:$0xff]   ;;  %v2049_v33 = vld [vmem:[%s2233_s9 + $0x150] ss:$12 sps:$4 sm:$0xff]  }
  0x15   : > { %1811 = vmatpush3.bf16.msra.mxu0 %v2018_v5  ;;  %1997 = vmatpush3.bf16.msra.mxu1 %v2018_v5  ;;  %v2042_v24 = vld [vmem:[%s2688_s1 + $0xa8] sm:$0xff]   ;;  %v2043_v25 = vld [vmem:[%s2688_s1 + $0xa0] sm:$0xff]   ;;  %v2050_v30 = vld [vmem:[%s2688_s1 + $0x98] sm:$0xff]  }
  0x16   : > { %1812 = vmatprep.subr.bf16.mxu0 %v2019_v6  ;;  %1990 = vmatprep.subr.bf16.mxu1 %v2019_v6  ;;  %v2052_v34 = vld [vmem:[%s2233_s9 + $0x4c] ss:$12 sps:$4 sm:$0xff]   ;;  %v2059_v37 = vld [vmem:[%s2688_s1 + $0x80] sm:$0xff]   ;;  %v2056_v38 = vld [vmem:[%s2233_s9 + $0x48] ss:$12 sps:$4 sm:$0xff]  }
  0x17   : > { %v2054_v35 = vld [vmem:[%s2233_s9 + $0x16c] ss:$12 sps:$4 sm:$0xff]   ;;  %v2057_v39 = vld [vmem:[%s2233_s9 + $0x168] ss:$12 sps:$4 sm:$0xff]   ;;  %v2060_v40 = vld [vmem:[%s2233_s9 + $0x64] ss:$12 sps:$4 sm:$0xff]  }
  0x18   : > { %v2058_v36 = vld [vmem:[%s2688_s1 + $0x88] sm:$0xff]   ;;  %v2067_v45 = vld [vmem:[%s2233_s9 + $0x38] ss:$12 sps:$4 sm:$0xff]   ;;  %v2069_v47 = vld [vmem:[%s2233_s9 + $0x50] ss:$12 sps:$4 sm:$0xff]  }
  0x19   : > { %1813 = vmatpush3.bf16.msra.mxu0 %v2020_v7  ;;  %1998 = vmatpush3.bf16.msra.mxu1 %v2020_v7  ;;  %v2062_v41 = vld [vmem:[%s2233_s9 + $0x8] ss:$12 sps:$4 sm:$0xff]   ;;  %v2063_v42 = vld [vmem:[%s2233_s9 + $0x60] ss:$12 sps:$4 sm:$0xff]   ;;  %v2068_v46 = vld [vmem:[%s2233_s9 + $0x78] ss:$12 sps:$4 sm:$0xff]  }
  0x1a   : > { %1814 = vmatprep.subr.bf16.mxu0 %v2021_v8  ;;  %1991 = vmatprep.subr.bf16.mxu1 %v2021_v8  ;;  %v2064_v43 = vld [vmem:[%s2233_s9 + $0x20] ss:$12 sps:$4 sm:$0xff]   ;;  %v2065_v44 = vld [vmem:[%s2233_s9 + $0x7c] ss:$12 sps:$4 sm:$0xff]   ;;  %v2077_v53 = vld [vmem:[%s2233_s9 + $0x98] ss:$12 sps:$4 sm:$0xff]  }
  0x1b   : > { %v2070_v48 = vld [vmem:[%s2233_s9 + $0x94] ss:$12 sps:$4 sm:$0xff]   ;;  %v2073_v50 = vld [vmem:[%s2233_s9 + $0x90] ss:$12 sps:$4 sm:$0xff]   ;;  %v2075_v52 = vld [vmem:[%s2233_s9 + $0xac] ss:$12 sps:$4 sm:$0xff]  }
  0x1c   : > { %v2072_v49 = vld [vmem:[%s2233_s9 + $0x68] ss:$12 sps:$4 sm:$0xff]   ;;  %v2074_v51 = vld [vmem:[%s2233_s9 + $0x80] ss:$12 sps:$4 sm:$0xff]   ;;  %v2079_v55 = vld [vmem:[%s2233_s9 + $0xb0] ss:$12 sps:$4 sm:$0xff]  }
  0x1d   : > { %1815 = vmatpush3.bf16.msra.mxu0 %v2022_v9  ;;  %1999 = vmatpush3.bf16.msra.mxu1 %v2022_v9  ;;  %v2078_v54 = vld [vmem:[%s2233_s9 + $0xa8] ss:$12 sps:$4 sm:$0xff]   ;;  %v2080_v56 = vld [vmem:[%s2233_s9 + $0xc4] ss:$12 sps:$4 sm:$0xff]   ;;  %v2083_v58 = vld [vmem:[%s2233_s9 + $0xc0] ss:$12 sps:$4 sm:$0xff]  }
  0x1e   : > { %1816 = vmatprep.subr.bf16.mxu0 %v2023_v10  ;;  %1992 = vmatprep.subr.bf16.mxu1 %v2023_v10  ;;  %v2082_v57 = vld [vmem:[%s2233_s9 + $0xc8] ss:$12 sps:$4 sm:$0xff]   ;;  %v2084_v59 = vld [vmem:[%s2233_s9 + $0xe0] ss:$12 sps:$4 sm:$0xff]   ;;  %v2087_v61 = vld [vmem:[%s2233_s9 + $0xf8] ss:$12 sps:$4 sm:$0xff]  }
  0x1f   : > { %v2085_v60 = vld [vmem:[%s2233_s9 + $0xdc] ss:$12 sps:$4 sm:$0xff]   ;;  %v2088_v62 = vld [vmem:[%s2233_s9 + $0xd8] ss:$12 sps:$4 sm:$0xff]   ;;  %v2090_v0 = vld [vmem:[%s2233_s9 + $0xf4] ss:$12 sps:$4 sm:$0xff]  }
  0x20   : > { %v2089_v63 = vld [vmem:[%s2233_s9 + $0x110] ss:$12 sps:$4 sm:$0xff]   ;;  %v2092_v1 = vld [vmem:[%s2233_s9 + $0x128] ss:$12 sps:$4 sm:$0xff]   ;;  %v2094_v3 = vld [vmem:[%s2233_s9 + $0x140] ss:$12 sps:$4 sm:$0xff]  }
  0x21   : > { %1817 = vmatpush3.bf16.msra.mxu0 %v2024_v13  ;;  %2000 = vmatpush3.bf16.msra.mxu1 %v2024_v13  ;;  %v2093_v2 = vld [vmem:[%s2233_s9 + $0xf0] ss:$12 sps:$4 sm:$0xff]   ;;  %v2095_v4 = vld [vmem:[%s2233_s9 + $0x10c] ss:$12 sps:$4 sm:$0xff]   ;;  %v2098_v6 = vld [vmem:[%s2233_s9 + $0x108] ss:$12 sps:$4 sm:$0xff]  }
  0x22   : > { %1818 = vmatprep.subr.bf16.mxu0 %v2025_v14  ;;  %1993 = vmatprep.subr.bf16.mxu1 %v2025_v14  ;;  %v2097_v5 = vld [vmem:[%s2233_s9 + $0x158] ss:$12 sps:$4 sm:$0xff]   ;;  %v2099_v7 = vld [vmem:[%s2233_s9 + $0x170] ss:$12 sps:$4 sm:$0xff]  }
  0x25   : > { %1819 = vmatpush3.bf16.msra.mxu0 %v2026_v15  ;;  %2001 = vmatpush3.bf16.msra.mxu1 %v2026_v15 }
  0x26   : > { %1820 = vmatprep.subr.bf16.mxu0 %v2027_v16  ;;  %1994 = vmatprep.subr.bf16.mxu1 %v2027_v16 }
  0x29   : > { %1821 = vmatpush3.bf16.msra.mxu0 %v2028_v17  ;;  %2002 = vmatpush3.bf16.msra.mxu1 %v2028_v17 }
  0x2a   : > { %2003 = vmatprep.subr.msk.bf16.mxu1 %vm718_vm0, %v2035_v18 }
  0x2c   : > { %755 = vmatmul.mubr.bf16.vlgmr.msra.gmra.mxu0 %v2029_v19  ;;  %851 = vmatmul.mubr.bf16.vlgmr.msra.gmra.mxu1 %v2032_v20 }
  0x2d   : > { %1942 = vmatpush3.bf16.msra.mxu1 %v720_v23  ;;  %762 = vmatprep.mubr.bf16.mxu0 %v2036_v21 }
  0x2e   : > { %858 = vmatprep.mubr.bf16.mxu1 %v2038_v22  ;;  %1943 = vmatprep.subr.bf16.mxu1 %v2042_v24 }
  0x31   : > { %1944 = vmatpush3.bf16.msra.mxu1 %v2042_v24 }
  0x32   : > { %1945 = vmatprep.subr.bf16.mxu1 %v2043_v25 }
  0x34   : > { %763 = vmatmul.mubr.bf16.gmra.mxu0 %v2040_v26  ;;  %859 = vmatmul.mubr.bf16.gmra.mxu1 %v2041_v27 }
  0x35   : > { %1946 = vmatpush3.bf16.msra.mxu1 %v2043_v25  ;;  %770 = vmatprep.mubr.bf16.mxu0 %v2044_v28 }
  0x36   : > { %866 = vmatprep.mubr.bf16.mxu1 %v2046_v29  ;;  %1947 = vmatprep.subr.bf16.mxu1 %v2050_v30 }
  0x39   : > { %1948 = vmatpush3.bf16.msra.mxu1 %v2050_v30 }
  0x3a   : > { %1949 = vmatprep.subr.bf16.mxu1 %v2051_v31 }
  0x3c   : > { %771 = vmatmul.mubr.bf16.gmra.mxu0 %v2048_v32  ;;  %867 = vmatmul.mubr.bf16.gmra.mxu1 %v2049_v33 }
  0x3d   : > { %1950 = vmatpush3.bf16.msra.mxu1 %v2051_v31  ;;  %778 = vmatprep.mubr.bf16.mxu0 %v2052_v34 }
  0x3e   : > { %874 = vmatprep.mubr.bf16.mxu1 %v2054_v35  ;;  %1951 = vmatprep.subr.bf16.mxu1 %v2058_v36 }
  0x41   : > { %1952 = vmatpush3.bf16.msra.mxu1 %v2058_v36 }
  0x42   : > { %1953 = vmatprep.subr.bf16.mxu1 %v2059_v37 }
  0x44   : > { %779 = vmatmul.mubr.bf16.gmra.mxu0 %v2056_v38  ;;  %875 = vmatmul.mubr.bf16.gmra.mxu1 %v2057_v39 }
  0x45   : > { %1954 = vmatpush3.bf16.msra.mxu1 %v2059_v37  ;;  %786 = vmatprep.mubr.bf16.mxu0 %v2060_v40 }
  0x46   : > { %1955 = vmatprep.mubr.msk.bf16.mxu1 %vm669_vm1, %v2062_v41 }
  0x4c   : > { %787 = vmatmul.mubr.bf16.gmra.mxu0 %v2063_v42  ;;  %1956 = vmatmul.mubr.msk.bf16.vlgmr.msra.gmra.mxu1 %vm669_vm1, %v2064_v43 }
  0x4d   : > { %794 = vmatprep.mubr.bf16.mxu0 %v2065_v44  ;;  %1959 = vmatprep.mubr.msk.bf16.mxu1 %vm669_vm1, %v2067_v45 }
  0x54   : > { %795 = vmatmul.mubr.bf16.gmra.mxu0 %v2068_v46  ;;  %1960 = vmatmul.mubr.msk.bf16.gmra.mxu1 %vm669_vm1, %v2069_v47 }
  0x55   : > { %802 = vmatprep.mubr.bf16.mxu0 %v2070_v48  ;;  %1963 = vmatprep.mubr.msk.bf16.mxu1 %vm669_vm1, %v2072_v49  ;;  %v2356_v49 = vld [vmem:[%s2689_s2] ss:$0 sm:$0xff] }
  0x5c   : > { %803 = vmatmul.mubr.bf16.gmra.mxu0 %v2073_v50  ;;  %1964 = vmatmul.mubr.msk.bf16.gmra.mxu1 %vm669_vm1, %v2074_v51 }
  0x5d   : > { %810 = vmatprep.mubr.bf16.mxu0 %v2075_v52  ;;  %1967 = vmatprep.mubr.msk.bf16.mxu1 %vm669_vm1, %v2077_v53 }
  0x64   : > { %811 = vmatmul.mubr.bf16.gmra.mxu0 %v2078_v54  ;;  %1968 = vmatmul.mubr.msk.bf16.gmra.mxu1 %vm669_vm1, %v2079_v55 }
  0x65   : > { %818 = vmatprep.mubr.bf16.mxu0 %v2080_v56  ;;  %1971 = vmatprep.mubr.msk.bf16.mxu1 %vm669_vm1, %v2082_v57 }
  0x6c   : > { %819 = vmatmul.mubr.bf16.gmra.mxu0 %v2083_v58  ;;  %1972 = vmatmul.mubr.msk.bf16.gmra.mxu1 %vm669_vm1, %v2084_v59 }
  0x6d   : > { %826 = vmatprep.mubr.bf16.mxu0 %v2085_v60  ;;  %1975 = vmatprep.mubr.msk.bf16.mxu1 %vm669_vm1, %v2087_v61 }
  0x74   : > { %827 = vmatmul.mubr.bf16.gmra.mxu0 %v2088_v62  ;;  %1976 = vmatmul.mubr.msk.bf16.gmra.mxu1 %vm669_vm1, %v2089_v63 }
  0x75   : > { %834 = vmatprep.mubr.bf16.mxu0 %v2090_v0  ;;  %1979 = vmatprep.mubr.msk.bf16.mxu1 %vm669_vm1, %v2092_v1 }
  0x7c   : > { %835 = vmatmul.mubr.bf16.gmra.mxu0 %v2093_v2  ;;  %1980 = vmatmul.mubr.msk.bf16.gmra.mxu1 %vm669_vm1, %v2094_v3 }
  0x7d   : > { %842 = vmatprep.mubr.bf16.mxu0 %v2095_v4  ;;  %1983 = vmatprep.mubr.msk.bf16.mxu1 %vm669_vm1, %v2097_v5 }
  0x84   : > { %843 = vmatmul.mubr.bf16.gmra.mxu0 %v2098_v6  ;;  %1984 = vmatmul.mubr.msk.bf16.gmra.mxu1 %vm669_vm1, %v2099_v7 }
  0xec   : > { %v1822_v8 = vpop.f32.mrf.mxu0  ;;  %v1894_v9 = vpop.f32.mrf.mxu1 }
  0xee   : > { %v1823_v10 = vpop.f32.mrf.mxu0  ;;  %v1895_v11 = vpop.f32.mrf.mxu1 }
  0xef   : > { %v2341_v12 = vadd.f32 %v1895_v11, %v1894_v9  ;;  %v1824_v46 = vadd.f32 %v1823_v10, %v1822_v8 }
  0xf0   : > { %v1825_v13 = vpop.f32.mrf.mxu0  ;;  %v1897_v14 = vpop.f32.mrf.mxu1 }
  0xf1   : > { %v757_v56 = vadd.f32 %v1824_v46, %v2356_v49  ;;  %v2370_v11 = vadd.f32 %v2341_v12, %v2356_v49 }
  0xf2   : > { %v1826_v15 = vpop.f32.mrf.mxu0  ;;  %v1898_v16 = vpop.f32.mrf.mxu1 }
  0xf3   : > { %v2343_v17 = vadd.f32 %v1898_v16, %v1897_v14  ;;  %v1827_v57 = vadd.f32 %v1826_v15, %v1825_v13 }
  0xf4   : > { %v1828_v18 = vpop.f32.mrf.mxu0  ;;  %v1900_v19 = vpop.f32.mrf.mxu1 }
  0xf5   : > { %v760_v9 = vadd.f32 %v1827_v57, %v2356_v49 }
  0xf6   : > { %v1829_v20 = vpop.f32.mrf.mxu0  ;;  %v1901_v21 = vpop.f32.mrf.mxu1 }
  0xf7   : > { %v1902_v22 = vadd.f32 %v1901_v21, %v1900_v19  ;;  %v1830_v42 = vadd.f32 %v1829_v20, %v1828_v18 }
  0xf8   : > { %v1831_v23 = vpop.f32.mrf.mxu0  ;;  %v1903_v24 = vpop.f32.mrf.mxu1 }
  0xf9   : > { %v765_v52 = vadd.f32 %v1830_v42, %v2356_v49 }
  0xfa   : > { %v1832_v25 = vpop.f32.mrf.mxu0  ;;  %v1904_v26 = vpop.f32.mrf.mxu1 }
  0xfb   : > { %v2345_v27 = vadd.f32 %v1904_v26, %v1903_v24  ;;  %v1833_v50 = vadd.f32 %v1832_v25, %v1831_v23  ;;  %v2377_v23 = vadd.f32 %v1902_v22, %v2356_v49  ;;  %v2381_v24 = vadd.f32 %v2343_v17, %v2356_v49 }
  0xfc   : > { %v1834_v28 = vpop.f32.mrf.mxu0  ;;  %v1906_v29 = vpop.f32.mrf.mxu1 }
  0xfd   : > { %v768_v63 = vadd.f32 %v1833_v50, %v2356_v49 }
  0xfe   : > { %v1835_v30 = vpop.f32.mrf.mxu0  ;;  %v1907_v31 = vpop.f32.mrf.mxu1 }
  0xff   : > { %v2347_v32 = vadd.f32 %v1907_v31, %v1906_v29  ;;  %v1836_v0 = vadd.f32 %v1835_v30, %v1834_v28 }
 0x100   : > { %v1837_v33 = vpop.f32.mrf.mxu0  ;;  %v1909_v34 = vpop.f32.mrf.mxu1 }
 0x101   : > { %v773_v21 = vadd.f32 %v1836_v0, %v2356_v49 }
 0x102   : > { %v1838_v35 = vpop.f32.mrf.mxu0  ;;  %v1910_v36 = vpop.f32.mrf.mxu1 }
 0x103   : > { %v2349_v37 = vadd.f32 %v1910_v36, %v1909_v34  ;;  %v1839_v6 = vadd.f32 %v1838_v35, %v1837_v33 }
 0x104   : > { %v1840_v38 = vpop.f32.mrf.mxu0  ;;  %v1912_v39 = vpop.f32.mrf.mxu1 }
 0x105   : > { %v776_v22 = vadd.f32 %v1839_v6, %v2356_v49 }
 0x106   : > { %v1841_v40 = vpop.f32.mrf.mxu0  ;;  %v1913_v41 = vpop.f32.mrf.mxu1 }
 0x107   : > { %v2351_v43 = vadd.f32 %v1913_v41, %v1912_v39  ;;  %v1842_v60 = vadd.f32 %v1841_v40, %v1840_v38 }
 0x108   : > { %v1843_v44 = vpop.f32.mrf.mxu0  ;;  %v1915_v45 = vpop.f32.mrf.mxu1 }
 0x109   : > { %v781_v16 = vadd.f32 %v1842_v60, %v2356_v49 }
 0x10a   : > { %v1844_v47 = vpop.f32.mrf.mxu0  ;;  %v1916_v48 = vpop.f32.mrf.mxu1 }
 0x10b   : > { %v2358_v51 = vadd.f32 %v1916_v48, %v1915_v45  ;;  %v1845_v7 = vadd.f32 %v1844_v47, %v1843_v44 }
 0x10c   : > { %v1846_v53 = vpop.f32.mrf.mxu0  ;;  %v1957_v54 = vpop.f32.mrf.mxu1 }
 0x10d   : > { %v926_v55 = vadd.f32 %v1957_v54, %v765_v52  ;;  %v784_v34 = vadd.f32 %v1845_v7, %v2356_v49 }
 0x10e   : > { %v1847_v58 = vpop.f32.mrf.mxu0  ;;  %v917_v59 = vpop.f32.mrf.mxu1 }
 0x10f   : > { %v1078_v61 = vmul.f32 0.044715, %v926_v55  ;;  %v918_v62 = vadd.f32 %v917_v59, %v757_v56  ;;  %v2385_v29 = vmul.f32 0.5, %v926_v55  ;;  %v1848_v36 = vadd.f32 %v1847_v58, %v1846_v53 }
 0x110   : > { %v2363_v1 = vpop.f32.mrf.mxu0  ;;  %v1958_v2 = vpop.f32.mrf.mxu1 }
 0x111   : > { %v1110_v3 = vmul.f32 %v1078_v61, %v926_v55  ;;  %v1076_v4 = vmul.f32 0.044715, %v918_v62  ;;  %v929_v5 = vadd.f32 %v1958_v2, %v768_v63  ;;  %v2396_v50 = vmul.f32 0.5, %v918_v62 }
 0x112   : > { %v2365_v8 = vpop.f32.mrf.mxu0  ;;  %v920_v10 = vpop.f32.mrf.mxu1  ;;  %v789_v59 = vadd.f32 %v1848_v36, %v2356_v49 }
 0x113   : > { %v1142_v13 = vmul.f32 %v1110_v3, %v926_v55  ;;  %v1108_v14 = vmul.f32 %v1076_v4, %v918_v62  ;;  %v1079_v15 = vmul.f32 0.044715, %v929_v5  ;;  %v2373_v18 = vadd.f32 %v920_v10, %v760_v9 }
 0x114   : > { %v1852_v19 = vpop.f32.mrf.mxu0  ;;  %v1961_v20 = vpop.f32.mrf.mxu1  ;;  %v2410_v7 = vmul.f32 0.5, %v929_v5 }
 0x115   : > { %v1174_v12 = vadd.f32 %v1142_v13, %v926_v55  ;;  %v1140_v25 = vmul.f32 %v1108_v14, %v918_v62  ;;  %v1111_v26 = vmul.f32 %v1079_v15, %v929_v5  ;;  %v2383_v28 = vadd.f32 %v1961_v20, %v781_v16 }
 0x116   : > { %v1077_v30 = vmul.f32 0.044715, %v2373_v18  ;;  %v1853_v31 = vpop.f32.mrf.mxu0  ;;  %v933_v33 = vpop.f32.mrf.mxu1  ;;  %v1851_v16 = vadd.f32 %v2365_v8, %v2363_v1 }
 0x117   : > { %v1206_v35 = vmul.f32 0.7978846, %v1174_v12  ;;  %v1172_v38 = vadd.f32 %v1140_v25, %v918_v62  ;;  %v1143_v17 = vmul.f32 %v1111_v26, %v929_v5  ;;  %v1082_v40 = vmul.f32 0.044715, %v2383_v28 }
 0x118   : > { %v1109_v39 = vmul.f32 %v1077_v30, %v2373_v18  ;;  %v1854_v41 = vadd.f32 %v1853_v31, %v1852_v19  ;;  %v2392_v42 = vadd.f32 %v933_v33, %v773_v21  ;;  %v1855_v44 = vpop.f32.mrf.mxu0  ;;  %v1962_v45 = vpop.f32.mrf.mxu1  ;;  %v2423_v31 = vmul.f32 0.5, %v2373_v18 }
 0x119   : > { %2100 = vtanh.f32 %v1206_v35  ;;  %v1204_v46 = vmul.f32 0.7978846, %v1172_v38  ;;  %v1175_v47 = vadd.f32 %v1143_v17, %v929_v5  ;;  %v2394_v48 = vadd.f32 %v1962_v45, %v784_v34 }
 0x11a   : > { %v1141_v52 = vmul.f32 %v1109_v39, %v2373_v18  ;;  %v1114_v53 = vmul.f32 %v1082_v40, %v2383_v28  ;;  %v1080_v54 = vmul.f32 0.044715, %v2392_v42  ;;  %v1856_v55 = vpop.f32.mrf.mxu0  ;;  %v936_v56 = vpop.f32.mrf.mxu1  ;;  %v797_v6 = vadd.f32 %v1854_v41, %v2356_v49 }
 0x11b   : > { %2102 = vtanh.f32 %v1204_v46  ;;  %v1207_v57 = vmul.f32 0.7978846, %v1175_v47  ;;  %v1083_v58 = vmul.f32 0.044715, %v2394_v48  ;;  %v1857_v63 = vadd.f32 %v1856_v55, %v1855_v44 }
 0x11c   : > { %v1173_v60 = vadd.f32 %v1141_v52, %v2373_v18  ;;  %v1146_v61 = vmul.f32 %v1114_v53, %v2383_v28  ;;  %v1112_v62 = vmul.f32 %v1080_v54, %v2392_v42  ;;  %v1858_v0 = vpop.f32.mrf.mxu0  ;;  %v1965_v2 = vpop.f32.mrf.mxu1  ;;  %v2407_v4 = vadd.f32 %v936_v56, %v776_v22 }
 0x11d   : > { %2104 = vtanh.f32 %v1207_v57  ;;  %v1115_v3 = vmul.f32 %v1083_v58, %v2394_v48  ;;  %v2418_v21 = vadd.f32 %v1965_v2, %v797_v6  ;;  %v800_v26 = vadd.f32 %v1857_v63, %v2356_v49 }
 0x11e   : > { %v1205_v9 = vmul.f32 0.7978846, %v1173_v60  ;;  %v1178_v10 = vadd.f32 %v1146_v61, %v2383_v28  ;;  %v1144_v13 = vmul.f32 %v1112_v62, %v2392_v42  ;;  %v1859_v14 = vpop.f32.mrf.mxu0  ;;  %v949_v15 = vpop.f32.mrf.mxu1  ;;  %v1081_v20 = vmul.f32 0.044715, %v2407_v4 }
 0x11f   : > { %v1147_v19 = vmul.f32 %v1115_v3, %v2394_v48  ;;  %v1086_v8 = vmul.f32 0.044715, %v2418_v21  ;;  %v2428_v22 = vadd.f32 %v949_v15, %v789_v59  ;;  %v792_v40 = vadd.f32 %v1851_v16, %v2356_v49 }
 0x120   : > { %2106 = vtanh.f32 %v1205_v9  ;;  %v1210_v12 = vmul.f32 0.7978846, %v1178_v10  ;;  %v1176_v5 = vadd.f32 %v1144_v13, %v2392_v42  ;;  %v1861_v25 = vpop.f32.mrf.mxu0  ;;  %v1966_v30 = vpop.f32.mrf.mxu1  ;;  %v1113_v1 = vmul.f32 %v1081_v20, %v2407_v4 }
 0x121   : > { %v1179_v33 = vadd.f32 %v1147_v19, %v2394_v48  ;;  %v2430_v35 = vadd.f32 %v1966_v30, %v800_v26  ;;  %v1118_v18 = vmul.f32 %v1086_v8, %v2418_v21  ;;  %v1860_v41 = vadd.f32 %v1859_v14, %v1858_v0 }
 0x122   : > { %2108 = vtanh.f32 %v1210_v12  ;;  %v1208_v34 = vmul.f32 0.7978846, %v1176_v5  ;;  %v1862_v36 = vpop.f32.mrf.mxu0  ;;  %v952_v38 = vpop.f32.mrf.mxu1  ;;  %v1145_v39 = vmul.f32 %v1113_v1, %v2407_v4  ;;  %v1084_v44 = vmul.f32 0.044715, %v2428_v22 }
 0x123   : > { %v1211_v17 = vmul.f32 0.7978846, %v1179_v33  ;;  %v1863_v45 = vadd.f32 %v1862_v36, %v1861_v25  ;;  %v1150_v53 = vmul.f32 %v1118_v18, %v2418_v21  ;;  %v1087_v54 = vmul.f32 0.044715, %v2430_v35 }
 0x124   : > { %2110 = vtanh.f32 %v1208_v34  ;;  %v1864_v46 = vpop.f32.mrf.mxu0  ;;  %v1969_v47 = vpop.f32.mrf.mxu1  ;;  %v1177_v52 = vadd.f32 %v1145_v39, %v2407_v4  ;;  %v2440_v56 = vmul.f32 0.5, %v2383_v28  ;;  %v2443_v57 = vmul.f32 0.5, %v2392_v42 }
 0x125   : > { %2112 = vtanh.f32 %v1211_v17  ;;  %v1116_v58 = vmul.f32 %v1084_v44, %v2428_v22  ;;  %v2446_v59 = vadd.f32 %v952_v38, %v792_v40  ;;  %v2449_v62 = vmul.f32 0.5, %v2394_v48 }
 0x126   : > { %v2101_v55 = vpop.eup %2100  ;;  %v1865_v60 = vpop.f32.mrf.mxu0  ;;  %v1209_v63 = vmul.f32 0.7978846, %v1177_v52  ;;  %v1182_v0 = vadd.f32 %v1150_v53, %v2418_v21  ;;  %v1119_v2 = vmul.f32 %v1087_v54, %v2430_v35  ;;  %v805_v9 = vadd.f32 %v1860_v41, %v2356_v49 }
 0x127   : > { %v965_v61 = vpop.f32.mrf.mxu1  ;;  %v1148_v28 = vmul.f32 %v1116_v58, %v2428_v22  ;;  %v1085_v42 = vmul.f32 0.044715, %v2446_v59  ;;  %v1866_v6 = vadd.f32 %v1865_v60, %v1864_v46  ;;  %v1270_v14 = vadd.f32 1.0, %v2101_v55 }
 0x128   : > { %v2103_v3 = vpop.eup %2102  ;;  %v1867_v10 = vpop.f32.mrf.mxu0  ;;  %2114 = vtanh.f32 %v1209_v63  ;;  %v1214_v48 = vmul.f32 0.7978846, %v1182_v0  ;;  %v808_v15 = vadd.f32 %v1863_v45, %v2356_v49  ;;  %v1151_v20 = vmul.f32 %v1119_v2, %v2430_v35 }
 0x129   : > { %v1970_v13 = vpop.f32.mrf.mxu1  ;;  %v1180_v19 = vadd.f32 %v1148_v28, %v2428_v22  ;;  %v1117_v12 = vmul.f32 %v1085_v42, %v2446_v59  ;;  %v813_v5 = vadd.f32 %v1866_v6, %v2356_v49  ;;  %v1268_v30 = vadd.f32 1.0, %v2103_v3 }
 0x12a   : > { %v2105_v16 = vpop.eup %2104  ;;  %v1868_v25 = vpop.f32.mrf.mxu0  ;;  %2116 = vtanh.f32 %v1214_v48  ;;  %v2462_v1 = vadd.f32 %v965_v61, %v805_v9  ;;  %v1183_v34 = vadd.f32 %v1151_v20, %v2430_v35  ;;  %v1302_v40 = vmul.f32 %v1270_v14, %v2385_v29 }
 0x12b   : > { %v968_v26 = vpop.f32.mrf.mxu1  ;;  %v1271_v33 = vadd.f32 1.0, %v2105_v16  ;;  %v1212_v8 = vmul.f32 0.7978846, %v1180_v19  ;;  %v1149_v36 = vmul.f32 %v1117_v12, %v2446_v59  ;;  %v2466_v38 = vadd.f32 %v1969_v47, %v813_v5 }
 0x12c   : > { %v1870_v17 = vpop.f32.mrf.mxu0  ;;  %v1088_v44 = vmul.f32 0.044715, %v2462_v1  ;;  %v1869_v45 = vadd.f32 %v1868_v25, %v1867_v10  ;;  %v1215_v47 = vmul.f32 0.7978846, %v1183_v34  ;;  %v1300_v29 = vmul.f32 %v1268_v30, %v2396_v50 }
 0x12d   : > { %v2468_v39 = vpop.f32.mrf.mxu1  ;;  %v2107_v18 = vpop.eup %2106  ;;  %v1303_v41 = vmul.f32 %v1271_v33, %v2410_v7  ;;  %2118 = vtanh.f32 %v1212_v8  ;;  %v1181_v52 = vadd.f32 %v1149_v36, %v2446_v59  ;;  %v1090_v58 = vmul.f32 0.044715, %v2466_v38 }
 0x12e   : > { %v1269_v46 = vadd.f32 1.0, %v2107_v18  ;;  %v1871_v53 = vpop.f32.mrf.mxu0  ;;  %v1120_v60 = vmul.f32 %v1088_v44, %v2462_v1  ;;  %2120 = vtanh.f32 %v1215_v47  ;;  %v816_v6 = vadd.f32 %v1869_v45, %v2356_v49 }
 0x12f   : > { %v981_v54 = vpop.f32.mrf.mxu1  ;;  %v2109_v55 = vpop.eup %2108  ;;  %v1719_v7 = vpack.c.bf16 %v1303_v41, %v1302_v40  ;;  %v1213_v0 = vmul.f32 0.7978846, %v1181_v52  ;;  %v1122_v42 = vmul.f32 %v1090_v58, %v2466_v38  ;;  %v2489_v9 = vadd.f32 %v968_v26, %v808_v15 }
 0x130   : > { %v1301_v61 = vmul.f32 %v1269_v46, %v2423_v31  ;;  %v1274_v63 = vadd.f32 1.0, %v2109_v55  ;;  %v1873_v2 = vpop.f32.mrf.mxu0  ;;  %v1152_v50 = vmul.f32 %v1120_v60, %v2462_v1  ;;  %v1049_v31 = vmul.f32 0.5, %v2407_v4 }
 0x131   : > { %v2483_v3 = vpop.f32.mrf.mxu1  ;;  %v2111_v28 = vpop.eup %2110  ;;  %1791 = vst [vmem:[%s2476_s19 + $0x8] sm:$0xff] %v1719_v7   ;;  %v2493_v48 = vmul.f32 0.5, %v2418_v21  ;;  %2122 = vtanh.f32 %v1213_v0  ;;  %v1154_v12 = vmul.f32 %v1122_v42, %v2466_v38  ;;  %v2497_v25 = vadd.f32 %v1970_v13, %v816_v6 }
 0x132   : > { %v2113_v10 = vpop.eup %2112  ;;  %v1714_v14 = vpack.c.bf16 %v1301_v61, %v1300_v29  ;;  %v1874_v16 = vpop.f32.mrf.mxu0  ;;  %v1184_v5 = vadd.f32 %v1152_v50, %v2462_v1  ;;  %v1306_v15 = vmul.f32 %v1274_v63, %v2440_v56  ;;  %v1052_v26 = vmul.f32 0.5, %v2428_v22 }
 0x133   : > { %v984_v19 = vpop.f32.mrf.mxu1  ;;  %v1275_v20 = vadd.f32 1.0, %v2113_v10  ;;  %v1089_v4 = vmul.f32 0.044715, %v2489_v9  ;;  %v1872_v30 = vadd.f32 %v1871_v53, %v1870_v17  ;;  %v1272_v8 = vadd.f32 1.0, %v2111_v28 }
 0x134   : > { %1715 = vst [vmem:[%s2476_s19] sm:$0xff] %v1714_v14   ;;  %v1876_v21 = vpop.f32.mrf.mxu0  ;;  %v1186_v36 = vadd.f32 %v1154_v12, %v2466_v38  ;;  %v1216_v18 = vmul.f32 0.7978846, %v1184_v5  ;;  %v1091_v13 = vmul.f32 0.044715, %v2497_v25  ;;  %v1875_v22 = vadd.f32 %v1874_v16, %v1873_v2 }
 0x135   : > { %v2503_v33 = vpop.f32.mrf.mxu1  ;;  %v1307_v34 = vmul.f32 %v1275_v20, %v2449_v62  ;;  %v2115_v40 = vpop.eup %2114  ;;  %v1121_v41 = vmul.f32 %v1089_v4, %v2489_v9  ;;  %v821_v56 = vadd.f32 %v1872_v30, %v2356_v49  ;;  %v1304_v60 = vmul.f32 %v1272_v8, %v2443_v57 }
 0x136   : > { %v1877_v44 = vpop.f32.mrf.mxu0  ;;  %v1273_v46 = vadd.f32 1.0, %v2115_v40  ;;  %v1218_v47 = vmul.f32 0.7978846, %v1186_v36  ;;  %2124 = vtanh.f32 %v1216_v18  ;;  %v1123_v52 = vmul.f32 %v1091_v13, %v2497_v25 }
 0x137   : > { %v2510_v17 = vpop.f32.mrf.mxu1  ;;  %v1729_v45 = vpack.c.bf16 %v1307_v34, %v1306_v15  ;;  %v2117_v62 = vpop.eup %2116  ;;  %v1153_v53 = vmul.f32 %v1121_v41, %v2489_v9  ;;  %v2514_v55 = vadd.f32 %v981_v54, %v821_v56  ;;  %v824_v29 = vadd.f32 %v1875_v22, %v2356_v49 }
 0x138   : > { %v1879_v7 = vpop.f32.mrf.mxu0  ;;  %v1305_v61 = vmul.f32 %v1273_v46, %v1049_v31  ;;  %v1278_v63 = vadd.f32 1.0, %v2117_v62  ;;  %v1878_v0 = vadd.f32 %v1877_v44, %v1876_v21  ;;  %2126 = vtanh.f32 %v1218_v47 }
 0x139   : > { %v2517_v58 = vpop.f32.mrf.mxu1  ;;  %1793 = vst [vmem:[%s2476_s19 + $0x18] sm:$0xff] %v1729_v45   ;;  %v1155_v2 = vmul.f32 %v1123_v52, %v2497_v25  ;;  %v1185_v28 = vadd.f32 %v1153_v53, %v2489_v9  ;;  %v1092_v54 = vmul.f32 0.044715, %v2514_v55  ;;  %v1055_v14 = vmul.f32 0.5, %v2430_v35 }
 0x13a   : > { %v1880_v42 = vpop.f32.mrf.mxu0  ;;  %v2119_v6 = vpop.eup %2118  ;;  %v1724_v10 = vpack.c.bf16 %v1305_v61, %v1304_v60  ;;  %v2527_v57 = vadd.f32 %v984_v19, %v824_v29  ;;  %v829_v31 = vadd.f32 %v1878_v0, %v2356_v49  ;;  %v1053_v21 = vmul.f32 0.5, %v2446_v59 }
 0x13b   : > { %v2524_v50 = vpop.f32.mrf.mxu1  ;;  %v1276_v16 = vadd.f32 1.0, %v2119_v6  ;;  %v1187_v20 = vadd.f32 %v1155_v2, %v2497_v25  ;;  %v1217_v12 = vmul.f32 0.7978846, %v1185_v28  ;;  %v1124_v5 = vmul.f32 %v1092_v54, %v2514_v55  ;;  %v2121_v30 = vpop.eup %2120 }
 0x13c   : > { %v1882_v15 = vpop.f32.mrf.mxu0  ;;  %1792 = vst [vmem:[%s2476_s19 + $0x10] sm:$0xff] %v1724_v10   ;;  %v1093_v8 = vmul.f32 0.044715, %v2527_v57  ;;  %v2536_v35 = vadd.f32 %v2468_v39, %v829_v31  ;;  %v1881_v19 = vadd.f32 %v1880_v42, %v1879_v7  ;;  %v1310_v34 = vmul.f32 %v1278_v63, %v2493_v48 }
 0x13d   : > { %v1981_v4 = vpop.f32.mrf.mxu1  ;;  %v1279_v36 = vadd.f32 1.0, %v2121_v30  ;;  %v1219_v18 = vmul.f32 0.7978846, %v1187_v20  ;;  %2128 = vtanh.f32 %v1217_v12  ;;  %v1308_v13 = vmul.f32 %v1276_v16, %v1052_v26 }
 0x13e   : > { %v2123_v40 = vpop.eup %2122  ;;  %v1156_v41 = vmul.f32 %v1124_v5, %v2514_v55  ;;  %v1125_v56 = vmul.f32 %v1093_v8, %v2527_v57  ;;  %v1094_v22 = vmul.f32 0.044715, %v2536_v35  ;;  %v1883_v59 = vpop.f32.mrf.mxu0  ;;  %v832_v39 = vadd.f32 %v1881_v19, %v2356_v49 }
 0x13f   : > { %v1311_v44 = vmul.f32 %v1279_v36, %v1055_v14  ;;  %v1277_v45 = vadd.f32 1.0, %v2123_v40  ;;  %2130 = vtanh.f32 %v1219_v18  ;;  %v1013_v46 = vpop.f32.mrf.mxu1  ;;  %v2547_v62 = vadd.f32 %v1981_v4, %v2377_v23 }
 0x140   : > { %v1188_v48 = vadd.f32 %v1156_v41, %v2514_v55  ;;  %v1157_v47 = vmul.f32 %v1125_v56, %v2527_v57  ;;  %v1126_v26 = vmul.f32 %v1094_v22, %v2536_v35  ;;  %v2550_v29 = vadd.f32 %v2483_v3, %v832_v39  ;;  %v1885_v42 = vpop.f32.mrf.mxu0 }
 0x141   : > { %v1739_v52 = vpack.c.bf16 %v1311_v44, %v1310_v34  ;;  %v1309_v53 = vmul.f32 %v1277_v45, %v1053_v21  ;;  %v1884_v7 = vadd.f32 %v1883_v59, %v1882_v15  ;;  %v864_v0 = vadd.f32 %v2345_v27, %v2356_v49  ;;  %v1982_v3 = vpop.f32.mrf.mxu1 }
 0x142   : > { %v1220_v60 = vmul.f32 0.7978846, %v1188_v48  ;;  %v1189_v61 = vadd.f32 %v1157_v47, %v2527_v57  ;;  %v1158_v63 = vmul.f32 %v1126_v26, %v2536_v35  ;;  %v1095_v23 = vmul.f32 0.044715, %v2550_v29  ;;  %v1886_v19 = vpop.f32.mrf.mxu0 }
 0x143   : > { %v2125_v2 = vpop.eup %2124  ;;  %1795 = vst [vmem:[%s2476_s19 + $0x28] sm:$0xff] %v1739_v52   ;;  %v1734_v28 = vpack.c.bf16 %v1309_v53, %v1308_v13  ;;  %v1102_v54 = vmul.f32 0.044715, %v2547_v62  ;;  %v2561_v6 = vadd.f32 %v2347_v32, %v2356_v49  ;;  %v1056_v10 = vmul.f32 0.5, %v2462_v1  ;;  %v1016_v34 = vpop.f32.mrf.mxu1 }
 0x144   : > { %2132 = vtanh.f32 %v1220_v60  ;;  %v1221_v14 = vmul.f32 0.7978846, %v1189_v61  ;;  %v1190_v31 = vadd.f32 %v1158_v63, %v2536_v35  ;;  %v1127_v27 = vmul.f32 %v1095_v23, %v2550_v29 }
 0x145   : > { %1794 = vst [vmem:[%s2476_s19 + $0x20] sm:$0xff] %v1734_v28   ;;  %v1134_v16 = vmul.f32 %v1102_v54, %v2547_v62  ;;  %v837_v20 = vadd.f32 %v1884_v7, %v2356_v49  ;;  %v2570_v12 = vadd.f32 %v1013_v46, %v2370_v11  ;;  %v2127_v5 = vpop.eup %2126  ;;  %v1058_v32 = vmul.f32 0.5, %v2466_v38  ;;  %v1888_v46 = vpop.f32.mrf.mxu0 }
 0x146   : > { %v1280_v15 = vadd.f32 1.0, %v2125_v2  ;;  %2134 = vtanh.f32 %v1221_v14  ;;  %v1222_v1 = vmul.f32 0.7978846, %v1190_v31  ;;  %v1057_v4 = vmul.f32 0.5, %v2489_v9  ;;  %v1985_v48 = vpop.f32.mrf.mxu1 }
 0x147   : > { %v1159_v30 = vmul.f32 %v1127_v27, %v2550_v29  ;;  %v1166_v21 = vmul.f32 %v1134_v16, %v2547_v62  ;;  %v2577_v8 = vadd.f32 %v2510_v17, %v837_v20  ;;  %v1059_v11 = vmul.f32 0.5, %v2497_v25 }
 0x148   : > { %2136 = vtanh.f32 %v1222_v1  ;;  %v1100_v36 = vmul.f32 0.044715, %v2570_v12  ;;  %v2581_v38 = vadd.f32 %v1982_v3, %v864_v0  ;;  %v1282_v18 = vadd.f32 1.0, %v2127_v5  ;;  %v1029_v14 = vpop.f32.mrf.mxu1 }
 0x149   : > { %v1191_v40 = vadd.f32 %v1159_v30, %v2550_v29  ;;  %v1198_v9 = vadd.f32 %v1166_v21, %v2547_v62  ;;  %v1096_v13 = vmul.f32 0.044715, %v2577_v8  ;;  %v1312_v56 = vmul.f32 %v1280_v15, %v1056_v10  ;;  %v1889_v10 = vpop.f32.mrf.mxu0 }
 0x14a   : > { %v2129_v41 = vpop.eup %2128  ;;  %v1132_v17 = vmul.f32 %v1100_v36, %v2570_v12  ;;  %v1103_v22 = vmul.f32 0.044715, %v2581_v38  ;;  %v1887_v59 = vadd.f32 %v1886_v19, %v1885_v42  ;;  %v2593_v7 = vadd.f32 %v1016_v34, %v2381_v24  ;;  %v1986_v36 = vpop.f32.mrf.mxu1 }
 0x14b   : > { %v1281_v25 = vadd.f32 1.0, %v2129_v41  ;;  %v1223_v44 = vmul.f32 0.7978846, %v1191_v40  ;;  %v1230_v45 = vmul.f32 0.7978846, %v1198_v9  ;;  %v1128_v39 = vmul.f32 %v1096_v13, %v2577_v8 }
 0x14c   : > { %v2131_v47 = vpop.eup %2130  ;;  %v1164_v26 = vmul.f32 %v1132_v17, %v2570_v12  ;;  %v1135_v52 = vmul.f32 %v1103_v22, %v2581_v38  ;;  %v840_v53 = vadd.f32 %v1887_v59, %v2356_v49  ;;  %v1314_v0 = vmul.f32 %v1282_v18, %v1058_v32 }
 0x14d   : > { %v1283_v60 = vadd.f32 1.0, %v2131_v47  ;;  %v1313_v61 = vmul.f32 %v1281_v25, %v1057_v4  ;;  %2138 = vtanh.f32 %v1223_v44  ;;  %v1160_v63 = vmul.f32 %v1128_v39, %v2577_v8 }
 0x14e   : > { %v1167_v2 = vmul.f32 %v1135_v52, %v2581_v38  ;;  %v2598_v28 = vadd.f32 %v2524_v50, %v840_v53  ;;  %v877_v23 = vadd.f32 %v2351_v43, %v2356_v49  ;;  %v1196_v3 = vadd.f32 %v1164_v26, %v2570_v12 }
 0x14f   : > { %v1315_v54 = vmul.f32 %v1283_v60, %v1059_v11  ;;  %v1744_v42 = vpack.c.bf16 %v1313_v61, %v1312_v56  ;;  %v1192_v24 = vadd.f32 %v1160_v63, %v2577_v8  ;;  %2140 = vtanh.f32 %v1230_v45  ;;  %v1891_v11 = vpop.f32.mrf.mxu0 }
 0x150   : > { %v1199_v31 = vadd.f32 %v1167_v2, %v2581_v38  ;;  %v1097_v27 = vmul.f32 0.044715, %v2598_v28  ;;  %v880_v50 = vadd.f32 %v2358_v51, %v2356_v49  ;;  %v1101_v5 = vmul.f32 0.044715, %v2593_v7 }
 0x151   : > { %v2133_v16 = vpop.eup %2132  ;;  %v1749_v20 = vpack.c.bf16 %v1315_v54, %v1314_v0  ;;  %1796 = vst [vmem:[%s2476_s19 + $0x30] sm:$0xff] %v1744_v42   ;;  %v1224_v43 = vmul.f32 0.7978846, %v1192_v24  ;;  %v2610_v32 = vadd.f32 %v1985_v48, %v877_v23  ;;  %v1060_v15 = vmul.f32 0.5, %v2514_v55  ;;  %v1892_v48 = vpop.f32.mrf.mxu0 }
 0x152   : > { %v1284_v1 = vadd.f32 1.0, %v2133_v16  ;;  %v1231_v4 = vmul.f32 0.7978846, %v1199_v31  ;;  %v1129_v30 = vmul.f32 %v1097_v27, %v2598_v28  ;;  %v1228_v19 = vmul.f32 0.7978846, %v1196_v3  ;;  %v1032_v54 = vpop.f32.mrf.mxu1 }
 0x153   : > { %v2135_v21 = vpop.eup %2134  ;;  %1797 = vst [vmem:[%s2476_s19 + $0x38] sm:$0xff] %v1749_v20   ;;  %2142 = vtanh.f32 %v1224_v43  ;;  %v1133_v51 = vmul.f32 %v1101_v5, %v2593_v7  ;;  %v1106_v34 = vmul.f32 0.044715, %v2610_v32  ;;  %v1061_v18 = vmul.f32 0.5, %v2527_v57 }
 0x154   : > { %v1285_v40 = vadd.f32 1.0, %v2135_v21  ;;  %2144 = vtanh.f32 %v1231_v4  ;;  %v1161_v55 = vmul.f32 %v1129_v30, %v2598_v28  ;;  %v1890_v56 = vadd.f32 %v1889_v10, %v1888_v46 }
 0x155   : > { %v2137_v9 = vpop.eup %2136  ;;  %v1165_v13 = vmul.f32 %v1133_v51, %v2593_v7  ;;  %v1138_v41 = vmul.f32 %v1106_v34, %v2610_v32  ;;  %v2622_v17 = vadd.f32 %v1029_v14, %v2561_v6  ;;  %v1316_v22 = vmul.f32 %v1284_v1, %v1060_v15 }
 0x156   : > { %v1317_v59 = vmul.f32 %v1285_v40, %v1061_v18  ;;  %v1193_v25 = vadd.f32 %v1161_v55, %v2598_v28  ;;  %v2625_v44 = vadd.f32 %v1986_v36, %v880_v50  ;;  %2146 = vtanh.f32 %v1228_v19 }
 0x157   : > { %v1197_v57 = vadd.f32 %v1165_v13, %v2593_v7  ;;  %v1170_v45 = vmul.f32 %v1138_v41, %v2610_v32  ;;  %v845_v39 = vadd.f32 %v1890_v56, %v2356_v49  ;;  %v1286_v46 = vadd.f32 1.0, %v2137_v9 }
 0x158   : > { %v1754_v47 = vpack.c.bf16 %v1317_v59, %v1316_v22  ;;  %v1225_v26 = vmul.f32 0.7978846, %v1193_v25  ;;  %v1104_v6 = vmul.f32 0.044715, %v2622_v17  ;;  %v1062_v52 = vmul.f32 0.5, %v2536_v35 }
 0x159   : > { %v1229_v53 = vmul.f32 0.7978846, %v1197_v57  ;;  %v1202_v60 = vadd.f32 %v1170_v45, %v2610_v32  ;;  %v2634_v61 = vadd.f32 %v2503_v33, %v845_v39  ;;  %v1107_v2 = vmul.f32 0.044715, %v2625_v44 }
 0x15a   : > { %v2139_v63 = vpop.eup %2138  ;;  %1798 = vst [vmem:[%s2476_s19 + $0x40] sm:$0xff] %v1754_v47   ;;  %2148 = vtanh.f32 %v1225_v26  ;;  %v1136_v0 = vmul.f32 %v1104_v6, %v2622_v17  ;;  %v1893_v23 = vadd.f32 %v1892_v48, %v1891_v11  ;;  %v1063_v42 = vmul.f32 0.5, %v2550_v29 }
 0x15b   : > { %v1287_v24 = vadd.f32 1.0, %v2139_v63  ;;  %2150 = vtanh.f32 %v1229_v53  ;;  %v872_v35 = vadd.f32 %v2349_v37, %v2356_v49  ;;  %v1318_v3 = vmul.f32 %v1286_v46, %v1062_v52 }
 0x15c   : > { %v1098_v33 = vmul.f32 0.044715, %v2634_v61  ;;  %v1168_v10 = vmul.f32 %v1136_v0, %v2622_v17  ;;  %v1139_v14 = vmul.f32 %v1107_v2, %v2625_v44  ;;  %v2141_v31 = vpop.eup %2140  ;;  %v1234_v50 = vmul.f32 0.7978846, %v1202_v60 }
 0x15d   : > { %v1319_v27 = vmul.f32 %v1287_v24, %v1063_v42  ;;  %v848_v16 = vadd.f32 %v1893_v23, %v2356_v49  ;;  %v2646_v20 = vadd.f32 %v1032_v54, %v872_v35  ;;  %v1294_v30 = vadd.f32 1.0, %v2141_v31 }
 0x15e   : > { %v1130_v29 = vmul.f32 %v1098_v33, %v2634_v61  ;;  %v1200_v43 = vadd.f32 %v1168_v10, %v2622_v17  ;;  %v1171_v37 = vmul.f32 %v1139_v14, %v2625_v44  ;;  %2152 = vtanh.f32 %v1234_v50 }
 0x15f   : > { %v1759_v5 = vpack.c.bf16 %v1319_v27, %v1318_v3  ;;  %v2652_v15 = vadd.f32 %v2517_v58, %v848_v16  ;;  %v1105_v1 = vmul.f32 0.044715, %v2646_v20  ;;  %v1070_v36 = vmul.f32 0.5, %v2547_v62 }
 0x160   : > { %v2143_v4 = vpop.eup %2142  ;;  %v1162_v21 = vmul.f32 %v1130_v29, %v2634_v61  ;;  %v1232_v19 = vmul.f32 0.7978846, %v1200_v43  ;;  %v1203_v49 = vadd.f32 %v1171_v37, %v2625_v44  ;;  %v1071_v58 = vmul.f32 0.5, %v2581_v38 }
 0x161   : > { %v2145_v51 = vpop.eup %2144  ;;  %1799 = vst [vmem:[%s2476_s19 + $0x48] sm:$0xff] %v1759_v5   ;;  %v1099_v34 = vmul.f32 0.044715, %v2652_v15  ;;  %v1137_v11 = vmul.f32 %v1105_v1, %v2646_v20  ;;  %v1326_v56 = vmul.f32 %v1294_v30, %v1070_v36  ;;  %v1288_v38 = vadd.f32 1.0, %v2143_v4 }
 0x162   : > { %v1295_v18 = vadd.f32 1.0, %v2145_v51  ;;  %v1194_v40 = vadd.f32 %v1162_v21, %v2634_v61  ;;  %v1235_v55 = vmul.f32 0.7978846, %v1203_v49  ;;  %2154 = vtanh.f32 %v1232_v19 }
 0x163   : > { %v1131_v9 = vmul.f32 %v1099_v34, %v2652_v15  ;;  %v1169_v13 = vmul.f32 %v1137_v11, %v2646_v20  ;;  %v2147_v41 = vpop.eup %2146  ;;  %v1064_v26 = vmul.f32 0.5, %v2577_v8  ;;  %v1068_v6 = vmul.f32 0.5, %v2570_v12 }
 0x164   : > { %v1327_v22 = vmul.f32 %v1295_v18, %v1071_v58  ;;  %v1226_v59 = vmul.f32 0.7978846, %v1194_v40  ;;  %2156 = vtanh.f32 %v1235_v55  ;;  %v1292_v39 = vadd.f32 1.0, %v2147_v41 }
 0x165   : > { %v1163_v25 = vmul.f32 %v1131_v9, %v2652_v15  ;;  %v1201_v62 = vadd.f32 %v1169_v13, %v2646_v20  ;;  %v1065_v52 = vmul.f32 0.5, %v2598_v28  ;;  %v1069_v60 = vmul.f32 0.5, %v2593_v7 }
 0x166   : > { %v1779_v57 = vpack.c.bf16 %v1327_v22, %v1326_v56  ;;  %2158 = vtanh.f32 %v1226_v59  ;;  %v1320_v2 = vmul.f32 %v1288_v38, %v1064_v26  ;;  %v1324_v54 = vmul.f32 %v1292_v39, %v1068_v6 }
 0x167   : > { %v2149_v45 = vpop.eup %2148  ;;  %v1195_v48 = vadd.f32 %v1163_v25, %v2652_v15  ;;  %v1233_v47 = vmul.f32 0.7978846, %v1201_v62  ;;  %v1074_v28 = vmul.f32 0.5, %v2610_v32  ;;  %v1075_v7 = vmul.f32 0.5, %v2625_v44 }
 0x168   : > { %v2151_v46 = vpop.eup %2150  ;;  %1803 = vst [vmem:[%s2476_s19 + $0x68] sm:$0xff] %v1779_v57   ;;  %v1289_v53 = vadd.f32 1.0, %v2149_v45  ;;  %v1072_v29 = vmul.f32 0.5, %v2622_v17  ;;  %v1073_v5 = vmul.f32 0.5, %v2646_v20  ;;  %v1066_v32 = vmul.f32 0.5, %v2634_v61 }
 0x169   : > { %v1293_v63 = vadd.f32 1.0, %v2151_v46  ;;  %v1227_v0 = vmul.f32 0.7978846, %v1195_v48  ;;  %2160 = vtanh.f32 %v1233_v47  ;;  %v1067_v44 = vmul.f32 0.5, %v2652_v15 }
 0x16a   : > { %v1321_v23 = vmul.f32 %v1289_v53, %v1065_v52 }
 0x16b   : > { %v1325_v42 = vmul.f32 %v1293_v63, %v1069_v60  ;;  %2162 = vtanh.f32 %v1227_v0  ;;  %v2153_v35 = vpop.eup %2152 }
 0x16c   : > { %v1764_v24 = vpack.c.bf16 %v1321_v23, %v1320_v2  ;;  %v1298_v3 = vadd.f32 1.0, %v2153_v35 }
 0x16d   : > { %v1774_v8 = vpack.c.bf16 %v1325_v42, %v1324_v54 }
 0x16e   : > { %1800 = vst [vmem:[%s2476_s19 + $0x50] sm:$0xff] %v1764_v24   ;;  %v1330_v31 = vmul.f32 %v1298_v3, %v1074_v28 }
 0x16f   : > { %1802 = vst [vmem:[%s2476_s19 + $0x60] sm:$0xff] %v1774_v8   ;;  %v2155_v12 = vpop.eup %2154 }
 0x170   : > { %v1296_v27 = vadd.f32 1.0, %v2155_v12 }
 0x171   : > { %v2157_v33 = vpop.eup %2156 }
 0x172   : > { %v1299_v10 = vadd.f32 1.0, %v2157_v33  ;;  %v1328_v30 = vmul.f32 %v1296_v27, %v1072_v29 }
 0x173   : > { %v2159_v14 = vpop.eup %2158 }
 0x174   : > { %v1331_v50 = vmul.f32 %v1299_v10, %v1075_v7  ;;  %v1290_v43 = vadd.f32 1.0, %v2159_v14 }
 0x176   : > { %v2161_v16 = vpop.eup %2160  ;;  %v1789_v37 = vpack.c.bf16 %v1331_v50, %v1330_v31  ;;  %v1322_v49 = vmul.f32 %v1290_v43, %v1066_v32 }
 0x177   : > { %v1297_v1 = vadd.f32 1.0, %v2161_v16 }
 0x178   : > { %v2163_v4 = vpop.eup %2162  ;;  %1805 = vst [vmem:[%s2476_s19 + $0x78] sm:$0xff] %v1789_v37  }
 0x179   : > { %v1291_v21 = vadd.f32 1.0, %v2163_v4  ;;  %v1329_v19 = vmul.f32 %v1297_v1, %v1073_v5 }
 0x17b   : > { %v1323_v51 = vmul.f32 %v1291_v21, %v1067_v44  ;;  %v1784_v34 = vpack.c.bf16 %v1329_v19, %v1328_v30 }
 0x17d   : > { %v1769_v17 = vpack.c.bf16 %v1323_v51, %v1322_v49  ;;  %1804 = vst [vmem:[%s2476_s19 + $0x70] sm:$0xff] %v1784_v34  }
 0x17f   : > { %1801 = vst [vmem:[%s2476_s19 + $0x58] sm:$0xff] %v1769_v17  }
 0x180 PF: > { %s13_s12 = sadd.s32 1, %s2170_s12  }
 0x181   : > { %p10_p4 = scmp.ge.s32.totalorder %s13_s12, 4  }
 0x183   :  { %12 = sbr.rel (!%p10_p4) target bundleno = 1 (0x1), region = 62 }

// kernel: _lambda_.18
= control target key start
LH: loop header
LB: loop body
LE: loop exit
PB: predicated region body
PF: predicated region fallthrough
CT: control target
= control target key end

     0   :  { %s5025_s12 = smov 0   ;;  %s6366_s0 = inlined_call_operand.vmem [shape: bf16[512,1400], index: 0, kind: input, shape index: {}]   ;;  %s6367_s1 = inlined_call_operand.vmem [shape: bf16[1400,128], index: 1, kind: input, shape index: {}]   ;;  %s6368_s2 = inlined_call_operand.vmem [shape: f32[1,128], index: 2, kind: input, shape index: {}]   ;;  %s6369_s3 = inlined_call_operand.vmem [shape: bf16[512,128], index: 3, kind: output, shape index: {}]  }
   0x1 LB: > { %s3480_s13 = sadd.s32 4294967295, %s5003_s12   ;;  %p3484_p0 = scmp.ge.s32.totalorder %s5003_s12, 1  ;;  %s5003_s12 = sphi %s5025_s12, %s13_s12  }
   0x2   : > { %p139_p1 = scmp.lt.s32.totalorder %s5003_s12, 3 }
   0x4   : > { %p140_p2 = pnand %p3484_p0, %p139_p1 }
   0x6   : > { %143 = sbr.rel (%p140_p2) target bundleno = 640 (0x280), region = 32 }
   0xb   : > { %v4589_v0 = vld [vmem:[%s6367_s1 + $0x78] sm:$0xff]   ;;  %s3485_s16 = sshll.u32 %s3480_s13, 5  ;;  %v4591_v2 = vld [vmem:[%s6367_s1 + $0x70] sm:$0xff]   ;;  %v4593_v4 = vld [vmem:[%s6367_s1 + $0x68] sm:$0xff]   ;;  %vm2006_vm0 = vcmask 1043456   ;;  %vm1957_vm1 = vcmask 982016  }
   0xc   : > { %v4590_v1 = vld [vmem:[%s6367_s1 + $0x38] sm:$0xff]   ;;  %3931 = vmatprep.subr.bf16.mxu0 %v4589_v0  ;;  %4563 = vmatprep.subr.bf16.mxu1 %v4589_v0  ;;  %p165_p3 = scmp.lt.s32.totalorder %s3485_s16, 63  ;;  %v4592_v3 = vld [vmem:[%s6367_s1 + $0x30] sm:$0xff]   ;;  %v4594_v5 = vld [vmem:[%s6367_s1 + $0x28] sm:$0xff]  }
   0xd   : > { %3932 = vmatpush3.bf16.msra.mxu0 %v4590_v1  ;;  %4571 = vmatpush3.bf16.msra.mxu1 %v4590_v1  ;;  %v4595_v6 = vld [vmem:[%s6367_s1 + $0x60] sm:$0xff]   ;;  %v4597_v8 = vld [vmem:[%s6367_s1 + $0x58] sm:$0xff]   ;;  %v4599_v10 = vld [vmem:[%s6367_s1 + $0x50] sm:$0xff]  }
   0xe   : > { %3933 = vmatprep.subr.bf16.mxu0 %v4591_v2  ;;  %4564 = vmatprep.subr.bf16.mxu1 %v4591_v2  ;;  %s6391_s16 = smov (!%p165_p3, %s3485_s16), 63  ;;  %v4596_v7 = vld [vmem:[%s6367_s1 + $0x20] sm:$0xff]   ;;  %v4598_v9 = vld [vmem:[%s6367_s1 + $0x18] sm:$0xff]   ;;  %v4600_v13 = vld [vmem:[%s6367_s1 + $0x10] sm:$0xff]  }
   0xf   : > { %s4580_s29 = smul.u32 44, %s6391_s16  ;;  %v4601_v14 = vld [vmem:[%s6367_s1 + $0x48] sm:$0xff]   ;;  %v4603_v16 = vld [vmem:[%s6367_s1 + $0x40] sm:$0xff]   ;;  %v4611_v18 = vld [vmem:[%s6367_s1 + $0xf8] sm:$0xff]  }
  0x10   : > { %v4602_v15 = vld [vmem:[%s6367_s1 + $0x8] sm:$0xff]   ;;  %v4604_v17 = vld [vmem:[%s6367_s1] sm:$0xff]   ;;  %v4612_v21 = vld [vmem:[%s6367_s1 + $0x178] sm:$0xff]  }
  0x11   : > { %3934 = vmatpush3.bf16.msra.mxu0 %v4592_v3  ;;  %4572 = vmatpush3.bf16.msra.mxu1 %v4592_v3  ;;  %s5066_s9 = scalar_lea.vmem %s6366_s0, %s4580_s29  ;;  %v4613_v22 = vld [vmem:[%s6367_s1 + $0xb8] sm:$0xff]   ;;  %v4615_v24 = vld [vmem:[%s6367_s1 + $0xf0] sm:$0xff]   ;;  %v4623_v32 = vld [vmem:[%s6367_s1 + $0xe8] sm:$0xff]  }
  0x12   : > { %3935 = vmatprep.subr.bf16.mxu0 %v4593_v4  ;;  %4565 = vmatprep.subr.bf16.mxu1 %v4593_v4  ;;  %v4607_v11 = vld [vmem:[%s5066_s9 + $0x4] ss:$44 sps:$4 sm:$0xff]   ;;  %v4605_v19 = vld [vmem:[%s5066_s9] ss:$44 sps:$4 sm:$0xff]   ;;  %v4614_v23 = vld [vmem:[%s6367_s1 + $0x138] sm:$0xff]  }
  0x13   : > { %v4610_v12 = vld [vmem:[%s5066_s9 + $0x424] ss:$44 sps:$4 sm:$0xff]   ;;  %2042 = vmatprep.mubr.bf16.mxu0 %v4607_v11  ;;  %v4608_v20 = vld [vmem:[%s5066_s9 + $0x420] ss:$44 sps:$4 sm:$0xff]   ;;  %v4617_v25 = vld [vmem:[%s5066_s9 + $0x5c] ss:$44 sps:$4 sm:$0xff]  }
  0x14   : > { %2138 = vmatprep.mubr.bf16.mxu1 %v4610_v12  ;;  %v4619_v26 = vld [vmem:[%s5066_s9 + $0x47c] ss:$44 sps:$4 sm:$0xff]   ;;  %v4626_v27 = vld [vmem:[%s6367_s1 + $0x170] sm:$0xff]   ;;  %v4621_v30 = vld [vmem:[%s5066_s9 + $0x58] ss:$44 sps:$4 sm:$0xff]  }
  0x15   : > { %3936 = vmatpush3.bf16.msra.mxu0 %v4594_v5  ;;  %4573 = vmatpush3.bf16.msra.mxu1 %v4594_v5  ;;  %v4616_v28 = vld [vmem:[%s6367_s1 + $0xb0] sm:$0xff]   ;;  %v4622_v31 = vld [vmem:[%s5066_s9 + $0x478] ss:$44 sps:$4 sm:$0xff]   ;;  %v4624_v33 = vld [vmem:[%s6367_s1 + $0xa8] sm:$0xff]  }
  0x16   : > { %3937 = vmatprep.subr.bf16.mxu0 %v4595_v6  ;;  %4566 = vmatprep.subr.bf16.mxu1 %v4595_v6  ;;  %v4628_v29 = vld [vmem:[%s6367_s1 + $0x130] sm:$0xff]   ;;  %v4625_v34 = vld [vmem:[%s6367_s1 + $0xe0] sm:$0xff]   ;;  %v4635_v38 = vld [vmem:[%s6367_s1 + $0xd8] sm:$0xff]  }
  0x17   : > { %v4629_v35 = vld [vmem:[%s5066_s9 + $0xb4] ss:$44 sps:$4 sm:$0xff]   ;;  %v4633_v39 = vld [vmem:[%s5066_s9 + $0xb0] ss:$44 sps:$4 sm:$0xff]   ;;  %v4646_v41 = vld [vmem:[%s6367_s1 + $0x168] sm:$0xff]  }
  0x18   : > { %v4631_v36 = vld [vmem:[%s5066_s9 + $0x4d4] ss:$44 sps:$4 sm:$0xff]   ;;  %v4634_v40 = vld [vmem:[%s5066_s9 + $0x4d0] ss:$44 sps:$4 sm:$0xff]   ;;  %v4648_v44 = vld [vmem:[%s6367_s1 + $0x128] sm:$0xff]  }
  0x19   : > { %3938 = vmatpush3.bf16.msra.mxu0 %v4596_v7  ;;  %4574 = vmatpush3.bf16.msra.mxu1 %v4596_v7  ;;  %v4627_v37 = vld [vmem:[%s6367_s1 + $0xa0] sm:$0xff]   ;;  %v4636_v42 = vld [vmem:[%s6367_s1 + $0x98] sm:$0xff]   ;;  %v4637_v43 = vld [vmem:[%s6367_s1 + $0xd0] sm:$0xff]  }
  0x1a   : > { %3939 = vmatprep.subr.bf16.mxu0 %v4597_v8  ;;  %4567 = vmatprep.subr.bf16.mxu1 %v4597_v8  ;;  %v4639_v45 = vld [vmem:[%s5066_s9 + $0x10c] ss:$44 sps:$4 sm:$0xff]   ;;  %v4638_v47 = vld [vmem:[%s6367_s1 + $0x90] sm:$0xff]   ;;  %v4657_v51 = vld [vmem:[%s6367_s1 + $0x160] sm:$0xff]  }
  0x1b   : > { %v4641_v46 = vld [vmem:[%s5066_s9 + $0x52c] ss:$44 sps:$4 sm:$0xff]   ;;  %v4643_v49 = vld [vmem:[%s5066_s9 + $0x108] ss:$44 sps:$4 sm:$0xff]   ;;  %v4649_v53 = vld [vmem:[%s6367_s1 + $0xc0] sm:$0xff]  }
  0x1c   : > { %v4645_v48 = vld [vmem:[%s6367_s1 + $0xc8] sm:$0xff]   ;;  %v4659_v54 = vld [vmem:[%s6367_s1 + $0x120] sm:$0xff]   ;;  %v4658_v60 = vld [vmem:[%s6367_s1 + $0x1f8] sm:$0xff]  }
  0x1d   : > { %3940 = vmatpush3.bf16.msra.mxu0 %v4598_v9  ;;  %4575 = vmatpush3.bf16.msra.mxu1 %v4598_v9  ;;  %v4644_v50 = vld [vmem:[%s5066_s9 + $0x528] ss:$44 sps:$4 sm:$0xff]   ;;  %v4651_v55 = vld [vmem:[%s5066_s9 + $0x164] ss:$44 sps:$4 sm:$0xff]   ;;  %v4655_v56 = vld [vmem:[%s5066_s9 + $0xc] ss:$44 sps:$4 sm:$0xff]  }
  0x1e   : > { %3941 = vmatprep.subr.bf16.mxu0 %v4599_v10  ;;  %4568 = vmatprep.subr.bf16.mxu1 %v4599_v10  ;;  %v4647_v52 = vld [vmem:[%s6367_s1 + $0x88] sm:$0xff]   ;;  %v4650_v57 = vld [vmem:[%s6367_s1 + $0x80] sm:$0xff]   ;;  %v4660_v61 = vld [vmem:[%s6367_s1 + $0x1b8] sm:$0xff]  }
  0x1f   : > { %v4653_v58 = vld [vmem:[%s5066_s9 + $0x8] ss:$44 sps:$4 sm:$0xff]   ;;  %v4656_v59 = vld [vmem:[%s5066_s9 + $0x160] ss:$44 sps:$4 sm:$0xff]   ;;  %v4673_v63 = vld [vmem:[%s6367_s1 + $0x158] sm:$0xff]  }
  0x20   : > { %v4661_v62 = vld [vmem:[%s5066_s9 + $0x1bc] ss:$44 sps:$4 sm:$0xff]   ;;  %v4663_v1 = vld [vmem:[%s5066_s9 + $0x64] ss:$44 sps:$4 sm:$0xff]   ;;  %v4666_v7 = vld [vmem:[%s5066_s9 + $0x60] ss:$44 sps:$4 sm:$0xff]  }
  0x21   : > { %3942 = vmatpush3.bf16.msra.mxu0 %v4600_v13  ;;  %4576 = vmatpush3.bf16.msra.mxu1 %v4600_v13  ;;  %v4674_v0 = vld [vmem:[%s6367_s1 + $0x118] sm:$0xff]   ;;  %v4675_v2 = vld [vmem:[%s6367_s1 + $0x1f0] sm:$0xff]   ;;  %v4691_v10 = vld [vmem:[%s6367_s1 + $0x1e8] sm:$0xff]  }
  0x22   : > { %3943 = vmatprep.subr.bf16.mxu0 %v4601_v14  ;;  %4569 = vmatprep.subr.bf16.mxu1 %v4601_v14  ;;  %v4676_v3 = vld [vmem:[%s6367_s1 + $0x1b0] sm:$0xff]   ;;  %v4665_v4 = vld [vmem:[%s5066_s9 + $0x1b8] ss:$44 sps:$4 sm:$0xff]   ;;  %v4669_v9 = vld [vmem:[%s5066_s9 + $0xbc] ss:$44 sps:$4 sm:$0xff]  }
  0x23   : > { %v4683_v5 = vld [vmem:[%s6367_s1 + $0x150] sm:$0xff]   ;;  %v4692_v11 = vld [vmem:[%s6367_s1 + $0x1a8] sm:$0xff]   ;;  %v4672_v13 = vld [vmem:[%s5066_s9 + $0xb8] ss:$44 sps:$4 sm:$0xff]  }
  0x24   : > { %v4684_v6 = vld [vmem:[%s6367_s1 + $0x110] sm:$0xff]   ;;  %v4677_v14 = vld [vmem:[%s5066_s9 + $0x26c] ss:$44 sps:$4 sm:$0xff]  }
  0x25   : > { %3944 = vmatpush3.bf16.msra.mxu0 %v4602_v15  ;;  %4577 = vmatpush3.bf16.msra.mxu1 %v4602_v15  ;;  %v4667_v8 = vld [vmem:[%s5066_s9 + $0x214] ss:$44 sps:$4 sm:$0xff]   ;;  %v4671_v12 = vld [vmem:[%s5066_s9 + $0x210] ss:$44 sps:$4 sm:$0xff]   ;;  %v4699_v15 = vld [vmem:[%s6367_s1 + $0x148] sm:$0xff]  }
  0x26   : > { %3945 = vmatprep.subr.bf16.mxu0 %v4603_v16  ;;  %4570 = vmatprep.subr.bf16.mxu1 %v4603_v16  ;;  %v4700_v16 = vld [vmem:[%s6367_s1 + $0x108] sm:$0xff]  }
  0x29   : > { %3946 = vmatpush3.bf16.msra.mxu0 %v4604_v17  ;;  %4578 = vmatpush3.bf16.msra.mxu1 %v4604_v17  ;;  %v4679_v17 = vld [vmem:[%s5066_s9 + $0x114] ss:$44 sps:$4 sm:$0xff]  }
  0x2a   : > { %4043 = vmatprep.subr.bf16.mxu1 %v4611_v18  ;;  %4155 = vmatprep.subr.bf16.mxu0 %v4612_v21  ;;  %v4707_v18 = vld [vmem:[%s6367_s1 + $0x140] sm:$0xff]  }
  0x2b   : > { %v4709_v21 = vld [vmem:[%s6367_s1 + $0x100] sm:$0xff]  }
  0x2c   : > { %2043 = vmatmul.mubr.bf16.vlgmr.msra.gmra.mxu0 %v4605_v19  ;;  %2139 = vmatmul.mubr.bf16.vlgmr.msra.gmra.mxu1 %v4608_v20  ;;  %v4708_v19 = vld [vmem:[%s6367_s1 + $0x1e0] sm:$0xff]   ;;  %v4681_v20 = vld [vmem:[%s5066_s9 + $0x268] ss:$44 sps:$4 sm:$0xff]  }
  0x2d   : > { %4044 = vmatpush3.bf16.msra.mxu1 %v4613_v22  ;;  %4156 = vmatpush3.bf16.msra.mxu0 %v4614_v23  ;;  %v4710_v22 = vld [vmem:[%s6367_s1 + $0x1a0] sm:$0xff]   ;;  %v4682_v23 = vld [vmem:[%s5066_s9 + $0x110] ss:$44 sps:$4 sm:$0xff]  }
  0x2e   : > { %4045 = vmatprep.subr.bf16.mxu1 %v4615_v24  ;;  %2050 = vmatprep.mubr.bf16.mxu0 %v4617_v25  ;;  %v4685_v24 = vld [vmem:[%s5066_s9 + $0x2c4] ss:$44 sps:$4 sm:$0xff]   ;;  %v4687_v25 = vld [vmem:[%s5066_s9 + $0x16c] ss:$44 sps:$4 sm:$0xff]  }
  0x2f   : > { %2146 = vmatprep.mubr.bf16.mxu1 %v4619_v26  ;;  %4157 = vmatprep.subr.bf16.mxu0 %v4626_v27  ;;  %v4723_v26 = vld [vmem:[%s6367_s1 + $0x278] sm:$0xff]   ;;  %v4689_v27 = vld [vmem:[%s5066_s9 + $0x2c0] ss:$44 sps:$4 sm:$0xff]  }
  0x31   : > { %4046 = vmatpush3.bf16.msra.mxu1 %v4616_v28  ;;  %4158 = vmatpush3.bf16.msra.mxu0 %v4628_v29  ;;  %v4690_v28 = vld [vmem:[%s5066_s9 + $0x168] ss:$44 sps:$4 sm:$0xff]  }
  0x32   : > { %4047 = vmatprep.subr.bf16.mxu1 %v4623_v32  ;;  %4159 = vmatprep.subr.bf16.mxu0 %v4646_v41  ;;  %v4693_v29 = vld [vmem:[%s5066_s9 + $0x31c] ss:$44 sps:$4 sm:$0xff]   ;;  %v4695_v32 = vld [vmem:[%s5066_s9 + $0x1c4] ss:$44 sps:$4 sm:$0xff]   ;;  %v4711_v41 = vld [vmem:[%s5066_s9 + $0x3cc] ss:$44 sps:$4 sm:$0xff]  }
  0x34   : > { %2051 = vmatmul.mubr.bf16.gmra.mxu0 %v4621_v30  ;;  %2147 = vmatmul.mubr.bf16.gmra.mxu1 %v4622_v31  ;;  %v4725_v30 = vld [vmem:[%s6367_s1 + $0x1d8] sm:$0xff]  }
  0x35   : > { %4048 = vmatpush3.bf16.msra.mxu1 %v4624_v33  ;;  %2058 = vmatprep.mubr.bf16.mxu0 %v4629_v35  ;;  %v4726_v31 = vld [vmem:[%s6367_s1 + $0x198] sm:$0xff]   ;;  %v4701_v35 = vld [vmem:[%s5066_s9 + $0x374] ss:$44 sps:$4 sm:$0xff]  }
  0x36   : > { %4049 = vmatprep.subr.bf16.mxu1 %v4625_v34  ;;  %2154 = vmatprep.mubr.bf16.mxu1 %v4631_v36  ;;  %v4697_v33 = vld [vmem:[%s5066_s9 + $0x318] ss:$44 sps:$4 sm:$0xff]   ;;  %v4698_v34 = vld [vmem:[%s5066_s9 + $0x1c0] ss:$44 sps:$4 sm:$0xff]   ;;  %v4703_v36 = vld [vmem:[%s5066_s9 + $0x21c] ss:$44 sps:$4 sm:$0xff]  }
  0x37   : > { %4160 = vmatpush3.bf16.msra.mxu0 %v4648_v44  ;;  %v4758_v44 = vld [vmem:[%s6367_s1 + $0x188] sm:$0xff]  }
  0x38   : > { %4161 = vmatprep.subr.bf16.mxu0 %v4657_v51  ;;  %v4719_v51 = vld [vmem:[%s5066_s9 + $0x10] ss:$44 sps:$4 sm:$0xff]  }
  0x39   : > { %4050 = vmatpush3.bf16.msra.mxu1 %v4627_v37  ;;  %v4741_v37 = vld [vmem:[%s6367_s1 + $0x1d0] sm:$0xff]  }
  0x3a   : > { %4051 = vmatprep.subr.bf16.mxu1 %v4635_v38  ;;  %v4742_v38 = vld [vmem:[%s6367_s1 + $0x190] sm:$0xff]  }
  0x3b   : > { %4162 = vmatpush3.bf16.msra.mxu0 %v4659_v54  ;;  %v4727_v54 = vld [vmem:[%s5066_s9 + $0x324] ss:$44 sps:$4 sm:$0xff]  }
  0x3c   : > { %2059 = vmatmul.mubr.bf16.gmra.mxu0 %v4633_v39  ;;  %2155 = vmatmul.mubr.bf16.gmra.mxu1 %v4634_v40  ;;  %v4705_v39 = vld [vmem:[%s5066_s9 + $0x370] ss:$44 sps:$4 sm:$0xff]   ;;  %v4706_v40 = vld [vmem:[%s5066_s9 + $0x218] ss:$44 sps:$4 sm:$0xff]  }
  0x3d   : > { %4052 = vmatpush3.bf16.msra.mxu1 %v4636_v42  ;;  %2066 = vmatprep.mubr.bf16.mxu0 %v4639_v45  ;;  %v4713_v42 = vld [vmem:[%s5066_s9 + $0x274] ss:$44 sps:$4 sm:$0xff]  }
  0x3e   : > { %4053 = vmatprep.subr.bf16.mxu1 %v4637_v43  ;;  %2162 = vmatprep.mubr.bf16.mxu1 %v4641_v46  ;;  %v4757_v43 = vld [vmem:[%s6367_s1 + $0x1c8] sm:$0xff]   ;;  %v4716_v46 = vld [vmem:[%s5066_s9 + $0x270] ss:$44 sps:$4 sm:$0xff]  }
  0x3f   : > { %4163 = vmatprep.subr.bf16.mxu0 %v4673_v63  ;;  %v4715_v45 = vld [vmem:[%s5066_s9 + $0x3c8] ss:$44 sps:$4 sm:$0xff]   ;;  %v4735_v63 = vld [vmem:[%s5066_s9 + $0xc4] ss:$44 sps:$4 sm:$0xff]  }
  0x40   : > { %4164 = vmatpush3.bf16.msra.mxu0 %v4674_v0  ;;  %v4756_v0 = vld [vmem:[%s6367_s1 + $0x228] sm:$0xff]  }
  0x41   : > { %4054 = vmatpush3.bf16.msra.mxu1 %v4638_v47  ;;  %4165 = vmatprep.subr.bf16.mxu0 %v4683_v5  ;;  %v4717_v47 = vld [vmem:[%s5066_s9 + $0x2cc] ss:$44 sps:$4 sm:$0xff]  }
  0x42   : > { %4055 = vmatprep.subr.bf16.mxu1 %v4645_v48  ;;  %v4721_v48 = vld [vmem:[%s5066_s9 + $0x14] ss:$44 sps:$4 sm:$0xff]  }
  0x43   : > { %v4738_v5 = vld [vmem:[%s5066_s9 + $0xc0] ss:$44 sps:$4 sm:$0xff]  }
  0x44   : > { %2067 = vmatmul.mubr.bf16.gmra.mxu0 %v4643_v49  ;;  %2163 = vmatmul.mubr.bf16.gmra.mxu1 %v4644_v50  ;;  %v4773_v49 = vld [vmem:[%s6367_s1 + $0x1c0] sm:$0xff]  }
  0x45   : > { %4056 = vmatpush3.bf16.msra.mxu1 %v4647_v52  ;;  %2074 = vmatprep.mubr.bf16.mxu0 %v4651_v55  ;;  %v4774_v50 = vld [vmem:[%s6367_s1 + $0x180] sm:$0xff]   ;;  %v4722_v52 = vld [vmem:[%s5066_s9 + $0x2c8] ss:$44 sps:$4 sm:$0xff]   ;;  %v4729_v55 = vld [vmem:[%s5066_s9 + $0x6c] ss:$44 sps:$4 sm:$0xff]  }
  0x46   : > { %4057 = vmatprep.subr.bf16.mxu1 %v4649_v53  ;;  %2203 = vmatprep.mubr.bf16.mxu1 %v4655_v56  ;;  %v4724_v53 = vld [vmem:[%s6367_s1 + $0x238] sm:$0xff]   ;;  %v4739_v56 = vld [vmem:[%s6367_s1 + $0x270] sm:$0xff]  }
  0x47   : > { %4166 = vmatpush3.bf16.msra.mxu0 %v4684_v6  ;;  %v4743_v6 = vld [vmem:[%s5066_s9 + $0x3d4] ss:$44 sps:$4 sm:$0xff]  }
  0x48   : > { %4167 = vmatprep.subr.bf16.mxu0 %v4699_v15  ;;  %v4751_v15 = vld [vmem:[%s5066_s9 + $0x174] ss:$44 sps:$4 sm:$0xff]  }
  0x49   : > { %4058 = vmatpush3.bf16.msra.mxu1 %v4650_v57  ;;  %v5299_v57 = vld [vmem:[%s6367_s1 + $0x2b8] ss:$0 sps:$4 sm:$0xff]  }
  0x4a   : > { %4267 = vmatprep.subr.bf16.mxu1 %v4658_v60  ;;  %v4731_v60 = vld [vmem:[%s5066_s9 + $0x320] ss:$44 sps:$4 sm:$0xff]  }
  0x4b   : > { %4168 = vmatpush3.bf16.msra.mxu0 %v4700_v16  ;;  %v4818_v16 = vld [vmem:[%s6367_s1 + $0x208] sm:$0xff]  }
  0x4c   : > { %2075 = vmatmul.mubr.bf16.gmra.mxu0 %v4656_v59  ;;  %2204 = vmatmul.mubr.bf16.vlgmr.msra.gmra.mxu1 %v4653_v58  ;;  %v4740_v58 = vld [vmem:[%s6367_s1 + $0x230] sm:$0xff]   ;;  %v4755_v59 = vld [vmem:[%s6367_s1 + $0x268] sm:$0xff]  }
  0x4d   : > { %4268 = vmatpush3.bf16.msra.mxu1 %v4660_v61  ;;  %2082 = vmatprep.mubr.bf16.mxu0 %v4661_v62  ;;  %v4732_v61 = vld [vmem:[%s5066_s9 + $0x68] ss:$44 sps:$4 sm:$0xff]  }
  0x4e   : > { %2211 = vmatprep.mubr.bf16.mxu1 %v4663_v1  ;;  %4269 = vmatprep.subr.bf16.mxu1 %v4675_v2  ;;  %v4733_v62 = vld [vmem:[%s5066_s9 + $0x37c] ss:$44 sps:$4 sm:$0xff]   ;;  %v4771_v1 = vld [vmem:[%s6367_s1 + $0x260] sm:$0xff]  }
  0x4f   : > { %4169 = vmatprep.subr.bf16.mxu0 %v4707_v18  ;;  %v4772_v2 = vld [vmem:[%s6367_s1 + $0x220] sm:$0xff]  }
  0x50   : > { %4170 = vmatpush3.bf16.msra.mxu0 %v4709_v21  ;;  %v4833_v18 = vld [vmem:[%s6367_s1 + $0x200] sm:$0xff]  }
  0x51   : > { %4270 = vmatpush3.bf16.msra.mxu1 %v4676_v3  ;;  %4379 = vmatprep.subr.bf16.mxu0 %v4723_v26  ;;  %v4737_v3 = vld [vmem:[%s5066_s9 + $0x378] ss:$44 sps:$4 sm:$0xff]  }
  0x52   : > { %4271 = vmatprep.subr.bf16.mxu1 %v4691_v10  ;;  %v4747_v10 = vld [vmem:[%s5066_s9 + $0x3d0] ss:$44 sps:$4 sm:$0xff]  }
  0x53   : > { %v4759_v21 = vld [vmem:[%s5066_s9 + $0x484] ss:$44 sps:$4 sm:$0xff]  }
  0x54   : > { %2083 = vmatmul.mubr.bf16.gmra.mxu0 %v4665_v4  ;;  %2212 = vmatmul.mubr.bf16.gmra.mxu1 %v4666_v7  ;;  %v4787_v4 = vld [vmem:[%s6367_s1 + $0x258] sm:$0xff]   ;;  %v4767_v26 = vld [vmem:[%s5066_s9 + $0x224] ss:$44 sps:$4 sm:$0xff]  }
  0x55   : > { %2090 = vmatprep.mubr.bf16.mxu0 %v4667_v8  ;;  %2219 = vmatprep.mubr.bf16.mxu1 %v4669_v9  ;;  %v4745_v7 = vld [vmem:[%s5066_s9 + $0x11c] ss:$44 sps:$4 sm:$0xff]   ;;  %v4802_v9 = vld [vmem:[%s6367_s1 + $0x250] sm:$0xff]  }
  0x56   : > { %4272 = vmatpush3.bf16.msra.mxu1 %v4692_v11  ;;  %v4788_v8 = vld [vmem:[%s6367_s1 + $0x218] sm:$0xff]   ;;  %v4803_v11 = vld [vmem:[%s6367_s1 + $0x210] sm:$0xff]  }
  0x57   : > { %4273 = vmatprep.subr.bf16.mxu1 %v4708_v19  ;;  %v4753_v19 = vld [vmem:[%s5066_s9 + $0x428] ss:$44 sps:$4 sm:$0xff]  }
  0x5a   : > { %4274 = vmatpush3.bf16.msra.mxu1 %v4710_v22  ;;  %v4761_v22 = vld [vmem:[%s5066_s9 + $0x1cc] ss:$44 sps:$4 sm:$0xff]  }
  0x5b   : > { %4275 = vmatprep.subr.bf16.mxu1 %v4725_v30  ;;  %v4777_v30 = vld [vmem:[%s5066_s9 + $0x27c] ss:$44 sps:$4 sm:$0xff]  }
  0x5c   : > { %2091 = vmatmul.mubr.bf16.gmra.mxu0 %v4671_v12  ;;  %2220 = vmatmul.mubr.bf16.gmra.mxu1 %v4672_v13  ;;  %v4748_v12 = vld [vmem:[%s5066_s9 + $0x118] ss:$44 sps:$4 sm:$0xff]   ;;  %v4817_v13 = vld [vmem:[%s6367_s1 + $0x248] sm:$0xff]  }
  0x5d   : > { %2098 = vmatprep.mubr.bf16.mxu0 %v4677_v14  ;;  %2227 = vmatprep.mubr.bf16.mxu1 %v4679_v17  ;;  %v4749_v14 = vld [vmem:[%s5066_s9 + $0x42c] ss:$44 sps:$4 sm:$0xff]   ;;  %v4832_v17 = vld [vmem:[%s6367_s1 + $0x240] sm:$0xff]  }
  0x5e   : > { %4276 = vmatpush3.bf16.msra.mxu1 %v4726_v31  ;;  %v4779_v31 = vld [vmem:[%s5066_s9 + $0x530] ss:$44 sps:$4 sm:$0xff]  }
  0x5f   : > { %4277 = vmatprep.subr.bf16.mxu1 %v4741_v37  ;;  %v4790_v37 = vld [vmem:[%s5066_s9 + $0x32c] ss:$44 sps:$4 sm:$0xff]  }
  0x62   : > { %4278 = vmatpush3.bf16.msra.mxu1 %v4742_v38  ;;  %v2008_v38 = vsel %vm2006_vm0, %v5299_v57, 0 }
  0x63   : > { %4279 = vmatprep.subr.bf16.mxu1 %v4757_v43  ;;  %v4795_v43 = vld [vmem:[%s5066_s9 + $0x70] ss:$44 sps:$4 sm:$0xff]  }
  0x64   : > { %2099 = vmatmul.mubr.bf16.gmra.mxu0 %v4681_v20  ;;  %2228 = vmatmul.mubr.bf16.gmra.mxu1 %v4682_v23  ;;  %v4754_v20 = vld [vmem:[%s5066_s9 + $0x170] ss:$44 sps:$4 sm:$0xff]   ;;  %v4763_v23 = vld [vmem:[%s5066_s9 + $0x480] ss:$44 sps:$4 sm:$0xff]  }
  0x65   : > { %2106 = vmatprep.mubr.bf16.mxu0 %v4685_v24  ;;  %2235 = vmatprep.mubr.bf16.mxu1 %v4687_v25  ;;  %v4764_v24 = vld [vmem:[%s5066_s9 + $0x1c8] ss:$44 sps:$4 sm:$0xff]  }
  0x66   : > { %4280 = vmatpush3.bf16.msra.mxu1 %v4758_v44  ;;  %v4765_v25 = vld [vmem:[%s5066_s9 + $0x4dc] ss:$44 sps:$4 sm:$0xff]   ;;  %v4796_v44 = vld [vmem:[%s5066_s9 + $0x384] ss:$44 sps:$4 sm:$0xff]  }
  0x67   : > { %4281 = vmatprep.subr.bf16.mxu1 %v4773_v49  ;;  %v4801_v49 = vld [vmem:[%s5066_s9 + $0xc8] ss:$44 sps:$4 sm:$0xff]  }
  0x6a   : > { %4282 = vmatpush3.bf16.msra.mxu1 %v4774_v50  ;;  %v4805_v50 = vld [vmem:[%s5066_s9 + $0x3dc] ss:$44 sps:$4 sm:$0xff]  }
  0x6b   : > { %4579 = vmatprep.subr.msk.bf16.mxu1 %vm2006_vm0, %v5299_v57  ;;  %v4813_v57 = vld [vmem:[%s5066_s9 + $0x17c] ss:$44 sps:$4 sm:$0xff]  }
  0x6c   : > { %2107 = vmatmul.mubr.bf16.gmra.mxu0 %v4689_v27  ;;  %2236 = vmatmul.mubr.bf16.gmra.mxu1 %v4690_v28  ;;  %v4769_v27 = vld [vmem:[%s5066_s9 + $0x4d8] ss:$44 sps:$4 sm:$0xff]   ;;  %v4770_v28 = vld [vmem:[%s5066_s9 + $0x220] ss:$44 sps:$4 sm:$0xff]  }
  0x6d   : > { %2114 = vmatprep.mubr.bf16.mxu0 %v4693_v29  ;;  %2243 = vmatprep.mubr.bf16.mxu1 %v4695_v32  ;;  %v4775_v29 = vld [vmem:[%s5066_s9 + $0x534] ss:$44 sps:$4 sm:$0xff]   ;;  %v4780_v32 = vld [vmem:[%s5066_s9 + $0x278] ss:$44 sps:$4 sm:$0xff]  }
  0x74   : > { %2115 = vmatmul.mubr.bf16.gmra.mxu0 %v4697_v33  ;;  %2244 = vmatmul.mubr.bf16.gmra.mxu1 %v4698_v34  ;;  %v4781_v33 = vld [vmem:[%s5066_s9 + $0x2d4] ss:$44 sps:$4 sm:$0xff]   ;;  %v4785_v34 = vld [vmem:[%s5066_s9 + $0x1c] ss:$44 sps:$4 sm:$0xff]  }
  0x75   : > { %2122 = vmatprep.mubr.bf16.mxu0 %v4701_v35  ;;  %2251 = vmatprep.mubr.bf16.mxu1 %v4703_v36  ;;  %v4783_v35 = vld [vmem:[%s5066_s9 + $0x18] ss:$44 sps:$4 sm:$0xff]   ;;  %v4786_v36 = vld [vmem:[%s5066_s9 + $0x2d0] ss:$44 sps:$4 sm:$0xff]  }
  0x7c   : > { %2123 = vmatmul.mubr.bf16.gmra.mxu0 %v4705_v39  ;;  %2252 = vmatmul.mubr.bf16.gmra.mxu1 %v4706_v40  ;;  %v4792_v39 = vld [vmem:[%s5066_s9 + $0x74] ss:$44 sps:$4 sm:$0xff]  }
  0x7d   : > { %2130 = vmatprep.mubr.bf16.mxu0 %v4711_v41  ;;  %2259 = vmatprep.mubr.bf16.mxu1 %v4713_v42  ;;  %v4804_v40 = vld [vmem:[%s6367_s1 + $0x2b0] sm:$0xff]   ;;  %v4819_v41 = vld [vmem:[%s6367_s1 + $0x2a8] sm:$0xff]  }
  0x7e   : > { %v4794_v42 = vld [vmem:[%s5066_s9 + $0x328] ss:$44 sps:$4 sm:$0xff]  }
  0x84   : > { %2131 = vmatmul.mubr.bf16.gmra.mxu0 %v4715_v45  ;;  %2260 = vmatmul.mubr.bf16.gmra.mxu1 %v4716_v46  ;;  %v4798_v45 = vld [vmem:[%s5066_s9 + $0xcc] ss:$44 sps:$4 sm:$0xff]   ;;  %v4834_v46 = vld [vmem:[%s6367_s1 + $0x2a0] sm:$0xff]  }
  0x85   : > { %2267 = vmatprep.mubr.bf16.mxu1 %v4717_v47  ;;  %2364 = vmatprep.mubr.bf16.mxu0 %v4721_v48  ;;  %v4847_v47 = vld [vmem:[%s6367_s1 + $0x298] sm:$0xff]   ;;  %v4800_v48 = vld [vmem:[%s5066_s9 + $0x380] ss:$44 sps:$4 sm:$0xff]  }
  0x8c   : > { %2268 = vmatmul.mubr.bf16.gmra.mxu1 %v4722_v52  ;;  %2365 = vmatmul.mubr.bf16.vlgmr.msra.gmra.mxu0 %v4719_v51  ;;  %v4807_v51 = vld [vmem:[%s5066_s9 + $0x124] ss:$44 sps:$4 sm:$0xff]  }
  0x8d   : > { %4380 = vmatpush3.bf16.msra.mxu0 %v4724_v53  ;;  %2275 = vmatprep.mubr.bf16.mxu1 %v4727_v54  ;;  %v4860_v52 = vld [vmem:[%s6367_s1 + $0x290] sm:$0xff]   ;;  %v4873_v53 = vld [vmem:[%s6367_s1 + $0x288] sm:$0xff]   ;;  %v4809_v54 = vld [vmem:[%s5066_s9 + $0x3d8] ss:$44 sps:$4 sm:$0xff]  }
  0x8e   : > { %2372 = vmatprep.mubr.bf16.mxu0 %v4729_v55  ;;  %4381 = vmatprep.subr.bf16.mxu0 %v4739_v56  ;;  %v4810_v55 = vld [vmem:[%s5066_s9 + $0x120] ss:$44 sps:$4 sm:$0xff]  }
  0x8f   : > { %v4811_v56 = vld [vmem:[%s5066_s9 + $0x434] ss:$44 sps:$4 sm:$0xff]  }
  0x91   : > { %4382 = vmatpush3.bf16.msra.mxu0 %v4740_v58  ;;  %v4886_v58 = vld [vmem:[%s6367_s1 + $0x280] sm:$0xff]  }
  0x92   : > { %4383 = vmatprep.subr.bf16.mxu0 %v4755_v59  ;;  %v4815_v59 = vld [vmem:[%s5066_s9 + $0x430] ss:$44 sps:$4 sm:$0xff]  }
  0x94   : > { %2276 = vmatmul.mubr.bf16.gmra.mxu1 %v4731_v60  ;;  %2373 = vmatmul.mubr.bf16.gmra.mxu0 %v4732_v61  ;;  %v4816_v60 = vld [vmem:[%s5066_s9 + $0x178] ss:$44 sps:$4 sm:$0xff]  }
  0x95   : > { %2283 = vmatprep.mubr.bf16.mxu1 %v4733_v62  ;;  %2380 = vmatprep.mubr.bf16.mxu0 %v4735_v63  ;;  %v4820_v61 = vld [vmem:[%s5066_s9 + $0x48c] ss:$44 sps:$4 sm:$0xff]   ;;  %v4822_v62 = vld [vmem:[%s5066_s9 + $0x1d4] ss:$44 sps:$4 sm:$0xff]  }
  0x96   : > { %4384 = vmatpush3.bf16.msra.mxu0 %v4756_v0 }
  0x97   : > { %4385 = vmatprep.subr.bf16.mxu0 %v4771_v1 }
  0x9a   : > { %4386 = vmatpush3.bf16.msra.mxu0 %v4772_v2 }
  0x9b   : > { %4387 = vmatprep.subr.bf16.mxu0 %v4787_v4 }
  0x9c   : > { %2284 = vmatmul.mubr.bf16.gmra.mxu1 %v4737_v3  ;;  %2381 = vmatmul.mubr.bf16.gmra.mxu0 %v4738_v5 }
  0x9d   : > { %2291 = vmatprep.mubr.bf16.mxu1 %v4743_v6  ;;  %2388 = vmatprep.mubr.bf16.mxu0 %v4745_v7  ;;  %v4824_v7 = vld [vmem:[%s5066_s9 + $0x488] ss:$44 sps:$4 sm:$0xff]  }
  0x9e   : > { %4388 = vmatpush3.bf16.msra.mxu0 %v4788_v8  ;;  %v4825_v8 = vld [vmem:[%s5066_s9 + $0x1d0] ss:$44 sps:$4 sm:$0xff]  }
  0x9f   : > { %4389 = vmatprep.subr.bf16.mxu0 %v4802_v9  ;;  %v4826_v9 = vld [vmem:[%s5066_s9 + $0x4e4] ss:$44 sps:$4 sm:$0xff]  }
  0xa2   : > { %4390 = vmatpush3.bf16.msra.mxu0 %v4803_v11 }
  0xa3   : > { %4391 = vmatprep.subr.bf16.mxu0 %v4817_v13 }
  0xa4   : > { %2292 = vmatmul.mubr.bf16.gmra.mxu1 %v4747_v10  ;;  %2389 = vmatmul.mubr.bf16.gmra.mxu0 %v4748_v12  ;;  %v4828_v10 = vld [vmem:[%s5066_s9 + $0x22c] ss:$44 sps:$4 sm:$0xff]  }
  0xa5   : > { %2299 = vmatprep.mubr.bf16.mxu1 %v4749_v14  ;;  %2396 = vmatprep.mubr.bf16.mxu0 %v4751_v15 }
  0xa6   : > { %4392 = vmatpush3.bf16.msra.mxu0 %v4818_v16 }
  0xa7   : > { %4393 = vmatprep.subr.bf16.mxu0 %v4832_v17 }
  0xaa   : > { %4394 = vmatpush3.bf16.msra.mxu0 %v4833_v18 }
  0xac   : > { %2300 = vmatmul.mubr.bf16.gmra.mxu1 %v4753_v19  ;;  %2397 = vmatmul.mubr.bf16.gmra.mxu0 %v4754_v20 }
  0xad   : > { %2307 = vmatprep.mubr.bf16.mxu1 %v4759_v21  ;;  %2404 = vmatprep.mubr.bf16.mxu0 %v4761_v22 }
  0xb4   : > { %2308 = vmatmul.mubr.bf16.gmra.mxu1 %v4763_v23  ;;  %2405 = vmatmul.mubr.bf16.gmra.mxu0 %v4764_v24  ;;  %v4830_v23 = vld [vmem:[%s5066_s9 + $0x4e0] ss:$44 sps:$4 sm:$0xff]   ;;  %v4831_v24 = vld [vmem:[%s5066_s9 + $0x228] ss:$44 sps:$4 sm:$0xff]  }
  0xb5   : > { %2315 = vmatprep.mubr.bf16.mxu1 %v4765_v25  ;;  %2412 = vmatprep.mubr.bf16.mxu0 %v4767_v26  ;;  %v4835_v25 = vld [vmem:[%s5066_s9 + $0x53c] ss:$44 sps:$4 sm:$0xff]   ;;  %v4837_v26 = vld [vmem:[%s5066_s9 + $0x284] ss:$44 sps:$4 sm:$0xff]  }
  0xbc   : > { %2316 = vmatmul.mubr.bf16.gmra.mxu1 %v4769_v27  ;;  %2413 = vmatmul.mubr.bf16.gmra.mxu0 %v4770_v28 }
  0xbd   : > { %2323 = vmatprep.mubr.bf16.mxu1 %v4775_v29  ;;  %2420 = vmatprep.mubr.bf16.mxu0 %v4777_v30 }
  0xc4   : > { %2324 = vmatmul.mubr.bf16.gmra.mxu1 %v4779_v31  ;;  %2421 = vmatmul.mubr.bf16.gmra.mxu0 %v4780_v32 }
  0xc5   : > { %2428 = vmatprep.mubr.bf16.mxu0 %v4781_v33  ;;  %2525 = vmatprep.mubr.bf16.mxu1 %v4785_v34 }
  0xcc   : > { %2429 = vmatmul.mubr.bf16.gmra.mxu0 %v4786_v36  ;;  %2526 = vmatmul.mubr.bf16.vlgmr.msra.gmra.mxu1 %v4783_v35 }
  0xcd   : > { %4516 = vmatpush3.bf16.msra.mxu1 %v2008_v38  ;;  %2436 = vmatprep.mubr.bf16.mxu0 %v4790_v37 }
  0xce   : > { %2533 = vmatprep.mubr.bf16.mxu1 %v4792_v39  ;;  %4517 = vmatprep.subr.bf16.mxu1 %v4804_v40  ;;  %v4839_v39 = vld [vmem:[%s5066_s9 + $0x538] ss:$44 sps:$4 sm:$0xff]  }
  0xd1   : > { %4518 = vmatpush3.bf16.msra.mxu1 %v4804_v40  ;;  %v4840_v40 = vld [vmem:[%s5066_s9 + $0x280] ss:$44 sps:$4 sm:$0xff]  }
  0xd2   : > { %4519 = vmatprep.subr.bf16.mxu1 %v4819_v41 }
  0xd4   : > { %2437 = vmatmul.mubr.bf16.gmra.mxu0 %v4794_v42  ;;  %2534 = vmatmul.mubr.bf16.gmra.mxu1 %v4795_v43  ;;  %v4846_v42 = vld [vmem:[%s5066_s9 + $0x24] ss:$44 sps:$4 sm:$0xff]  }
  0xd5   : > { %2444 = vmatprep.mubr.bf16.mxu0 %v4796_v44  ;;  %2541 = vmatprep.mubr.bf16.mxu1 %v4798_v45 }
  0xd6   : > { %4520 = vmatpush3.bf16.msra.mxu1 %v4819_v41  ;;  %v4843_v41 = vld [vmem:[%s5066_s9 + $0x2dc] ss:$44 sps:$4 sm:$0xff]  }
  0xd7   : > { %4521 = vmatprep.subr.bf16.mxu1 %v4834_v46 }
  0xda   : > { %4522 = vmatpush3.bf16.msra.mxu1 %v4834_v46 }
  0xdb   : > { %4523 = vmatprep.subr.bf16.mxu1 %v4847_v47 }
  0xdc   : > { %2445 = vmatmul.mubr.bf16.gmra.mxu0 %v4800_v48  ;;  %2542 = vmatmul.mubr.bf16.gmra.mxu1 %v4801_v49 }
  0xdd   : > { %2452 = vmatprep.mubr.bf16.mxu0 %v4805_v50  ;;  %2549 = vmatprep.mubr.bf16.mxu1 %v4807_v51 }
  0xde   : > { %4524 = vmatpush3.bf16.msra.mxu1 %v4847_v47 }
  0xdf   : > { %4525 = vmatprep.subr.bf16.mxu1 %v4860_v52 }
  0xe2   : > { %4526 = vmatpush3.bf16.msra.mxu1 %v4860_v52 }
  0xe3   : > { %4527 = vmatprep.subr.bf16.mxu1 %v4873_v53 }
  0xe4   : > { %2453 = vmatmul.mubr.bf16.gmra.mxu0 %v4809_v54  ;;  %2550 = vmatmul.mubr.bf16.gmra.mxu1 %v4810_v55  ;;  %v4841_v55 = vld [vmem:[%s5066_s9 + $0x2d8] ss:$44 sps:$4 sm:$0xff]  }
  0xe5   : > { %2460 = vmatprep.mubr.bf16.mxu0 %v4811_v56  ;;  %2557 = vmatprep.mubr.bf16.mxu1 %v4813_v57  ;;  %v4844_v56 = vld [vmem:[%s5066_s9 + $0x20] ss:$44 sps:$4 sm:$0xff]  }
  0xe6   : > { %4528 = vmatpush3.bf16.msra.mxu1 %v4873_v53  ;;  %v4850_v57 = vld [vmem:[%s5066_s9 + $0x334] ss:$44 sps:$4 sm:$0xff]  }
  0xe7   : > { %4529 = vmatprep.subr.bf16.mxu1 %v4886_v58 }
  0xea   : > { %4530 = vmatpush3.bf16.msra.mxu1 %v4886_v58  ;;  %v4853_v58 = vld [vmem:[%s5066_s9 + $0x7c] ss:$44 sps:$4 sm:$0xff]  }
  0xec   : > { %v3947_v63 = vpop.f32.mrf.mxu0  ;;  %v4019_v0 = vpop.f32.mrf.mxu1  ;;  %2461 = vmatmul.mubr.bf16.gmra.mxu0 %v4815_v59  ;;  %2558 = vmatmul.mubr.bf16.gmra.mxu1 %v4816_v60 }
  0xed   : > { %2468 = vmatprep.mubr.bf16.mxu0 %v4820_v61  ;;  %2565 = vmatprep.mubr.bf16.mxu1 %v4822_v62 }
  0xee   : > { %v3948_v1 = vpop.f32.mrf.mxu0  ;;  %v4020_v2 = vpop.f32.mrf.mxu1 }
  0xef   : > { %v5413_v3 = vadd.f32 %v3948_v1, %v3947_v63  ;;  %v5415_v4 = vadd.f32 %v4020_v2, %v4019_v0  ;;  %v5464_v63 = vld [vmem:[%s6368_s2] ss:$0 sm:$0xff] }
  0xf0   : > { %v3950_v5 = vpop.f32.mrf.mxu0  ;;  %v4022_v6 = vpop.f32.mrf.mxu1 }
  0xf2   : > { %v3951_v11 = vpop.f32.mrf.mxu0  ;;  %v4023_v12 = vpop.f32.mrf.mxu1 }
  0xf3   : > { %v5421_v13 = vadd.f32 %v3951_v11, %v3950_v5  ;;  %v5423_v14 = vadd.f32 %v4023_v12, %v4022_v6  ;;  %v2045_v6 = vadd.f32 %v5413_v3, %v5464_v63  ;;  %v4848_v11 = vld [vmem:[%s5066_s9 + $0x330] ss:$44 sps:$4 sm:$0xff]   ;;  %v4851_v12 = vld [vmem:[%s5066_s9 + $0x78] ss:$44 sps:$4 sm:$0xff]  }
  0xf4   : > { %v3953_v15 = vpop.f32.mrf.mxu0  ;;  %v4025_v16 = vpop.f32.mrf.mxu1  ;;  %2469 = vmatmul.mubr.bf16.gmra.mxu0 %v4824_v7  ;;  %2566 = vmatmul.mubr.bf16.gmra.mxu1 %v4825_v8 }
  0xf5   : > { %2476 = vmatprep.mubr.bf16.mxu0 %v4826_v9  ;;  %2573 = vmatprep.mubr.bf16.mxu1 %v4828_v10 }
  0xf6   : > { %v3954_v17 = vpop.f32.mrf.mxu0  ;;  %v4026_v18 = vpop.f32.mrf.mxu1 }
  0xf7   : > { %v5425_v19 = vadd.f32 %v3954_v17, %v3953_v15  ;;  %v5427_v20 = vadd.f32 %v4026_v18, %v4025_v16  ;;  %v4856_v16 = vld [vmem:[%s5066_s9 + $0x38c] ss:$44 sps:$4 sm:$0xff]   ;;  %v4859_v17 = vld [vmem:[%s5066_s9 + $0xd4] ss:$44 sps:$4 sm:$0xff]  }
  0xf8   : > { %v3956_v21 = vpop.f32.mrf.mxu0  ;;  %v4028_v22 = vpop.f32.mrf.mxu1 }
  0xfa   : > { %v3957_v27 = vpop.f32.mrf.mxu0  ;;  %v4029_v28 = vpop.f32.mrf.mxu1 }
  0xfb   : > { %v5433_v29 = vadd.f32 %v3957_v27, %v3956_v21  ;;  %v5435_v30 = vadd.f32 %v4029_v28, %v4028_v22  ;;  %v2048_v22 = vadd.f32 %v5421_v13, %v5464_v63  ;;  %v2053_v13 = vadd.f32 %v5425_v19, %v5464_v63 }
  0xfc   : > { %v3959_v31 = vpop.f32.mrf.mxu0  ;;  %v4031_v32 = vpop.f32.mrf.mxu1  ;;  %2477 = vmatmul.mubr.bf16.gmra.mxu0 %v4830_v23  ;;  %2574 = vmatmul.mubr.bf16.gmra.mxu1 %v4831_v24 }
  0xfd   : > { %2484 = vmatprep.mubr.bf16.mxu0 %v4835_v25  ;;  %2581 = vmatprep.mubr.bf16.mxu1 %v4837_v26 }
  0xfe   : > { %v3960_v33 = vpop.f32.mrf.mxu0  ;;  %v4032_v34 = vpop.f32.mrf.mxu1 }
  0xff   : > { %v5437_v35 = vadd.f32 %v3960_v33, %v3959_v31  ;;  %v5439_v36 = vadd.f32 %v4032_v34, %v4031_v32 }
 0x100   : > { %v3962_v37 = vpop.f32.mrf.mxu0  ;;  %v4034_v38 = vpop.f32.mrf.mxu1 }
 0x102   : > { %v3963_v43 = vpop.f32.mrf.mxu0  ;;  %v4035_v44 = vpop.f32.mrf.mxu1 }
 0x103   : > { %v5445_v45 = vadd.f32 %v3963_v43, %v3962_v37  ;;  %v5447_v46 = vadd.f32 %v4035_v44, %v4034_v38  ;;  %v4854_v37 = vld [vmem:[%s5066_s9 + $0x388] ss:$44 sps:$4 sm:$0xff]   ;;  %v4857_v38 = vld [vmem:[%s5066_s9 + $0xd0] ss:$44 sps:$4 sm:$0xff]   ;;  %v2056_v44 = vadd.f32 %v5433_v29, %v5464_v63  ;;  %v2061_v29 = vadd.f32 %v5437_v35, %v5464_v63 }
 0x104   : > { %v3965_v47 = vpop.f32.mrf.mxu0  ;;  %v4037_v48 = vpop.f32.mrf.mxu1  ;;  %2485 = vmatmul.mubr.bf16.gmra.mxu0 %v4839_v39  ;;  %2582 = vmatmul.mubr.bf16.gmra.mxu1 %v4840_v40  ;;  %v4863_v40 = vld [vmem:[%s5066_s9 + $0x3e4] ss:$44 sps:$4 sm:$0xff]  }
 0x105   : > { %2589 = vmatprep.mubr.bf16.mxu1 %v4843_v41  ;;  %2686 = vmatprep.mubr.bf16.mxu0 %v4846_v42  ;;  %v4866_v41 = vld [vmem:[%s5066_s9 + $0x12c] ss:$44 sps:$4 sm:$0xff]  }
 0x106   : > { %v3966_v49 = vpop.f32.mrf.mxu0  ;;  %v4038_v50 = vpop.f32.mrf.mxu1 }
 0x107   : > { %v5449_v51 = vadd.f32 %v3966_v49, %v3965_v47  ;;  %v5451_v52 = vadd.f32 %v4038_v50, %v4037_v48 }
 0x108   : > { %v3968_v53 = vpop.f32.mrf.mxu0  ;;  %v4040_v54 = vpop.f32.mrf.mxu1 }
 0x10a   : > { %v3969_v59 = vpop.f32.mrf.mxu0  ;;  %v4041_v60 = vpop.f32.mrf.mxu1 }
 0x10b   : > { %v5457_v61 = vadd.f32 %v3969_v59, %v3968_v53  ;;  %v5459_v62 = vadd.f32 %v4041_v60, %v4040_v54  ;;  %v4861_v59 = vld [vmem:[%s5066_s9 + $0x3e0] ss:$44 sps:$4 sm:$0xff]   ;;  %v4864_v60 = vld [vmem:[%s5066_s9 + $0x128] ss:$44 sps:$4 sm:$0xff]  }
 0x10c   : > { %v3971_v0 = vpop.f32.mrf.mxu0  ;;  %v4059_v1 = vpop.f32.mrf.mxu1  ;;  %2590 = vmatmul.mubr.bf16.gmra.mxu1 %v4841_v55  ;;  %2687 = vmatmul.mubr.bf16.vlgmr.msra.gmra.mxu0 %v4844_v56 }
 0x10d   : > { %2597 = vmatprep.mubr.bf16.mxu1 %v4850_v57  ;;  %2694 = vmatprep.mubr.bf16.mxu0 %v4853_v58 }
 0x10e   : > { %v3972_v2 = vpop.f32.mrf.mxu0  ;;  %v4060_v5 = vpop.f32.mrf.mxu1 }
 0x10f   : > { %v5468_v7 = vadd.f32 %v3972_v2, %v3971_v0  ;;  %v4061_v8 = vadd.f32 %v4060_v5, %v4059_v1  ;;  %v4869_v1 = vld [vmem:[%s5066_s9 + $0x43c] ss:$44 sps:$4 sm:$0xff]   ;;  %v4872_v2 = vld [vmem:[%s5066_s9 + $0x184] ss:$44 sps:$4 sm:$0xff]  }
 0x110   : > { %v3974_v9 = vpop.f32.mrf.mxu0  ;;  %v4062_v10 = vpop.f32.mrf.mxu1 }
 0x111   : > { %v5472_v15 = vadd.f32 %v4061_v8, %v2045_v6  ;;  %v2064_v8 = vadd.f32 %v5445_v45, %v5464_v63  ;;  %v2069_v45 = vadd.f32 %v5449_v51, %v5464_v63 }
 0x112   : > { %v3975_v18 = vpop.f32.mrf.mxu0  ;;  %v4063_v21 = vpop.f32.mrf.mxu1 }
 0x113   : > { %v5478_v23 = vadd.f32 %v3975_v18, %v3974_v9  ;;  %v4064_v3 = vadd.f32 %v4063_v21, %v4062_v10 }
 0x114   : > { %v3977_v24 = vpop.f32.mrf.mxu0  ;;  %v4065_v25 = vpop.f32.mrf.mxu1  ;;  %2598 = vmatmul.mubr.bf16.gmra.mxu1 %v4848_v11  ;;  %2695 = vmatmul.mubr.bf16.gmra.mxu0 %v4851_v12 }
 0x115   : > { %v5480_v26 = vadd.f32 %v4064_v3, %v2048_v22  ;;  %2605 = vmatprep.mubr.bf16.mxu1 %v4856_v16  ;;  %2702 = vmatprep.mubr.bf16.mxu0 %v4859_v17 }
 0x116   : > { %v3978_v27 = vpop.f32.mrf.mxu0  ;;  %v4066_v28 = vpop.f32.mrf.mxu1 }
 0x117   : > { %v5484_v31 = vadd.f32 %v3978_v27, %v3977_v24  ;;  %v4067_v32 = vadd.f32 %v4066_v28, %v4065_v25  ;;  %v4867_v24 = vld [vmem:[%s5066_s9 + $0x438] ss:$44 sps:$4 sm:$0xff]   ;;  %v4870_v25 = vld [vmem:[%s5066_s9 + $0x180] ss:$44 sps:$4 sm:$0xff]  }
 0x118   : > { %v3980_v33 = vpop.f32.mrf.mxu0  ;;  %v4068_v34 = vpop.f32.mrf.mxu1  ;;  %v4876_v28 = vld [vmem:[%s5066_s9 + $0x494] ss:$44 sps:$4 sm:$0xff]  }
 0x119   : > { %v5488_v39 = vadd.f32 %v4067_v32, %v2053_v13  ;;  %v4879_v13 = vld [vmem:[%s5066_s9 + $0x1dc] ss:$44 sps:$4 sm:$0xff]  }
 0x11a   : > { %v3981_v42 = vpop.f32.mrf.mxu0  ;;  %v4069_v43 = vpop.f32.mrf.mxu1 }
 0x11b   : > { %v5494_v47 = vadd.f32 %v3981_v42, %v3980_v33  ;;  %v4070_v19 = vadd.f32 %v4069_v43, %v4068_v34  ;;  %v2072_v34 = vadd.f32 %v5457_v61, %v5464_v63  ;;  %v2077_v61 = vadd.f32 %v5468_v7, %v5464_v63 }
 0x11c   : > { %v3983_v48 = vpop.f32.mrf.mxu0  ;;  %v4071_v49 = vpop.f32.mrf.mxu1  ;;  %2606 = vmatmul.mubr.bf16.gmra.mxu1 %v4854_v37  ;;  %2703 = vmatmul.mubr.bf16.gmra.mxu0 %v4857_v38 }
 0x11d   : > { %v5496_v50 = vadd.f32 %v4070_v19, %v2056_v44  ;;  %2613 = vmatprep.mubr.bf16.mxu1 %v4863_v40  ;;  %2710 = vmatprep.mubr.bf16.mxu0 %v4866_v41 }
 0x11e   : > { %v3984_v53 = vpop.f32.mrf.mxu0  ;;  %v4072_v54 = vpop.f32.mrf.mxu1 }
 0x11f   : > { %v5500_v55 = vadd.f32 %v3984_v53, %v3983_v48  ;;  %v4073_v56 = vadd.f32 %v4072_v54, %v4071_v49  ;;  %v4874_v53 = vld [vmem:[%s5066_s9 + $0x490] ss:$44 sps:$4 sm:$0xff]   ;;  %v4877_v54 = vld [vmem:[%s5066_s9 + $0x1d8] ss:$44 sps:$4 sm:$0xff]  }
 0x120   : > { %v3986_v57 = vpop.f32.mrf.mxu0  ;;  %v4074_v58 = vpop.f32.mrf.mxu1 }
 0x121   : > { %v5504_v0 = vadd.f32 %v4073_v56, %v2061_v29  ;;  %v4882_v56 = vld [vmem:[%s5066_s9 + $0x4ec] ss:$44 sps:$4 sm:$0xff]  }
 0x122   : > { %v3987_v5 = vpop.f32.mrf.mxu0  ;;  %v4075_v6 = vpop.f32.mrf.mxu1 }
 0x123   : > { %v5510_v9 = vadd.f32 %v3987_v5, %v3986_v57  ;;  %v4076_v35 = vadd.f32 %v4075_v6, %v4074_v58  ;;  %v4885_v57 = vld [vmem:[%s5066_s9 + $0x234] ss:$44 sps:$4 sm:$0xff]  }
 0x124   : > { %v3989_v10 = vpop.f32.mrf.mxu0  ;;  %v4077_v11 = vpop.f32.mrf.mxu1  ;;  %2614 = vmatmul.mubr.bf16.gmra.mxu1 %v4861_v59  ;;  %2711 = vmatmul.mubr.bf16.gmra.mxu0 %v4864_v60  ;;  %v2080_v60 = vadd.f32 %v5478_v23, %v5464_v63  ;;  %v2085_v23 = vadd.f32 %v5484_v31, %v5464_v63 }
 0x125   : > { %v5512_v12 = vadd.f32 %v4076_v35, %v2064_v8  ;;  %2621 = vmatprep.mubr.bf16.mxu1 %v4869_v1  ;;  %2718 = vmatprep.mubr.bf16.mxu0 %v4872_v2 }
 0x126   : > { %v3990_v16 = vpop.f32.mrf.mxu0  ;;  %v4078_v17 = vpop.f32.mrf.mxu1 }
 0x127   : > { %v5516_v18 = vadd.f32 %v3990_v16, %v3989_v10  ;;  %v4079_v21 = vadd.f32 %v4078_v17, %v4077_v11 }
 0x128   : > { %v3992_v22 = vpop.f32.mrf.mxu0  ;;  %v4080_v3 = vpop.f32.mrf.mxu1 }
 0x129   : > { %v5520_v27 = vadd.f32 %v4079_v21, %v2069_v45  ;;  %v4880_v45 = vld [vmem:[%s5066_s9 + $0x4e8] ss:$44 sps:$4 sm:$0xff]   ;;  %v4883_v21 = vld [vmem:[%s5066_s9 + $0x230] ss:$44 sps:$4 sm:$0xff]  }
 0x12a   : > { %v3993_v32 = vpop.f32.mrf.mxu0  ;;  %v4081_v33 = vpop.f32.mrf.mxu1 }
 0x12b   : > { %v5526_v37 = vadd.f32 %v3993_v32, %v3992_v22  ;;  %v4082_v51 = vadd.f32 %v4081_v33, %v4080_v3  ;;  %v4889_v3 = vld [vmem:[%s5066_s9 + $0x544] ss:$44 sps:$4 sm:$0xff]  }
 0x12c   : > { %v3995_v38 = vpop.f32.mrf.mxu0  ;;  %v4083_v40 = vpop.f32.mrf.mxu1  ;;  %2622 = vmatmul.mubr.bf16.gmra.mxu1 %v4867_v24  ;;  %2719 = vmatmul.mubr.bf16.gmra.mxu0 %v4870_v25  ;;  %v4892_v24 = vld [vmem:[%s5066_s9 + $0x28c] ss:$44 sps:$4 sm:$0xff]  }
 0x12d   : > { %v5528_v41 = vadd.f32 %v4082_v51, %v2072_v34  ;;  %2629 = vmatprep.mubr.bf16.mxu1 %v4876_v28  ;;  %2726 = vmatprep.mubr.bf16.mxu0 %v4879_v13  ;;  %v2088_v13 = vadd.f32 %v5494_v47, %v5464_v63  ;;  %v2093_v47 = vadd.f32 %v5500_v55, %v5464_v63 }
 0x12e   : > { %v3996_v42 = vpop.f32.mrf.mxu0  ;;  %v4084_v43 = vpop.f32.mrf.mxu1 }
 0x12f   : > { %v5532_v44 = vadd.f32 %v3996_v42, %v3995_v38  ;;  %v4085_v19 = vadd.f32 %v4084_v43, %v4083_v40 }
 0x130   : > { %v3998_v48 = vpop.f32.mrf.mxu0  ;;  %v4086_v49 = vpop.f32.mrf.mxu1 }
 0x131   : > { %v5536_v29 = vadd.f32 %v4085_v19, %v2077_v61 }
 0x132   : > { %v3999_v58 = vpop.f32.mrf.mxu0  ;;  %v4087_v59 = vpop.f32.mrf.mxu1 }
 0x133   : > { %v5542_v1 = vadd.f32 %v3999_v58, %v3998_v48  ;;  %v4088_v7 = vadd.f32 %v4087_v59, %v4086_v49  ;;  %v4887_v48 = vld [vmem:[%s5066_s9 + $0x540] ss:$44 sps:$4 sm:$0xff]   ;;  %v4890_v49 = vld [vmem:[%s5066_s9 + $0x288] ss:$44 sps:$4 sm:$0xff]   ;;  %v2096_v59 = vadd.f32 %v5510_v9, %v5464_v63  ;;  %v2101_v9 = vadd.f32 %v5516_v18, %v5464_v63 }
 0x134   : > { %v4001_v2 = vpop.f32.mrf.mxu0  ;;  %v4089_v5 = vpop.f32.mrf.mxu1  ;;  %2630 = vmatmul.mubr.bf16.gmra.mxu1 %v4874_v53  ;;  %2727 = vmatmul.mubr.bf16.gmra.mxu0 %v4877_v54  ;;  %v4895_v54 = vld [vmem:[%s5066_s9 + $0x2e4] ss:$44 sps:$4 sm:$0xff]  }
 0x135   : > { %v5544_v6 = vadd.f32 %v4088_v7, %v2080_v60  ;;  %2637 = vmatprep.mubr.bf16.mxu1 %v4882_v56  ;;  %2734 = vmatprep.mubr.bf16.mxu0 %v4885_v57  ;;  %v4896_v56 = vld [vmem:[%s5066_s9 + $0x28] ss:$44 sps:$4 sm:$0xff]  }
 0x136   : > { %v4002_v8 = vpop.f32.mrf.mxu0  ;;  %v4090_v35 = vpop.f32.mrf.mxu1 }
 0x137   : > { %v5548_v10 = vadd.f32 %v4002_v8, %v4001_v2  ;;  %v4091_v11 = vadd.f32 %v4090_v35, %v4089_v5 }
 0x138   : > { %v4004_v16 = vpop.f32.mrf.mxu0  ;;  %v4092_v17 = vpop.f32.mrf.mxu1 }
 0x139   : > { %v5552_v22 = vadd.f32 %v4091_v11, %v2085_v23 }
 0x13a   : > { %v4005_v25 = vpop.f32.mrf.mxu0  ;;  %v4093_v28 = vpop.f32.mrf.mxu1 }
 0x13b   : > { %v5558_v32 = vadd.f32 %v4005_v25, %v4004_v16  ;;  %v4094_v31 = vadd.f32 %v4093_v28, %v4092_v17  ;;  %v4901_v25 = vld [vmem:[%s5066_s9 + $0xd8] ss:$44 sps:$4 sm:$0xff]  }
 0x13c   : > { %v4007_v33 = vpop.f32.mrf.mxu0  ;;  %v4095_v34 = vpop.f32.mrf.mxu1  ;;  %2638 = vmatmul.mubr.bf16.gmra.mxu1 %v4880_v45  ;;  %2735 = vmatmul.mubr.bf16.gmra.mxu0 %v4883_v21  ;;  %v4893_v45 = vld [vmem:[%s5066_s9 + $0x2e0] ss:$44 sps:$4 sm:$0xff]  }
 0x13d   : > { %v5560_v51 = vadd.f32 %v4094_v31, %v2088_v13  ;;  %2645 = vmatprep.mubr.bf16.mxu1 %v4889_v3  ;;  %2742 = vmatprep.mubr.bf16.mxu0 %v4892_v24  ;;  %v4897_v21 = vld [vmem:[%s5066_s9 + $0x80] ss:$44 sps:$4 sm:$0xff]   ;;  %v4900_v24 = vld [vmem:[%s5066_s9 + $0x33c] ss:$44 sps:$4 sm:$0xff]   ;;  %v2104_v31 = vadd.f32 %v5526_v37, %v5464_v63  ;;  %v2109_v37 = vadd.f32 %v5532_v44, %v5464_v63 }
 0x13e   : > { %v4008_v38 = vpop.f32.mrf.mxu0  ;;  %v4096_v40 = vpop.f32.mrf.mxu1 }
 0x13f   : > { %v5564_v42 = vadd.f32 %v4008_v38, %v4007_v33  ;;  %v4097_v43 = vadd.f32 %v4096_v40, %v4095_v34 }
 0x140   : > { %v4010_v61 = vpop.f32.mrf.mxu0  ;;  %v4098_v19 = vpop.f32.mrf.mxu1 }
 0x141   : > { %v5568_v53 = vadd.f32 %v4097_v43, %v2093_v47 }
 0x142   : > { %v4011_v57 = vpop.f32.mrf.mxu0  ;;  %v4099_v58 = vpop.f32.mrf.mxu1 }
 0x143   : > { %v5574_v60 = vadd.f32 %v4011_v57, %v4010_v61  ;;  %v4100_v55 = vadd.f32 %v4099_v58, %v4098_v19 }
 0x144   : > { %v4013_v7 = vpop.f32.mrf.mxu0  ;;  %v4101_v2 = vpop.f32.mrf.mxu1  ;;  %2646 = vmatmul.mubr.bf16.gmra.mxu1 %v4887_v48  ;;  %2743 = vmatmul.mubr.bf16.gmra.mxu0 %v4890_v49 }
 0x145   : > { %v5576_v5 = vadd.f32 %v4100_v55, %v2096_v59  ;;  %2750 = vmatprep.mubr.bf16.mxu0 %v4895_v54  ;;  %4531 = vmatprep.mubr.msk.bf16.mxu1 %vm1957_vm1, %v4896_v56  ;;  %v4898_v54 = vld [vmem:[%s5066_s9 + $0x338] ss:$44 sps:$4 sm:$0xff]   ;;  %v4902_v56 = vld [vmem:[%s5066_s9 + $0x130] ss:$44 sps:$4 sm:$0xff]   ;;  %v4905_v59 = vld [vmem:[%s5066_s9 + $0x394] ss:$44 sps:$4 sm:$0xff]  }
 0x146   : > { %v4014_v8 = vpop.f32.mrf.mxu0  ;;  %v4102_v35 = vpop.f32.mrf.mxu1  ;;  %v4906_v55 = vld [vmem:[%s5066_s9 + $0x188] ss:$44 sps:$4 sm:$0xff]  }
 0x147   : > { %v5581_v23 = vadd.f32 %v4014_v8, %v4013_v7  ;;  %v4103_v11 = vadd.f32 %v4102_v35, %v4101_v2  ;;  %v2112_v8 = vadd.f32 %v5542_v1, %v5464_v63 }
 0x148   : > { %v4016_v16 = vpop.f32.mrf.mxu0  ;;  %v4104_v17 = vpop.f32.mrf.mxu1 }
 0x149   : > { %v5585_v3 = vadd.f32 %v4103_v11, %v2101_v9 }
 0x14a   : > { %v4017_v28 = vpop.f32.mrf.mxu0  ;;  %v4105_v13 = vpop.f32.mrf.mxu1 }
 0x14b   : > { %v5591_v33 = vadd.f32 %v4017_v28, %v4016_v16  ;;  %v4106_v18 = vadd.f32 %v4105_v13, %v4104_v17  ;;  %v4903_v13 = vld [vmem:[%s5066_s9 + $0x390] ss:$44 sps:$4 sm:$0xff]  }
 0x14c   : > { %v4107_v34 = vpop.f32.mrf.mxu1  ;;  %v4171_v38 = vpop.f32.mrf.mxu0  ;;  %2751 = vmatmul.mubr.bf16.gmra.mxu0 %v4893_v45  ;;  %4532 = vmatmul.mubr.msk.bf16.vlgmr.msra.gmra.mxu1 %vm1957_vm1, %v4897_v21  ;;  %v2117_v45 = vadd.f32 %v5548_v10, %v5464_v63 }
 0x14d   : > { %v5594_v40 = vadd.f32 %v4106_v18, %v2104_v31  ;;  %2758 = vmatprep.mubr.bf16.mxu0 %v4900_v24  ;;  %4535 = vmatprep.mubr.msk.bf16.mxu1 %vm1957_vm1, %v4901_v25  ;;  %v4907_v31 = vld [vmem:[%s5066_s9 + $0x1e0] ss:$44 sps:$4 sm:$0xff]  }
 0x14e   : > { %v4108_v47 = vpop.f32.mrf.mxu1  ;;  %v4172_v43 = vpop.f32.mrf.mxu0 }
 0x14f   : > { %v4109_v61 = vadd.f32 %v4108_v47, %v4107_v34  ;;  %v4173_v19 = vadd.f32 %v4172_v43, %v4171_v38  ;;  %v4911_v38 = vld [vmem:[%s5066_s9 + $0x238] ss:$44 sps:$4 sm:$0xff]  }
 0x150   : > { %v4110_v48 = vpop.f32.mrf.mxu1  ;;  %v4174_v49 = vpop.f32.mrf.mxu0 }
 0x151   : > { %v5601_v57 = vadd.f32 %v4109_v61, %v2109_v37  ;;  %v5604_v58 = vadd.f32 %v4173_v19, %v5472_v15  ;;  %v2120_v37 = vadd.f32 %v5558_v32, %v5464_v63 }
 0x152   : > { %v4111_v7 = vpop.f32.mrf.mxu1  ;;  %v4175_v2 = vpop.f32.mrf.mxu0 }
 0x153   : > { %v4112_v35 = vadd.f32 %v4111_v7, %v4110_v48  ;;  %v4176_v44 = vadd.f32 %v4175_v2, %v4174_v49 }
 0x154   : > { %v4113_v9 = vpop.f32.mrf.mxu1  ;;  %v4177_v11 = vpop.f32.mrf.mxu0  ;;  %2759 = vmatmul.mubr.bf16.gmra.mxu0 %v4898_v54  ;;  %4536 = vmatmul.mubr.msk.bf16.gmra.mxu1 %vm1957_vm1, %v4902_v56  ;;  %v2125_v56 = vadd.f32 %v5564_v42, %v5464_v63 }
 0x155   : > { %v5611_v16 = vadd.f32 %v4112_v35, %v2112_v8  ;;  %v5614_v15 = vadd.f32 %v4176_v44, %v5480_v26  ;;  %2766 = vmatprep.mubr.bf16.mxu0 %v4905_v59  ;;  %4539 = vmatprep.mubr.msk.bf16.mxu1 %vm1957_vm1, %v4906_v55  ;;  %v4910_v26 = vld [vmem:[%s5066_s9 + $0x3ec] ss:$44 sps:$4 sm:$0xff]   ;;  %v4908_v8 = vld [vmem:[%s5066_s9 + $0x3e8] ss:$44 sps:$4 sm:$0xff]   ;;  %v4912_v35 = vld [vmem:[%s5066_s9 + $0x290] ss:$44 sps:$4 sm:$0xff]  }
 0x156   : > { %v4114_v1 = vpop.f32.mrf.mxu1  ;;  %v4178_v17 = vpop.f32.mrf.mxu0 }
 0x157   : > { %v4115_v21 = vadd.f32 %v4114_v1, %v4113_v9  ;;  %v4179_v24 = vadd.f32 %v4178_v17, %v4177_v11  ;;  %v4916_v11 = vld [vmem:[%s5066_s9 + $0x2e8] ss:$44 sps:$4 sm:$0xff]  }
 0x158   : > { %v4116_v25 = vpop.f32.mrf.mxu1  ;;  %v4180_v28 = vpop.f32.mrf.mxu0 }
 0x159   : > { %v5621_v18 = vadd.f32 %v4115_v21, %v2117_v45  ;;  %v5624_v34 = vadd.f32 %v4179_v24, %v5488_v39  ;;  %v2128_v45 = vadd.f32 %v5574_v60, %v5464_v63 }
 0x15a   : > { %v4117_v47 = vpop.f32.mrf.mxu1  ;;  %v4181_v43 = vpop.f32.mrf.mxu0 }
 0x15b   : > { %v4118_v61 = vadd.f32 %v4117_v47, %v4116_v25  ;;  %v4182_v10 = vadd.f32 %v4181_v43, %v4180_v28 }
 0x15c   : > { %v4119_v19 = vpop.f32.mrf.mxu1  ;;  %v4183_v48 = vpop.f32.mrf.mxu0  ;;  %2767 = vmatmul.mubr.bf16.gmra.mxu0 %v4903_v13  ;;  %4540 = vmatmul.mubr.msk.bf16.gmra.mxu1 %vm1957_vm1, %v4907_v31  ;;  %v2133_v31 = vadd.f32 %v5581_v23, %v5464_v63 }
 0x15d   : > { %v5631_v49 = vadd.f32 %v4118_v61, %v2120_v37  ;;  %v5634_v39 = vadd.f32 %v4182_v10, %v5496_v50  ;;  %2774 = vmatprep.mubr.bf16.mxu0 %v4910_v26  ;;  %4543 = vmatprep.mubr.msk.bf16.mxu1 %vm1957_vm1, %v4911_v38  ;;  %v4915_v50 = vld [vmem:[%s5066_s9 + $0x444] ss:$44 sps:$4 sm:$0xff]   ;;  %v4913_v37 = vld [vmem:[%s5066_s9 + $0x440] ss:$44 sps:$4 sm:$0xff]  }
 0x15e   : > { %v4120_v32 = vpop.f32.mrf.mxu1  ;;  %v4184_v54 = vpop.f32.mrf.mxu0  ;;  %v4917_v61 = vld [vmem:[%s5066_s9 + $0x340] ss:$44 sps:$4 sm:$0xff]  }
 0x15f   : > { %v4121_v59 = vadd.f32 %v4120_v32, %v4119_v19  ;;  %v4185_v55 = vadd.f32 %v4184_v54, %v4183_v48  ;;  %v4921_v48 = vld [vmem:[%s5066_s9 + $0x398] ss:$44 sps:$4 sm:$0xff]  }
 0x160   : > { %v4122_v7 = vpop.f32.mrf.mxu1  ;;  %v4186_v2 = vpop.f32.mrf.mxu0 }
 0x161   : > { %v5641_v44 = vadd.f32 %v4121_v59, %v2125_v56  ;;  %v5644_v9 = vadd.f32 %v4185_v55, %v5504_v0  ;;  %v2136_v56 = vadd.f32 %v5591_v33, %v5464_v63 }
 0x162   : > { %v4123_v1 = vpop.f32.mrf.mxu1  ;;  %v4187_v17 = vpop.f32.mrf.mxu0 }
 0x163   : > { %v4124_v21 = vadd.f32 %v4123_v1, %v4122_v7  ;;  %v4188_v42 = vadd.f32 %v4187_v17, %v4186_v2 }
 0x164   : > { %v4125_v24 = vpop.f32.mrf.mxu1  ;;  %v4189_v25 = vpop.f32.mrf.mxu0  ;;  %2775 = vmatmul.mubr.bf16.gmra.mxu0 %v4908_v8  ;;  %4544 = vmatmul.mubr.msk.bf16.gmra.mxu1 %vm1957_vm1, %v4912_v35  ;;  %v2141_v35 = vadd.f32 %v5415_v4, %v5464_v63 }
 0x165   : > { %v5651_v28 = vadd.f32 %v4124_v21, %v2128_v45  ;;  %v5654_v0 = vadd.f32 %v4188_v42, %v5512_v12  ;;  %2782 = vmatprep.mubr.bf16.mxu0 %v4915_v50  ;;  %4547 = vmatprep.mubr.msk.bf16.mxu1 %vm1957_vm1, %v4916_v11  ;;  %v4920_v12 = vld [vmem:[%s5066_s9 + $0x49c] ss:$44 sps:$4 sm:$0xff]   ;;  %v4918_v45 = vld [vmem:[%s5066_s9 + $0x498] ss:$44 sps:$4 sm:$0xff]  }
 0x166   : > { %v4126_v60 = vpop.f32.mrf.mxu1  ;;  %v4190_v13 = vpop.f32.mrf.mxu0  ;;  %v4922_v21 = vld [vmem:[%s5066_s9 + $0x3f0] ss:$44 sps:$4 sm:$0xff]  }
 0x167   : > { %v4127_v26 = vadd.f32 %v4126_v60, %v4125_v24  ;;  %v4191_v38 = vadd.f32 %v4190_v13, %v4189_v25  ;;  %v4926_v25 = vld [vmem:[%s5066_s9 + $0x448] ss:$44 sps:$4 sm:$0xff]  }
 0x168   : > { %v4128_v47 = vpop.f32.mrf.mxu1  ;;  %v4192_v43 = vpop.f32.mrf.mxu0 }
 0x169   : > { %v5661_v10 = vadd.f32 %v4127_v26, %v2133_v31  ;;  %v5664_v19 = vadd.f32 %v4191_v38, %v5520_v27  ;;  %v2144_v31 = vadd.f32 %v5423_v14, %v5464_v63 }
 0x16a   : > { %v4129_v32 = vpop.f32.mrf.mxu1  ;;  %v4193_v54 = vpop.f32.mrf.mxu0 }
 0x16b   : > { %v4130_v59 = vadd.f32 %v4129_v32, %v4128_v47  ;;  %v4194_v23 = vadd.f32 %v4193_v54, %v4192_v43 }
 0x16c   : > { %v4131_v55 = vpop.f32.mrf.mxu1  ;;  %v4195_v7 = vpop.f32.mrf.mxu0  ;;  %2783 = vmatmul.mubr.bf16.gmra.mxu0 %v4913_v37  ;;  %4548 = vmatmul.mubr.msk.bf16.gmra.mxu1 %vm1957_vm1, %v4917_v61  ;;  %v2149_v61 = vadd.f32 %v5427_v20, %v5464_v63 }
 0x16d   : > { %v5671_v2 = vadd.f32 %v4130_v59, %v2136_v56  ;;  %v5674_v27 = vadd.f32 %v4194_v23, %v5528_v41  ;;  %2790 = vmatprep.mubr.bf16.mxu0 %v4920_v12  ;;  %4551 = vmatprep.mubr.msk.bf16.mxu1 %vm1957_vm1, %v4921_v48  ;;  %v4925_v41 = vld [vmem:[%s5066_s9 + $0x4f4] ss:$44 sps:$4 sm:$0xff]   ;;  %v4923_v56 = vld [vmem:[%s5066_s9 + $0x4f0] ss:$44 sps:$4 sm:$0xff]  }
 0x16e   : > { %v4132_v33 = vpop.f32.mrf.mxu1  ;;  %v4196_v8 = vpop.f32.mrf.mxu0  ;;  %v4927_v59 = vld [vmem:[%s5066_s9 + $0x4a0] ss:$44 sps:$4 sm:$0xff]  }
 0x16f   : > { %v4133_v50 = vadd.f32 %v4132_v33, %v4131_v55  ;;  %v4197_v11 = vadd.f32 %v4196_v8, %v4195_v7  ;;  %v4931_v7 = vld [vmem:[%s5066_s9 + $0x4f8] ss:$44 sps:$4 sm:$0xff]  }
 0x170   : > { %v4134_v1 = vpop.f32.mrf.mxu1  ;;  %v4198_v17 = vpop.f32.mrf.mxu0 }
 0x171   : > { %v5681_v42 = vadd.f32 %v4133_v50, %v2141_v35  ;;  %v5684_v24 = vadd.f32 %v4197_v11, %v5536_v29  ;;  %v2152_v35 = vadd.f32 %v5435_v30, %v5464_v63  ;;  %v2157_v30 = vadd.f32 %v5439_v36, %v5464_v63 }
 0x172   : > { %v4135_v60 = vpop.f32.mrf.mxu1  ;;  %v4199_v13 = vpop.f32.mrf.mxu0 }
 0x173   : > { %v4136_v26 = vadd.f32 %v4135_v60, %v4134_v1  ;;  %v4200_v4 = vadd.f32 %v4199_v13, %v4198_v17 }
 0x174   : > { %v4137_v38 = vpop.f32.mrf.mxu1  ;;  %v4201_v47 = vpop.f32.mrf.mxu0  ;;  %2791 = vmatmul.mubr.bf16.gmra.mxu0 %v4918_v45  ;;  %4552 = vmatmul.mubr.msk.bf16.gmra.mxu1 %vm1957_vm1, %v4922_v21 }
 0x175   : > { %v5691_v43 = vadd.f32 %v4136_v26, %v2144_v31  ;;  %v5694_v29 = vadd.f32 %v4200_v4, %v5544_v6  ;;  %2798 = vmatprep.mubr.bf16.mxu0 %v4925_v41  ;;  %4555 = vmatprep.mubr.msk.bf16.mxu1 %vm1957_vm1, %v4926_v25  ;;  %v4930_v6 = vld [vmem:[%s5066_s9 + $0x54c] ss:$44 sps:$4 sm:$0xff]   ;;  %v4928_v31 = vld [vmem:[%s5066_s9 + $0x548] ss:$44 sps:$4 sm:$0xff]   ;;  %v4932_v26 = vld [vmem:[%s5066_s9 + $0x550] ss:$44 sps:$4 sm:$0xff]  }
 0x176   : > { %v4138_v14 = vpop.f32.mrf.mxu1  ;;  %v4202_v37 = vpop.f32.mrf.mxu0  ;;  %s3488_s9 = sshll.u32 %s6391_s16, 2 }
 0x177   : > { %v4139_v12 = vadd.f32 %v4138_v14, %v4137_v38  ;;  %v4203_v48 = vadd.f32 %v4202_v37, %v4201_v47  ;;  %v2160_v14 = vadd.f32 %v5447_v46, %v5464_v63  ;;  %s6126_s29 = scalar_lea.vmem %s6369_s3, %s3488_s9 }
 0x178   : > { %v4140_v32 = vpop.f32.mrf.mxu1  ;;  %v4204_v54 = vpop.f32.mrf.mxu0 }
 0x179   : > { %v5701_v23 = vadd.f32 %v4139_v12, %v2149_v61  ;;  %v5704_v55 = vadd.f32 %v4203_v48, %v5552_v22 }
 0x17a   : > { %v4141_v33 = vpop.f32.mrf.mxu1  ;;  %v4205_v8 = vpop.f32.mrf.mxu0 }
 0x17b   : > { %v4142_v50 = vadd.f32 %v4141_v33, %v4140_v32  ;;  %v4206_v20 = vadd.f32 %v4205_v8, %v4204_v54 }
 0x17c   : > { %v4143_v11 = vpop.f32.mrf.mxu1  ;;  %v4207_v1 = vpop.f32.mrf.mxu0  ;;  %2799 = vmatmul.mubr.bf16.gmra.mxu0 %v4923_v56  ;;  %4556 = vmatmul.mubr.msk.bf16.gmra.mxu1 %vm1957_vm1, %v4927_v59  ;;  %v2165_v56 = vadd.f32 %v5451_v52, %v5464_v63 }
 0x17d   : > { %v5711_v17 = vadd.f32 %v4142_v50, %v2152_v35  ;;  %v5714_v22 = vadd.f32 %v4206_v20, %v5560_v51  ;;  %2806 = vmatprep.mubr.bf16.mxu0 %v4930_v6  ;;  %4559 = vmatprep.mubr.msk.bf16.mxu1 %vm1957_vm1, %v4931_v7 }
 0x17e   : > { %v4144_v45 = vpop.f32.mrf.mxu1  ;;  %v4208_v21 = vpop.f32.mrf.mxu0 }
 0x17f   : > { %v4145_v41 = vadd.f32 %v4144_v45, %v4143_v11  ;;  %v4209_v25 = vadd.f32 %v4208_v21, %v4207_v1 }
 0x180   : > { %v4146_v60 = vpop.f32.mrf.mxu1  ;;  %v4210_v13 = vpop.f32.mrf.mxu0 }
 0x181   : > { %v5721_v4 = vadd.f32 %v4145_v41, %v2157_v30  ;;  %v5724_v38 = vadd.f32 %v4209_v25, %v5568_v53 }
 0x182   : > { %v4147_v51 = vpop.f32.mrf.mxu1  ;;  %v4211_v47 = vpop.f32.mrf.mxu0 }
 0x183   : > { %v4148_v37 = vadd.f32 %v4147_v51, %v4146_v60  ;;  %v4212_v61 = vadd.f32 %v4211_v47, %v4210_v13 }
 0x184   : > { %v4149_v12 = vpop.f32.mrf.mxu1  ;;  %v4213_v36 = vpop.f32.mrf.mxu0  ;;  %2807 = vmatmul.mubr.bf16.gmra.mxu0 %v4928_v31  ;;  %4560 = vmatmul.mubr.msk.bf16.gmra.mxu1 %vm1957_vm1, %v4932_v26 }
 0x185   : > { %v5729_v48 = vadd.f32 %v4148_v37, %v2160_v14  ;;  %v5732_v32 = vadd.f32 %v4212_v61, %v5576_v5  ;;  %v2168_v5 = vadd.f32 %v5459_v62, %v5464_v63 }
 0x186   : > { %v4150_v54 = vpop.f32.mrf.mxu1  ;;  %v4214_v53 = vpop.f32.mrf.mxu0 }
 0x187   : > { %v4151_v59 = vadd.f32 %v4150_v54, %v4149_v12  ;;  %v4215_v6 = vadd.f32 %v4214_v53, %v4213_v36 }
 0x188   : > { %v4152_v46 = vpop.f32.mrf.mxu1  ;;  %v4216_v7 = vpop.f32.mrf.mxu0 }
 0x189   : > { %v5736_v33 = vadd.f32 %v4151_v59, %v2165_v56  ;;  %v5739_v8 = vadd.f32 %v4215_v6, %v5585_v3 }
 0x18a   : > { %v4153_v35 = vpop.f32.mrf.mxu1  ;;  %v4217_v50 = vpop.f32.mrf.mxu0 }
 0x18b   : > { %v4154_v20 = vadd.f32 %v4153_v35, %v4152_v46  ;;  %v4218_v11 = vadd.f32 %v4217_v50, %v4216_v7 }
 0x18c   : > { %v4219_v1 = vpop.f32.mrf.mxu0  ;;  %v4283_v45 = vpop.f32.mrf.mxu1 }
 0x18d   : > { %v5743_v21 = vadd.f32 %v4154_v20, %v2168_v5  ;;  %v5746_v52 = vadd.f32 %v4218_v11, %v5594_v40 }
 0x18e   : > { %v4220_v30 = vpop.f32.mrf.mxu0  ;;  %v4284_v41 = vpop.f32.mrf.mxu1 }
 0x18f   : > { %v4221_v25 = vadd.f32 %v4220_v30, %v4219_v1  ;;  %v4285_v60 = vadd.f32 %v4284_v41, %v4283_v45 }
 0x190   : > { %v4222_v3 = vpop.f32.mrf.mxu0  ;;  %v4286_v13 = vpop.f32.mrf.mxu1 }
 0x191   : > { %v5749_v31 = vadd.f32 %v4221_v25, %v5601_v57  ;;  %v5752_v62 = vadd.f32 %v4285_v60, %v5604_v58 }
 0x192   : > { %v4223_v63 = vpop.f32.mrf.mxu0  ;;  %v4287_v26 = vpop.f32.mrf.mxu1 }
 0x193   : > { %v4224_v51 = vadd.f32 %v4223_v63, %v4222_v3  ;;  %v4288_v47 = vadd.f32 %v4287_v26, %v4286_v13 }
 0x194   : > { %v4225_v14 = vpop.f32.mrf.mxu0  ;;  %v4289_v37 = vpop.f32.mrf.mxu1 }
 0x195   : > { %v5755_v40 = vadd.f32 %v4224_v51, %v5611_v16  ;;  %v5758_v61 = vadd.f32 %v4288_v47, %v5614_v15 }
 0x196   : > { %v4226_v12 = vpop.f32.mrf.mxu0  ;;  %v4290_v36 = vpop.f32.mrf.mxu1 }
 0x197   : > { %v4227_v54 = vadd.f32 %v4226_v12, %v4225_v14  ;;  %v4291_v57 = vadd.f32 %v4290_v36, %v4289_v37 }
 0x198   : > { %v4228_v53 = vpop.f32.mrf.mxu0  ;;  %v4292_v56 = vpop.f32.mrf.mxu1 }
 0x199   : > { %v5761_v58 = vadd.f32 %v4227_v54, %v5621_v18  ;;  %v5764_v59 = vadd.f32 %v4291_v57, %v5624_v34 }
 0x19a   : > { %v4229_v6 = vpop.f32.mrf.mxu0  ;;  %v4293_v46 = vpop.f32.mrf.mxu1 }
 0x19b   : > { %v4230_v7 = vadd.f32 %v4229_v6, %v4228_v53  ;;  %v4294_v16 = vadd.f32 %v4293_v46, %v4292_v56 }
 0x19c   : > { %v4231_v35 = vpop.f32.mrf.mxu0  ;;  %v4295_v50 = vpop.f32.mrf.mxu1 }
 0x19d   : > { %v5767_v15 = vadd.f32 %v4230_v7, %v5631_v49  ;;  %v5770_v5 = vadd.f32 %v4294_v16, %v5634_v39 }
 0x19e   : > { %v4232_v20 = vpop.f32.mrf.mxu0  ;;  %v4296_v11 = vpop.f32.mrf.mxu1 }
 0x19f   : > { %v4233_v1 = vadd.f32 %v4232_v20, %v4231_v35  ;;  %v4297_v18 = vadd.f32 %v4296_v11, %v4295_v50 }
 0x1a0   : > { %v4234_v45 = vpop.f32.mrf.mxu0  ;;  %v4298_v30 = vpop.f32.mrf.mxu1 }
 0x1a1   : > { %v5773_v34 = vadd.f32 %v4233_v1, %v5641_v44  ;;  %v5776_v41 = vadd.f32 %v4297_v18, %v5644_v9 }
 0x1a2   : > { %v4235_v25 = vpop.f32.mrf.mxu0  ;;  %v4299_v60 = vpop.f32.mrf.mxu1 }
 0x1a3   : > { %v4236_v3 = vadd.f32 %v4235_v25, %v4234_v45  ;;  %v4300_v49 = vadd.f32 %v4299_v60, %v4298_v30 }
 0x1a4   : > { %v4237_v13 = vpop.f32.mrf.mxu0  ;;  %v4301_v63 = vpop.f32.mrf.mxu1 }
 0x1a5   : > { %v5779_v39 = vadd.f32 %v4236_v3, %v5651_v28  ;;  %v5782_v26 = vadd.f32 %v4300_v49, %v5654_v0 }
 0x1a6   : > { %v4238_v51 = vpop.f32.mrf.mxu0  ;;  %v4302_v47 = vpop.f32.mrf.mxu1 }
 0x1a7   : > { %v4239_v14 = vadd.f32 %v4238_v51, %v4237_v13  ;;  %v4303_v44 = vadd.f32 %v4302_v47, %v4301_v63 }
 0x1a8   : > { %v4240_v37 = vpop.f32.mrf.mxu0  ;;  %v4304_v12 = vpop.f32.mrf.mxu1 }
 0x1a9   : > { %v5785_v9 = vadd.f32 %v4239_v14, %v5661_v10  ;;  %v5788_v36 = vadd.f32 %v4303_v44, %v5664_v19 }
 0x1aa   : > { %v4241_v54 = vpop.f32.mrf.mxu0  ;;  %v4305_v57 = vpop.f32.mrf.mxu1 }
 0x1ab   : > { %v4242_v53 = vadd.f32 %v4241_v54, %v4240_v37  ;;  %v4306_v28 = vadd.f32 %v4305_v57, %v4304_v12 }
 0x1ac   : > { %v4243_v56 = vpop.f32.mrf.mxu0  ;;  %v4307_v6 = vpop.f32.mrf.mxu1 }
 0x1ad   : > { %v5791_v0 = vadd.f32 %v4242_v53, %v5671_v2  ;;  %v5794_v46 = vadd.f32 %v4306_v28, %v5674_v27 }
 0x1ae   : > { %v4244_v7 = vpop.f32.mrf.mxu0  ;;  %v4308_v16 = vpop.f32.mrf.mxu1 }
 0x1af   : > { %v4245_v35 = vadd.f32 %v4244_v7, %v4243_v56  ;;  %v4309_v10 = vadd.f32 %v4308_v16, %v4307_v6 }
 0x1b0   : > { %v4246_v50 = vpop.f32.mrf.mxu0  ;;  %v4310_v20 = vpop.f32.mrf.mxu1 }
 0x1b1   : > { %v5797_v19 = vadd.f32 %v4245_v35, %v5681_v42  ;;  %v5800_v11 = vadd.f32 %v4309_v10, %v5684_v24 }
 0x1b2   : > { %v4247_v1 = vpop.f32.mrf.mxu0  ;;  %v4311_v18 = vpop.f32.mrf.mxu1 }
 0x1b3   : > { %v4248_v45 = vadd.f32 %v4247_v1, %v4246_v50  ;;  %v4312_v2 = vadd.f32 %v4311_v18, %v4310_v20 }
 0x1b4   : > { %v4249_v30 = vpop.f32.mrf.mxu0  ;;  %v4313_v25 = vpop.f32.mrf.mxu1 }
 0x1b5   : > { %v5803_v27 = vadd.f32 %v4248_v45, %v5691_v43  ;;  %v5806_v60 = vadd.f32 %v4312_v2, %v5694_v29 }
 0x1b6   : > { %v4250_v3 = vpop.f32.mrf.mxu0  ;;  %v4314_v49 = vpop.f32.mrf.mxu1 }
 0x1b7   : > { %v4251_v13 = vadd.f32 %v4250_v3, %v4249_v30  ;;  %v4315_v42 = vadd.f32 %v4314_v49, %v4313_v25 }
 0x1b8   : > { %v4252_v63 = vpop.f32.mrf.mxu0  ;;  %v4316_v51 = vpop.f32.mrf.mxu1 }
 0x1b9   : > { %v5809_v24 = vadd.f32 %v4251_v13, %v5701_v23  ;;  %v5812_v47 = vadd.f32 %v4315_v42, %v5704_v55 }
 0x1ba   : > { %v4253_v14 = vpop.f32.mrf.mxu0  ;;  %v4317_v44 = vpop.f32.mrf.mxu1 }
 0x1bb   : > { %v4254_v37 = vadd.f32 %v4253_v14, %v4252_v63  ;;  %v4318_v43 = vadd.f32 %v4317_v44, %v4316_v51 }
 0x1bc   : > { %v4255_v12 = vpop.f32.mrf.mxu0  ;;  %v4319_v54 = vpop.f32.mrf.mxu1 }
 0x1bd   : > { %v5815_v29 = vadd.f32 %v4254_v37, %v5711_v17  ;;  %v5818_v57 = vadd.f32 %v4318_v43, %v5714_v22 }
 0x1be   : > { %v4256_v53 = vpop.f32.mrf.mxu0  ;;  %v4320_v28 = vpop.f32.mrf.mxu1 }
 0x1bf   : > { %v4257_v56 = vadd.f32 %v4256_v53, %v4255_v12  ;;  %v4321_v23 = vadd.f32 %v4320_v28, %v4319_v54 }
 0x1c0   : > { %v4258_v6 = vpop.f32.mrf.mxu0  ;;  %v4322_v7 = vpop.f32.mrf.mxu1 }
 0x1c1   : > { %v5821_v55 = vadd.f32 %v4257_v56, %v5721_v4  ;;  %v5824_v16 = vadd.f32 %v4321_v23, %v5724_v38 }
 0x1c2   : > { %v4259_v35 = vpop.f32.mrf.mxu0  ;;  %v4323_v10 = vpop.f32.mrf.mxu1 }
 0x1c3   : > { %v4260_v50 = vadd.f32 %v4259_v35, %v4258_v6  ;;  %v4324_v17 = vadd.f32 %v4323_v10, %v4322_v7 }
 0x1c4   : > { %v4261_v20 = vpop.f32.mrf.mxu0  ;;  %v4325_v1 = vpop.f32.mrf.mxu1 }
 0x1c5   : > { %v5827_v22 = vadd.f32 %v4260_v50, %v5729_v48  ;;  %v5830_v18 = vadd.f32 %v4324_v17, %v5732_v32 }
 0x1c6   : > { %v4262_v45 = vpop.f32.mrf.mxu0  ;;  %v4326_v2 = vpop.f32.mrf.mxu1 }
 0x1c7   : > { %v4263_v30 = vadd.f32 %v4262_v45, %v4261_v20  ;;  %v4327_v4 = vadd.f32 %v4326_v2, %v4325_v1 }
 0x1c8   : > { %v4264_v25 = vpop.f32.mrf.mxu0  ;;  %v4328_v3 = vpop.f32.mrf.mxu1 }
 0x1c9   : > { %v5833_v38 = vadd.f32 %v4263_v30, %v5736_v33  ;;  %v5836_v49 = vadd.f32 %v4327_v4, %v5739_v8 }
 0x1ca   : > { %v4265_v13 = vpop.f32.mrf.mxu0  ;;  %v4329_v42 = vpop.f32.mrf.mxu1 }
 0x1cb   : > { %v4266_v63 = vadd.f32 %v4265_v13, %v4264_v25  ;;  %v4330_v48 = vadd.f32 %v4329_v42, %v4328_v3 }
 0x1cc   : > { %v4331_v51 = vpop.f32.mrf.mxu1  ;;  %v5838_v14 = vpop.f32.mrf.mxu0 }
 0x1cd   : > { %v5841_v32 = vadd.f32 %v4266_v63, %v5743_v21  ;;  %v5844_v44 = vadd.f32 %v4330_v48, %v5746_v52 }
 0x1ce   : > { %v4332_v37 = vpop.f32.mrf.mxu1  ;;  %v5846_v43 = vpop.f32.mrf.mxu0 }
 0x1cf   : > { %v4333_v33 = vadd.f32 %v4332_v37, %v4331_v51 }
 0x1d0   : > { %v4334_v12 = vpop.f32.mrf.mxu1  ;;  %v5848_v8 = vpop.f32.mrf.mxu0 }
 0x1d1   : > { %v5851_v54 = vadd.f32 %v4333_v33, %v5749_v31 }
 0x1d2   : > { %v4335_v53 = vpop.f32.mrf.mxu1  ;;  %v5853_v28 = vpop.f32.mrf.mxu0 }
 0x1d3   : > { %v4336_v56 = vadd.f32 %v4335_v53, %v4334_v12 }
 0x1d4   : > { %v4337_v23 = vpop.f32.mrf.mxu1  ;;  %v5855_v21 = vpop.f32.mrf.mxu0 }
 0x1d5   : > { %v5858_v52 = vadd.f32 %v4336_v56, %v5755_v40 }
 0x1d6   : > { %v4338_v6 = vpop.f32.mrf.mxu1  ;;  %v5860_v7 = vpop.f32.mrf.mxu0 }
 0x1d7   : > { %6370 = vst [vmem:[#allocation2_spill] sm:$0xff] %v5858_v52  ;;  %v4339_v35 = vadd.f32 %v4338_v6, %v4337_v23 }
 0x1d8   : > { %v4340_v10 = vpop.f32.mrf.mxu1  ;;  %v5862_v50 = vpop.f32.mrf.mxu0 }
 0x1d9   : > { %v5865_v31 = vadd.f32 %v4339_v35, %v5761_v58 }
 0x1da   : > { %v4341_v17 = vpop.f32.mrf.mxu1  ;;  %v5867_v20 = vpop.f32.mrf.mxu0 }
 0x1db   : > { %6371 = vst [vmem:[#allocation3_spill] sm:$0xff] %v5865_v31  ;;  %v4342_v1 = vadd.f32 %v4341_v17, %v4340_v10 }
 0x1dc   : > { %v4343_v45 = vpop.f32.mrf.mxu1  ;;  %v5869_v2 = vpop.f32.mrf.mxu0 }
 0x1dd   : > { %v5872_v40 = vadd.f32 %v4342_v1, %v5767_v15 }
 0x1de   : > { %v4344_v30 = vpop.f32.mrf.mxu1  ;;  %v5874_v4 = vpop.f32.mrf.mxu0 }
 0x1df   : > { %6372 = vst [vmem:[#allocation4_spill] sm:$0xff] %v5872_v40  ;;  %v4345_v25 = vadd.f32 %v4344_v30, %v4343_v45 }
 0x1e0   : > { %v4346_v3 = vpop.f32.mrf.mxu1  ;;  %v5876_v13 = vpop.f32.mrf.mxu0 }
 0x1e1   : > { %v5879_v58 = vadd.f32 %v4345_v25, %v5773_v34 }
 0x1e2   : > { %v4347_v42 = vpop.f32.mrf.mxu1  ;;  %v5881_v63 = vpop.f32.mrf.mxu0 }
 0x1e3   : > { %6373 = vst [vmem:[#allocation5_spill] sm:$0xff] %v5879_v58  ;;  %v4348_v48 = vadd.f32 %v4347_v42, %v4346_v3 }
 0x1e4   : > { %v4349_v51 = vpop.f32.mrf.mxu1  ;;  %v5883_v37 = vpop.f32.mrf.mxu0 }
 0x1e5   : > { %v5886_v15 = vadd.f32 %v4348_v48, %v5779_v39 }
 0x1e6   : > { %v4350_v33 = vpop.f32.mrf.mxu1  ;;  %v5888_v12 = vpop.f32.mrf.mxu0 }
 0x1e7   : > { %6374 = vst [vmem:[#allocation6_spill] sm:$0xff] %v5886_v15  ;;  %v4351_v53 = vadd.f32 %v4350_v33, %v4349_v51 }
 0x1e8   : > { %v4352_v56 = vpop.f32.mrf.mxu1  ;;  %v5890_v23 = vpop.f32.mrf.mxu0 }
 0x1e9   : > { %v5893_v34 = vadd.f32 %v4351_v53, %v5785_v9 }
 0x1ea   : > { %v4353_v6 = vpop.f32.mrf.mxu1  ;;  %v4417_v35 = vpop.f32.mrf.mxu0 }
 0x1eb   : > { %6375 = vst [vmem:[#allocation7_spill] sm:$0xff] %v5893_v34  ;;  %v4354_v10 = vadd.f32 %v4353_v6, %v4352_v56 }
 0x1ec   : > { %v4355_v17 = vpop.f32.mrf.mxu1  ;;  %v4419_v1 = vpop.f32.mrf.mxu0 }
 0x1ed   : > { %v5896_v45 = vadd.f32 %v4354_v10, %v5791_v0 }
 0x1ee   : > { %v4356_v39 = vpop.f32.mrf.mxu1  ;;  %v4420_v30 = vpop.f32.mrf.mxu0 }
 0x1ef   : > { %6376 = vst [vmem:[#allocation8_spill] sm:$0xff] %v5896_v45  ;;  %v4357_v25 = vadd.f32 %v4356_v39, %v4355_v17 }
 0x1f0   : > { %v4358_v3 = vpop.f32.mrf.mxu1  ;;  %v5898_v42 = vpop.f32.mrf.mxu0 }
 0x1f1   : > { %v5901_v48 = vadd.f32 %v4357_v25, %v5797_v19 }
 0x1f2   : > { %v4359_v51 = vpop.f32.mrf.mxu1  ;;  %v4423_v9 = vpop.f32.mrf.mxu0 }
 0x1f3   : > { %6377 = vst [vmem:[#allocation9_spill] sm:$0xff] %v5901_v48  ;;  %v4360_v33 = vadd.f32 %v4359_v51, %v4358_v3 }
 0x1f4   : > { %v4361_v53 = vpop.f32.mrf.mxu1  ;;  %v4425_v15 = vpop.f32.mrf.mxu0 }
 0x1f5   : > { %v5904_v56 = vadd.f32 %v4360_v33, %v5803_v27 }
 0x1f6   : > { %v4362_v6 = vpop.f32.mrf.mxu1  ;;  %v4426_v0 = vpop.f32.mrf.mxu0 }
 0x1f7   : > { %6378 = vst [vmem:[#allocation10_spill] sm:$0xff] %v5904_v56  ;;  %v4363_v10 = vadd.f32 %v4362_v6, %v4361_v53 }
 0x1f8   : > { %v4364_v45 = vpop.f32.mrf.mxu1  ;;  %v4428_v58 = vpop.f32.mrf.mxu0 }
 0x1f9   : > { %v5907_v17 = vadd.f32 %v4363_v10, %v5809_v24 }
 0x1fa   : > { %v4365_v39 = vpop.f32.mrf.mxu1  ;;  %v4429_v34 = vpop.f32.mrf.mxu0 }
 0x1fb   : > { %6379 = vst [vmem:[#allocation11_spill] sm:$0xff] %v5907_v17  ;;  %v4366_v19 = vadd.f32 %v4365_v39, %v4364_v45 }
 0x1fc   : > { %v4367_v25 = vpop.f32.mrf.mxu1  ;;  %v4431_v48 = vpop.f32.mrf.mxu0 }
 0x1fd   : > { %v5910_v3 = vadd.f32 %v4366_v19, %v5815_v29  ;;  %v4403_v29 = vadd.f32 %v5860_v7, %v5855_v21  ;;  %v4409_v21 = vadd.f32 %v5874_v4, %v5869_v2  ;;  %v4421_v2 = vadd.f32 %v4420_v30, %v4419_v1 }
 0x1fe   : > { %v4368_v51 = vpop.f32.mrf.mxu1  ;;  %v4432_v40 = vpop.f32.mrf.mxu0 }
 0x1ff   : > { %v4369_v27 = vadd.f32 %v4368_v51, %v4367_v25 }
 0x200   : > { %v4370_v33 = vpop.f32.mrf.mxu1  ;;  %v4434_v56 = vpop.f32.mrf.mxu0 }
 0x201   : > { %v5913_v53 = vadd.f32 %v4369_v27, %v5821_v55  ;;  %v4397_v55 = vadd.f32 %v5846_v43, %v5838_v14  ;;  %v4412_v14 = vadd.f32 %v5881_v63, %v5876_v13 }
 0x202   : > { %v4371_v6 = vpop.f32.mrf.mxu1  ;;  %v4435_v31 = vpop.f32.mrf.mxu0 }
 0x203   : > { %v4372_v24 = vadd.f32 %v4371_v6, %v4370_v33  ;;  %v4400_v33 = vadd.f32 %v5853_v28, %v5848_v8  ;;  %v4418_v28 = vadd.f32 %v4417_v35, %v5890_v23  ;;  %v4424_v23 = vadd.f32 %v4423_v9, %v5898_v42 }
 0x204   : > { %v4373_v10 = vpop.f32.mrf.mxu1  ;;  %v4437_v17 = vpop.f32.mrf.mxu0  ;;  %v5954_v1 = vadd.f32 %v4412_v14, %v5782_v26  ;;  %v5963_v9 = vadd.f32 %v4421_v2, %v5800_v11 }
 0x205   : > { %v5916_v45 = vadd.f32 %v4372_v24, %v5827_v22  ;;  %v4406_v24 = vadd.f32 %v5867_v20, %v5862_v50  ;;  %v2689_v20 = vadd.f32 %v4397_v55, %v5752_v62  ;;  %v2692_v13 = vadd.f32 %v4400_v33, %v5758_v61 }
 0x206   : > { %v4374_v39 = vpop.f32.mrf.mxu1  ;;  %v4438_v52 = vpop.f32.mrf.mxu0  ;;  %v4430_v55 = vadd.f32 %v4429_v34, %v4428_v58  ;;  %v4436_v33 = vadd.f32 %v4435_v31, %v4434_v56 }
 0x207   : > { %v4375_v19 = vadd.f32 %v4374_v39, %v4373_v10  ;;  %v2697_v10 = vadd.f32 %v4403_v29, %v5764_v59  ;;  %v2705_v29 = vadd.f32 %v4409_v21, %v5776_v41  ;;  %v4433_v41 = vadd.f32 %v4432_v40, %v4431_v48 }
 0x208   : > { %v4376_v25 = vpop.f32.mrf.mxu1  ;;  %v4440_v51 = vpop.f32.mrf.mxu0  ;;  %v5973_v40 = vadd.f32 %v4424_v23, %v5806_v60  ;;  %v5987_v60 = vadd.f32 %v4436_v33, %v5830_v18 }
 0x209   : > { %v5923_v27 = vadd.f32 %v4375_v19, %v5833_v38  ;;  %v4415_v38 = vadd.f32 %v5888_v12, %v5883_v37  ;;  %v2700_v12 = vadd.f32 %v4406_v24, %v5770_v5  ;;  %v2716_v5 = vadd.f32 %v4418_v28, %v5794_v46 }
 0x20a   : > { %v4377_v6 = vpop.f32.mrf.mxu1  ;;  %v4441_v22 = vpop.f32.mrf.mxu0 }
 0x20b   : > { %v4378_v7 = vadd.f32 %v4377_v6, %v4376_v25  ;;  %v2713_v62 = vadd.f32 %v4415_v38, %v5788_v36  ;;  %v4439_v36 = vadd.f32 %v4438_v52, %v4437_v17  ;;  %v4442_v24 = vadd.f32 %v4441_v22, %v4440_v51 }
 0x20c   : > { %v5936_v43 = vpop.f32.mrf.mxu0  ;;  %v4533_v8 = vpop.f32.mrf.mxu1  ;;  %v2732_v51 = vadd.f32 %v4430_v55, %v5818_v57  ;;  %v5984_v22 = vadd.f32 %v4433_v41, %v5824_v16 }
 0x20d   : > { %v5940_v39 = vadd.f32 %v4378_v7, %v5841_v32  ;;  %v5942_v50 = vadd.f32 %v4533_v8, %v2697_v10  ;;  %v4427_v32 = vadd.f32 %v4426_v0, %v4425_v15  ;;  %v5991_v38 = vadd.f32 %v4439_v36, %v5836_v49 }
 0x20e   : > { %v4444_v59 = vpop.f32.mrf.mxu0  ;;  %v2849_v4 = vpop.f32.mrf.mxu1  ;;  %v6000_v2 = vadd.f32 %v4442_v24, %v5844_v44 }
 0x20f   : > { %v3010_v63 = vmul.f32 0.044715, %v5942_v50  ;;  %v2850_v37 = vadd.f32 %v2849_v4, %v2689_v20  ;;  %v2729_v31 = vadd.f32 %v4427_v32, %v5812_v47  ;;  %v4445_v49 = vadd.f32 %v4444_v59, %v5936_v43 }
 0x210   : > { %v5950_v35 = vpop.f32.mrf.mxu0  ;;  %v4534_v19 = vpop.f32.mrf.mxu1  ;;  %v6012_v44 = vmul.f32 0.5, %v5942_v50 }
 0x211   : > { %v3042_v61 = vmul.f32 %v3010_v63, %v5942_v50  ;;  %v3008_v30 = vmul.f32 0.044715, %v2850_v37  ;;  %v5957_v25 = vadd.f32 %v4534_v19, %v2700_v12 }
 0x212   : > { %v5960_v42 = vpop.f32.mrf.mxu0  ;;  %v2852_v15 = vpop.f32.mrf.mxu1 }
 0x213   : > { %v3074_v26 = vmul.f32 %v3042_v61, %v5942_v50  ;;  %v3040_v0 = vmul.f32 %v3008_v30, %v2850_v37  ;;  %v3011_v6 = vmul.f32 0.044715, %v5957_v25  ;;  %v5967_v21 = vadd.f32 %v2852_v15, %v2692_v13 }
 0x214   : > { %v5969_v7 = vpop.f32.mrf.mxu0  ;;  %v4537_v46 = vpop.f32.mrf.mxu1  ;;  %v6015_v61 = vmul.f32 0.5, %v2850_v37  ;;  %v6036_v24 = vmul.f32 0.5, %v5957_v25 }
 0x215   : > { %v3106_v11 = vadd.f32 %v3074_v26, %v5942_v50  ;;  %v3072_v58 = vmul.f32 %v3040_v0, %v2850_v37  ;;  %v3043_v52 = vmul.f32 %v3011_v6, %v5957_v25  ;;  %v5977_v34 = vadd.f32 %v4537_v46, %v2713_v62 }
 0x216   : > { %v3009_v48 = vmul.f32 0.044715, %v5967_v21  ;;  %v5980_v56 = vpop.f32.mrf.mxu0  ;;  %v2865_v17 = vpop.f32.mrf.mxu1  ;;  %v6033_v6 = vadd.f32 %v4445_v49, %v5851_v54 }
 0x217   : > { %v3138_v47 = vmul.f32 0.7978846, %v3106_v11  ;;  %v3104_v10 = vadd.f32 %v3072_v58, %v2850_v37  ;;  %v3075_v14 = vmul.f32 %v3043_v52, %v5957_v25  ;;  %v3014_v28 = vmul.f32 0.044715, %v5977_v34 }
 0x218   : > { %v3041_v8 = vmul.f32 %v3009_v48, %v5967_v21  ;;  %v5995_v20 = vadd.f32 %v2865_v17, %v2705_v29  ;;  %v5997_v57 = vpop.f32.mrf.mxu0  ;;  %v4538_v16 = vpop.f32.mrf.mxu1  ;;  %v6047_v17 = vmul.f32 0.5, %v5967_v21 }
 0x219   : > { %4933 = vtanh.f32 %v3138_v47  ;;  %v3136_v18 = vmul.f32 0.7978846, %v3104_v10  ;;  %v3107_v4 = vadd.f32 %v3075_v14, %v5957_v25  ;;  %v6003_v13 = vadd.f32 %v4538_v16, %v2716_v5 }
 0x21a   : > { %v3073_v63 = vmul.f32 %v3041_v8, %v5967_v21  ;;  %v3046_v12 = vmul.f32 %v3014_v28, %v5977_v34  ;;  %v3012_v29 = vmul.f32 0.044715, %v5995_v20  ;;  %v6009_v23 = vpop.f32.mrf.mxu0  ;;  %v2868_v32 = vpop.f32.mrf.mxu1 }
 0x21b   : > { %4935 = vtanh.f32 %v3136_v18  ;;  %v3139_v19 = vmul.f32 0.7978846, %v3107_v4  ;;  %v3015_v62 = vmul.f32 0.044715, %v6003_v13  ;;  %v6024_v50 = vadd.f32 %v2868_v32, %v5954_v1  ;;  %v6380_v4 = vld [vmem:[#allocation2_spill] sm:$0xff] }
 0x21c   : > { %v3105_v43 = vadd.f32 %v3073_v63, %v5967_v21  ;;  %v3078_v59 = vmul.f32 %v3046_v12, %v5977_v34  ;;  %v3044_v30 = vmul.f32 %v3012_v29, %v5995_v20  ;;  %v6020_v5 = vpop.f32.mrf.mxu0  ;;  %v4541_v55 = vpop.f32.mrf.mxu1  ;;  %v4448_v1 = vadd.f32 %v5960_v42, %v5950_v35 }
 0x21d   : > { %4937 = vtanh.f32 %v3139_v19  ;;  %v3047_v41 = vmul.f32 %v3015_v62, %v6003_v13  ;;  %v6026_v33 = vadd.f32 %v4541_v55, %v2729_v31  ;;  %v3013_v31 = vmul.f32 0.044715, %v6024_v50 }
 0x21e   : > { %v3137_v15 = vmul.f32 0.7978846, %v3105_v43  ;;  %v3110_v37 = vadd.f32 %v3078_v59, %v5977_v34  ;;  %v3076_v36 = vmul.f32 %v3044_v30, %v5995_v20  ;;  %v6030_v26 = vpop.f32.mrf.mxu0  ;;  %v2881_v0 = vpop.f32.mrf.mxu1  ;;  %v6062_v49 = vadd.f32 %v4448_v1, %v6380_v4 }
 0x21f   : > { %v3079_v46 = vmul.f32 %v3047_v41, %v6003_v13  ;;  %v3018_v52 = vmul.f32 0.044715, %v6026_v33  ;;  %v3045_v35 = vmul.f32 %v3013_v31, %v6024_v50  ;;  %v6052_v42 = vadd.f32 %v2881_v0, %v5963_v9 }
 0x220   : > { %4939 = vtanh.f32 %v3137_v15  ;;  %v3142_v11 = vmul.f32 0.7978846, %v3110_v37  ;;  %v3108_v58 = vadd.f32 %v3076_v36, %v5995_v20  ;;  %v6044_v48 = vpop.f32.mrf.mxu0  ;;  %v4542_v54 = vpop.f32.mrf.mxu1  ;;  %v6065_v9 = vmul.f32 0.5, %v5977_v34 }
 0x221   : > { %v3111_v25 = vadd.f32 %v3079_v46, %v6003_v13  ;;  %v3050_v10 = vmul.f32 %v3018_v52, %v6026_v33  ;;  %v6055_v14 = vadd.f32 %v4542_v54, %v2732_v51  ;;  %v3077_v21 = vmul.f32 %v3045_v35, %v6024_v50  ;;  %v6381_v52 = vld [vmem:[#allocation3_spill] sm:$0xff] }
 0x222   : > { %4941 = vtanh.f32 %v3142_v11  ;;  %v3140_v47 = vmul.f32 0.7978846, %v3108_v58  ;;  %v6057_v8 = vpop.f32.mrf.mxu0  ;;  %v2884_v28 = vpop.f32.mrf.mxu1  ;;  %v3016_v18 = vmul.f32 0.044715, %v6052_v42  ;;  %v4451_v32 = vadd.f32 %v5980_v56, %v5969_v7 }
 0x223   : > { %v3143_v16 = vmul.f32 0.7978846, %v3111_v25  ;;  %v3082_v63 = vmul.f32 %v3050_v10, %v6026_v33  ;;  %v3019_v51 = vmul.f32 0.044715, %v6055_v14  ;;  %v3109_v19 = vadd.f32 %v3077_v21, %v6024_v50 }
 0x224   : > { %4943 = vtanh.f32 %v3140_v47  ;;  %v6069_v12 = vpop.f32.mrf.mxu0  ;;  %v4545_v29 = vpop.f32.mrf.mxu1  ;;  %v3048_v62 = vmul.f32 %v3016_v18, %v6052_v42  ;;  %v6076_v34 = vmul.f32 0.5, %v5995_v20  ;;  %v6081_v55 = vadd.f32 %v2884_v28, %v5973_v40 }
 0x225   : > { %4945 = vtanh.f32 %v3143_v16  ;;  %v3114_v59 = vadd.f32 %v3082_v63, %v6026_v33  ;;  %v3051_v30 = vmul.f32 %v3019_v51, %v6055_v14  ;;  %v6086_v7 = vmul.f32 0.5, %v6003_v13 }
 0x226   : > { %v4934_v43 = vpop.eup %4933  ;;  %v6083_v41 = vpop.f32.mrf.mxu0  ;;  %v3141_v56 = vmul.f32 0.7978846, %v3109_v19  ;;  %v3080_v37 = vmul.f32 %v3048_v62, %v6052_v42  ;;  %v6090_v20 = vadd.f32 %v4545_v29, %v5991_v38  ;;  %v6094_v0 = vadd.f32 %v6009_v23, %v5997_v57 }
 0x227   : > { %v2897_v15 = vpop.f32.mrf.mxu1  ;;  %v3146_v40 = vmul.f32 0.7978846, %v3114_v59  ;;  %v3083_v1 = vmul.f32 %v3051_v30, %v6055_v14  ;;  %v3017_v46 = vmul.f32 0.044715, %v6081_v55  ;;  %v3202_v11 = vadd.f32 1.0, %v4934_v43 }
 0x228   : > { %v4936_v36 = vpop.eup %4935  ;;  %v6098_v31 = vpop.f32.mrf.mxu0  ;;  %4947 = vtanh.f32 %v3141_v56  ;;  %v3112_v58 = vadd.f32 %v3080_v37, %v6052_v42  ;;  %v2761_v38 = vadd.f32 %v4451_v32, %v6381_v52  ;;  %v6104_v25 = vmul.f32 0.5, %v6024_v50 }
 0x229   : > { %v4546_v13 = vpop.f32.mrf.mxu1  ;;  %4949 = vtanh.f32 %v3146_v40  ;;  %v3115_v57 = vadd.f32 %v3083_v1, %v6055_v14  ;;  %v3049_v23 = vmul.f32 %v3017_v46, %v6081_v55  ;;  %v3200_v10 = vadd.f32 1.0, %v4936_v36 }
 0x22a   : > { %v4938_v54 = vpop.eup %4937  ;;  %v6108_v35 = vpop.f32.mrf.mxu0  ;;  %v3144_v16 = vmul.f32 0.7978846, %v3112_v58  ;;  %v3022_v21 = vmul.f32 0.044715, %v6090_v20  ;;  %v6113_v63 = vadd.f32 %v2897_v15, %v5984_v22  ;;  %v6116_v50 = vadd.f32 %v4546_v13, %v6000_v2 }
 0x22b   : > { %v2900_v47 = vpop.f32.mrf.mxu1  ;;  %v3203_v28 = vadd.f32 1.0, %v4938_v54  ;;  %v3147_v18 = vmul.f32 0.7978846, %v3115_v57  ;;  %v3081_v4 = vmul.f32 %v3049_v23, %v6081_v55  ;;  %v3234_v19 = vmul.f32 %v3202_v11, %v6012_v44 }
 0x22c   : > { %v6118_v51 = vpop.f32.mrf.mxu0  ;;  %4951 = vtanh.f32 %v3144_v16  ;;  %v3054_v43 = vmul.f32 %v3022_v21, %v6090_v20  ;;  %v6129_v2 = vmul.f32 0.5, %v6026_v33  ;;  %v3232_v15 = vmul.f32 %v3200_v10, %v6015_v61 }
 0x22d   : > { %v4549_v29 = vpop.f32.mrf.mxu1  ;;  %v4940_v32 = vpop.eup %4939  ;;  %v3235_v62 = vmul.f32 %v3203_v28, %v6036_v24  ;;  %4953 = vtanh.f32 %v3147_v18  ;;  %v3113_v59 = vadd.f32 %v3081_v4, %v6081_v55  ;;  %v3020_v36 = vmul.f32 0.044715, %v6113_v63 }
 0x22e   : > { %v3201_v22 = vadd.f32 1.0, %v4940_v32  ;;  %v6132_v30 = vpop.f32.mrf.mxu0  ;;  %v3086_v37 = vmul.f32 %v3054_v43, %v6090_v20  ;;  %v3023_v46 = vmul.f32 0.044715, %v6116_v50  ;;  %v6146_v61 = vadd.f32 %v6030_v26, %v6020_v5 }
 0x22f   : > { %v2913_v44 = vpop.f32.mrf.mxu1  ;;  %v4942_v24 = vpop.eup %4941  ;;  %v3844_v56 = vpack.c.bf16 %v3235_v62, %v3234_v19  ;;  %v3145_v33 = vmul.f32 0.7978846, %v3113_v59  ;;  %v3052_v54 = vmul.f32 %v3020_v36, %v6113_v63  ;;  %v6154_v10 = vmul.f32 0.5, %v6052_v42 }
 0x230   : > { %v3233_v40 = vmul.f32 %v3201_v22, %v6047_v17  ;;  %v3206_v1 = vadd.f32 1.0, %v4942_v24  ;;  %v6139_v13 = vpop.f32.mrf.mxu0  ;;  %v3118_v52 = vadd.f32 %v3086_v37, %v6090_v20  ;;  %v6151_v17 = vadd.f32 %v2900_v47, %v5987_v60 }
 0x231   : > { %v6141_v11 = vpop.f32.mrf.mxu1  ;;  %v4944_v58 = vpop.eup %4943  ;;  %3916 = vst [vmem:[%s6126_s29 + $0x8] sm:$0xff] %v3844_v56   ;;  %4955 = vtanh.f32 %v3145_v33  ;;  %v6156_v28 = vadd.f32 %v4549_v29, %v2761_v38  ;;  %v3084_v18 = vmul.f32 %v3052_v54, %v6113_v63  ;;  %v3055_v4 = vmul.f32 %v3023_v46, %v6116_v50 }
 0x232   : > { %v4946_v57 = vpop.eup %4945  ;;  %v3839_v23 = vpack.c.bf16 %v3233_v40, %v3232_v15  ;;  %v6158_v16 = vpop.f32.mrf.mxu0  ;;  %v3150_v26 = vmul.f32 0.7978846, %v3118_v52  ;;  %v3238_v60 = vmul.f32 %v3206_v1, %v6065_v9  ;;  %v3204_v47 = vadd.f32 1.0, %v4944_v58 }
 0x233   : > { %v2916_v21 = vpop.f32.mrf.mxu1  ;;  %v3207_v5 = vadd.f32 1.0, %v4946_v57  ;;  %v2987_v32 = vmul.f32 0.5, %v6055_v14  ;;  %v3021_v42 = vmul.f32 0.044715, %v6151_v17  ;;  %v3116_v62 = vadd.f32 %v3084_v18, %v6113_v63 }
 0x234   : > { %3840 = vst [vmem:[%s6126_s29] sm:$0xff] %v3839_v23   ;;  %v6166_v19 = vpop.f32.mrf.mxu0  ;;  %4957 = vtanh.f32 %v3150_v26  ;;  %v3087_v43 = vmul.f32 %v3055_v4, %v6116_v50  ;;  %v6175_v9 = vadd.f32 %v6057_v8, %v6044_v48  ;;  %v3026_v59 = vmul.f32 0.044715, %v6156_v28 }
 0x235   : > { %v6168_v38 = vpop.f32.mrf.mxu1  ;;  %v3239_v29 = vmul.f32 %v3207_v5, %v6086_v7  ;;  %v4948_v22 = vpop.eup %4947  ;;  %v3053_v14 = vmul.f32 %v3021_v42, %v6151_v17  ;;  %v6180_v24 = vadd.f32 %v2913_v44, %v6033_v6  ;;  %v3148_v40 = vmul.f32 0.7978846, %v3116_v62 }
 0x236   : > { %v6182_v15 = vpop.f32.mrf.mxu0  ;;  %v4950_v56 = vpop.eup %4949  ;;  %v3205_v36 = vadd.f32 1.0, %v4948_v22  ;;  %v3119_v1 = vadd.f32 %v3087_v43, %v6116_v50  ;;  %v3236_v48 = vmul.f32 %v3204_v47, %v6076_v34  ;;  %v4463_v8 = vadd.f32 %v6083_v41, %v6069_v12  ;;  %v6382_v41 = vld [vmem:[#allocation4_spill] sm:$0xff] }
 0x237   : > { %v6184_v7 = vpop.f32.mrf.mxu1  ;;  %v3854_v37 = vpack.c.bf16 %v3239_v29, %v3238_v60  ;;  %v3085_v33 = vmul.f32 %v3053_v14, %v6151_v17  ;;  %v3058_v6 = vmul.f32 %v3026_v59, %v6156_v28  ;;  %4959 = vtanh.f32 %v3148_v40 }
 0x238   : > { %v6192_v44 = vpop.f32.mrf.mxu0  ;;  %v3237_v46 = vmul.f32 %v3205_v36, %v6104_v25  ;;  %v3151_v58 = vmul.f32 0.7978846, %v3119_v1  ;;  %v3024_v52 = vmul.f32 0.044715, %v6180_v24  ;;  %v3210_v57 = vadd.f32 1.0, %v4950_v56 }
 0x239   : > { %3918 = vst [vmem:[%s6126_s29 + $0x18] sm:$0xff] %v3854_v37   ;;  %v4952_v54 = vpop.eup %4951  ;;  %v3117_v34 = vadd.f32 %v3085_v33, %v6151_v17  ;;  %v3090_v12 = vmul.f32 %v3058_v6, %v6156_v28  ;;  %v2764_v23 = vadd.f32 %v6094_v0, %v6382_v41  ;;  %v4554_v5 = vpop.f32.mrf.mxu1  ;;  %v2985_v0 = vmul.f32 0.5, %v6081_v55 }
 0x23a   : > { %v6201_v26 = vpop.f32.mrf.mxu0  ;;  %v4954_v18 = vpop.eup %4953  ;;  %v3849_v4 = vpack.c.bf16 %v3237_v46, %v3236_v48  ;;  %v3208_v25 = vadd.f32 1.0, %v4952_v54  ;;  %4961 = vtanh.f32 %v3151_v58  ;;  %v3056_v60 = vmul.f32 %v3024_v52, %v6180_v24  ;;  %v6383_v48 = vld [vmem:[#allocation7_spill] sm:$0xff] }
 0x23b   : > { %v3211_v47 = vadd.f32 1.0, %v4954_v18  ;;  %v3149_v42 = vmul.f32 0.7978846, %v3117_v34  ;;  %v3122_v29 = vadd.f32 %v3090_v12, %v6156_v28  ;;  %v6206_v62 = vadd.f32 %v6141_v11, %v2764_v23  ;;  %v6219_v11 = vpop.f32.mrf.mxu1 }
 0x23c   : > { %v6208_v43 = vpop.f32.mrf.mxu0  ;;  %3917 = vst [vmem:[%s6126_s29 + $0x10] sm:$0xff] %v3849_v4   ;;  %v4466_v22 = vadd.f32 %v6108_v35, %v6098_v31  ;;  %v3088_v14 = vmul.f32 %v3056_v60, %v6180_v24  ;;  %v6216_v59 = vadd.f32 %v2916_v21, %v6062_v49  ;;  %v3242_v56 = vmul.f32 %v3210_v57, %v6129_v2  ;;  %v6384_v57 = vld [vmem:[#allocation5_spill] sm:$0xff] }
 0x23d   : > { %v3243_v37 = vmul.f32 %v3211_v47, %v2987_v32  ;;  %4963 = vtanh.f32 %v3149_v42  ;;  %v3154_v36 = vmul.f32 0.7978846, %v3122_v29  ;;  %v2990_v55 = vmul.f32 0.5, %v6090_v20  ;;  %v4557_v41 = vpop.f32.mrf.mxu1 }
 0x23e   : > { %v6221_v40 = vpop.f32.mrf.mxu0  ;;  %v4956_v1 = vpop.eup %4955  ;;  %v3120_v31 = vadd.f32 %v3088_v14, %v6180_v24  ;;  %v3027_v35 = vmul.f32 0.044715, %v6206_v62  ;;  %v3025_v49 = vmul.f32 0.044715, %v6216_v59  ;;  %v3240_v21 = vmul.f32 %v3208_v25, %v6154_v10  ;;  %v6385_v10 = vld [vmem:[#allocation8_spill] sm:$0xff] }
 0x23f   : > { %v3864_v2 = vpack.c.bf16 %v3243_v37, %v3242_v56  ;;  %v3209_v32 = vadd.f32 1.0, %v4956_v1  ;;  %v2777_v33 = vadd.f32 %v4463_v8, %v6383_v48  ;;  %4965 = vtanh.f32 %v3154_v36  ;;  %v2945_v37 = vpop.f32.mrf.mxu1  ;;  %v6387_v48 = vld [vmem:[#allocation11_spill] sm:$0xff] }
 0x240   : > { %v3152_v6 = vmul.f32 0.7978846, %v3120_v31  ;;  %v3059_v46 = vmul.f32 %v3027_v35, %v6206_v62  ;;  %v3057_v58 = vmul.f32 %v3025_v49, %v6216_v59  ;;  %v2769_v34 = vadd.f32 %v6146_v61, %v6384_v57  ;;  %v6238_v8 = vpop.f32.mrf.mxu0 }
 0x241   : > { %v4958_v52 = vpop.eup %4957  ;;  %3920 = vst [vmem:[%s6126_s29 + $0x28] sm:$0xff] %v3864_v2   ;;  %v3241_v20 = vmul.f32 %v3209_v32, %v2985_v0  ;;  %v6233_v54 = vadd.f32 %v6168_v38, %v2777_v33  ;;  %v2780_v12 = vadd.f32 %v4466_v22, %v6385_v10  ;;  %v2988_v60 = vmul.f32 0.5, %v6113_v63  ;;  %v6386_v2 = vld [vmem:[#allocation6_spill] sm:$0xff] }
 0x242   : > { %v3214_v23 = vadd.f32 1.0, %v4958_v52  ;;  %4967 = vtanh.f32 %v3152_v6  ;;  %v3091_v18 = vmul.f32 %v3059_v46, %v6206_v62  ;;  %v3089_v4 = vmul.f32 %v3057_v58, %v6216_v59  ;;  %v6258_v36 = vpop.f32.mrf.mxu0  ;;  %v4558_v6 = vpop.f32.mrf.mxu1 }
 0x243   : > { %v3859_v25 = vpack.c.bf16 %v3241_v20, %v3240_v21  ;;  %v3030_v38 = vmul.f32 0.044715, %v6233_v54  ;;  %v6245_v47 = vadd.f32 %v6184_v7, %v2769_v34  ;;  %v4475_v29 = vadd.f32 %v6182_v15, %v6166_v19 }
 0x244   : > { %v3123_v61 = vadd.f32 %v3091_v18, %v6206_v62  ;;  %v3121_v42 = vadd.f32 %v3089_v4, %v6216_v59  ;;  %v6251_v0 = vadd.f32 %v4554_v5, %v2780_v12  ;;  %v4960_v22 = vpop.eup %4959  ;;  %v2991_v14 = vmul.f32 0.5, %v6116_v50  ;;  %v4485_v46 = vpop.f32.mrf.mxu0 }
 0x245   : > { %3919 = vst [vmem:[%s6126_s29 + $0x20] sm:$0xff] %v3859_v25   ;;  %v2989_v63 = vmul.f32 0.5, %v6151_v17  ;;  %v3062_v56 = vmul.f32 %v3030_v38, %v6233_v54  ;;  %v3028_v7 = vmul.f32 0.044715, %v6245_v47  ;;  %v3246_v1 = vmul.f32 %v3214_v23, %v2990_v55 }
 0x246   : > { %v4469_v31 = vadd.f32 %v6132_v30, %v6118_v51  ;;  %v3155_v19 = vmul.f32 0.7978846, %v3123_v61  ;;  %v3153_v15 = vmul.f32 0.7978846, %v3121_v42  ;;  %v3212_v35 = vadd.f32 1.0, %v4960_v22  ;;  %v2948_v61 = vpop.f32.mrf.mxu1  ;;  %v4486_v42 = vpop.f32.mrf.mxu0 }
 0x247   : > { %v4962_v5 = vpop.eup %4961  ;;  %v3094_v49 = vmul.f32 %v3062_v56, %v6233_v54  ;;  %v3060_v50 = vmul.f32 %v3028_v7, %v6245_v47  ;;  %v3031_v17 = vmul.f32 0.044715, %v6251_v0  ;;  %v2772_v32 = vadd.f32 %v6175_v9, %v6386_v2 }
 0x248   : > { %v3215_v21 = vadd.f32 1.0, %v4962_v5  ;;  %4969 = vtanh.f32 %v3155_v19  ;;  %v2793_v55 = vadd.f32 %v4475_v29, %v6387_v48  ;;  %v4478_v20 = vadd.f32 %v6201_v26, %v6192_v44 }
 0x249   : > { %4971 = vtanh.f32 %v3153_v15  ;;  %v3126_v51 = vadd.f32 %v3094_v49, %v6233_v54  ;;  %v3092_v30 = vmul.f32 %v3060_v50, %v6245_v47  ;;  %v3063_v33 = vmul.f32 %v3031_v17, %v6251_v0  ;;  %v4561_v50 = vpop.f32.mrf.mxu1  ;;  %v4488_v17 = vpop.f32.mrf.mxu0 }
 0x24a   : > { %v4964_v58 = vpop.eup %4963  ;;  %v3247_v52 = vmul.f32 %v3215_v21, %v2991_v14  ;;  %v6274_v57 = vadd.f32 %v6219_v11, %v2772_v32  ;;  %v6276_v9 = vadd.f32 %v4557_v41, %v2793_v55  ;;  %v2994_v4 = vmul.f32 0.5, %v6156_v28 }
 0x24b   : > { %v3213_v34 = vadd.f32 1.0, %v4964_v58  ;;  %v3158_v10 = vmul.f32 0.7978846, %v3126_v51  ;;  %v3124_v12 = vadd.f32 %v3092_v30, %v6245_v47  ;;  %v3095_v23 = vmul.f32 %v3063_v33, %v6251_v0 }
 0x24c   : > { %v3874_v18 = vpack.c.bf16 %v3247_v52, %v3246_v1  ;;  %v2992_v25 = vmul.f32 0.5, %v6180_v24  ;;  %v3029_v38 = vmul.f32 0.044715, %v6274_v57  ;;  %v4966_v44 = vpop.eup %4965  ;;  %v3244_v26 = vmul.f32 %v3212_v35, %v2988_v60 }
 0x24d   : > { %v3245_v11 = vmul.f32 %v3213_v34, %v2989_v63  ;;  %4973 = vtanh.f32 %v3158_v10  ;;  %v3156_v41 = vmul.f32 0.7978846, %v3124_v12  ;;  %v4472_v29 = vadd.f32 %v6158_v16, %v6139_v13  ;;  %v6388_v63 = vld [vmem:[#allocation9_spill] sm:$0xff]  ;;  %v4489_v34 = vpop.f32.mrf.mxu0 }
 0x24e   : > { %3922 = vst [vmem:[%s6126_s29 + $0x38] sm:$0xff] %v3874_v18   ;;  %v3127_v22 = vadd.f32 %v3095_v23, %v6251_v0  ;;  %v3061_v28 = vmul.f32 %v3029_v38, %v6274_v57  ;;  %v3034_v24 = vmul.f32 0.044715, %v6276_v9  ;;  %v4481_v60 = vadd.f32 %v6221_v40, %v6208_v43  ;;  %v6389_v40 = vld [vmem:[#allocation10_spill] sm:$0xff] }
 0x24f   : > { %v4968_v14 = vpop.eup %4967  ;;  %v3869_v56 = vpack.c.bf16 %v3245_v11, %v3244_v26  ;;  %v2785_v7 = vadd.f32 %v4469_v31, %v6388_v63  ;;  %v2796_v1 = vadd.f32 %v4478_v20, %v5910_v3  ;;  %v3218_v19 = vadd.f32 1.0, %v4966_v44 }
 0x250   : > { %v3159_v15 = vmul.f32 0.7978846, %v3127_v22  ;;  %v3093_v5 = vmul.f32 %v3061_v28, %v6274_v57  ;;  %v3066_v13 = vmul.f32 %v3034_v24, %v6276_v9  ;;  %v3216_v16 = vadd.f32 1.0, %v4968_v14 }
 0x251   : > { %3921 = vst [vmem:[%s6126_s29 + $0x30] sm:$0xff] %v3869_v56   ;;  %4975 = vtanh.f32 %v3156_v41  ;;  %v6296_v35 = vadd.f32 %v2945_v37, %v2785_v7  ;;  %v6298_v49 = vadd.f32 %v4558_v6, %v2796_v1  ;;  %v2788_v31 = vadd.f32 %v4472_v29, %v6389_v40 }
 0x252   : > { %4977 = vtanh.f32 %v3159_v15  ;;  %v3125_v43 = vadd.f32 %v3093_v5, %v6274_v57  ;;  %v3098_v3 = vmul.f32 %v3066_v13, %v6276_v9  ;;  %v2995_v21 = vmul.f32 0.5, %v6206_v62  ;;  %v2961_v62 = vpop.f32.mrf.mxu1 }
 0x253   : > { %v2993_v2 = vmul.f32 0.5, %v6216_v59  ;;  %v3032_v32 = vmul.f32 0.044715, %v6296_v35  ;;  %v3035_v37 = vmul.f32 0.044715, %v6298_v49  ;;  %v6308_v51 = vadd.f32 %v2948_v61, %v2788_v31 }
 0x254   : > { %v3157_v48 = vmul.f32 0.7978846, %v3125_v43  ;;  %v3130_v55 = vadd.f32 %v3098_v3, %v6276_v9  ;;  %v4487_v30 = vadd.f32 %v4486_v42, %v4485_v46  ;;  %v3250_v6 = vmul.f32 %v3218_v19, %v2994_v4 }
 0x255   : > { %v4970_v33 = vpop.eup %4969  ;;  %v3248_v58 = vmul.f32 %v3216_v16, %v2992_v25  ;;  %v3064_v52 = vmul.f32 %v3032_v32, %v6296_v35  ;;  %v3067_v20 = vmul.f32 %v3035_v37, %v6298_v49  ;;  %v2801_v23 = vadd.f32 %v4481_v60, %v5913_v53 }
 0x256   : > { %v4972_v59 = vpop.eup %4971  ;;  %v3219_v10 = vadd.f32 1.0, %v4970_v33  ;;  %4979 = vtanh.f32 %v3157_v48  ;;  %v3162_v12 = vmul.f32 0.7978846, %v3130_v55  ;;  %v3033_v4 = vmul.f32 0.044715, %v6308_v51 }
 0x257   : > { %v3217_v18 = vadd.f32 1.0, %v4972_v59  ;;  %v3096_v38 = vmul.f32 %v3064_v52, %v6296_v35  ;;  %v3099_v46 = vmul.f32 %v3067_v20, %v6298_v49  ;;  %v2809_v44 = vadd.f32 %v4487_v30, %v5923_v27  ;;  %v4562_v27 = vpop.f32.mrf.mxu1 }
 0x258   : > { %v3251_v25 = vmul.f32 %v3219_v10, %v2995_v21  ;;  %v6317_v26 = vadd.f32 %v2961_v62, %v2801_v23  ;;  %v4490_v11 = vadd.f32 %v4489_v34, %v4488_v17  ;;  %v3065_v53 = vmul.f32 %v3033_v4, %v6308_v51 }
 0x259   : > { %v3249_v41 = vmul.f32 %v3217_v18, %v2993_v2  ;;  %v3128_v61 = vadd.f32 %v3096_v38, %v6296_v35  ;;  %v3131_v42 = vadd.f32 %v3099_v46, %v6298_v49  ;;  %4981 = vtanh.f32 %v3162_v12 }
 0x25a   : > { %v4974_v29 = vpop.eup %4973  ;;  %v3884_v22 = vpack.c.bf16 %v3251_v25, %v3250_v6  ;;  %v6322_v28 = vadd.f32 %v4561_v50, %v2809_v44  ;;  %v3036_v24 = vmul.f32 0.044715, %v6317_v26  ;;  %v4484_v63 = vadd.f32 %v6258_v36, %v6238_v8  ;;  %v2964_v36 = vpop.f32.mrf.mxu1 }
 0x25b   : > { %v3879_v14 = vpack.c.bf16 %v3249_v41, %v3248_v58  ;;  %v3160_v56 = vmul.f32 0.7978846, %v3128_v61  ;;  %v3163_v60 = vmul.f32 0.7978846, %v3131_v42  ;;  %v3097_v7 = vmul.f32 %v3065_v53, %v6308_v51 }
 0x25c   : > { %3924 = vst [vmem:[%s6126_s29 + $0x48] sm:$0xff] %v3884_v22   ;;  %v3038_v1 = vmul.f32 0.044715, %v6322_v28  ;;  %v3068_v19 = vmul.f32 %v3036_v24, %v6317_v26  ;;  %v3222_v15 = vadd.f32 1.0, %v4974_v29  ;;  %v2812_v5 = vadd.f32 %v4490_v11, %v5940_v39 }
 0x25d   : > { %3923 = vst [vmem:[%s6126_s29 + $0x40] sm:$0xff] %v3879_v14   ;;  %4983 = vtanh.f32 %v3160_v56  ;;  %v3129_v16 = vadd.f32 %v3097_v7, %v6308_v51  ;;  %v2998_v43 = vmul.f32 0.5, %v6233_v54  ;;  %v2804_v40 = vadd.f32 %v4484_v63, %v5916_v45 }
 0x25e   : > { %v4976_v13 = vpop.eup %4975  ;;  %4985 = vtanh.f32 %v3163_v60  ;;  %v3070_v50 = vmul.f32 %v3038_v1, %v6322_v28  ;;  %v3100_v8 = vmul.f32 %v3068_v19, %v6317_v26  ;;  %v6337_v3 = vadd.f32 %v4562_v27, %v2812_v5 }
 0x25f   : > { %v4978_v17 = vpop.eup %4977  ;;  %v2999_v31 = vmul.f32 0.5, %v6251_v0  ;;  %v3161_v39 = vmul.f32 0.7978846, %v3129_v16  ;;  %v3254_v32 = vmul.f32 %v3222_v15, %v2998_v43  ;;  %v2965_v55 = vadd.f32 %v2964_v36, %v2804_v40 }
 0x260   : > { %v3223_v21 = vadd.f32 1.0, %v4978_v17  ;;  %v3102_v2 = vmul.f32 %v3070_v50, %v6322_v28  ;;  %v3132_v37 = vadd.f32 %v3100_v8, %v6317_v26  ;;  %v3039_v48 = vmul.f32 0.044715, %v6337_v3 }
 0x261   : > { %v3220_v30 = vadd.f32 1.0, %v4976_v13  ;;  %4987 = vtanh.f32 %v3161_v39  ;;  %v2996_v45 = vmul.f32 0.5, %v6245_v47  ;;  %v3037_v58 = vmul.f32 0.044715, %v2965_v55 }
 0x262   : > { %v3255_v33 = vmul.f32 %v3223_v21, %v2999_v31  ;;  %v3134_v54 = vadd.f32 %v3102_v2, %v6322_v28  ;;  %v3071_v0 = vmul.f32 %v3039_v48, %v6337_v3  ;;  %v2997_v20 = vmul.f32 0.5, %v6274_v57 }
 0x263   : > { %v4980_v6 = vpop.eup %4979  ;;  %v3164_v59 = vmul.f32 0.7978846, %v3132_v37  ;;  %v3069_v12 = vmul.f32 %v3037_v58, %v2965_v55  ;;  %v3252_v23 = vmul.f32 %v3220_v30, %v2996_v45  ;;  %v3002_v42 = vmul.f32 0.5, %v6276_v9 }
 0x264   : > { %v3894_v52 = vpack.c.bf16 %v3255_v33, %v3254_v32  ;;  %v3221_v62 = vadd.f32 1.0, %v4980_v6  ;;  %v3166_v34 = vmul.f32 0.7978846, %v3134_v54  ;;  %v3103_v10 = vmul.f32 %v3071_v0, %v6337_v3 }
 0x265   : > { %v3101_v46 = vmul.f32 %v3069_v12, %v2965_v55  ;;  %v3003_v53 = vmul.f32 0.5, %v6298_v49  ;;  %v3000_v56 = vmul.f32 0.5, %v6296_v35  ;;  %v3001_v63 = vmul.f32 0.5, %v6308_v51 }
 0x266   : > { %3926 = vst [vmem:[%s6126_s29 + $0x58] sm:$0xff] %v3894_v52   ;;  %v3253_v18 = vmul.f32 %v3221_v62, %v2997_v20  ;;  %v4982_v38 = vpop.eup %4981  ;;  %4989 = vtanh.f32 %v3166_v34  ;;  %v3135_v47 = vadd.f32 %v3103_v10, %v6337_v3  ;;  %v3006_v16 = vmul.f32 0.5, %v6322_v28 }
 0x267   : > { %4991 = vtanh.f32 %v3164_v59  ;;  %v3133_v44 = vadd.f32 %v3101_v46, %v2965_v55  ;;  %v3226_v11 = vadd.f32 1.0, %v4982_v38  ;;  %v3007_v35 = vmul.f32 0.5, %v6337_v3 }
 0x268   : > { %v3889_v4 = vpack.c.bf16 %v3253_v18, %v3252_v23  ;;  %v3167_v25 = vmul.f32 0.7978846, %v3135_v47  ;;  %v3004_v51 = vmul.f32 0.5, %v6317_v26  ;;  %v3005_v40 = vmul.f32 0.5, %v2965_v55 }
 0x269   : > { %v3165_v61 = vmul.f32 0.7978846, %v3133_v44  ;;  %v3258_v22 = vmul.f32 %v3226_v11, %v3002_v42 }
 0x26a   : > { %v4984_v57 = vpop.eup %4983  ;;  %3925 = vst [vmem:[%s6126_s29 + $0x50] sm:$0xff] %v3889_v4   ;;  %4993 = vtanh.f32 %v3167_v25 }
 0x26b   : > { %v4986_v41 = vpop.eup %4985  ;;  %4995 = vtanh.f32 %v3165_v61  ;;  %v3224_v24 = vadd.f32 1.0, %v4984_v57 }
 0x26c   : > { %v3227_v29 = vadd.f32 1.0, %v4986_v41 }
 0x26d   : > { %v3256_v1 = vmul.f32 %v3224_v24, %v3000_v56 }
 0x26e   : > { %v3259_v27 = vmul.f32 %v3227_v29, %v3003_v53  ;;  %v4988_v14 = vpop.eup %4987 }
 0x26f   : > { %v3225_v7 = vadd.f32 1.0, %v4988_v14 }
 0x270   : > { %v3904_v60 = vpack.c.bf16 %v3259_v27, %v3258_v22 }
 0x271   : > { %v3257_v19 = vmul.f32 %v3225_v7, %v3001_v63 }
 0x272   : > { %3928 = vst [vmem:[%s6126_s29 + $0x68] sm:$0xff] %v3904_v60  }
 0x273   : > { %v4990_v15 = vpop.eup %4989  ;;  %v3899_v9 = vpack.c.bf16 %v3257_v19, %v3256_v1 }
 0x274   : > { %v4992_v5 = vpop.eup %4991  ;;  %v3230_v49 = vadd.f32 1.0, %v4990_v15 }
 0x275   : > { %3927 = vst [vmem:[%s6126_s29 + $0x60] sm:$0xff] %v3899_v9   ;;  %v3228_v50 = vadd.f32 1.0, %v4992_v5 }
 0x276   : > { %v3262_v17 = vmul.f32 %v3230_v49, %v3006_v16 }
 0x277   : > { %v4994_v13 = vpop.eup %4993  ;;  %v3260_v21 = vmul.f32 %v3228_v50, %v3004_v51 }
 0x278   : > { %v3231_v8 = vadd.f32 1.0, %v4994_v13  ;;  %v4996_v36 = vpop.eup %4995 }
 0x279   : > { %v3229_v31 = vadd.f32 1.0, %v4996_v36 }
 0x27a   : > { %v3263_v43 = vmul.f32 %v3231_v8, %v3007_v35 }
 0x27b   : > { %v3261_v2 = vmul.f32 %v3229_v31, %v3005_v40 }
 0x27c   : > { %v3914_v39 = vpack.c.bf16 %v3263_v43, %v3262_v17 }
 0x27d   : > { %v3909_v32 = vpack.c.bf16 %v3261_v2, %v3260_v21 }
 0x27e   : > { %3930 = vst [vmem:[%s6126_s29 + $0x78] sm:$0xff] %v3914_v39  }
 0x27f   : > { %3929 = vst [vmem:[%s6126_s29 + $0x70] sm:$0xff] %v3909_v32  }
 0x280 PF: > { %s13_s12 = sadd.s32 1, %s5003_s12  }
 0x281   : > { %p10_p4 = scmp.ge.s32.totalorder %s13_s12, 4  }
 0x283   :  { %12 = sbr.rel (!%p10_p4) target bundleno = 1 (0x1), region = 62 }

// kernel: _lambda_.21
= control target key start
LH: loop header
LB: loop body
LE: loop exit
PB: predicated region body
PF: predicated region fallthrough
CT: control target
= control target key end

     0   :  { %s3576_s15 = smov 0   ;;  %s4653_s0 = inlined_call_operand.vmem [shape: bf16[512,864], index: 0, kind: input, shape index: {}]   ;;  %s4654_s1 = inlined_call_operand.vmem [shape: bf16[864,128], index: 1, kind: input, shape index: {}]   ;;  %s4655_s2 = inlined_call_operand.vmem [shape: f32[1,128], index: 2, kind: input, shape index: {}]   ;;  %s4656_s3 = inlined_call_operand.vmem [shape: bf16[512,128], index: 3, kind: input, shape index: {}]   ;;  %s4657_s4 = inlined_call_operand.vmem [shape: f32[512,128], index: 4, kind: output, shape index: {}]  }
   0x1 LB: > { %s2563_s16 = sadd.s32 4294967295, %s3549_s15   ;;  %p2567_p0 = scmp.ge.s32.totalorder %s3549_s15, 1  ;;  %s3549_s15 = sphi %s3576_s15, %s14_s15  }
   0x2   : > { %p175_p1 = scmp.lt.s32.totalorder %s3549_s15, 3 }
   0x4   : > { %p176_p2 = pnand %p2567_p0, %p175_p1 }
   0x6   : > { %179 = sbr.rel (%p176_p2) target bundleno = 529 (0x211), region = 36 }
   0xb   : > { %v3265_v0 = vld [vmem:[%s4654_s1 + $0x78] sm:$0xff]   ;;  %s2568_s19 = sshll.u32 %s2563_s16, 5  ;;  %v3267_v2 = vld [vmem:[%s4654_s1 + $0x70] sm:$0xff]   ;;  %v3269_v4 = vld [vmem:[%s4654_s1 + $0x68] sm:$0xff]   ;;  %vm1354_vm0 = vcmask 785408  }
   0xc   : > { %v3266_v1 = vld [vmem:[%s4654_s1 + $0x38] sm:$0xff]   ;;  %2838 = vmatprep.subr.bf16.mxu0 %v3265_v0  ;;  %3240 = vmatprep.subr.bf16.mxu1 %v3265_v0  ;;  %p208_p3 = scmp.lt.s32.totalorder %s2568_s19, 63  ;;  %v3268_v3 = vld [vmem:[%s4654_s1 + $0x30] sm:$0xff]   ;;  %v3270_v5 = vld [vmem:[%s4654_s1 + $0x28] sm:$0xff]  }
   0xd   : > { %2839 = vmatpush3.bf16.msra.mxu0 %v3266_v1  ;;  %3248 = vmatpush3.bf16.msra.mxu1 %v3266_v1  ;;  %v3271_v6 = vld [vmem:[%s4654_s1 + $0x60] sm:$0xff]   ;;  %v3273_v8 = vld [vmem:[%s4654_s1 + $0x58] sm:$0xff]   ;;  %v3275_v10 = vld [vmem:[%s4654_s1 + $0x50] sm:$0xff]  }
   0xe   : > { %2840 = vmatprep.subr.bf16.mxu0 %v3267_v2  ;;  %3241 = vmatprep.subr.bf16.mxu1 %v3267_v2  ;;  %s4717_s19 = smov (!%p208_p3, %s2568_s19), 63  ;;  %v3272_v7 = vld [vmem:[%s4654_s1 + $0x20] sm:$0xff]   ;;  %v3274_v9 = vld [vmem:[%s4654_s1 + $0x18] sm:$0xff]   ;;  %v3276_v13 = vld [vmem:[%s4654_s1 + $0x10] sm:$0xff]  }
   0xf   : > { %s3256_s6 = smul.u32 28, %s4717_s19  ;;  %v3277_v14 = vld [vmem:[%s4654_s1 + $0x48] sm:$0xff]   ;;  %v3279_v16 = vld [vmem:[%s4654_s1 + $0x40] sm:$0xff]   ;;  %v3287_v18 = vld [vmem:[%s4654_s1 + $0xf8] sm:$0xff]   ;;  %s2571_s12 = sshll.u32 %s4717_s19, 2 }
  0x10   : > { %v3278_v15 = vld [vmem:[%s4654_s1 + $0x8] sm:$0xff]   ;;  %v3280_v17 = vld [vmem:[%s4654_s1] sm:$0xff]   ;;  %v3288_v21 = vld [vmem:[%s4654_s1 + $0x178] sm:$0xff]   ;;  %s4089_s17 = scalar_lea.vmem %s4656_s3, %s2571_s12  ;;  %s2573_s18 = sshll.u32 %s4717_s19, 3 }
  0x11   : > { %2841 = vmatpush3.bf16.msra.mxu0 %v3268_v3  ;;  %3249 = vmatpush3.bf16.msra.mxu1 %v3268_v3  ;;  %s3617_s13 = scalar_lea.vmem %s4653_s0, %s3256_s6  ;;  %v3289_v22 = vld [vmem:[%s4654_s1 + $0xb8] sm:$0xff]   ;;  %v3291_v24 = vld [vmem:[%s4654_s1 + $0xf0] sm:$0xff]   ;;  %v3299_v32 = vld [vmem:[%s4654_s1 + $0xe8] sm:$0xff]   ;;  %s4322_s21 = scalar_lea.vmem %s4657_s4, %s2573_s18 }
  0x12   : > { %2842 = vmatprep.subr.bf16.mxu0 %v3269_v4  ;;  %3242 = vmatprep.subr.bf16.mxu1 %v3269_v4  ;;  %v3283_v11 = vld [vmem:[%s3617_s13 + $0x4] ss:$28 sps:$4 sm:$0xff]   ;;  %v3290_v23 = vld [vmem:[%s4654_s1 + $0x138] sm:$0xff]   ;;  %v3302_v27 = vld [vmem:[%s4654_s1 + $0x170] sm:$0xff]  }
  0x13   : > { %v3286_v12 = vld [vmem:[%s3617_s13 + $0x2a4] ss:$28 sps:$4 sm:$0xff]   ;;  %1435 = vmatprep.mubr.bf16.mxu0 %v3283_v11  ;;  %v3293_v25 = vld [vmem:[%s3617_s13 + $0x3c] ss:$28 sps:$4 sm:$0xff]   ;;  %v3292_v28 = vld [vmem:[%s4654_s1 + $0xb0] sm:$0xff]  }
  0x14   : > { %1531 = vmatprep.mubr.bf16.mxu1 %v3286_v12  ;;  %v3281_v19 = vld [vmem:[%s3617_s13] ss:$28 sps:$4 sm:$0xff]   ;;  %v3304_v29 = vld [vmem:[%s4654_s1 + $0x130] sm:$0xff]   ;;  %v3300_v33 = vld [vmem:[%s4654_s1 + $0xa8] sm:$0xff]  }
  0x15   : > { %2843 = vmatpush3.bf16.msra.mxu0 %v3270_v5  ;;  %3250 = vmatpush3.bf16.msra.mxu1 %v3270_v5  ;;  %v3284_v20 = vld [vmem:[%s3617_s13 + $0x2a0] ss:$28 sps:$4 sm:$0xff]   ;;  %v3297_v30 = vld [vmem:[%s3617_s13 + $0x38] ss:$28 sps:$4 sm:$0xff]   ;;  %v3309_v39 = vld [vmem:[%s3617_s13 + $0x70] ss:$28 sps:$4 sm:$0xff]  }
  0x16   : > { %2844 = vmatprep.subr.bf16.mxu0 %v3271_v6  ;;  %3243 = vmatprep.subr.bf16.mxu1 %v3271_v6  ;;  %v3295_v26 = vld [vmem:[%s3617_s13 + $0x2dc] ss:$28 sps:$4 sm:$0xff]   ;;  %v3301_v34 = vld [vmem:[%s4654_s1 + $0xe0] sm:$0xff]   ;;  %v3305_v35 = vld [vmem:[%s3617_s13 + $0x74] ss:$28 sps:$4 sm:$0xff]  }
  0x17   : > { %v3298_v31 = vld [vmem:[%s3617_s13 + $0x2d8] ss:$28 sps:$4 sm:$0xff]   ;;  %v3303_v37 = vld [vmem:[%s4654_s1 + $0xa0] sm:$0xff]   ;;  %v3310_v40 = vld [vmem:[%s3617_s13 + $0x310] ss:$28 sps:$4 sm:$0xff]  }
  0x18   : > { %v3307_v36 = vld [vmem:[%s3617_s13 + $0x314] ss:$28 sps:$4 sm:$0xff]   ;;  %v3311_v38 = vld [vmem:[%s4654_s1 + $0xd8] sm:$0xff]   ;;  %v3322_v41 = vld [vmem:[%s4654_s1 + $0x168] sm:$0xff]  }
  0x19   : > { %2845 = vmatpush3.bf16.msra.mxu0 %v3272_v7  ;;  %3251 = vmatpush3.bf16.msra.mxu1 %v3272_v7  ;;  %v3312_v42 = vld [vmem:[%s4654_s1 + $0x98] sm:$0xff]   ;;  %v3313_v43 = vld [vmem:[%s4654_s1 + $0xd0] sm:$0xff]   ;;  %v3324_v44 = vld [vmem:[%s4654_s1 + $0x128] sm:$0xff]  }
  0x1a   : > { %2846 = vmatprep.subr.bf16.mxu0 %v3273_v8  ;;  %3244 = vmatprep.subr.bf16.mxu1 %v3273_v8  ;;  %v3315_v45 = vld [vmem:[%s3617_s13 + $0xac] ss:$28 sps:$4 sm:$0xff]   ;;  %v3314_v47 = vld [vmem:[%s4654_s1 + $0x90] sm:$0xff]   ;;  %v3333_v51 = vld [vmem:[%s4654_s1 + $0x160] sm:$0xff]  }
  0x1b   : > { %v3317_v46 = vld [vmem:[%s3617_s13 + $0x34c] ss:$28 sps:$4 sm:$0xff]   ;;  %v3335_v53 = vld [vmem:[%s4654_s1 + $0x120] sm:$0xff]   ;;  %v3348_v60 = vld [vmem:[%s4654_s1 + $0x158] sm:$0xff]  }
  0x1c   : > { %v3321_v48 = vld [vmem:[%s4654_s1 + $0xc8] sm:$0xff]   ;;  %v3327_v54 = vld [vmem:[%s3617_s13 + $0xe4] ss:$28 sps:$4 sm:$0xff]   ;;  %v3349_v61 = vld [vmem:[%s4654_s1 + $0x118] sm:$0xff]  }
  0x1d   : > { %2847 = vmatpush3.bf16.msra.mxu0 %v3274_v9  ;;  %3252 = vmatpush3.bf16.msra.mxu1 %v3274_v9  ;;  %v3319_v49 = vld [vmem:[%s3617_s13 + $0xa8] ss:$28 sps:$4 sm:$0xff]   ;;  %v3332_v62 = vld [vmem:[%s3617_s13 + $0xe0] ss:$28 sps:$4 sm:$0xff]   ;;  %v3357_v2 = vld [vmem:[%s4654_s1 + $0x150] sm:$0xff]  }
  0x1e   : > { %2848 = vmatprep.subr.bf16.mxu0 %v3275_v10  ;;  %3245 = vmatprep.subr.bf16.mxu1 %v3275_v10  ;;  %v3320_v50 = vld [vmem:[%s3617_s13 + $0x348] ss:$28 sps:$4 sm:$0xff]   ;;  %v3336_v63 = vld [vmem:[%s3617_s13 + $0x11c] ss:$28 sps:$4 sm:$0xff]   ;;  %v3358_v3 = vld [vmem:[%s4654_s1 + $0x110] sm:$0xff]  }
  0x1f   : > { %v3323_v52 = vld [vmem:[%s4654_s1 + $0x88] sm:$0xff]   ;;  %v3325_v55 = vld [vmem:[%s4654_s1 + $0xc0] sm:$0xff]   ;;  %v3340_v4 = vld [vmem:[%s3617_s13 + $0x118] ss:$28 sps:$4 sm:$0xff]  }
  0x20   : > { %v3331_v56 = vld [vmem:[%s3617_s13 + $0xc] ss:$28 sps:$4 sm:$0xff]   ;;  %v3326_v57 = vld [vmem:[%s4654_s1 + $0x80] sm:$0xff]   ;;  %v3342_v6 = vld [vmem:[%s3617_s13 + $0x154] ss:$28 sps:$4 sm:$0xff]  }
  0x21   : > { %2849 = vmatpush3.bf16.msra.mxu0 %v3276_v13  ;;  %3253 = vmatpush3.bf16.msra.mxu1 %v3276_v13  ;;  %v3334_v58 = vld [vmem:[%s4654_s1 + $0x1a8] sm:$0xff]   ;;  %v3338_v0 = vld [vmem:[%s3617_s13 + $0x44] ss:$28 sps:$4 sm:$0xff]   ;;  %v3344_v7 = vld [vmem:[%s3617_s13 + $0x7c] ss:$28 sps:$4 sm:$0xff]  }
  0x22   : > { %2850 = vmatprep.subr.bf16.mxu0 %v3277_v14  ;;  %3246 = vmatprep.subr.bf16.mxu1 %v3277_v14  ;;  %v3329_v59 = vld [vmem:[%s3617_s13 + $0x8] ss:$28 sps:$4 sm:$0xff]   ;;  %v3341_v5 = vld [vmem:[%s3617_s13 + $0x40] ss:$28 sps:$4 sm:$0xff]   ;;  %v3346_v10 = vld [vmem:[%s3617_s13 + $0x150] ss:$28 sps:$4 sm:$0xff]  }
  0x23   : > { %v3356_v1 = vld [vmem:[%s4654_s1 + $0x1a0] sm:$0xff]   ;;  %v3371_v8 = vld [vmem:[%s4654_s1 + $0x148] sm:$0xff]   ;;  %v3347_v11 = vld [vmem:[%s3617_s13 + $0x78] ss:$28 sps:$4 sm:$0xff]  }
  0x24   : > { %v3372_v9 = vld [vmem:[%s4654_s1 + $0x108] sm:$0xff]   ;;  %v3377_v13 = vld [vmem:[%s4654_s1 + $0x198] sm:$0xff]   ;;  %v3352_v14 = vld [vmem:[%s3617_s13 + $0xb4] ss:$28 sps:$4 sm:$0xff]  }
  0x25   : > { %2851 = vmatpush3.bf16.msra.mxu0 %v3278_v15  ;;  %3254 = vmatpush3.bf16.msra.mxu1 %v3278_v15  ;;  %v3350_v12 = vld [vmem:[%s3617_s13 + $0x18c] ss:$28 sps:$4 sm:$0xff]   ;;  %v3380_v15 = vld [vmem:[%s4654_s1 + $0x140] sm:$0xff]  }
  0x26   : > { %2852 = vmatprep.subr.bf16.mxu0 %v3279_v16  ;;  %3247 = vmatprep.subr.bf16.mxu1 %v3279_v16  ;;  %v3381_v16 = vld [vmem:[%s4654_s1 + $0x100] sm:$0xff]  }
  0x29   : > { %2853 = vmatpush3.bf16.msra.mxu0 %v3280_v17  ;;  %3255 = vmatpush3.bf16.msra.mxu1 %v3280_v17  ;;  %v3354_v17 = vld [vmem:[%s3617_s13 + $0x188] ss:$28 sps:$4 sm:$0xff]  }
  0x2a   : > { %2950 = vmatprep.subr.bf16.mxu1 %v3287_v18  ;;  %3062 = vmatprep.subr.bf16.mxu0 %v3288_v21  ;;  %v3355_v18 = vld [vmem:[%s3617_s13 + $0xb0] ss:$28 sps:$4 sm:$0xff]  }
  0x2b   : > { %v3361_v21 = vld [vmem:[%s3617_s13 + $0xec] ss:$28 sps:$4 sm:$0xff]  }
  0x2c   : > { %1436 = vmatmul.mubr.bf16.vlgmr.msra.gmra.mxu0 %v3281_v19  ;;  %1532 = vmatmul.mubr.bf16.vlgmr.msra.gmra.mxu1 %v3284_v20  ;;  %v3359_v19 = vld [vmem:[%s3617_s13 + $0x1c4] ss:$28 sps:$4 sm:$0xff]   ;;  %v3394_v20 = vld [vmem:[%s4654_s1 + $0x190] sm:$0xff]  }
  0x2d   : > { %2951 = vmatpush3.bf16.msra.mxu1 %v3289_v22  ;;  %3063 = vmatpush3.bf16.msra.mxu0 %v3290_v23  ;;  %v3363_v22 = vld [vmem:[%s3617_s13 + $0x1c0] ss:$28 sps:$4 sm:$0xff]   ;;  %v3364_v23 = vld [vmem:[%s3617_s13 + $0xe8] ss:$28 sps:$4 sm:$0xff]  }
  0x2e   : > { %2952 = vmatprep.subr.bf16.mxu1 %v3291_v24  ;;  %1443 = vmatprep.mubr.bf16.mxu0 %v3293_v25  ;;  %v3365_v24 = vld [vmem:[%s3617_s13 + $0x1fc] ss:$28 sps:$4 sm:$0xff]   ;;  %v3367_v25 = vld [vmem:[%s3617_s13 + $0x124] ss:$28 sps:$4 sm:$0xff]  }
  0x2f   : > { %1539 = vmatprep.mubr.bf16.mxu1 %v3295_v26  ;;  %3064 = vmatprep.subr.bf16.mxu0 %v3302_v27  ;;  %v3413_v26 = vld [vmem:[%s4654_s1 + $0x188] sm:$0xff]   ;;  %v3369_v27 = vld [vmem:[%s3617_s13 + $0x1f8] ss:$28 sps:$4 sm:$0xff]  }
  0x31   : > { %2953 = vmatpush3.bf16.msra.mxu1 %v3292_v28  ;;  %3065 = vmatpush3.bf16.msra.mxu0 %v3304_v29  ;;  %v3370_v28 = vld [vmem:[%s3617_s13 + $0x120] ss:$28 sps:$4 sm:$0xff]   ;;  %v3373_v29 = vld [vmem:[%s3617_s13 + $0x234] ss:$28 sps:$4 sm:$0xff]  }
  0x32   : > { %2954 = vmatprep.subr.bf16.mxu1 %v3299_v32  ;;  %3066 = vmatprep.subr.bf16.mxu0 %v3322_v41  ;;  %v3378_v32 = vld [vmem:[%s3617_s13 + $0x230] ss:$28 sps:$4 sm:$0xff]   ;;  %v3393_v41 = vld [vmem:[%s3617_s13 + $0x1c8] ss:$28 sps:$4 sm:$0xff]  }
  0x34   : > { %1444 = vmatmul.mubr.bf16.gmra.mxu0 %v3297_v30  ;;  %1540 = vmatmul.mubr.bf16.gmra.mxu1 %v3298_v31  ;;  %v3375_v30 = vld [vmem:[%s3617_s13 + $0x15c] ss:$28 sps:$4 sm:$0xff]   ;;  %v3430_v31 = vld [vmem:[%s4654_s1 + $0x180] sm:$0xff]  }
  0x35   : > { %2955 = vmatpush3.bf16.msra.mxu1 %v3300_v33  ;;  %1451 = vmatprep.mubr.bf16.mxu0 %v3305_v35  ;;  %v3379_v33 = vld [vmem:[%s3617_s13 + $0x158] ss:$28 sps:$4 sm:$0xff]  }
  0x36   : > { %2956 = vmatprep.subr.bf16.mxu1 %v3301_v34  ;;  %1547 = vmatprep.mubr.bf16.mxu1 %v3307_v36  ;;  %v3382_v34 = vld [vmem:[%s3617_s13 + $0x26c] ss:$28 sps:$4 sm:$0xff]   ;;  %v3384_v35 = vld [vmem:[%s3617_s13 + $0x194] ss:$28 sps:$4 sm:$0xff]  }
  0x37   : > { %3067 = vmatpush3.bf16.msra.mxu0 %v3324_v44  ;;  %v3386_v36 = vld [vmem:[%s3617_s13 + $0x268] ss:$28 sps:$4 sm:$0xff]   ;;  %v3399_v44 = vld [vmem:[%s3617_s13 + $0x200] ss:$28 sps:$4 sm:$0xff]  }
  0x38   : > { %3068 = vmatprep.subr.bf16.mxu0 %v3333_v51  ;;  %v3409_v51 = vld [vmem:[%s3617_s13 + $0xbc] ss:$28 sps:$4 sm:$0xff]  }
  0x39   : > { %2957 = vmatpush3.bf16.msra.mxu1 %v3303_v37  ;;  %v3387_v37 = vld [vmem:[%s3617_s13 + $0x190] ss:$28 sps:$4 sm:$0xff]  }
  0x3a   : > { %2958 = vmatprep.subr.bf16.mxu1 %v3311_v38  ;;  %v3388_v38 = vld [vmem:[%s3617_s13 + $0x1cc] ss:$28 sps:$4 sm:$0xff]  }
  0x3b   : > { %3069 = vmatpush3.bf16.msra.mxu0 %v3335_v53  ;;  %v3412_v53 = vld [vmem:[%s3617_s13 + $0xb8] ss:$28 sps:$4 sm:$0xff]  }
  0x3c   : > { %1452 = vmatmul.mubr.bf16.gmra.mxu0 %v3309_v39  ;;  %1548 = vmatmul.mubr.bf16.gmra.mxu1 %v3310_v40  ;;  %v3392_v39 = vld [vmem:[%s3617_s13 + $0x14] ss:$28 sps:$4 sm:$0xff]  }
  0x3d   : > { %2959 = vmatpush3.bf16.msra.mxu1 %v3312_v42  ;;  %1459 = vmatprep.mubr.bf16.mxu0 %v3315_v45  ;;  %v3390_v40 = vld [vmem:[%s3617_s13 + $0x10] ss:$28 sps:$4 sm:$0xff]   ;;  %v3395_v42 = vld [vmem:[%s3617_s13 + $0x204] ss:$28 sps:$4 sm:$0xff]  }
  0x3e   : > { %2960 = vmatprep.subr.bf16.mxu1 %v3313_v43  ;;  %1555 = vmatprep.mubr.bf16.mxu1 %v3317_v46  ;;  %v3397_v43 = vld [vmem:[%s3617_s13 + $0x4c] ss:$28 sps:$4 sm:$0xff]   ;;  %v3401_v46 = vld [vmem:[%s3617_s13 + $0x23c] ss:$28 sps:$4 sm:$0xff]  }
  0x3f   : > { %3070 = vmatprep.subr.bf16.mxu0 %v3348_v60  ;;  %v3400_v45 = vld [vmem:[%s3617_s13 + $0x48] ss:$28 sps:$4 sm:$0xff]   ;;  %v3424_v60 = vld [vmem:[%s3617_s13 + $0x2e0] ss:$28 sps:$4 sm:$0xff]  }
  0x40   : > { %3071 = vmatpush3.bf16.msra.mxu0 %v3349_v61  ;;  %v3425_v61 = vld [vmem:[%s3617_s13 + $0x128] ss:$28 sps:$4 sm:$0xff]  }
  0x41   : > { %2961 = vmatpush3.bf16.msra.mxu1 %v3314_v47  ;;  %3072 = vmatprep.subr.bf16.mxu0 %v3357_v2  ;;  %v3403_v47 = vld [vmem:[%s3617_s13 + $0x84] ss:$28 sps:$4 sm:$0xff]   ;;  %v3433_v2 = vld [vmem:[%s3617_s13 + $0x354] ss:$28 sps:$4 sm:$0xff]  }
  0x42   : > { %2962 = vmatprep.subr.bf16.mxu1 %v3321_v48  ;;  %v3405_v48 = vld [vmem:[%s3617_s13 + $0x238] ss:$28 sps:$4 sm:$0xff]  }
  0x44   : > { %1460 = vmatmul.mubr.bf16.gmra.mxu0 %v3319_v49  ;;  %1556 = vmatmul.mubr.bf16.gmra.mxu1 %v3320_v50  ;;  %v3406_v49 = vld [vmem:[%s3617_s13 + $0x80] ss:$28 sps:$4 sm:$0xff]   ;;  %v3407_v50 = vld [vmem:[%s3617_s13 + $0x274] ss:$28 sps:$4 sm:$0xff]  }
  0x45   : > { %2963 = vmatpush3.bf16.msra.mxu1 %v3323_v52  ;;  %1467 = vmatprep.mubr.bf16.mxu0 %v3327_v54  ;;  %v3411_v52 = vld [vmem:[%s3617_s13 + $0x270] ss:$28 sps:$4 sm:$0xff]  }
  0x46   : > { %2964 = vmatprep.subr.bf16.mxu1 %v3325_v55  ;;  %1596 = vmatprep.mubr.bf16.mxu1 %v3331_v56  ;;  %v3414_v54 = vld [vmem:[%s3617_s13 + $0x2ac] ss:$28 sps:$4 sm:$0xff]   ;;  %v3416_v55 = vld [vmem:[%s3617_s13 + $0xf4] ss:$28 sps:$4 sm:$0xff]  }
  0x47   : > { %3073 = vmatpush3.bf16.msra.mxu0 %v3358_v3  ;;  %v3418_v56 = vld [vmem:[%s3617_s13 + $0x2a8] ss:$28 sps:$4 sm:$0xff]   ;;  %v3435_v3 = vld [vmem:[%s3617_s13 + $0x19c] ss:$28 sps:$4 sm:$0xff]  }
  0x48   : > { %3074 = vmatprep.subr.bf16.mxu0 %v3371_v8  ;;  %v3442_v8 = vld [vmem:[%s3617_s13 + $0x1d0] ss:$28 sps:$4 sm:$0xff]  }
  0x49   : > { %2965 = vmatpush3.bf16.msra.mxu1 %v3326_v57  ;;  %v3419_v57 = vld [vmem:[%s3617_s13 + $0xf0] ss:$28 sps:$4 sm:$0xff]  }
  0x4a   : > { %3196 = vmatprep.subr.bf16.mxu1 %v3334_v58 }
  0x4b   : > { %3075 = vmatpush3.bf16.msra.mxu0 %v3372_v9  ;;  %v3443_v9 = vld [vmem:[%s3617_s13 + $0x50] ss:$28 sps:$4 sm:$0xff]  }
  0x4c   : > { %1468 = vmatmul.mubr.bf16.gmra.mxu0 %v3332_v62  ;;  %1597 = vmatmul.mubr.bf16.vlgmr.msra.gmra.mxu1 %v3329_v59  ;;  %v3422_v59 = vld [vmem:[%s3617_s13 + $0x12c] ss:$28 sps:$4 sm:$0xff]   ;;  %v3426_v62 = vld [vmem:[%s3617_s13 + $0x31c] ss:$28 sps:$4 sm:$0xff]  }
  0x4d   : > { %3197 = vmatpush3.bf16.msra.mxu1 %v3334_v58  ;;  %1475 = vmatprep.mubr.bf16.mxu0 %v3336_v63  ;;  %v3420_v58 = vld [vmem:[%s3617_s13 + $0x2e4] ss:$28 sps:$4 sm:$0xff]  }
  0x4e   : > { %1604 = vmatprep.mubr.bf16.mxu1 %v3338_v0  ;;  %3198 = vmatprep.subr.bf16.mxu1 %v3356_v1  ;;  %v3428_v63 = vld [vmem:[%s3617_s13 + $0x164] ss:$28 sps:$4 sm:$0xff]   ;;  %v3431_v0 = vld [vmem:[%s3617_s13 + $0x318] ss:$28 sps:$4 sm:$0xff]  }
  0x4f   : > { %3076 = vmatprep.subr.bf16.mxu0 %v3380_v15  ;;  %v3451_v15 = vld [vmem:[%s3617_s13 + $0xf8] ss:$28 sps:$4 sm:$0xff]  }
  0x50   : > { %3077 = vmatpush3.bf16.msra.mxu0 %v3381_v16  ;;  %v3452_v16 = vld [vmem:[%s3617_s13 + $0x240] ss:$28 sps:$4 sm:$0xff]  }
  0x51   : > { %3199 = vmatpush3.bf16.msra.mxu1 %v3356_v1  ;;  %v3432_v1 = vld [vmem:[%s3617_s13 + $0x160] ss:$28 sps:$4 sm:$0xff]  }
  0x52   : > { %3200 = vmatprep.subr.bf16.mxu1 %v3377_v13 }
  0x54   : > { %1476 = vmatmul.mubr.bf16.gmra.mxu0 %v3340_v4  ;;  %1605 = vmatmul.mubr.bf16.gmra.mxu1 %v3341_v5  ;;  %v3437_v4 = vld [vmem:[%s3617_s13 + $0x350] ss:$28 sps:$4 sm:$0xff]   ;;  %v3438_v5 = vld [vmem:[%s3617_s13 + $0x198] ss:$28 sps:$4 sm:$0xff]  }
  0x55   : > { %1483 = vmatprep.mubr.bf16.mxu0 %v3342_v6  ;;  %1612 = vmatprep.mubr.bf16.mxu1 %v3344_v7  ;;  %v3439_v6 = vld [vmem:[%s3617_s13 + $0x1d4] ss:$28 sps:$4 sm:$0xff]  }
  0x56   : > { %3201 = vmatpush3.bf16.msra.mxu1 %v3377_v13  ;;  %v3441_v7 = vld [vmem:[%s3617_s13 + $0x18] ss:$28 sps:$4 sm:$0xff]   ;;  %v3448_v13 = vld [vmem:[%s3617_s13 + $0xc0] ss:$28 sps:$4 sm:$0xff]  }
  0x57   : > { %3202 = vmatprep.subr.bf16.mxu1 %v3394_v20 }
  0x5a   : > { %3203 = vmatpush3.bf16.msra.mxu1 %v3394_v20  ;;  %v3457_v20 = vld [vmem:[%s3617_s13 + $0x278] ss:$28 sps:$4 sm:$0xff]  }
  0x5b   : > { %3204 = vmatprep.subr.bf16.mxu1 %v3413_v26 }
  0x5c   : > { %1484 = vmatmul.mubr.bf16.gmra.mxu0 %v3346_v10  ;;  %1613 = vmatmul.mubr.bf16.gmra.mxu1 %v3347_v11  ;;  %v3444_v10 = vld [vmem:[%s3617_s13 + $0x20c] ss:$28 sps:$4 sm:$0xff]  }
  0x5d   : > { %1491 = vmatprep.mubr.bf16.mxu0 %v3350_v12  ;;  %1620 = vmatprep.mubr.bf16.mxu1 %v3352_v14  ;;  %v3446_v11 = vld [vmem:[%s3617_s13 + $0x88] ss:$28 sps:$4 sm:$0xff]  }
  0x5e   : > { %3205 = vmatpush3.bf16.msra.mxu1 %v3413_v26  ;;  %v3447_v12 = vld [vmem:[%s3617_s13 + $0x208] ss:$28 sps:$4 sm:$0xff]  }
  0x5f   : > { %3206 = vmatprep.subr.bf16.mxu1 %v3430_v31  ;;  %v3449_v14 = vld [vmem:[%s3617_s13 + $0x244] ss:$28 sps:$4 sm:$0xff]   ;;  %v3464_v26 = vld [vmem:[%s3617_s13 + $0x2ec] ss:$28 sps:$4 sm:$0xff]  }
  0x62   : > { %3207 = vmatpush3.bf16.msra.mxu1 %v3430_v31 }
  0x64   : > { %1492 = vmatmul.mubr.bf16.gmra.mxu0 %v3354_v17  ;;  %1621 = vmatmul.mubr.bf16.gmra.mxu1 %v3355_v18  ;;  %v3453_v17 = vld [vmem:[%s3617_s13 + $0x130] ss:$28 sps:$4 sm:$0xff]   ;;  %v3454_v18 = vld [vmem:[%s3617_s13 + $0x27c] ss:$28 sps:$4 sm:$0xff]  }
  0x65   : > { %1499 = vmatprep.mubr.bf16.mxu0 %v3359_v19  ;;  %1628 = vmatprep.mubr.bf16.mxu1 %v3361_v21  ;;  %v3456_v19 = vld [vmem:[%s3617_s13 + $0x168] ss:$28 sps:$4 sm:$0xff]   ;;  %v3458_v21 = vld [vmem:[%s3617_s13 + $0x1a0] ss:$28 sps:$4 sm:$0xff]  }
  0x6c   : > { %1500 = vmatmul.mubr.bf16.gmra.mxu0 %v3363_v22  ;;  %1629 = vmatmul.mubr.bf16.gmra.mxu1 %v3364_v23  ;;  %v3459_v22 = vld [vmem:[%s3617_s13 + $0x2b4] ss:$28 sps:$4 sm:$0xff]  }
  0x6d   : > { %1507 = vmatprep.mubr.bf16.mxu0 %v3365_v24  ;;  %1636 = vmatprep.mubr.bf16.mxu1 %v3367_v25  ;;  %v3461_v23 = vld [vmem:[%s3617_s13 + $0x1d8] ss:$28 sps:$4 sm:$0xff]   ;;  %v3462_v24 = vld [vmem:[%s3617_s13 + $0x2b0] ss:$28 sps:$4 sm:$0xff]  }
  0x6e   : > { %v3463_v25 = vld [vmem:[%s3617_s13 + $0x210] ss:$28 sps:$4 sm:$0xff]  }
  0x74   : > { %1508 = vmatmul.mubr.bf16.gmra.mxu0 %v3369_v27  ;;  %1637 = vmatmul.mubr.bf16.gmra.mxu1 %v3370_v28  ;;  %v3466_v27 = vld [vmem:[%s3617_s13 + $0x248] ss:$28 sps:$4 sm:$0xff]  }
  0x75   : > { %1515 = vmatprep.mubr.bf16.mxu0 %v3373_v29  ;;  %1644 = vmatprep.mubr.bf16.mxu1 %v3375_v30 }
  0x7c   : > { %1516 = vmatmul.mubr.bf16.gmra.mxu0 %v3378_v32  ;;  %1645 = vmatmul.mubr.bf16.gmra.mxu1 %v3379_v33 }
  0x7d   : > { %1523 = vmatprep.mubr.bf16.mxu0 %v3382_v34  ;;  %1652 = vmatprep.mubr.bf16.mxu1 %v3384_v35 }
  0x84   : > { %1524 = vmatmul.mubr.bf16.gmra.mxu0 %v3386_v36  ;;  %1653 = vmatmul.mubr.bf16.gmra.mxu1 %v3387_v37  ;;  %v3467_v36 = vld [vmem:[%s3617_s13 + $0x2e8] ss:$28 sps:$4 sm:$0xff]   ;;  %v3468_v37 = vld [vmem:[%s3617_s13 + $0x280] ss:$28 sps:$4 sm:$0xff]  }
  0x85   : > { %1660 = vmatprep.mubr.bf16.mxu1 %v3388_v38  ;;  %1757 = vmatprep.mubr.bf16.mxu0 %v3392_v39  ;;  %v3469_v38 = vld [vmem:[%s3617_s13 + $0x324] ss:$28 sps:$4 sm:$0xff]   ;;  %v3471_v39 = vld [vmem:[%s3617_s13 + $0x2b8] ss:$28 sps:$4 sm:$0xff]  }
  0x8c   : > { %1661 = vmatmul.mubr.bf16.gmra.mxu1 %v3393_v41  ;;  %1758 = vmatmul.mubr.bf16.vlgmr.msra.gmra.mxu0 %v3390_v40 }
  0x8d   : > { %1668 = vmatprep.mubr.bf16.mxu1 %v3395_v42  ;;  %1765 = vmatprep.mubr.bf16.mxu0 %v3397_v43 }
  0x94   : > { %1669 = vmatmul.mubr.bf16.gmra.mxu1 %v3399_v44  ;;  %1766 = vmatmul.mubr.bf16.gmra.mxu0 %v3400_v45 }
  0x95   : > { %1676 = vmatprep.mubr.bf16.mxu1 %v3401_v46  ;;  %1773 = vmatprep.mubr.bf16.mxu0 %v3403_v47 }
  0x9c   : > { %1677 = vmatmul.mubr.bf16.gmra.mxu1 %v3405_v48  ;;  %1774 = vmatmul.mubr.bf16.gmra.mxu0 %v3406_v49 }
  0x9d   : > { %1684 = vmatprep.mubr.bf16.mxu1 %v3407_v50  ;;  %1781 = vmatprep.mubr.bf16.mxu0 %v3409_v51 }
  0xa4   : > { %1685 = vmatmul.mubr.bf16.gmra.mxu1 %v3411_v52  ;;  %1782 = vmatmul.mubr.bf16.gmra.mxu0 %v3412_v53  ;;  %v3472_v52 = vld [vmem:[%s3617_s13 + $0x320] ss:$28 sps:$4 sm:$0xff]   ;;  %v3473_v53 = vld [vmem:[%s3617_s13 + $0x2f0] ss:$28 sps:$4 sm:$0xff]  }
  0xa5   : > { %1692 = vmatprep.mubr.bf16.mxu1 %v3414_v54  ;;  %1789 = vmatprep.mubr.bf16.mxu0 %v3416_v55  ;;  %v3474_v54 = vld [vmem:[%s3617_s13 + $0x35c] ss:$28 sps:$4 sm:$0xff]   ;;  %v3476_v55 = vld [vmem:[%s3617_s13 + $0x328] ss:$28 sps:$4 sm:$0xff]  }
  0xac   : > { %1693 = vmatmul.mubr.bf16.gmra.mxu1 %v3418_v56  ;;  %1790 = vmatmul.mubr.bf16.gmra.mxu0 %v3419_v57 }
  0xad   : > { %1700 = vmatprep.mubr.bf16.mxu1 %v3420_v58  ;;  %1797 = vmatprep.mubr.bf16.mxu0 %v3422_v59 }
  0xb4   : > { %1701 = vmatmul.mubr.bf16.gmra.mxu1 %v3424_v60  ;;  %1798 = vmatmul.mubr.bf16.gmra.mxu0 %v3425_v61 }
  0xb5   : > { %1708 = vmatprep.mubr.bf16.mxu1 %v3426_v62  ;;  %1805 = vmatprep.mubr.bf16.mxu0 %v3428_v63 }
  0xbc   : > { %1709 = vmatmul.mubr.bf16.gmra.mxu1 %v3431_v0  ;;  %1806 = vmatmul.mubr.bf16.gmra.mxu0 %v3432_v1 }
  0xbd   : > { %1716 = vmatprep.mubr.bf16.mxu1 %v3433_v2  ;;  %1813 = vmatprep.mubr.bf16.mxu0 %v3435_v3 }
  0xc4   : > { %1717 = vmatmul.mubr.bf16.gmra.mxu1 %v3437_v4  ;;  %1814 = vmatmul.mubr.bf16.gmra.mxu0 %v3438_v5  ;;  %v3477_v4 = vld [vmem:[%s3617_s13 + $0x358] ss:$28 sps:$4 sm:$0xff]   ;;  %v3478_v5 = vld [vmem:[%s3617_s13 + $0x360] ss:$28 sps:$4 sm:$0xff]  }
  0xc5   : > { %1821 = vmatprep.mubr.bf16.mxu0 %v3439_v6  ;;  %3208 = vmatprep.mubr.msk.bf16.mxu1 %vm1354_vm0, %v3441_v7 }
  0xcc   : > { %1822 = vmatmul.mubr.bf16.gmra.mxu0 %v3442_v8  ;;  %3209 = vmatmul.mubr.msk.bf16.vlgmr.msra.gmra.mxu1 %vm1354_vm0, %v3443_v9 }
  0xcd   : > { %1829 = vmatprep.mubr.bf16.mxu0 %v3444_v10  ;;  %3212 = vmatprep.mubr.msk.bf16.mxu1 %vm1354_vm0, %v3446_v11 }
  0xd4   : > { %1830 = vmatmul.mubr.bf16.gmra.mxu0 %v3447_v12  ;;  %3213 = vmatmul.mubr.msk.bf16.gmra.mxu1 %vm1354_vm0, %v3448_v13 }
  0xd5   : > { %1837 = vmatprep.mubr.bf16.mxu0 %v3449_v14  ;;  %3216 = vmatprep.mubr.msk.bf16.mxu1 %vm1354_vm0, %v3451_v15 }
  0xdc   : > { %1838 = vmatmul.mubr.bf16.gmra.mxu0 %v3452_v16  ;;  %3217 = vmatmul.mubr.msk.bf16.gmra.mxu1 %vm1354_vm0, %v3453_v17 }
  0xdd   : > { %1845 = vmatprep.mubr.bf16.mxu0 %v3454_v18  ;;  %3220 = vmatprep.mubr.msk.bf16.mxu1 %vm1354_vm0, %v3456_v19 }
  0xe4   : > { %1846 = vmatmul.mubr.bf16.gmra.mxu0 %v3457_v20  ;;  %3221 = vmatmul.mubr.msk.bf16.gmra.mxu1 %vm1354_vm0, %v3458_v21 }
  0xe5   : > { %1853 = vmatprep.mubr.bf16.mxu0 %v3459_v22  ;;  %3224 = vmatprep.mubr.msk.bf16.mxu1 %vm1354_vm0, %v3461_v23  ;;  %v3911_v22 = vld [vmem:[%s4655_s2] ss:$0 sm:$0xff] }
  0xec   : > { %v2854_v28 = vpop.f32.mrf.mxu0  ;;  %v2926_v29 = vpop.f32.mrf.mxu1  ;;  %1854 = vmatmul.mubr.bf16.gmra.mxu0 %v3462_v24  ;;  %3225 = vmatmul.mubr.msk.bf16.gmra.mxu1 %vm1354_vm0, %v3463_v25 }
  0xed   : > { %1861 = vmatprep.mubr.bf16.mxu0 %v3464_v26  ;;  %3228 = vmatprep.mubr.msk.bf16.mxu1 %vm1354_vm0, %v3466_v27 }
  0xee   : > { %v2855_v30 = vpop.f32.mrf.mxu0  ;;  %v2927_v31 = vpop.f32.mrf.mxu1 }
  0xef   : > { %v3867_v32 = vadd.f32 %v2855_v30, %v2854_v28  ;;  %v3869_v33 = vadd.f32 %v2927_v31, %v2926_v29 }
  0xf0   : > { %v2857_v34 = vpop.f32.mrf.mxu0  ;;  %v2929_v35 = vpop.f32.mrf.mxu1 }
  0xf1   : > { %v1438_v27 = vadd.f32 %v3867_v32, %v3911_v22 }
  0xf2   : > { %v2858_v40 = vpop.f32.mrf.mxu0  ;;  %v2930_v41 = vpop.f32.mrf.mxu1 }
  0xf3   : > { %v3875_v42 = vadd.f32 %v2858_v40, %v2857_v34  ;;  %v3877_v43 = vadd.f32 %v2930_v41, %v2929_v35 }
  0xf4   : > { %v2860_v44 = vpop.f32.mrf.mxu0  ;;  %v2932_v45 = vpop.f32.mrf.mxu1  ;;  %1862 = vmatmul.mubr.bf16.gmra.mxu0 %v3467_v36  ;;  %3229 = vmatmul.mubr.msk.bf16.gmra.mxu1 %vm1354_vm0, %v3468_v37 }
  0xf5   : > { %1869 = vmatprep.mubr.bf16.mxu0 %v3469_v38  ;;  %3232 = vmatprep.mubr.msk.bf16.mxu1 %vm1354_vm0, %v3471_v39  ;;  %v1441_v37 = vadd.f32 %v3875_v42, %v3911_v22 }
  0xf6   : > { %v2861_v46 = vpop.f32.mrf.mxu0  ;;  %v2933_v47 = vpop.f32.mrf.mxu1 }
  0xf7   : > { %v3881_v48 = vadd.f32 %v2861_v46, %v2860_v44  ;;  %v3883_v49 = vadd.f32 %v2933_v47, %v2932_v45 }
  0xf8   : > { %v2863_v50 = vpop.f32.mrf.mxu0  ;;  %v2935_v51 = vpop.f32.mrf.mxu1 }
  0xf9   : > { %v1446_v46 = vadd.f32 %v3881_v48, %v3911_v22 }
  0xfa   : > { %v2864_v56 = vpop.f32.mrf.mxu0  ;;  %v2936_v57 = vpop.f32.mrf.mxu1 }
  0xfb   : > { %v3889_v58 = vadd.f32 %v2864_v56, %v2863_v50  ;;  %v3891_v59 = vadd.f32 %v2936_v57, %v2935_v51 }
  0xfc   : > { %v2866_v60 = vpop.f32.mrf.mxu0  ;;  %v2938_v61 = vpop.f32.mrf.mxu1  ;;  %1870 = vmatmul.mubr.bf16.gmra.mxu0 %v3472_v52  ;;  %3233 = vmatmul.mubr.msk.bf16.gmra.mxu1 %vm1354_vm0, %v3473_v53 }
  0xfd   : > { %1877 = vmatprep.mubr.bf16.mxu0 %v3474_v54  ;;  %3236 = vmatprep.mubr.msk.bf16.mxu1 %vm1354_vm0, %v3476_v55  ;;  %v1449_v55 = vadd.f32 %v3889_v58, %v3911_v22 }
  0xfe   : > { %v2867_v62 = vpop.f32.mrf.mxu0  ;;  %v2939_v63 = vpop.f32.mrf.mxu1 }
  0xff   : > { %v2868_v0 = vadd.f32 %v2867_v62, %v2866_v60  ;;  %v3895_v1 = vadd.f32 %v2939_v63, %v2938_v61 }
 0x100   : > { %v2869_v2 = vpop.f32.mrf.mxu0  ;;  %v2941_v3 = vpop.f32.mrf.mxu1 }
 0x102   : > { %v2870_v6 = vpop.f32.mrf.mxu0  ;;  %v2942_v7 = vpop.f32.mrf.mxu1 }
 0x103   : > { %v2871_v8 = vadd.f32 %v2870_v6, %v2869_v2  ;;  %v3899_v9 = vadd.f32 %v2942_v7, %v2941_v3  ;;  %v1454_v2 = vadd.f32 %v2868_v0, %v3911_v22 }
 0x104   : > { %v2872_v10 = vpop.f32.mrf.mxu0  ;;  %v2944_v11 = vpop.f32.mrf.mxu1  ;;  %1878 = vmatmul.mubr.bf16.gmra.mxu0 %v3477_v4  ;;  %3237 = vmatmul.mubr.msk.bf16.gmra.mxu1 %vm1354_vm0, %v3478_v5 }
 0x106   : > { %v2873_v12 = vpop.f32.mrf.mxu0  ;;  %v2945_v13 = vpop.f32.mrf.mxu1 }
 0x107   : > { %v2874_v14 = vadd.f32 %v2873_v12, %v2872_v10  ;;  %v3902_v15 = vadd.f32 %v2945_v13, %v2944_v11  ;;  %v1457_v11 = vadd.f32 %v2871_v8, %v3911_v22 }
 0x108   : > { %v2875_v16 = vpop.f32.mrf.mxu0  ;;  %v2947_v17 = vpop.f32.mrf.mxu1 }
 0x10a   : > { %v2876_v18 = vpop.f32.mrf.mxu0  ;;  %v2948_v19 = vpop.f32.mrf.mxu1 }
 0x10b   : > { %v3904_v20 = vadd.f32 %v2876_v18, %v2875_v16  ;;  %v3906_v21 = vadd.f32 %v2948_v19, %v2947_v17 }
 0x10c   : > { %v2878_v23 = vpop.f32.mrf.mxu0  ;;  %v2966_v24 = vpop.f32.mrf.mxu1 }
 0x10e   : > { %v2879_v25 = vpop.f32.mrf.mxu0  ;;  %v2967_v26 = vpop.f32.mrf.mxu1 }
 0x10f   : > { %v3915_v28 = vadd.f32 %v2879_v25, %v2878_v23  ;;  %v2968_v29 = vadd.f32 %v2967_v26, %v2966_v24  ;;  %v1462_v23 = vadd.f32 %v2874_v14, %v3911_v22 }
 0x110   : > { %v2881_v30 = vpop.f32.mrf.mxu0  ;;  %v2969_v31 = vpop.f32.mrf.mxu1 }
 0x111   : > { %v3917_v34 = vadd.f32 %v2968_v29, %v1438_v27 }
 0x112   : > { %v2882_v35 = vpop.f32.mrf.mxu0  ;;  %v2970_v36 = vpop.f32.mrf.mxu1 }
 0x113   : > { %v3921_v38 = vadd.f32 %v2882_v35, %v2881_v30  ;;  %v2971_v39 = vadd.f32 %v2970_v36, %v2969_v31  ;;  %v1465_v31 = vadd.f32 %v3904_v20, %v3911_v22 }
 0x114   : > { %v2884_v40 = vpop.f32.mrf.mxu0  ;;  %v2972_v41 = vpop.f32.mrf.mxu1 }
 0x115   : > { %v3923_v44 = vadd.f32 %v2971_v39, %v1441_v37 }
 0x116   : > { %v2885_v32 = vpop.f32.mrf.mxu0  ;;  %v2973_v45 = vpop.f32.mrf.mxu1 }
 0x117   : > { %v3927_v47 = vadd.f32 %v2885_v32, %v2884_v40  ;;  %v2974_v50 = vadd.f32 %v2973_v45, %v2972_v41  ;;  %v1470_v32 = vadd.f32 %v3915_v28, %v3911_v22 }
 0x118   : > { %v2887_v51 = vpop.f32.mrf.mxu0  ;;  %v2975_v52 = vpop.f32.mrf.mxu1 }
 0x119   : > { %v3929_v53 = vadd.f32 %v2974_v50, %v1446_v46 }
 0x11a   : > { %v2888_v42 = vpop.f32.mrf.mxu0  ;;  %v2976_v54 = vpop.f32.mrf.mxu1 }
 0x11b   : > { %v3933_v56 = vadd.f32 %v2888_v42, %v2887_v51  ;;  %v2977_v57 = vadd.f32 %v2976_v54, %v2975_v52  ;;  %v1473_v54 = vadd.f32 %v3921_v38, %v3911_v22 }
 0x11c   : > { %v2890_v60 = vpop.f32.mrf.mxu0  ;;  %v2978_v61 = vpop.f32.mrf.mxu1 }
 0x11d   : > { %v3935_v62 = vadd.f32 %v2977_v57, %v1449_v55  ;;  %v1481_v38 = vadd.f32 %v3933_v56, %v3911_v22 }
 0x11e   : > { %v2891_v48 = vpop.f32.mrf.mxu0  ;;  %v2979_v63 = vpop.f32.mrf.mxu1 }
 0x11f   : > { %v3938_v3 = vadd.f32 %v2891_v48, %v2890_v60  ;;  %v2980_v4 = vadd.f32 %v2979_v63, %v2978_v61 }
 0x120   : > { %v2893_v5 = vpop.f32.mrf.mxu0  ;;  %v2981_v6 = vpop.f32.mrf.mxu1 }
 0x121   : > { %v3940_v7 = vadd.f32 %v2980_v4, %v1454_v2  ;;  %v1478_v2 = vadd.f32 %v3927_v47, %v3911_v22  ;;  %v1486_v47 = vadd.f32 %v3938_v3, %v3911_v22 }
 0x122   : > { %v2894_v10 = vpop.f32.mrf.mxu0  ;;  %v2982_v58 = vpop.f32.mrf.mxu1 }
 0x123   : > { %v3943_v12 = vadd.f32 %v2894_v10, %v2893_v5  ;;  %v2983_v13 = vadd.f32 %v2982_v58, %v2981_v6 }
 0x124   : > { %v2896_v16 = vpop.f32.mrf.mxu0  ;;  %v2984_v17 = vpop.f32.mrf.mxu1 }
 0x125   : > { %v3945_v18 = vadd.f32 %v2983_v13, %v1457_v11  ;;  %v1489_v56 = vadd.f32 %v3943_v12, %v3911_v22 }
 0x126   : > { %v2897_v19 = vpop.f32.mrf.mxu0  ;;  %v2985_v0 = vpop.f32.mrf.mxu1 }
 0x127   : > { %v3948_v24 = vadd.f32 %v2897_v19, %v2896_v16  ;;  %v2986_v25 = vadd.f32 %v2985_v0, %v2984_v17 }
 0x128   : > { %v2899_v26 = vpop.f32.mrf.mxu0  ;;  %v2987_v27 = vpop.f32.mrf.mxu1 }
 0x129   : > { %v3950_v29 = vadd.f32 %v2986_v25, %v1462_v23  ;;  %v1494_v3 = vadd.f32 %v3948_v24, %v3911_v22 }
 0x12a   : > { %v2900_v30 = vpop.f32.mrf.mxu0  ;;  %v2988_v8 = vpop.f32.mrf.mxu1 }
 0x12b   : > { %v3954_v35 = vadd.f32 %v2900_v30, %v2899_v26  ;;  %v2989_v36 = vadd.f32 %v2988_v8, %v2987_v27 }
 0x12c   : > { %v2902_v37 = vpop.f32.mrf.mxu0  ;;  %v2990_v39 = vpop.f32.mrf.mxu1 }
 0x12d   : > { %v3956_v40 = vadd.f32 %v2989_v36, %v1465_v31  ;;  %v1497_v12 = vadd.f32 %v3954_v35, %v3911_v22 }
 0x12e   : > { %v2903_v14 = vpop.f32.mrf.mxu0  ;;  %v2991_v41 = vpop.f32.mrf.mxu1 }
 0x12f   : > { %v3960_v45 = vadd.f32 %v2903_v14, %v2902_v37  ;;  %v2992_v46 = vadd.f32 %v2991_v41, %v2990_v39 }
 0x130   : > { %v2905_v50 = vpop.f32.mrf.mxu0  ;;  %v2993_v51 = vpop.f32.mrf.mxu1 }
 0x131   : > { %v3962_v52 = vadd.f32 %v2992_v46, %v1470_v32 }
 0x132   : > { %v2906_v20 = vpop.f32.mrf.mxu0  ;;  %v2994_v42 = vpop.f32.mrf.mxu1 }
 0x133   : > { %v2907_v55 = vadd.f32 %v2906_v20, %v2905_v50  ;;  %v2995_v57 = vadd.f32 %v2994_v42, %v2993_v51 }
 0x134   : > { %v2908_v60 = vpop.f32.mrf.mxu0  ;;  %v2996_v61 = vpop.f32.mrf.mxu1 }
 0x135   : > { %v3966_v48 = vadd.f32 %v2995_v57, %v1473_v54 }
 0x136   : > { %v2909_v63 = vpop.f32.mrf.mxu0  ;;  %v2997_v28 = vpop.f32.mrf.mxu1 }
 0x137   : > { %v2910_v4 = vadd.f32 %v2909_v63, %v2908_v60  ;;  %v2998_v5 = vadd.f32 %v2997_v28, %v2996_v61 }
 0x138   : > { %v2911_v6 = vpop.f32.mrf.mxu0  ;;  %v2999_v10 = vpop.f32.mrf.mxu1 }
 0x139   : > { %v3970_v58 = vadd.f32 %v2998_v5, %v1478_v2 }
 0x13a   : > { %v2912_v11 = vpop.f32.mrf.mxu0  ;;  %v3000_v13 = vpop.f32.mrf.mxu1 }
 0x13b   : > { %v2913_v16 = vadd.f32 %v2912_v11, %v2911_v6  ;;  %v3001_v17 = vadd.f32 %v3000_v13, %v2999_v10 }
 0x13c   : > { %v2914_v19 = vpop.f32.mrf.mxu0  ;;  %v3002_v0 = vpop.f32.mrf.mxu1 }
 0x13d   : > { %v3974_v23 = vadd.f32 %v3001_v17, %v1481_v38  ;;  %v1502_v38 = vadd.f32 %v3960_v45, %v3911_v22  ;;  %v1510_v45 = vadd.f32 %v2910_v4, %v3911_v22 }
 0x13e   : > { %v2915_v25 = vpop.f32.mrf.mxu0  ;;  %v3003_v26 = vpop.f32.mrf.mxu1 }
 0x13f   : > { %v2916_v27 = vadd.f32 %v2915_v25, %v2914_v19  ;;  %v3004_v30 = vadd.f32 %v3003_v26, %v3002_v0 }
 0x140   : > { %v2917_v8 = vpop.f32.mrf.mxu0  ;;  %v3005_v31 = vpop.f32.mrf.mxu1 }
 0x141   : > { %v3978_v36 = vadd.f32 %v3004_v30, %v1486_v47  ;;  %v1505_v47 = vadd.f32 %v2907_v55, %v3911_v22  ;;  %v1513_v55 = vadd.f32 %v2913_v16, %v3911_v22  ;;  %v1518_v4 = vadd.f32 %v2916_v27, %v3911_v22 }
 0x142   : > { %v2918_v37 = vpop.f32.mrf.mxu0  ;;  %v3006_v39 = vpop.f32.mrf.mxu1 }
 0x143   : > { %v2919_v14 = vadd.f32 %v2918_v37, %v2917_v8  ;;  %v3007_v41 = vadd.f32 %v3006_v39, %v3005_v31 }
 0x144   : > { %v2920_v32 = vpop.f32.mrf.mxu0  ;;  %v3008_v46 = vpop.f32.mrf.mxu1 }
 0x145   : > { %v3982_v50 = vadd.f32 %v3007_v41, %v1489_v56  ;;  %v1521_v16 = vadd.f32 %v2919_v14, %v3911_v22 }
 0x146   : > { %v2921_v51 = vpop.f32.mrf.mxu0  ;;  %v3009_v20 = vpop.f32.mrf.mxu1 }
 0x147   : > { %v2922_v42 = vadd.f32 %v2921_v51, %v2920_v32  ;;  %v3010_v54 = vadd.f32 %v3009_v20, %v3008_v46 }
 0x148   : > { %v2923_v57 = vpop.f32.mrf.mxu0  ;;  %v3011_v60 = vpop.f32.mrf.mxu1 }
 0x149   : > { %v3986_v61 = vadd.f32 %v3010_v54, %v1494_v3  ;;  %v1526_v27 = vadd.f32 %v2922_v42, %v3911_v22  ;;  %v1534_v42 = vadd.f32 %v3869_v33, %v3911_v22 }
 0x14a   : > { %v2924_v63 = vpop.f32.mrf.mxu0  ;;  %v3012_v28 = vpop.f32.mrf.mxu1 }
 0x14b   : > { %v2925_v2 = vadd.f32 %v2924_v63, %v2923_v57  ;;  %v3013_v5 = vadd.f32 %v3012_v28, %v3011_v60 }
 0x14c   : > { %v3014_v6 = vpop.f32.mrf.mxu1  ;;  %v3990_v10 = vpop.f32.mrf.mxu0 }
 0x14d   : > { %v3992_v11 = vadd.f32 %v3013_v5, %v1497_v12  ;;  %v1529_v14 = vadd.f32 %v2925_v2, %v3911_v22 }
 0x14e   : > { %v3015_v13 = vpop.f32.mrf.mxu1  ;;  %v3994_v24 = vpop.f32.mrf.mxu0 }
 0x14f   : > { %4662 = vst [vmem:[#allocation2_spill] sm:$0xff] %v3992_v11  ;;  %v3016_v17 = vadd.f32 %v3015_v13, %v3014_v6  ;;  %v4127_v11 = vld [vmem:[%s4089_s17 + $0x20] sm:$0xff]  }
 0x150   : > { %v3017_v19 = vpop.f32.mrf.mxu1  ;;  %v3998_v0 = vpop.f32.mrf.mxu0 }
 0x151   : > { %v4000_v25 = vadd.f32 %v3016_v17, %v1502_v38 }
 0x152   : > { %v3018_v35 = vpop.f32.mrf.mxu1  ;;  %v4002_v26 = vpop.f32.mrf.mxu0 }
 0x153   : > { %4663 = vst [vmem:[#allocation3_spill] sm:$0xff] %v4000_v25  ;;  %v3019_v30 = vadd.f32 %v3018_v35, %v3017_v19 }
 0x154   : > { %v3020_v8 = vpop.f32.mrf.mxu1  ;;  %v4005_v31 = vpop.f32.mrf.mxu0 }
 0x155   : > { %v4007_v37 = vadd.f32 %v3019_v30, %v1505_v47 }
 0x156   : > { %v3021_v39 = vpop.f32.mrf.mxu1  ;;  %v4009_v56 = vpop.f32.mrf.mxu0 }
 0x157   : > { %4664 = vst [vmem:[#allocation4_spill] sm:$0xff] %v4007_v37  ;;  %v3022_v41 = vadd.f32 %v3021_v39, %v3020_v8 }
 0x158   : > { %v3023_v32 = vpop.f32.mrf.mxu1  ;;  %v4012_v46 = vpop.f32.mrf.mxu0 }
 0x159   : > { %v4014_v51 = vadd.f32 %v3022_v41, %v1510_v45 }
 0x15a   : > { %v3024_v20 = vpop.f32.mrf.mxu1  ;;  %v4016_v3 = vpop.f32.mrf.mxu0 }
 0x15b   : > { %4665 = vst [vmem:[#allocation5_spill] sm:$0xff] %v4014_v51  ;;  %v3025_v54 = vadd.f32 %v3024_v20, %v3023_v32  ;;  %v3080_v51 = vadd.f32 %v3994_v24, %v3990_v10  ;;  %v3089_v24 = vadd.f32 %v4016_v3, %v4012_v46 }
 0x15c   : > { %v3026_v57 = vpop.f32.mrf.mxu1  ;;  %v4019_v60 = vpop.f32.mrf.mxu0 }
 0x15d   : > { %v4021_v63 = vadd.f32 %v3025_v54, %v1513_v55 }
 0x15e   : > { %v3027_v28 = vpop.f32.mrf.mxu1  ;;  %v4023_v12 = vpop.f32.mrf.mxu0 }
 0x15f   : > { %4666 = vst [vmem:[#allocation6_spill] sm:$0xff] %v4021_v63  ;;  %v3028_v5 = vadd.f32 %v3027_v28, %v3026_v57 }
 0x160   : > { %v3029_v6 = vpop.f32.mrf.mxu1  ;;  %v4026_v13 = vpop.f32.mrf.mxu0 }
 0x161   : > { %v4028_v38 = vadd.f32 %v3028_v5, %v1518_v4 }
 0x162   : > { %v3030_v17 = vpop.f32.mrf.mxu1  ;;  %v4030_v19 = vpop.f32.mrf.mxu0 }
 0x163   : > { %4667 = vst [vmem:[#allocation7_spill] sm:$0xff] %v4028_v38  ;;  %v3031_v35 = vadd.f32 %v3030_v17, %v3029_v6 }
 0x164   : > { %v3032_v47 = vpop.f32.mrf.mxu1  ;;  %v4033_v30 = vpop.f32.mrf.mxu0 }
 0x165   : > { %v4035_v8 = vadd.f32 %v3031_v35, %v1521_v16 }
 0x166   : > { %v3033_v39 = vpop.f32.mrf.mxu1  ;;  %v4037_v45 = vpop.f32.mrf.mxu0 }
 0x167   : > { %4668 = vst [vmem:[#allocation8_spill] sm:$0xff] %v4035_v8  ;;  %v3034_v41 = vadd.f32 %v3033_v39, %v3032_v47 }
 0x168   : > { %v3035_v32 = vpop.f32.mrf.mxu1  ;;  %v4040_v20 = vpop.f32.mrf.mxu0 }
 0x169   : > { %v4042_v55 = vadd.f32 %v3034_v41, %v1526_v27 }
 0x16a   : > { %v3036_v54 = vpop.f32.mrf.mxu1  ;;  %v4044_v57 = vpop.f32.mrf.mxu0 }
 0x16b   : > { %4669 = vst [vmem:[#allocation9_spill] sm:$0xff] %v4042_v55  ;;  %v3037_v28 = vadd.f32 %v3036_v54, %v3035_v32  ;;  %v1537_v32 = vadd.f32 %v3877_v43, %v3911_v22  ;;  %v4109_v55 = vld [vmem:[%s4089_s17 + $0x10] sm:$0xff]  }
 0x16c   : > { %v3038_v4 = vpop.f32.mrf.mxu1  ;;  %v4047_v5 = vpop.f32.mrf.mxu0  ;;  %4677 = vst [vmem:[#allocation17_spill] sm:$0xff] %v4109_v55  ;;  %v1760_v55 = vadd.f32 %v3080_v51, %v3917_v34  ;;  %v1771_v34 = vadd.f32 %v3089_v24, %v3935_v62 }
 0x16d   : > { %v4049_v6 = vadd.f32 %v3037_v28, %v1529_v14 }
 0x16e   : > { %v3039_v17 = vpop.f32.mrf.mxu1  ;;  %v4051_v16 = vpop.f32.mrf.mxu0 }
 0x16f   : > { %4670 = vst [vmem:[#allocation10_spill] sm:$0xff] %v4049_v6  ;;  %v3040_v35 = vadd.f32 %v3039_v17, %v3038_v4  ;;  %v1542_v17 = vadd.f32 %v3883_v49, %v3911_v22 }
 0x170   : > { %v3041_v47 = vpop.f32.mrf.mxu1  ;;  %v4055_v39 = vpop.f32.mrf.mxu0 }
 0x171   : > { %v4057_v27 = vadd.f32 %v3040_v35, %v1534_v42 }
 0x172   : > { %v3042_v41 = vpop.f32.mrf.mxu1  ;;  %v4059_v2 = vpop.f32.mrf.mxu0 }
 0x173   : > { %4671 = vst [vmem:[#allocation11_spill] sm:$0xff] %v4057_v27  ;;  %v3043_v54 = vadd.f32 %v3042_v41, %v3041_v47  ;;  %v1545_v47 = vadd.f32 %v3891_v59, %v3911_v22  ;;  %v1550_v59 = vadd.f32 %v3895_v1, %v3911_v22  ;;  %v1553_v1 = vadd.f32 %v3899_v9, %v3911_v22 }
 0x174   : > { %v3044_v14 = vpop.f32.mrf.mxu1  ;;  %v4063_v28 = vpop.f32.mrf.mxu0  ;;  %v3083_v9 = vadd.f32 %v4002_v26, %v3998_v0  ;;  %v3092_v0 = vadd.f32 %v4023_v12, %v4019_v60  ;;  %v3098_v60 = vadd.f32 %v4037_v45, %v4033_v30  ;;  %v3101_v30 = vadd.f32 %v4044_v57, %v4040_v20 }
 0x175   : > { %v4065_v8 = vadd.f32 %v3043_v54, %v1537_v32  ;;  %v3104_v20 = vadd.f32 %v4051_v16, %v4047_v5  ;;  %v3107_v62 = vadd.f32 %v4059_v2, %v4055_v39 }
 0x176   : > { %v3045_v33 = vpop.f32.mrf.mxu1  ;;  %v4067_v4 = vpop.f32.mrf.mxu0  ;;  %v1784_v24 = vadd.f32 %v3098_v60, %v3950_v29  ;;  %v1787_v2 = vadd.f32 %v3101_v30, %v3956_v40 }
 0x177   : > { %4672 = vst [vmem:[#allocation12_spill] sm:$0xff] %v4065_v8  ;;  %v3046_v42 = vadd.f32 %v3045_v33, %v3044_v14 }
 0x178   : > { %v3047_v35 = vpop.f32.mrf.mxu1  ;;  %v4071_v27 = vpop.f32.mrf.mxu0 }
 0x179   : > { %v4073_v6 = vadd.f32 %v3046_v42, %v1542_v17 }
 0x17a   : > { %v3048_v43 = vpop.f32.mrf.mxu1  ;;  %v4075_v38 = vpop.f32.mrf.mxu0 }
 0x17b   : > { %4673 = vst [vmem:[#allocation13_spill] sm:$0xff] %v4073_v6  ;;  %v3049_v41 = vadd.f32 %v3048_v43, %v3047_v35  ;;  %v4098_v43 = vld [vmem:[%s4089_s17 + $0x8] sm:$0xff]   ;;  %v4106_v6 = vld [vmem:[%s4089_s17 + $0x18] sm:$0xff]  }
 0x17c   : > { %v3050_v32 = vpop.f32.mrf.mxu1  ;;  %v4080_v54 = vpop.f32.mrf.mxu0  ;;  %4676 = vst [vmem:[#allocation16_spill] sm:$0xff] %v4106_v6  ;;  %v4157_v6 = vld [vmem:[%s4089_s17 + $0x48] sm:$0xff]  }
 0x17d   : > { %v4082_v8 = vadd.f32 %v3049_v41, %v1545_v47  ;;  %v4101_v47 = vld [vmem:[%s4089_s17] sm:$0xff]  }
 0x17e   : > { %v3051_v49 = vpop.f32.mrf.mxu1  ;;  %v4084_v14 = vpop.f32.mrf.mxu0 }
 0x17f   : > { %4674 = vst [vmem:[#allocation14_spill] sm:$0xff] %v4082_v8  ;;  %v3052_v33 = vadd.f32 %v3051_v49, %v3050_v32  ;;  %v1558_v32 = vadd.f32 %v3902_v15, %v3911_v22  ;;  %v1561_v49 = vadd.f32 %v3906_v21, %v3911_v22  ;;  %v4144_v21 = vld [vmem:[%s4089_s17 + $0x30] sm:$0xff]   ;;  %v3116_v5 = vadd.f32 %v4084_v14, %v4080_v54 }
 0x180   : > { %v3053_v17 = vpop.f32.mrf.mxu1  ;;  %v4093_v42 = vpop.f32.mrf.mxu0  ;;  %v2785_v46 = vunpack.c.l.bf16 %v4144_v21  ;;  %v2786_v10 = vunpack.c.h.bf16 %v4144_v21  ;;  %v4215_v54 = vadd.f32 %v3107_v62, %v3966_v48 }
 0x181   : > { %v4095_v35 = vadd.f32 %v3052_v33, %v1550_v59  ;;  %v4118_v33 = vld [vmem:[%s4089_s17 + $0x28] sm:$0xff]  }
 0x182   : > { %v3054_v41 = vpop.f32.mrf.mxu1  ;;  %v4103_v8 = vpop.f32.mrf.mxu0 }
 0x183   : > { %4675 = vst [vmem:[#allocation15_spill] sm:$0xff] %v4095_v35  ;;  %v3055_v59 = vadd.f32 %v3054_v41, %v3053_v17  ;;  %v4135_v41 = vld [vmem:[%s4089_s17 + $0x38] sm:$0xff]   ;;  %v3086_v17 = vadd.f32 %v4009_v56, %v4005_v31  ;;  %v3095_v31 = vadd.f32 %v4030_v19, %v4026_v13  ;;  %v2797_v19 = vunpack.c.l.bf16 %v4157_v6 }
 0x184   : > { %v3056_v35 = vpop.f32.mrf.mxu1  ;;  %v4120_v63 = vpop.f32.mrf.mxu0  ;;  %v3119_v16 = vadd.f32 %v4103_v8, %v4093_v42 }
 0x185   : > { %v4129_v15 = vadd.f32 %v3055_v59, %v1553_v1  ;;  %v1763_v59 = vadd.f32 %v3083_v9, %v3923_v44  ;;  %v1768_v13 = vadd.f32 %v3086_v17, %v3929_v53  ;;  %v1776_v44 = vadd.f32 %v3092_v0, %v3940_v7  ;;  %v4185_v9 = vld [vmem:[%s4089_s17 + $0x50] sm:$0xff]  }
 0x186   : > { %v3057_v25 = vpop.f32.mrf.mxu1  ;;  %v3121_v37 = vpop.f32.mrf.mxu0 }
 0x187   : > { %4678 = vst [vmem:[#allocation18_spill] sm:$0xff] %v4129_v15  ;;  %v3058_v22 = vadd.f32 %v3057_v25, %v3056_v35  ;;  %v4160_v25 = vld [vmem:[%s4089_s17 + $0x40] sm:$0xff]  }
 0x188   : > { %v3059_v26 = vpop.f32.mrf.mxu1  ;;  %v3123_v1 = vpop.f32.mrf.mxu0 }
 0x189   : > { %v4164_v56 = vadd.f32 %v3058_v22, %v1558_v32  ;;  %v4177_v22 = vld [vmem:[%s4089_s17 + $0x58] sm:$0xff]   ;;  %v4685_v32 = vunpack.c.h.bf16 %v4098_v43 }
 0x18a   : > { %v3060_v12 = vpop.f32.mrf.mxu1  ;;  %v3124_v35 = vpop.f32.mrf.mxu0 }
 0x18b   : > { %v3061_v15 = vadd.f32 %v3060_v12, %v3059_v26  ;;  %v4190_v26 = vadd.f32 %v3095_v31, %v3945_v18 }
 0x18c   : > { %v3126_v45 = vpop.f32.mrf.mxu0  ;;  %v3210_v3 = vpop.f32.mrf.mxu1 }
 0x18d   : > { %v4187_v53 = vadd.f32 %v3061_v15, %v1561_v49  ;;  %v1929_v17 = vadd.f32 %v3210_v3, %v1768_v13  ;;  %v3110_v49 = vadd.f32 %v4067_v4, %v4063_v28  ;;  %v3113_v3 = vadd.f32 %v4075_v38, %v4071_v27 }
 0x18e   : > { %v3127_v57 = vpop.f32.mrf.mxu0  ;;  %v1920_v7 = vpop.f32.mrf.mxu1  ;;  %v3122_v4 = vadd.f32 %v3121_v37, %v4120_v63  ;;  %v4212_v27 = vadd.f32 %v3104_v20, %v3962_v52  ;;  %v4224_v63 = vadd.f32 %v3116_v5, %v3978_v36  ;;  %v4227_v52 = vadd.f32 %v3119_v16, %v3982_v50 }
 0x18f   : > { %v2081_v15 = vmul.f32 0.044715, %v1929_v17  ;;  %v1921_v18 = vadd.f32 %v1920_v7, %v1760_v55  ;;  %v3125_v7 = vadd.f32 %v3124_v35, %v3123_v1  ;;  %v1800_v40 = vadd.f32 %v3110_v49, %v3970_v58 }
 0x190   : > { %v3129_v39 = vpop.f32.mrf.mxu0  ;;  %v3211_v29 = vpop.f32.mrf.mxu1  ;;  %v4221_v37 = vadd.f32 %v3113_v3, %v3974_v23  ;;  %v3128_v62 = vadd.f32 %v3127_v57, %v3126_v45  ;;  %v4230_v49 = vadd.f32 %v3122_v4, %v3986_v61  ;;  %v4235_v3 = vmul.f32 0.5, %v1929_v17 }
 0x191   : > { %v2113_v60 = vmul.f32 %v2081_v15, %v1929_v17  ;;  %v2079_v13 = vmul.f32 0.044715, %v1921_v18  ;;  %v1932_v28 = vadd.f32 %v3211_v29, %v1771_v34  ;;  %v4237_v16 = vmul.f32 0.5, %v1921_v18 }
 0x192   : > { %v3130_v31 = vpop.f32.mrf.mxu0  ;;  %v1923_v38 = vpop.f32.mrf.mxu1 }
 0x193   : > { %v2145_v8 = vmul.f32 %v2113_v60, %v1929_v17  ;;  %v2111_v14 = vmul.f32 %v2079_v13, %v1921_v18  ;;  %v2082_v42 = vmul.f32 0.044715, %v1932_v28  ;;  %v1924_v30 = vadd.f32 %v1923_v38, %v1763_v59  ;;  %v4679_v60 = vld [vmem:[#allocation2_spill] sm:$0xff] }
 0x194   : > { %v4218_v34 = vpop.f32.mrf.mxu0  ;;  %v3214_v15 = vpop.f32.mrf.mxu1  ;;  %v4233_v23 = vadd.f32 %v3125_v7, %v4679_v60 }
 0x195   : > { %v2177_v48 = vadd.f32 %v2145_v8, %v1929_v17  ;;  %v2143_v1 = vmul.f32 %v2111_v14, %v1921_v18  ;;  %v2114_v35 = vmul.f32 %v2082_v42, %v1932_v28  ;;  %v1945_v20 = vadd.f32 %v3214_v15, %v1784_v24 }
 0x196   : > { %v2080_v29 = vmul.f32 0.044715, %v1924_v30  ;;  %v3133_v58 = vpop.f32.mrf.mxu0  ;;  %v1936_v59 = vpop.f32.mrf.mxu1 }
 0x197   : > { %v2209_v36 = vmul.f32 0.7978846, %v2177_v48  ;;  %v2175_v5 = vadd.f32 %v2143_v1, %v1921_v18  ;;  %v2146_v50 = vmul.f32 %v2114_v35, %v1932_v28  ;;  %v2085_v38 = vmul.f32 0.044715, %v1945_v20  ;;  %v4680_v48 = vld [vmem:[#allocation3_spill] sm:$0xff] }
 0x198   : > { %v2112_v13 = vmul.f32 %v2080_v29, %v1924_v30  ;;  %v1937_v24 = vadd.f32 %v1936_v59, %v1776_v44  ;;  %v4239_v45 = vpop.f32.mrf.mxu0  ;;  %v3215_v57 = vpop.f32.mrf.mxu1  ;;  %v4242_v1 = vadd.f32 %v3128_v62, %v4680_v48  ;;  %v3131_v35 = vadd.f32 %v3130_v31, %v3129_v39 }
 0x199   : > { %3479 = vtanh.f32 %v2209_v36  ;;  %v2207_v8 = vmul.f32 0.7978846, %v2175_v5  ;;  %v2178_v61 = vadd.f32 %v2146_v50, %v1932_v28  ;;  %v1948_v4 = vadd.f32 %v3215_v57, %v1787_v2 }
 0x19a   : > { %v2144_v14 = vmul.f32 %v2112_v13, %v1924_v30  ;;  %v2117_v7 = vmul.f32 %v2085_v38, %v1945_v20  ;;  %v2083_v42 = vmul.f32 0.044715, %v1937_v24  ;;  %v3136_v17 = vpop.f32.mrf.mxu0  ;;  %v1939_v15 = vpop.f32.mrf.mxu1  ;;  %v4244_v44 = vmul.f32 0.5, %v1932_v28 }
 0x19b   : > { %3481 = vtanh.f32 %v2207_v8  ;;  %v2210_v18 = vmul.f32 0.7978846, %v2178_v61  ;;  %v2086_v29 = vmul.f32 0.044715, %v1948_v4  ;;  %v1940_v13 = vadd.f32 %v1939_v15, %v4190_v26 }
 0x19c   : > { %v2176_v59 = vadd.f32 %v2144_v14, %v1924_v30  ;;  %v2149_v60 = vmul.f32 %v2117_v7, %v1945_v20  ;;  %v2115_v36 = vmul.f32 %v2083_v42, %v1937_v24  ;;  %v4246_v5 = vpop.f32.mrf.mxu0  ;;  %v3218_v2 = vpop.f32.mrf.mxu1  ;;  %v4251_v62 = vmul.f32 0.5, %v1924_v30  ;;  %v4681_v42 = vld [vmem:[#allocation4_spill] sm:$0xff] }
 0x19d   : > { %3483 = vtanh.f32 %v2210_v18  ;;  %v2118_v50 = vmul.f32 %v2086_v29, %v1948_v4  ;;  %v4249_v38 = vadd.f32 %v3218_v2, %v1800_v40  ;;  %v4255_v61 = vmul.f32 0.5, %v1945_v20 }
 0x19e   : > { %v2208_v57 = vmul.f32 0.7978846, %v2176_v59  ;;  %v2181_v8 = vadd.f32 %v2149_v60, %v1945_v20  ;;  %v2147_v31 = vmul.f32 %v2115_v36, %v1937_v24  ;;  %v4253_v39 = vpop.f32.mrf.mxu0  ;;  %v1952_v28 = vpop.f32.mrf.mxu1  ;;  %v2084_v7 = vmul.f32 0.044715, %v1940_v13 }
 0x19f   : > { %v2150_v14 = vmul.f32 %v2118_v50, %v1948_v4  ;;  %v4258_v48 = vadd.f32 %v3131_v35, %v4681_v42  ;;  %v2089_v40 = vmul.f32 0.044715, %v4249_v38  ;;  %v3134_v29 = vadd.f32 %v3133_v58, %v4218_v34 }
 0x1a0   : > { %3485 = vtanh.f32 %v2208_v57  ;;  %v2213_v18 = vmul.f32 0.7978846, %v2181_v8  ;;  %v2179_v26 = vadd.f32 %v2147_v31, %v1937_v24  ;;  %v4261_v30 = vpop.f32.mrf.mxu0  ;;  %v3219_v15 = vpop.f32.mrf.mxu1  ;;  %v2116_v60 = vmul.f32 %v2084_v7, %v1940_v13 }
 0x1a1   : > { %v2182_v59 = vadd.f32 %v2150_v14, %v1948_v4  ;;  %v4265_v20 = vadd.f32 %v1952_v28, %v4212_v27  ;;  %v2121_v35 = vmul.f32 %v2089_v40, %v4249_v38  ;;  %v4269_v2 = vadd.f32 %v3219_v15, %v4221_v37 }
 0x1a2   : > { %3487 = vtanh.f32 %v2213_v18  ;;  %v2211_v36 = vmul.f32 0.7978846, %v2179_v26  ;;  %v4271_v50 = vpop.f32.mrf.mxu0  ;;  %v1955_v57 = vpop.f32.mrf.mxu1  ;;  %v4273_v8 = vmul.f32 0.5, %v1937_v24  ;;  %v2148_v42 = vmul.f32 %v2116_v60, %v1940_v13 }
 0x1a3   : > { %v2214_v31 = vmul.f32 0.7978846, %v2182_v59  ;;  %v2087_v34 = vmul.f32 0.044715, %v4265_v20  ;;  %v4276_v58 = vmul.f32 0.5, %v1948_v4  ;;  %v2153_v27 = vmul.f32 %v2121_v35, %v4249_v38 }
 0x1a4   : > { %3489 = vtanh.f32 %v2211_v36  ;;  %v2090_v28 = vmul.f32 0.044715, %v4269_v2  ;;  %v4280_v14 = vpop.f32.mrf.mxu0  ;;  %v3222_v37 = vpop.f32.mrf.mxu1  ;;  %v4283_v7 = vadd.f32 %v3136_v17, %v4239_v45  ;;  %v2180_v24 = vadd.f32 %v2148_v42, %v1940_v13  ;;  %v4682_v36 = vld [vmem:[#allocation5_spill] sm:$0xff] }
 0x1a5   : > { %3491 = vtanh.f32 %v2214_v31  ;;  %v2119_v18 = vmul.f32 %v2087_v34, %v4265_v20  ;;  %v2185_v40 = vadd.f32 %v2153_v27, %v4249_v38  ;;  %v4289_v15 = vadd.f32 %v1955_v57, %v4215_v54 }
 0x1a6   : > { %v3480_v26 = vpop.eup %3479  ;;  %v2122_v4 = vmul.f32 %v2090_v28, %v4269_v2  ;;  %v4291_v59 = vpop.f32.mrf.mxu0  ;;  %v4294_v35 = vadd.f32 %v3134_v29, %v4682_v36  ;;  %v4296_v17 = vmul.f32 0.5, %v1940_v13  ;;  %v2212_v31 = vmul.f32 0.7978846, %v2180_v24 }
 0x1a7   : > { %v1968_v60 = vpop.f32.mrf.mxu1  ;;  %v2273_v45 = vadd.f32 1.0, %v3480_v26  ;;  %v2151_v42 = vmul.f32 %v2119_v18, %v4265_v20  ;;  %v2217_v27 = vmul.f32 0.7978846, %v2185_v40  ;;  %v2088_v55 = vmul.f32 0.044715, %v4289_v15 }
 0x1a8   : > { %v3482_v34 = vpop.eup %3481  ;;  %v2154_v28 = vmul.f32 %v2122_v4, %v4269_v2  ;;  %v4302_v54 = vadd.f32 %v3222_v37, %v4230_v49  ;;  %v4304_v57 = vpop.f32.mrf.mxu0  ;;  %3493 = vtanh.f32 %v2212_v31  ;;  %v4310_v26 = vmul.f32 0.5, %v4249_v38 }
 0x1a9   : > { %v3223_v0 = vpop.f32.mrf.mxu1  ;;  %v2305_v29 = vmul.f32 %v2273_v45, %v4235_v3  ;;  %v2271_v13 = vadd.f32 1.0, %v3482_v34  ;;  %v2183_v24 = vadd.f32 %v2151_v42, %v4265_v20  ;;  %3495 = vtanh.f32 %v2217_v27 }
 0x1aa   : > { %v3484_v18 = vpop.eup %3483  ;;  %v2186_v40 = vadd.f32 %v2154_v28, %v4269_v2  ;;  %v2120_v49 = vmul.f32 %v2088_v55, %v4289_v15  ;;  %v4314_v37 = vpop.f32.mrf.mxu0  ;;  %v4683_v36 = vunpack.c.l.bf16 %v4098_v43  ;;  %v2093_v55 = vmul.f32 0.044715, %v4302_v54 }
 0x1ab   : > { %v1971_v4 = vpop.f32.mrf.mxu1  ;;  %v2303_v3 = vmul.f32 %v2271_v13, %v4237_v16  ;;  %v2274_v45 = vadd.f32 1.0, %v3484_v18  ;;  %v2215_v31 = vmul.f32 0.7978846, %v2183_v24  ;;  %v4327_v34 = vadd.f32 %v1968_v60, %v4224_v63 }
 0x1ac   : > { %v2401_v12 = vadd.f32 %v4683_v36, %v2305_v29  ;;  %v2218_v38 = vmul.f32 0.7978846, %v2186_v40  ;;  %v2152_v42 = vmul.f32 %v2120_v49, %v4289_v15  ;;  %v4329_v27 = vpop.f32.mrf.mxu0  ;;  %v4684_v13 = vunpack.c.l.bf16 %v4101_v47 }
 0x1ad   : > { %v3226_v28 = vpop.f32.mrf.mxu1  ;;  %v3486_v16 = vpop.eup %3485  ;;  %v2306_v18 = vmul.f32 %v2274_v45, %v4244_v44  ;;  %3497 = vtanh.f32 %v2215_v31  ;;  %v2125_v36 = vmul.f32 %v2093_v55, %v4302_v54  ;;  %v4345_v44 = vadd.f32 %v4253_v39, %v4246_v5 }
 0x1ae   : > { %v2433_v29 = vmax.f32 %v2401_v12, 0.0  ;;  %v2399_v24 = vadd.f32 %v4684_v13, %v2303_v3  ;;  %v2272_v40 = vadd.f32 1.0, %v3486_v16  ;;  %3499 = vtanh.f32 %v2218_v38  ;;  %v4336_v63 = vpop.f32.mrf.mxu0 }
 0x1af   : > { %v2184_v49 = vadd.f32 %v2152_v42, %v4289_v15  ;;  %v4338_v60 = vpop.f32.mrf.mxu1  ;;  %v3488_v51 = vpop.eup %3487  ;;  %v2402_v3 = vadd.f32 %v4685_v32, %v2306_v18  ;;  %v2091_v45 = vmul.f32 0.044715, %v4327_v34  ;;  %v2157_v55 = vmul.f32 %v2125_v36, %v4302_v54 }
 0x1b0   : > { %2465 = vst [vmem:[%s4322_s21 + $0x10] sm:$0xff] %v2433_v29  ;;  %v2431_v12 = vmax.f32 %v2399_v24, 0.0  ;;  %v2304_v31 = vmul.f32 %v2272_v40, %v4251_v62  ;;  %v2277_v38 = vadd.f32 1.0, %v3488_v51  ;;  %v4350_v16 = vpop.f32.mrf.mxu0  ;;  %v4354_v43 = vmul.f32 0.5, %v4265_v20 }
 0x1b1   : > { %v2216_v42 = vmul.f32 0.7978846, %v2184_v49  ;;  %v3490_v29 = vpop.eup %3489  ;;  %v2434_v13 = vmax.f32 %v2402_v3, 0.0  ;;  %v2123_v32 = vmul.f32 %v2091_v45, %v4327_v34  ;;  %v4358_v5 = vadd.f32 %v3223_v0, %v4233_v23  ;;  %v4360_v39 = vpop.f32.mrf.mxu1  ;;  %v4687_v3 = vld [vmem:[#allocation16_spill] sm:$0xff] }
 0x1b2   : > { %2463 = vst [vmem:[%s4322_s21] sm:$0xff] %v2431_v12  ;;  %v3492_v51 = vpop.eup %3491  ;;  %v4686_v62 = vunpack.c.h.bf16 %v4101_v47  ;;  %v2309_v18 = vmul.f32 %v2277_v38, %v4255_v61  ;;  %v2275_v40 = vadd.f32 1.0, %v3490_v29  ;;  %v4365_v49 = vpop.f32.mrf.mxu0  ;;  %v2058_v36 = vmul.f32 0.5, %v4269_v2 }
 0x1b3   : > { %3501 = vtanh.f32 %v2216_v42  ;;  %2466 = vst [vmem:[%s4322_s21 + $0x18] sm:$0xff] %v2434_v13  ;;  %v2278_v20 = vadd.f32 1.0, %v3492_v51  ;;  %v2189_v0 = vadd.f32 %v2157_v55, %v4302_v54  ;;  %v2155_v23 = vmul.f32 %v2123_v32, %v4327_v34  ;;  %v4380_v55 = vpop.f32.mrf.mxu1 }
 0x1b4   : > { %v2400_v24 = vadd.f32 %v4686_v62, %v2304_v31  ;;  %v4688_v45 = vunpack.c.l.bf16 %v4687_v3  ;;  %v2307_v31 = vmul.f32 %v2275_v40, %v4273_v8  ;;  %v2094_v61 = vmul.f32 0.044715, %v4358_v5  ;;  %v4382_v13 = vpop.f32.mrf.mxu0  ;;  %v4689_v62 = vld [vmem:[#allocation17_spill] sm:$0xff] }
 0x1b5   : > { %v2310_v38 = vmul.f32 %v2278_v20, %v4276_v58  ;;  %v2221_v42 = vmul.f32 0.7978846, %v2189_v0  ;;  %v2187_v29 = vadd.f32 %v2155_v23, %v4327_v34  ;;  %v4378_v2 = vadd.f32 %v1971_v4, %v4227_v52  ;;  %v3494_v32 = vpop.eup %3493 }
 0x1b6   : > { %v2432_v12 = vmax.f32 %v2400_v24, 0.0  ;;  %v2405_v47 = vadd.f32 %v4688_v45, %v2309_v18  ;;  %v4690_v8 = vunpack.c.l.bf16 %v4689_v62  ;;  %v2126_v18 = vmul.f32 %v2094_v61, %v4358_v5  ;;  %v3496_v40 = vpop.eup %3495  ;;  %v4403_v61 = vpop.f32.mrf.mxu0 }
 0x1b7   : > { %v4389_v58 = vadd.f32 %v3226_v28, %v4294_v35  ;;  %v4691_v20 = vunpack.c.h.bf16 %v4687_v3  ;;  %v2276_v4 = vadd.f32 1.0, %v3494_v32  ;;  %3503 = vtanh.f32 %v2221_v42 }
 0x1b8   : > { %2464 = vst [vmem:[%s4322_s21 + $0x8] sm:$0xff] %v2432_v12  ;;  %v2437_v51 = vmax.f32 %v2405_v47, 0.0  ;;  %v2403_v24 = vadd.f32 %v4690_v8, %v2307_v31  ;;  %v2219_v0 = vmul.f32 0.7978846, %v2187_v29  ;;  %v2281_v12 = vadd.f32 1.0, %v3496_v40  ;;  %v4401_v31 = vpop.f32.mrf.mxu1 }
 0x1b9   : > { %v2406_v52 = vadd.f32 %v4691_v20, %v2310_v38  ;;  %v4396_v45 = vadd.f32 %v4271_v50, %v4261_v30  ;;  %v2158_v47 = vmul.f32 %v2126_v18, %v4358_v5  ;;  %v2308_v28 = vmul.f32 %v2276_v4, %v4296_v17 }
 0x1ba   : > { %2469 = vst [vmem:[%s4322_s21 + $0x30] sm:$0xff] %v2437_v51  ;;  %v2435_v23 = vmax.f32 %v2403_v24, 0.0  ;;  %3505 = vtanh.f32 %v2219_v0  ;;  %v2092_v3 = vmul.f32 0.044715, %v4378_v2  ;;  %v3498_v38 = vpop.eup %3497  ;;  %v2313_v42 = vmul.f32 %v2281_v12, %v4310_v26 }
 0x1bb   : > { %v2438_v35 = vmax.f32 %v2406_v52, 0.0  ;;  %v3146_v30 = vadd.f32 %v4291_v59, %v4280_v14  ;;  %v2190_v50 = vadd.f32 %v2158_v47, %v4358_v5  ;;  %v2097_v29 = vmul.f32 0.044715, %v4389_v58  ;;  %v3500_v32 = vpop.eup %3499 }
 0x1bc   : > { %2467 = vst [vmem:[%s4322_s21 + $0x20] sm:$0xff] %v2435_v23  ;;  %v4692_v17 = vunpack.c.h.bf16 %v4689_v62  ;;  %v2279_v8 = vadd.f32 1.0, %v3498_v38  ;;  %v2056_v24 = vmul.f32 0.5, %v4289_v15  ;;  %v2124_v18 = vmul.f32 %v2092_v3, %v4378_v2  ;;  %v4425_v15 = vpop.f32.mrf.mxu1  ;;  %v4427_v23 = vpop.f32.mrf.mxu0 }
 0x1bd   : > { %2470 = vst [vmem:[%s4322_s21 + $0x38] sm:$0xff] %v2438_v35  ;;  %v4693_v40 = vunpack.c.l.bf16 %v4118_v33  ;;  %v2282_v20 = vadd.f32 1.0, %v3500_v32  ;;  %v2222_v14 = vmul.f32 0.7978846, %v2190_v50  ;;  %v2129_v59 = vmul.f32 %v2097_v29, %v4389_v58  ;;  %v4696_v32 = vld [vmem:[#allocation6_spill] sm:$0xff] }
 0x1be   : > { %v2404_v51 = vadd.f32 %v4692_v17, %v2308_v28  ;;  %v2311_v4 = vmul.f32 %v2279_v8, %v4354_v43  ;;  %v2156_v62 = vmul.f32 %v2124_v18, %v4378_v2  ;;  %v4423_v0 = vadd.f32 %v4338_v60, %v4242_v1 }
 0x1bf   : > { %v2409_v26 = vadd.f32 %v4693_v40, %v2313_v42  ;;  %v2314_v47 = vmul.f32 %v2282_v20, %v2058_v36  ;;  %3507 = vtanh.f32 %v2222_v14  ;;  %v2161_v35 = vmul.f32 %v2129_v59, %v4389_v58  ;;  %v3231_v40 = vpop.f32.mrf.mxu1 }
 0x1c0   : > { %v2436_v52 = vmax.f32 %v2404_v51, 0.0  ;;  %v3502_v28 = vpop.eup %3501  ;;  %v4694_v3 = vunpack.c.l.bf16 %v4127_v11  ;;  %v2061_v38 = vmul.f32 0.5, %v4302_v54  ;;  %v2188_v42 = vadd.f32 %v2156_v62, %v4378_v2 }
 0x1c1   : > { %v2441_v12 = vmax.f32 %v2409_v26, 0.0  ;;  %v2095_v1 = vmul.f32 0.044715, %v4423_v0  ;;  %v4695_v60 = vunpack.c.h.bf16 %v4118_v33  ;;  %v2280_v36 = vadd.f32 1.0, %v3502_v28  ;;  %v4444_v26 = vpop.f32.mrf.mxu0 }
 0x1c2   : > { %2468 = vst [vmem:[%s4322_s21 + $0x28] sm:$0xff] %v2436_v52  ;;  %v2407_v43 = vadd.f32 %v4694_v3, %v2311_v4  ;;  %v2193_v29 = vadd.f32 %v2161_v35, %v4389_v58  ;;  %v1835_v17 = vadd.f32 %v4283_v7, %v4696_v32  ;;  %v2059_v8 = vmul.f32 0.5, %v4327_v34 }
 0x1c3   : > { %2473 = vst [vmem:[%s4322_s21 + $0x50] sm:$0xff] %v2441_v12  ;;  %v2410_v50 = vadd.f32 %v4695_v60, %v2314_v47  ;;  %v2220_v54 = vmul.f32 0.7978846, %v2188_v42  ;;  %v2127_v18 = vmul.f32 %v2095_v1, %v4423_v0  ;;  %v2312_v14 = vmul.f32 %v2280_v36, %v2056_v24  ;;  %v4698_v12 = vld [vmem:[#allocation9_spill] sm:$0xff] }
 0x1c4   : > { %v2439_v51 = vmax.f32 %v2407_v43, 0.0  ;;  %v2225_v33 = vmul.f32 0.7978846, %v2193_v29  ;;  %v4447_v59 = vadd.f32 %v4360_v39, %v1835_v17  ;;  %v3149_v7 = vadd.f32 %v4314_v37, %v4304_v57  ;;  %v3504_v4 = vpop.eup %3503  ;;  %v4699_v17 = vld [vmem:[#allocation7_spill] sm:$0xff] }
 0x1c5   : > { %v2442_v20 = vmax.f32 %v2410_v50, 0.0  ;;  %3509 = vtanh.f32 %v2220_v54  ;;  %v2159_v52 = vmul.f32 %v2127_v18, %v4423_v0  ;;  %v4455_v34 = vadd.f32 %v4380_v55, %v4258_v48  ;;  %v2003_v48 = vpop.f32.mrf.mxu1  ;;  %v4465_v55 = vpop.f32.mrf.mxu0 }
 0x1c6   : > { %2471 = vst [vmem:[%s4322_s21 + $0x40] sm:$0xff] %v2439_v51  ;;  %v4697_v62 = vunpack.c.h.bf16 %v4127_v11  ;;  %3511 = vtanh.f32 %v2225_v33  ;;  %v2098_v39 = vmul.f32 0.044715, %v4447_v59  ;;  %v1848_v47 = vadd.f32 %v3146_v30, %v4698_v12 }
 0x1c7   : > { %2474 = vst [vmem:[%s4322_s21 + $0x58] sm:$0xff] %v2442_v20  ;;  %v2285_v35 = vadd.f32 1.0, %v3504_v4  ;;  %v2062_v57 = vmul.f32 0.5, %v4358_v5  ;;  %v2191_v37 = vadd.f32 %v2159_v52, %v4423_v0  ;;  %v2096_v28 = vmul.f32 0.044715, %v4455_v34  ;;  %v3506_v3 = vpop.eup %3505  ;;  %v3234_v18 = vpop.f32.mrf.mxu1 }
 0x1c8   : > { %v2408_v24 = vadd.f32 %v4697_v62, %v2312_v14  ;;  %v4468_v11 = vmul.f32 0.5, %v4378_v2  ;;  %v2130_v42 = vmul.f32 %v2098_v39, %v4447_v59  ;;  %v4472_v30 = vadd.f32 %v4401_v31, %v1848_v47  ;;  %v4484_v20 = vpop.f32.mrf.mxu0 }
 0x1c9   : > { %v2317_v1 = vmul.f32 %v2285_v35, %v2061_v38  ;;  %v2283_v60 = vadd.f32 1.0, %v3506_v3  ;;  %v2223_v5 = vmul.f32 0.7978846, %v2191_v37  ;;  %v2128_v50 = vmul.f32 %v2096_v28, %v4455_v34 }
 0x1ca   : > { %v2440_v43 = vmax.f32 %v2408_v24, 0.0  ;;  %v2065_v36 = vmul.f32 0.5, %v4389_v58  ;;  %v2162_v29 = vmul.f32 %v2130_v42, %v4447_v59  ;;  %v2101_v32 = vmul.f32 0.044715, %v4472_v30  ;;  %v4701_v24 = vld [vmem:[#allocation10_spill] sm:$0xff]  ;;  %v4504_v3 = vpop.f32.mrf.mxu0  ;;  %v4702_v42 = vld [vmem:[#allocation8_spill] sm:$0xff] }
 0x1cb   : > { %v1840_v2 = vadd.f32 %v4345_v44, %v4699_v17  ;;  %v4700_v51 = vunpack.c.l.bf16 %v4135_v41  ;;  %v2315_v31 = vmul.f32 %v2283_v60, %v2059_v8  ;;  %3513 = vtanh.f32 %v2223_v5 }
 0x1cc   : > { %2472 = vst [vmem:[%s4322_s21 + $0x48] sm:$0xff] %v2440_v43  ;;  %v2160_v38 = vmul.f32 %v2128_v50, %v4455_v34  ;;  %v3152_v58 = vadd.f32 %v4336_v63, %v4329_v27  ;;  %v2194_v14 = vadd.f32 %v2162_v29, %v4447_v59  ;;  %v2133_v33 = vmul.f32 %v2101_v32, %v4472_v30  ;;  %v3508_v52 = vpop.eup %3507 }
 0x1cd   : > { %v2413_v54 = vadd.f32 %v4700_v51, %v2317_v1  ;;  %v4491_v44 = vadd.f32 %v4425_v15, %v1840_v2  ;;  %v2411_v8 = vadd.f32 %v2785_v46, %v2315_v31  ;;  %v1851_v39 = vadd.f32 %v3149_v7, %v4701_v24  ;;  %v2016_v46 = vpop.f32.mrf.mxu1  ;;  %v4523_v31 = vpop.f32.mrf.mxu0 }
 0x1ce   : > { %v2192_v62 = vadd.f32 %v2160_v38, %v4455_v34  ;;  %v2286_v12 = vadd.f32 1.0, %v3508_v52  ;;  %v2226_v47 = vmul.f32 0.7978846, %v2194_v14  ;;  %v2165_v27 = vmul.f32 %v2133_v33, %v4472_v30 }
 0x1cf   : > { %v2445_v4 = vmax.f32 %v2413_v54, 0.0  ;;  %v3158_v63 = vadd.f32 %v4403_v61, %v4382_v13  ;;  %v2443_v15 = vmax.f32 %v2411_v8, 0.0  ;;  %v2099_v37 = vmul.f32 0.044715, %v4491_v44  ;;  %v3235_v54 = vpop.f32.mrf.mxu1  ;;  %v4705_v8 = vld [vmem:[#allocation11_spill] sm:$0xff] }
 0x1d0   : > { %v2224_v35 = vmul.f32 0.7978846, %v2192_v62  ;;  %v4502_v28 = vadd.f32 %v3231_v40, %v1851_v39  ;;  %v2318_v43 = vmul.f32 %v2286_v12, %v2062_v57  ;;  %3515 = vtanh.f32 %v2226_v47 }
 0x1d1   : > { %2477 = vst [vmem:[%s4322_s21 + $0x70] sm:$0xff] %v2445_v4  ;;  %v2197_v7 = vadd.f32 %v2165_v27, %v4472_v30  ;;  %v1843_v1 = vadd.f32 %v4396_v45, %v4702_v42  ;;  %2475 = vst [vmem:[%s4322_s21 + $0x60] sm:$0xff] %v2443_v15  ;;  %v2063_v13 = vmul.f32 0.5, %v4423_v0  ;;  %v2131_v61 = vmul.f32 %v2099_v37, %v4491_v44  ;;  %v2019_v47 = vpop.f32.mrf.mxu1  ;;  %v3168_v27 = vpop.f32.mrf.mxu0 }
 0x1d2   : > { %3517 = vtanh.f32 %v2224_v35  ;;  %v2102_v60 = vmul.f32 0.044715, %v4502_v28  ;;  %v3510_v40 = vpop.eup %3509  ;;  %v4703_v5 = vunpack.c.h.bf16 %v4135_v41  ;;  %v3155_v57 = vadd.f32 %v4365_v49, %v4350_v16  ;;  %v4704_v16 = vld [vmem:[#allocation13_spill] sm:$0xff] }
 0x1d3   : > { %v2229_v29 = vmul.f32 0.7978846, %v2197_v7  ;;  %v4517_v32 = vadd.f32 %v2003_v48, %v1843_v1  ;;  %v3512_v45 = vpop.eup %3511  ;;  %v2284_v17 = vadd.f32 1.0, %v3510_v40  ;;  %v2163_v0 = vmul.f32 %v2131_v61, %v4491_v44  ;;  %v3238_v61 = vpop.f32.mrf.mxu1 }
 0x1d4   : > { %v2414_v50 = vadd.f32 %v4703_v5, %v2318_v43  ;;  %v2134_v2 = vmul.f32 %v2102_v60, %v4502_v28  ;;  %v3161_v51 = vadd.f32 %v4444_v26, %v4427_v23  ;;  %v2289_v38 = vadd.f32 1.0, %v3512_v45  ;;  %v3169_v60 = vpop.f32.mrf.mxu0 }
 0x1d5   : > { %3519 = vtanh.f32 %v2229_v29  ;;  %v1864_v49 = vadd.f32 %v3158_v63, %v4704_v16  ;;  %v2316_v48 = vmul.f32 %v2284_v17, %v4468_v11  ;;  %v2195_v14 = vadd.f32 %v2163_v0, %v4491_v44 }
 0x1d6   : > { %v2446_v41 = vmax.f32 %v2414_v50, 0.0  ;;  %v2166_v33 = vmul.f32 %v2134_v2, %v4502_v28  ;;  %v2100_v52 = vmul.f32 0.044715, %v4517_v32  ;;  %v2321_v4 = vmul.f32 %v2289_v38, %v2065_v36  ;;  %v4707_v50 = vld [vmem:[#allocation12_spill] sm:$0xff] }
 0x1d7   : > { %v2066_v23 = vmul.f32 0.5, %v4447_v59  ;;  %v4532_v26 = vadd.f32 %v3234_v18, %v1864_v49  ;;  %v1856_v62 = vadd.f32 %v3152_v58, %v4705_v8  ;;  %v2412_v24 = vadd.f32 %v2786_v10, %v2316_v48  ;;  %v4706_v58 = vld [vmem:[#allocation14_spill] sm:$0xff] }
 0x1d8   : > { %2478 = vst [vmem:[%s4322_s21 + $0x78] sm:$0xff] %v2446_v41  ;;  %v2227_v39 = vmul.f32 0.7978846, %v2195_v14  ;;  %v2198_v11 = vadd.f32 %v2166_v33, %v4502_v28  ;;  %v2132_v12 = vmul.f32 %v2100_v52, %v4517_v32  ;;  %v3514_v63 = vpop.eup %3513  ;;  %v2417_v36 = vadd.f32 %v2797_v19, %v2321_v4  ;;  %v2032_v33 = vpop.f32.mrf.mxu1 }
 0x1d9   : > { %v2105_v59 = vmul.f32 0.044715, %v4532_v26  ;;  %v4542_v18 = vadd.f32 %v2016_v46, %v1856_v62  ;;  %v1867_v15 = vadd.f32 %v3161_v51, %v4706_v58  ;;  %v2444_v21 = vmax.f32 %v2412_v24, 0.0 }
 0x1da   : > { %v2287_v10 = vadd.f32 1.0, %v3514_v63  ;;  %3521 = vtanh.f32 %v2227_v39  ;;  %v2230_v35 = vmul.f32 0.7978846, %v2198_v11  ;;  %v2449_v37 = vmax.f32 %v2417_v36, 0.0 }
 0x1db   : > { %v2064_v43 = vmul.f32 0.5, %v4455_v34  ;;  %v2164_v7 = vmul.f32 %v2132_v12, %v4517_v32  ;;  %v2137_v42 = vmul.f32 %v2105_v59, %v4532_v26  ;;  %2476 = vst [vmem:[%s4322_s21 + $0x68] sm:$0xff] %v2444_v21  ;;  %v2103_v46 = vmul.f32 0.044715, %v4542_v18 }
 0x1dc   : > { %v2319_v19 = vmul.f32 %v2287_v10, %v2063_v13  ;;  %3523 = vtanh.f32 %v2230_v35  ;;  %v4550_v1 = vadd.f32 %v3235_v54, %v1867_v15  ;;  %2481 = vst [vmem:[%s4322_s21 + $0x90] sm:$0xff] %v2449_v37  ;;  %v2069_v40 = vmul.f32 0.5, %v4472_v30  ;;  %v3239_v15 = vpop.f32.mrf.mxu1  ;;  %v4711_v37 = vld [vmem:[#allocation15_spill] sm:$0xff] }
 0x1dd   : > { %v2196_v5 = vadd.f32 %v2164_v7, %v4517_v32  ;;  %v2169_v34 = vmul.f32 %v2137_v42, %v4532_v26  ;;  %v1859_v29 = vadd.f32 %v3155_v57, %v4707_v50  ;;  %v3516_v45 = vpop.eup %3515  ;;  %v4708_v17 = vunpack.c.l.bf16 %v4160_v25 }
 0x1de   : > { %v3164_v0 = vadd.f32 %v4484_v20, %v4465_v55  ;;  %v2135_v2 = vmul.f32 %v2103_v46, %v4542_v18  ;;  %v2106_v51 = vmul.f32 0.044715, %v4550_v1  ;;  %v2290_v30 = vadd.f32 1.0, %v3516_v45  ;;  %v3171_v55 = vpop.f32.mrf.mxu0 }
 0x1df   : > { %v2415_v13 = vadd.f32 %v4708_v17, %v2319_v19  ;;  %v3518_v54 = vpop.eup %3517  ;;  %v2228_v41 = vmul.f32 0.7978846, %v2196_v5  ;;  %v2201_v38 = vadd.f32 %v2169_v34, %v4532_v26  ;;  %v4564_v16 = vadd.f32 %v2019_v47, %v1859_v29  ;;  %v2035_v29 = vpop.f32.mrf.mxu1 }
 0x1e0   : > { %v2288_v49 = vadd.f32 1.0, %v3518_v54  ;;  %v2167_v48 = vmul.f32 %v2135_v2, %v4542_v18  ;;  %v2138_v14 = vmul.f32 %v2106_v51, %v4550_v1  ;;  %v2322_v20 = vmul.f32 %v2290_v30, %v2066_v23  ;;  %v3172_v21 = vpop.f32.mrf.mxu0 }
 0x1e1   : > { %v2447_v57 = vmax.f32 %v2415_v13, 0.0  ;;  %3525 = vtanh.f32 %v2228_v41  ;;  %v2233_v52 = vmul.f32 0.7978846, %v2201_v38  ;;  %v3167_v4 = vadd.f32 %v4523_v31, %v4504_v3 }
 0x1e2   : > { %v3520_v8 = vpop.eup %3519  ;;  %v2320_v62 = vmul.f32 %v2288_v49, %v2064_v43  ;;  %v2199_v24 = vadd.f32 %v2167_v48, %v4542_v18  ;;  %v2170_v39 = vmul.f32 %v2138_v14, %v4550_v1  ;;  %v2104_v11 = vmul.f32 0.044715, %v4564_v16 }
 0x1e3   : > { %2479 = vst [vmem:[%s4322_s21 + $0x80] sm:$0xff] %v2447_v57  ;;  %v4709_v12 = vunpack.c.h.bf16 %v4157_v6  ;;  %v2293_v63 = vadd.f32 1.0, %v3520_v8  ;;  %3527 = vtanh.f32 %v2233_v52  ;;  %v3170_v23 = vadd.f32 %v3169_v60, %v3168_v27 }
 0x1e4   : > { %v4710_v36 = vunpack.c.h.bf16 %v4160_v25  ;;  %v2231_v3 = vmul.f32 0.7978846, %v2199_v24  ;;  %v2202_v31 = vadd.f32 %v2170_v39, %v4550_v1  ;;  %v2136_v58 = vmul.f32 %v2104_v11, %v4564_v16 }
 0x1e5   : > { %v2418_v47 = vadd.f32 %v4709_v12, %v2322_v20  ;;  %v2325_v35 = vmul.f32 %v2293_v63, %v2069_v40  ;;  %v1880_v6 = vadd.f32 %v3170_v23, %v4164_v56  ;;  %v1872_v43 = vadd.f32 %v3164_v0, %v4711_v37  ;;  %v4713_v0 = vld [vmem:[#allocation18_spill] sm:$0xff] }
 0x1e6   : > { %v2416_v59 = vadd.f32 %v4710_v36, %v2320_v62  ;;  %3529 = vtanh.f32 %v2231_v3  ;;  %v2234_v27 = vmul.f32 0.7978846, %v2202_v31  ;;  %v2168_v25 = vmul.f32 %v2136_v58, %v4564_v16 }
 0x1e7   : > { %v2450_v10 = vmax.f32 %v2418_v47, 0.0  ;;  %v3522_v42 = vpop.eup %3521  ;;  %v4712_v19 = vunpack.c.l.bf16 %v4177_v22  ;;  %v4586_v60 = vadd.f32 %v3238_v61, %v1880_v6  ;;  %v4588_v5 = vadd.f32 %v2032_v33, %v1872_v43 }
 0x1e8   : > { %v2448_v7 = vmax.f32 %v2416_v59, 0.0  ;;  %v3173_v34 = vadd.f32 %v3172_v21, %v3171_v55  ;;  %v2067_v56 = vmul.f32 0.5, %v4491_v44  ;;  %v2291_v40 = vadd.f32 1.0, %v3522_v42  ;;  %v4599_v44 = vld [vmem:[%s4089_s17 + $0x68] sm:$0xff]  }
 0x1e9   : > { %2482 = vst [vmem:[%s4322_s21 + $0x98] sm:$0xff] %v2450_v10  ;;  %v2421_v46 = vadd.f32 %v4712_v19, %v2325_v35  ;;  %3531 = vtanh.f32 %v2234_v27  ;;  %v2200_v50 = vadd.f32 %v2168_v25, %v4564_v16  ;;  %v3524_v45 = vpop.eup %3523  ;;  %v2070_v13 = vmul.f32 0.5, %v4502_v28 }
 0x1ea   : > { %2480 = vst [vmem:[%s4322_s21 + $0x88] sm:$0xff] %v2448_v7  ;;  %v2109_v61 = vmul.f32 0.044715, %v4586_v60  ;;  %v1875_v2 = vadd.f32 %v3167_v4, %v4713_v0  ;;  %v2323_v51 = vmul.f32 %v2291_v40, %v2067_v56  ;;  %v2294_v54 = vadd.f32 1.0, %v3524_v45 }
 0x1eb   : > { %v2453_v17 = vmax.f32 %v2421_v46, 0.0  ;;  %v2232_v30 = vmul.f32 0.7978846, %v2200_v50  ;;  %v2107_v41 = vmul.f32 0.044715, %v4588_v5  ;;  %v1883_v57 = vadd.f32 %v3173_v34, %v4187_v53 }
 0x1ec   : > { %v2141_v38 = vmul.f32 %v2109_v61, %v4586_v60  ;;  %v4603_v49 = vadd.f32 %v2035_v29, %v1875_v2  ;;  %v4714_v28 = vunpack.c.l.bf16 %v4185_v9  ;;  %v2326_v14 = vmul.f32 %v2294_v54, %v2070_v13 }
 0x1ed   : > { %2485 = vst [vmem:[%s4322_s21 + $0xb0] sm:$0xff] %v2453_v17  ;;  %3533 = vtanh.f32 %v2232_v30  ;;  %v2139_v33 = vmul.f32 %v2107_v41, %v4588_v5  ;;  %v2802_v55 = vunpack.c.h.bf16 %v4185_v9  ;;  %v4610_v52 = vadd.f32 %v3239_v15, %v1883_v57  ;;  %v2834_v9 = vld [vmem:[%s4089_s17 + $0x60] sm:$0xff]  }
 0x1ee   : > { %v2419_v48 = vadd.f32 %v4714_v28, %v2323_v51  ;;  %v2173_v20 = vmul.f32 %v2141_v38, %v4586_v60  ;;  %v2108_v4 = vmul.f32 0.044715, %v4603_v49  ;;  %v3526_v53 = vpop.eup %3525  ;;  %v4715_v62 = vunpack.c.h.bf16 %v4177_v22  ;;  %v2837_v28 = vld [vmem:[%s4089_s17 + $0x78] sm:$0xff]  }
 0x1ef   : > { %v2813_v39 = vunpack.c.l.bf16 %v4599_v44  ;;  %v2171_v11 = vmul.f32 %v2139_v33, %v4588_v5  ;;  %v2068_v12 = vmul.f32 0.5, %v4517_v32  ;;  %v2292_v47 = vadd.f32 1.0, %v3526_v53 }
 0x1f0   : > { %v2451_v8 = vmax.f32 %v2419_v48, 0.0  ;;  %v2422_v24 = vadd.f32 %v4715_v62, %v2326_v14  ;;  %v2205_v63 = vadd.f32 %v2173_v20, %v4586_v60  ;;  %v2110_v23 = vmul.f32 0.044715, %v4610_v52  ;;  %v3528_v36 = vpop.eup %3527  ;;  %v2836_v48 = vld [vmem:[%s4089_s17 + $0x70] sm:$0xff]  }
 0x1f1   : > { %v2073_v3 = vmul.f32 0.5, %v4532_v26  ;;  %v2203_v22 = vadd.f32 %v2171_v11, %v4588_v5  ;;  %v2140_v31 = vmul.f32 %v2108_v4, %v4603_v49  ;;  %v2324_v58 = vmul.f32 %v2292_v47, %v2068_v12 }
 0x1f2   : > { %2483 = vst [vmem:[%s4322_s21 + $0xa0] sm:$0xff] %v2451_v8  ;;  %v2454_v59 = vmax.f32 %v2422_v24, 0.0  ;;  %v2297_v15 = vadd.f32 1.0, %v3528_v36  ;;  %v2237_v21 = vmul.f32 0.7978846, %v2205_v63  ;;  %v2142_v32 = vmul.f32 %v2110_v23, %v4610_v52 }
 0x1f3   : > { %v2809_v10 = vunpack.c.l.bf16 %v2834_v9  ;;  %v2235_v35 = vmul.f32 0.7978846, %v2203_v22  ;;  %v2172_v6 = vmul.f32 %v2140_v31, %v4603_v49  ;;  %v3530_v37 = vpop.eup %3529  ;;  %v2420_v43 = vadd.f32 %v2802_v55, %v2324_v58 }
 0x1f4   : > { %2486 = vst [vmem:[%s4322_s21 + $0xb8] sm:$0xff] %v2454_v59  ;;  %v2329_v7 = vmul.f32 %v2297_v15, %v2073_v3  ;;  %3535 = vtanh.f32 %v2237_v21  ;;  %v2174_v26 = vmul.f32 %v2142_v32, %v4610_v52  ;;  %v2071_v27 = vmul.f32 0.5, %v4542_v18 }
 0x1f5   : > { %v2295_v25 = vadd.f32 1.0, %v3530_v37  ;;  %3537 = vtanh.f32 %v2235_v35  ;;  %v2204_v42 = vadd.f32 %v2172_v6, %v4603_v49  ;;  %v2452_v46 = vmax.f32 %v2420_v43, 0.0 }
 0x1f6   : > { %v3532_v19 = vpop.eup %3531  ;;  %v2425_v34 = vadd.f32 %v2813_v39, %v2329_v7  ;;  %v2814_v56 = vunpack.c.h.bf16 %v4599_v44  ;;  %v2206_v40 = vadd.f32 %v2174_v26, %v4610_v52  ;;  %v2074_v29 = vmul.f32 0.5, %v4550_v1 }
 0x1f7   : > { %v2327_v50 = vmul.f32 %v2295_v25, %v2071_v27  ;;  %v2298_v45 = vadd.f32 1.0, %v3532_v19  ;;  %v2236_v17 = vmul.f32 0.7978846, %v2204_v42  ;;  %2484 = vst [vmem:[%s4322_s21 + $0xa8] sm:$0xff] %v2452_v46  ;;  %v2810_v51 = vunpack.c.h.bf16 %v2834_v9 }
 0x1f8   : > { %v2457_v18 = vmax.f32 %v2425_v34, 0.0  ;;  %v2238_v13 = vmul.f32 0.7978846, %v2206_v40  ;;  %v2072_v1 = vmul.f32 0.5, %v4564_v16  ;;  %v2077_v20 = vmul.f32 0.5, %v4586_v60 }
 0x1f9   : > { %v2423_v61 = vadd.f32 %v2809_v10, %v2327_v50  ;;  %v2330_v0 = vmul.f32 %v2298_v45, %v2074_v29  ;;  %3539 = vtanh.f32 %v2236_v17  ;;  %v2821_v53 = vunpack.c.l.bf16 %v2837_v28 }
 0x1fa   : > { %v3534_v2 = vpop.eup %3533  ;;  %2489 = vst [vmem:[%s4322_s21 + $0xd0] sm:$0xff] %v2457_v18  ;;  %3541 = vtanh.f32 %v2238_v13  ;;  %v2075_v8 = vmul.f32 0.5, %v4588_v5  ;;  %v2817_v16 = vunpack.c.l.bf16 %v2836_v48  ;;  %v2076_v63 = vmul.f32 0.5, %v4603_v49 }
 0x1fb   : > { %v2455_v54 = vmax.f32 %v2423_v61, 0.0  ;;  %v2426_v30 = vadd.f32 %v2814_v56, %v2330_v0  ;;  %v2296_v41 = vadd.f32 1.0, %v3534_v2  ;;  %v2818_v60 = vunpack.c.h.bf16 %v2836_v48 }
 0x1fc   : > { %v2078_v59 = vmul.f32 0.5, %v4610_v52  ;;  %v2822_v3 = vunpack.c.h.bf16 %v2837_v28 }
 0x1fd   : > { %2487 = vst [vmem:[%s4322_s21 + $0xc0] sm:$0xff] %v2455_v54  ;;  %v2458_v44 = vmax.f32 %v2426_v30, 0.0  ;;  %v2328_v38 = vmul.f32 %v2296_v41, %v2072_v1 }
 0x1ff   : > { %2490 = vst [vmem:[%s4322_s21 + $0xd8] sm:$0xff] %v2458_v44  ;;  %v2424_v57 = vadd.f32 %v2810_v51, %v2328_v38 }
 0x201   : > { %v3536_v14 = vpop.eup %3535  ;;  %v2456_v33 = vmax.f32 %v2424_v57, 0.0 }
 0x202   : > { %v3538_v55 = vpop.eup %3537  ;;  %v2301_v4 = vadd.f32 1.0, %v3536_v14 }
 0x203   : > { %2488 = vst [vmem:[%s4322_s21 + $0xc8] sm:$0xff] %v2456_v33  ;;  %v2299_v62 = vadd.f32 1.0, %v3538_v55 }
 0x204   : > { %v2333_v24 = vmul.f32 %v2301_v4, %v2077_v20 }
 0x205   : > { %v2331_v39 = vmul.f32 %v2299_v62, %v2075_v8 }
 0x206   : > { %v3540_v11 = vpop.eup %3539  ;;  %v2429_v12 = vadd.f32 %v2821_v53, %v2333_v24 }
 0x207   : > { %v3542_v47 = vpop.eup %3541  ;;  %v2427_v9 = vadd.f32 %v2817_v16, %v2331_v39  ;;  %v2300_v23 = vadd.f32 1.0, %v3540_v11 }
 0x208   : > { %v2461_v36 = vmax.f32 %v2429_v12, 0.0  ;;  %v2302_v5 = vadd.f32 1.0, %v3542_v47 }
 0x209   : > { %v2459_v22 = vmax.f32 %v2427_v9, 0.0  ;;  %v2332_v31 = vmul.f32 %v2300_v23, %v2076_v63 }
 0x20a   : > { %2493 = vst [vmem:[%s4322_s21 + $0xf0] sm:$0xff] %v2461_v36  ;;  %v2334_v58 = vmul.f32 %v2302_v5, %v2078_v59 }
 0x20b   : > { %2491 = vst [vmem:[%s4322_s21 + $0xe0] sm:$0xff] %v2459_v22  ;;  %v2428_v15 = vadd.f32 %v2818_v60, %v2332_v31 }
 0x20c   : > { %v2430_v21 = vadd.f32 %v2822_v3, %v2334_v58 }
 0x20d   : > { %v2460_v32 = vmax.f32 %v2428_v15, 0.0 }
 0x20e   : > { %v2462_v10 = vmax.f32 %v2430_v21, 0.0 }
 0x20f   : > { %2492 = vst [vmem:[%s4322_s21 + $0xe8] sm:$0xff] %v2460_v32 }
 0x210   : > { %2494 = vst [vmem:[%s4322_s21 + $0xf8] sm:$0xff] %v2462_v10 }
 0x211 PF: > { %s14_s15 = sadd.s32 1, %s3549_s15  }
 0x212   : > { %p11_p4 = scmp.ge.s32.totalorder %s14_s15, 4  }
 0x214   :  { %13 = sbr.rel (!%p11_p4) target bundleno = 1 (0x1), region = 69 }

</bundles_post_ra>
